<compile_context>
chip_gen: v6e
topology: v6e:2x2x1
jax: 0.10.0
libtpu: 0.0.40
codegen_flags: <defaults>
</compile_context>

<pallas_src>
import functools

import jax
import jax.numpy as jnp
from jax.experimental import pallas as pl
from jax.experimental.pallas import tpu as pltpu


_ACT_DTYPE = jnp.bfloat16          # inter-layer activations / MXU operands
_BN_EPS = 1e-5
_VMEM_LIMIT = 48 * 1024 * 1024     # above 16/32 MiB scoped defaults, < v7x 64 MiB


def _cparams():
    return pltpu.CompilerParams(dimension_semantics=("parallel",),
                                vmem_limit_bytes=_VMEM_LIMIT)


# ----------------------------------------------------------------------------
# Pallas kernels
# ----------------------------------------------------------------------------
def _stem_maxpool_kernel(x_ref, w_ref, s_ref, b_ref, o_ref):
    """Fused Conv1d(1->64,k=7,s=2,p=3) + BN + ReLU + MaxPool1d(k=3,s=2,p=1).

    x_ref: (1, Q, 4) f32 where row i holds x[4i:4i+4]   (Q = L // 4)
    w_ref: (7, 64) f32 taps; s_ref/b_ref: (1, 64) f32 folded BN
    o_ref: (1, Q, 64)       (maxpool output, length L // 4)
    """
    xv = x_ref[...][0]                                     # (Q, 4) f32
    zrow = jnp.zeros((1, 4), jnp.float32)
    prev = jnp.concatenate([zrow, xv[:-1, :]], axis=0)     # row i-1 (zero pad)
    nxt = jnp.concatenate([xv[1:, :], zrow], axis=0)       # row i+1 (zero pad)
    w = w_ref[...]                                         # (7, 64)
    # Stem output y[m] = sum_k W[k] * x[2m + k - 3]; split by output parity so
    # the following stride-2 maxpool needs no strided access:
    #   y_even[i] = y[2i]   uses x[4i-3 .. 4i+3]
    #   y_odd[i]  = y[2i+1] uses x[4i-1 .. 4i+5]
    even_taps = (prev[:, 1:2], prev[:, 2:3], prev[:, 3:4],
                 xv[:, 0:1], xv[:, 1:2], xv[:, 2:3], xv[:, 3:4])
    odd_taps = (prev[:, 3:4], xv[:, 0:1], xv[:, 1:2], xv[:, 2:3],
                xv[:, 3:4], nxt[:, 0:1], nxt[:, 1:2])
    q = xv.shape[0]
    ye = jnp.zeros((q, 64), jnp.float32)
    yo = jnp.zeros((q, 64), jnp.float32)
    for k in range(7):                                     # VPU broadcast MAdds
        wk = w[k:k + 1, :]                                 # (1, 64)
        ye = ye + even_taps[k] * wk
        yo = yo + odd_taps[k] * wk
    scale = s_ref[...]
    bias = b_ref[...]
    ye = jnp.maximum(ye * scale + bias, 0.0)
    yo = jnp.maximum(yo * scale + bias, 0.0)
    # MaxPool1d(3,2,1): out[j] = max(y[2j-1], y[2j], y[2j+1]); post-ReLU values
    # are >= 0, so a zero edge pad is equivalent to the -inf pad.
    yo_prev = jnp.concatenate(
        [jnp.zeros((1, 64), jnp.float32), yo[:-1, :]], axis=0)
    out = jnp.maximum(jnp.maximum(yo_prev, ye), yo)
    o_ref[...] = out[None].astype(o_ref.dtype)


def _conv3_s1_kernel(*refs, has_res, avg_pool):
    """Conv1d(k=3,s=1,p=1) + folded BN (+ residual) + ReLU (+ mean over L).

    Single MXU contraction: the (L, 3*Cin) im2col window is built in-kernel
    (lane concat of three shifted copies) and dotted with the (3*Cin, Cout)
    weight; BN/residual/ReLU (and the optional adaptive avg-pool of the very
    last layer) live in the f32 epilogue.
    """
    if has_res:
        x_ref, w_ref, s_ref, b_ref, r_ref, o_ref = refs
    else:
        x_ref, w_ref, s_ref, b_ref, o_ref = refs
        r_ref = None
    xv = x_ref[...][0]                                     # (L, Cin) bf16
    cin = xv.shape[1]
    z = jnp.zeros((1, cin), xv.dtype)
    x_prev = jnp.concatenate([z, xv[:-1, :]], axis=0)      # x[l-1] (zero pad)
    x_next = jnp.concatenate([xv[1:, :], z], axis=0)       # x[l+1] (zero pad)
    cols = jnp.concatenate([x_prev, xv, x_next], axis=1)   # (L, 3*Cin)
    acc = jnp.dot(cols, w_ref[...], preferred_element_type=jnp.float32)
    acc = acc * s_ref[...] + b_ref[...]                    # folded BatchNorm
    if has_res:
        acc = acc + r_ref[...][0].astype(jnp.float32)      # residual add
    acc = jnp.maximum(acc, 0.0)                            # ReLU
    if avg_pool:                                           # fused AdaptiveAvgPool1d(1)
        o_ref[...] = jnp.mean(acc, axis=0, keepdims=True)[None].astype(o_ref.dtype)
    else:
        o_ref[...] = acc[None].astype(o_ref.dtype)


def _transition_kernel(x_ref, w1_ref, s1_ref, b1_ref, wd_ref, sd_ref, bd_ref,
                       o_ref, id_ref, *, cin):
    """Stride-2 first conv of a BasicBlock fused with its 1x1 downsample.

    x_ref is the previous layer's output free-reshaped to (1, L/2, 2*Cin):
    lanes [0:Cin] hold even timesteps, [Cin:2Cin] odd timesteps, so all the
    stride-2 taps become unit-stride row shifts (no strided loads).
    Outputs: conv1+BN+ReLU (o_ref) and the 1x1 downsample+BN identity (id_ref).
    """
    xv = x_ref[...][0]                                     # (Lh, 2*Cin)
    xe = xv[:, :cin]                                       # x[2j]
    xo = xv[:, cin:]                                       # x[2j+1]
    z = jnp.zeros((1, cin), xv.dtype)
    xo_prev = jnp.concatenate([z, xo[:-1, :]], axis=0)     # x[2j-1] (zero pad)
    cols = jnp.concatenate([xo_prev, xe, xo], axis=1)      # (Lh, 3*Cin)
    acc = jnp.dot(cols, w1_ref[...], preferred_element_type=jnp.float32)
    acc = jnp.maximum(acc * s1_ref[...] + b1_ref[...], 0.0)
    o_ref[...] = acc[None].astype(o_ref.dtype)
    # Identity path: 1x1 stride-2 conv + BN (no ReLU) on the same resident x.
    ident = jnp.dot(xe, wd_ref[...], preferred_element_type=jnp.float32)
    ident = ident * sd_ref[...] + bd_ref[...]
    id_ref[...] = ident[None].astype(id_ref.dtype)


# ----------------------------------------------------------------------------
# Pallas-backed ops (wrappers)
# ----------------------------------------------------------------------------
def stem_maxpool(x, w, scale, bias):
    """x: (N, L) f32 -> (N, L//4, 64) bf16 (stem conv+BN+ReLU+maxpool fused)."""
    n, l = x.shape
    assert l % 4 == 0, "sequence length must be a multiple of 4"
    q = l // 4
    x4 = x.reshape(n, q, 4).astype(jnp.float32)            # free contiguous reshape
    return pl.pallas_call(
        _stem_maxpool_kernel,
        out_shape=jax.ShapeDtypeStruct((n, q, 64), _ACT_DTYPE),
        grid=(n,),
        in_specs=[pl.BlockSpec((1, q, 4), lambda i: (i, 0, 0)),
                  pl.BlockSpec((7, 64), lambda i: (0, 0)),
                  pl.BlockSpec((1, 64), lambda i: (0, 0)),
                  pl.BlockSpec((1, 64), lambda i: (0, 0))],
        out_specs=pl.BlockSpec((1, q, 64), lambda i: (i, 0, 0)),
        compiler_params=_cparams(),
    )(x4, w, scale, bias)


def conv3_bn_relu(x, w, scale, bias, *, residual=None, avg_pool=False):
    """Conv1d(k=3,s=1,p=1,bias=False)+BN(+res)+ReLU(+global avg-pool)."""
    n, l, cin = x.shape
    cout = w.shape[-1]
    args = [x, w, scale, bias]
    in_specs = [pl.BlockSpec((1, l, cin), lambda i: (i, 0, 0)),
                pl.BlockSpec((3 * cin, cout), lambda i: (0, 0)),
                pl.BlockSpec((1, cout), lambda i: (0, 0)),
                pl.BlockSpec((1, cout), lambda i: (0, 0))]
    if residual is not None:
        in_specs.append(pl.BlockSpec((1, l, cout), lambda i: (i, 0, 0)))
        args.append(residual)
    if avg_pool:
        out_shape = jax.ShapeDtypeStruct((n, 1, cout), jnp.float32)
        out_spec = pl.BlockSpec((1, 1, cout), lambda i: (i, 0, 0))
    else:
        out_shape = jax.ShapeDtypeStruct((n, l, cout), _ACT_DTYPE)
        out_spec = pl.BlockSpec((1, l, cout), lambda i: (i, 0, 0))
    out = pl.pallas_call(
        functools.partial(_conv3_s1_kernel, has_res=residual is not None,
                          avg_pool=avg_pool),
        out_shape=out_shape,
        grid=(n,),
        in_specs=in_specs,
        out_specs=out_spec,
        compiler_params=_cparams(),
    )(*args)
    return out.reshape(n, cout) if avg_pool else out


def transition_convs(x, blk):
    """First conv (stride 2) of a downsampling block fused with its 1x1 path."""
    n, l, cin = x.shape
    assert blk["stride"] == 2 and blk["wd"] is not None
    assert l % 2 == 0, "sequence length must be even at stride-2 transitions"
    lh = l // 2
    cout = blk["w1"].shape[-1]
    x2 = x.reshape(n, lh, 2 * cin)                          # free contiguous reshape
    out_shapes = (jax.ShapeDtypeStruct((n, lh, cout), _ACT_DTYPE),
                  jax.ShapeDtypeStruct((n, lh, cout), _ACT_DTYPE))
    out_specs = (pl.BlockSpec((1, lh, cout), lambda i: (i, 0, 0)),
                 pl.BlockSpec((1, lh, cout), lambda i: (i, 0, 0)))
    return pl.pallas_call(
        functools.partial(_transition_kernel, cin=cin),
        out_shape=out_shapes,
        grid=(n,),
        in_specs=[pl.BlockSpec((1, lh, 2 * cin), lambda i: (i, 0, 0)),
                  pl.BlockSpec((3 * cin, cout), lambda i: (0, 0)),
                  pl.BlockSpec((1, cout), lambda i: (0, 0)),
                  pl.BlockSpec((1, cout), lambda i: (0, 0)),
                  pl.BlockSpec((cin, cout), lambda i: (0, 0)),
                  pl.BlockSpec((1, cout), lambda i: (0, 0)),
                  pl.BlockSpec((1, cout), lambda i: (0, 0))],
        out_specs=out_specs,
        compiler_params=_cparams(),
    )(x2, blk["w1"], blk["s1"], blk["b1"], blk["wd"], blk["sd"], blk["bd"])


# ----------------------------------------------------------------------------
# Parameter init (deterministic, synthetic)
# ----------------------------------------------------------------------------
def _conv_w(key, k, cin, cout, dtype=_ACT_DTYPE):
    w = jax.random.normal(key, (k, cin, cout), jnp.float32) / jnp.sqrt(
        jnp.float32(k * cin))
    return w.reshape(k * cin, cout).astype(dtype)           # taps folded along rows


def _bn_params(key, c):
    # eval-mode BN folded to scale/bias; running_mean=0, running_var=1.
    k1, k2 = jax.random.split(key)
    gamma = 1.0 + 0.1 * jax.random.normal(k1, (c,), jnp.float32)
    beta = 0.1 * jax.random.normal(k2, (c,), jnp.float32)
    mean = jnp.zeros((c,), jnp.float32)
    var = jnp.ones((c,), jnp.float32)
    scale = gamma / jnp.sqrt(var + _BN_EPS)
    bias = beta - mean * scale
    return scale.reshape(1, c), bias.reshape(1, c)


def init_params(key, layers=(1, 1, 1, 1)):
    keys = iter(jax.random.split(key, 64))
    params = {}
    params["stem_w"] = (jax.random.normal(next(keys), (7, 64), jnp.float32)
                        / jnp.sqrt(jnp.float32(7.0)))       # f32 VPU stem taps
    params["stem_s"], params["stem_b"] = _bn_params(next(keys), 64)
    in_planes = 64
    stages = []
    for planes, nblocks, stride in zip((64, 128, 256, 512), layers, (1, 2, 2, 2)):
        blocks = []
        for bi in range(nblocks):
            s = stride if bi == 0 else 1
            blk = {"stride": s}
            blk["w1"] = _conv_w(next(keys), 3, in_planes, planes)
            blk["s1"], blk["b1"] = _bn_params(next(keys), planes)
            blk["w2"] = _conv_w(next(keys), 3, planes, planes)
            blk["s2"], blk["b2"] = _bn_params(next(keys), planes)
            if s != 1 or in_planes != planes:
                blk["wd"] = _conv_w(next(keys), 1, in_planes, planes)
                blk["sd"], blk["bd"] = _bn_params(next(keys), planes)
            else:
                blk["wd"] = None
            blocks.append(blk)
            in_planes = planes
        stages.append(blocks)
    params["stages"] = stages
    return params


# ----------------------------------------------------------------------------
# Forward pass
# ----------------------------------------------------------------------------
def resnet1d_forward(params, x):
    # torch: x.unsqueeze(1) -> conv1/bn1/relu -> maxpool -> layer1..4
    #        -> AdaptiveAvgPool1d(1) -> flatten.
    # Here: stem+maxpool fused; per-block conv1(+downsample) and conv2(+res+relu)
    # are one kernel each; the final avg-pool is fused into the last conv2.
    h = stem_maxpool(x, params["stem_w"], params["stem_s"], params["stem_b"])
    blocks = [blk for stage in params["stages"] for blk in stage]
    for idx, blk in enumerate(blocks):
        is_last = idx == len(blocks) - 1
        if blk["wd"] is not None:                            # stride-2 downsampling block
            out, ident = transition_convs(h, blk)
        else:                                                # stride-1 block, identity res
            out = conv3_bn_relu(h, blk["w1"], blk["s1"], blk["b1"])
            ident = h
        h = conv3_bn_relu(out, blk["w2"], blk["s2"], blk["b2"],
                          residual=ident, avg_pool=is_last)
    return h                                                 # (N, 512) float32


# ----------------------------------------------------------------------------
if __name__ == "__main__":
    key = jax.random.PRNGKey(0)
    k_x, k_p = jax.random.split(key)
    batch, seq = 2, 64
    x = jax.random.normal(k_x, (batch, seq), jnp.float32)
    params = init_params(k_p, layers=(1, 1, 1, 1))

    fwd = jax.jit(lambda inp: resnet1d_forward(params, inp))
    out = jax.block_until_ready(fwd(x))
    assert out.shape == (batch, 512), out.shape
    assert bool(jnp.all(jnp.isfinite(out)))
    print("KERNEL_OK")
</pallas_src>

<mosaic_0001>
module attributes {stable_mosaic.version = 11 : i64} {
  func.func @_conv3_s1_kernel(%arg0: i32, %arg1: memref<1x16x64xbf16, #tpu.memory_space<vmem>>, %arg2: memref<192x64xbf16, #tpu.memory_space<vmem>>, %arg3: memref<1x64xf32, #tpu.memory_space<vmem>>, %arg4: memref<1x64xf32, #tpu.memory_space<vmem>>, %arg5: memref<1x16x64xbf16, #tpu.memory_space<vmem>>, %arg6: memref<1x16x64xbf16, #tpu.memory_space<vmem>>) attributes {dimension_semantics = [#tpu.dimension_semantics<parallel>], iteration_bounds = array<i64: 2>, scalar_prefetch = 0 : i64, scratch_operands = 0 : i64, tpu.core_type = #tpu.core_type<tc>, window_params = [{transform_indices = @transform_0, window_bounds = array<i64: 1, 16, 64>}, {pipeline_mode = #tpu.pipeline_mode<synchronous>, transform_indices = @transform_1, window_bounds = array<i64: 192, 64>}, {pipeline_mode = #tpu.pipeline_mode<synchronous>, transform_indices = @transform_2, window_bounds = array<i64: 1, 64>}, {pipeline_mode = #tpu.pipeline_mode<synchronous>, transform_indices = @transform_3, window_bounds = array<i64: 1, 64>}, {transform_indices = @transform_4, window_bounds = array<i64: 1, 16, 64>}, {transform_indices = @transform_5, window_bounds = array<i64: 1, 16, 64>}]} {
    %c0 = arith.constant 0 : index
    %c0_0 = arith.constant 0 : index
    %c0_1 = arith.constant 0 : index
    %0 = vector.load %arg1[%c0, %c0_0, %c0_1] : memref<1x16x64xbf16, #tpu.memory_space<vmem>>, vector<1x16x64xbf16>
    %1 = vector.shape_cast %0 : vector<1x16x64xbf16> to vector<16x64xbf16>
    %cst = arith.constant 0.000000e+00 : bf16
    %2 = vector.broadcast %cst : bf16 to vector<1x64xbf16>
    %3 = vector.extract_strided_slice %1 {offsets = [0, 0], sizes = [15, 64], strides = [1, 1]} : vector<16x64xbf16> to vector<15x64xbf16>
    %4 = tpu.concatenate %2, %3 in 0 : vector<1x64xbf16>, vector<15x64xbf16> -> vector<16x64xbf16>
    %5 = vector.extract_strided_slice %1 {offsets = [1, 0], sizes = [15, 64], strides = [1, 1]} : vector<16x64xbf16> to vector<15x64xbf16>
    %6 = tpu.concatenate %5, %2 in 0 : vector<15x64xbf16>, vector<1x64xbf16> -> vector<16x64xbf16>
    %7 = tpu.concatenate %4, %1, %6 in 1 : vector<16x64xbf16>, vector<16x64xbf16>, vector<16x64xbf16> -> vector<16x192xbf16>
    %c0_2 = arith.constant 0 : index
    %c0_3 = arith.constant 0 : index
    %8 = vector.load %arg2[%c0_2, %c0_3] : memref<192x64xbf16, #tpu.memory_space<vmem>>, vector<192x64xbf16>
    %cst_4 = arith.constant dense<0.000000e+00> : vector<16x64xf32>
    %9 = tpu.matmul %7, %8, %cst_4 {dimension_numbers = #tpu.dot_dimension_numbers<[1], [0], [0], [1], [0, 0, 1, 1], [], []>} : vector<16x192xbf16>, vector<192x64xbf16>, vector<16x64xf32> -> vector<16x64xf32>
    %c0_5 = arith.constant 0 : index
    %c0_6 = arith.constant 0 : index
    %10 = vector.load %arg3[%c0_5, %c0_6] : memref<1x64xf32, #tpu.memory_space<vmem>>, vector<1x64xf32>
    %11 = vector.broadcast %10 : vector<1x64xf32> to vector<16x64xf32>
    %12 = arith.mulf %9, %11 : vector<16x64xf32>
    %c0_7 = arith.constant 0 : index
    %c0_8 = arith.constant 0 : index
    %13 = vector.load %arg4[%c0_7, %c0_8] : memref<1x64xf32, #tpu.memory_space<vmem>>, vector<1x64xf32>
    %14 = vector.broadcast %13 : vector<1x64xf32> to vector<16x64xf32>
    %15 = arith.addf %12, %14 : vector<16x64xf32>
    %c0_9 = arith.constant 0 : index
    %c0_10 = arith.constant 0 : index
    %c0_11 = arith.constant 0 : index
    %16 = vector.load %arg5[%c0_9, %c0_10, %c0_11] : memref<1x16x64xbf16, #tpu.memory_space<vmem>>, vector<1x16x64xbf16>
    %17 = vector.shape_cast %16 : vector<1x16x64xbf16> to vector<16x64xbf16>
    %18 = arith.extf %17 : vector<16x64xbf16> to vector<16x64xf32>
    %19 = arith.addf %15, %18 : vector<16x64xf32>
    %cst_12 = arith.constant 0.000000e+00 : f32
    %20 = vector.broadcast %cst_12 : f32 to vector<16x64xf32>
    %21 = arith.maximumf %19, %20 : vector<16x64xf32>
    %22 = vector.shape_cast %21 : vector<16x64xf32> to vector<1x16x64xf32>
    %23 = arith.truncf %22 : vector<1x16x64xf32> to vector<1x16x64xbf16>
    %c0_13 = arith.constant 0 : index
    %c0_14 = arith.constant 0 : index
    %c0_15 = arith.constant 0 : index
    %24 = vector.load %arg6[%c0_13, %c0_14, %c0_15] : memref<1x16x64xbf16, #tpu.memory_space<vmem>>, vector<1x16x64xbf16>
    tpu.vector_store %arg6[%c0_13, %c0_14, %c0_15], %23 {strides = array<i32>} : memref<1x16x64xbf16, #tpu.memory_space<vmem>>, vector<1x16x64xbf16>,
    return
  }
  func.func @transform_0(%arg0: i32) -> (i32, i32, i32) {
    %c0_i32 = arith.constant 0 : i32
    %c0_i32_0 = arith.constant 0 : i32
    %c0_i32_1 = arith.constant 0 : i32
    return %arg0, %c0_i32, %c0_i32_0 : i32, i32, i32
  }
  func.func @transform_1(%arg0: i32) -> (i32, i32) {
    %c0_i32 = arith.constant 0 : i32
    %c0_i32_0 = arith.constant 0 : i32
    %c0_i32_1 = arith.constant 0 : i32
    return %c0_i32, %c0_i32_0 : i32, i32
  }
  func.func @transform_2(%arg0: i32) -> (i32, i32) {
    %c0_i32 = arith.constant 0 : i32
    %c0_i32_0 = arith.constant 0 : i32
    %c0_i32_1 = arith.constant 0 : i32
    return %c0_i32, %c0_i32_0 : i32, i32
  }
  func.func @transform_3(%arg0: i32) -> (i32, i32) {
    %c0_i32 = arith.constant 0 : i32
    %c0_i32_0 = arith.constant 0 : i32
    %c0_i32_1 = arith.constant 0 : i32
    return %c0_i32, %c0_i32_0 : i32, i32
  }
  func.func @transform_4(%arg0: i32) -> (i32, i32, i32) {
    %c0_i32 = arith.constant 0 : i32
    %c0_i32_0 = arith.constant 0 : i32
    %c0_i32_1 = arith.constant 0 : i32
    return %arg0, %c0_i32, %c0_i32_0 : i32, i32, i32
  }
  func.func @transform_5(%arg0: i32) -> (i32, i32, i32) {
    %c0_i32 = arith.constant 0 : i32
    %c0_i32_0 = arith.constant 0 : i32
    %c0_i32_1 = arith.constant 0 : i32
    return %arg0, %c0_i32, %c0_i32_0 : i32, i32, i32
  }
}

module attributes {stable_mosaic.version = 11 : i64} {
  func.func @_conv3_s1_kernel(%arg0: i32, %arg1: memref<1x16x64xbf16, #tpu.memory_space<vmem>>, %arg2: memref<192x64xbf16, #tpu.memory_space<vmem>>, %arg3: memref<1x64xf32, #tpu.memory_space<vmem>>, %arg4: memref<1x64xf32, #tpu.memory_space<vmem>>, %arg5: memref<1x16x64xbf16, #tpu.memory_space<vmem>>) attributes {dimension_semantics = [#tpu.dimension_semantics<parallel>], iteration_bounds = array<i64: 2>, scalar_prefetch = 0 : i64, scratch_operands = 0 : i64, tpu.core_type = #tpu.core_type<tc>, window_params = [{transform_indices = @transform_0, window_bounds = array<i64: 1, 16, 64>}, {pipeline_mode = #tpu.pipeline_mode<synchronous>, transform_indices = @transform_1, window_bounds = array<i64: 192, 64>}, {pipeline_mode = #tpu.pipeline_mode<synchronous>, transform_indices = @transform_2, window_bounds = array<i64: 1, 64>}, {pipeline_mode = #tpu.pipeline_mode<synchronous>, transform_indices = @transform_3, window_bounds = array<i64: 1, 64>}, {transform_indices = @transform_4, window_bounds = array<i64: 1, 16, 64>}]} {
    %c0 = arith.constant 0 : index
    %c0_0 = arith.constant 0 : index
    %c0_1 = arith.constant 0 : index
    %0 = vector.load %arg1[%c0, %c0_0, %c0_1] : memref<1x16x64xbf16, #tpu.memory_space<vmem>>, vector<1x16x64xbf16>
    %1 = vector.shape_cast %0 : vector<1x16x64xbf16> to vector<16x64xbf16>
    %cst = arith.constant 0.000000e+00 : bf16
    %2 = vector.broadcast %cst : bf16 to vector<1x64xbf16>
    %3 = vector.extract_strided_slice %1 {offsets = [0, 0], sizes = [15, 64], strides = [1, 1]} : vector<16x64xbf16> to vector<15x64xbf16>
    %4 = tpu.concatenate %2, %3 in 0 : vector<1x64xbf16>, vector<15x64xbf16> -> vector<16x64xbf16>
    %5 = vector.extract_strided_slice %1 {offsets = [1, 0], sizes = [15, 64], strides = [1, 1]} : vector<16x64xbf16> to vector<15x64xbf16>
    %6 = tpu.concatenate %5, %2 in 0 : vector<15x64xbf16>, vector<1x64xbf16> -> vector<16x64xbf16>
    %7 = tpu.concatenate %4, %1, %6 in 1 : vector<16x64xbf16>, vector<16x64xbf16>, vector<16x64xbf16> -> vector<16x192xbf16>
    %c0_2 = arith.constant 0 : index
    %c0_3 = arith.constant 0 : index
    %8 = vector.load %arg2[%c0_2, %c0_3] : memref<192x64xbf16, #tpu.memory_space<vmem>>, vector<192x64xbf16>
    %cst_4 = arith.constant dense<0.000000e+00> : vector<16x64xf32>
    %9 = tpu.matmul %7, %8, %cst_4 {dimension_numbers = #tpu.dot_dimension_numbers<[1], [0], [0], [1], [0, 0, 1, 1], [], []>} : vector<16x192xbf16>, vector<192x64xbf16>, vector<16x64xf32> -> vector<16x64xf32>
    %c0_5 = arith.constant 0 : index
    %c0_6 = arith.constant 0 : index
    %10 = vector.load %arg3[%c0_5, %c0_6] : memref<1x64xf32, #tpu.memory_space<vmem>>, vector<1x64xf32>
    %11 = vector.broadcast %10 : vector<1x64xf32> to vector<16x64xf32>
    %12 = arith.mulf %9, %11 : vector<16x64xf32>
    %c0_7 = arith.constant 0 : index
    %c0_8 = arith.constant 0 : index
    %13 = vector.load %arg4[%c0_7, %c0_8] : memref<1x64xf32, #tpu.memory_space<vmem>>, vector<1x64xf32>
    %14 = vector.broadcast %13 : vector<1x64xf32> to vector<16x64xf32>
    %15 = arith.addf %12, %14 : vector<16x64xf32>
    %cst_9 = arith.constant 0.000000e+00 : f32
    %16 = vector.broadcast %cst_9 : f32 to vector<16x64xf32>
    %17 = arith.maximumf %15, %16 : vector<16x64xf32>
    %18 = vector.shape_cast %17 : vector<16x64xf32> to vector<1x16x64xf32>
    %19 = arith.truncf %18 : vector<1x16x64xf32> to vector<1x16x64xbf16>
    %c0_10 = arith.constant 0 : index
    %c0_11 = arith.constant 0 : index
    %c0_12 = arith.constant 0 : index
    %20 = vector.load %arg5[%c0_10, %c0_11, %c0_12] : memref<1x16x64xbf16, #tpu.memory_space<vmem>>, vector<1x16x64xbf16>
    tpu.vector_store %arg5[%c0_10, %c0_11, %c0_12], %19 {strides = array<i32>} : memref<1x16x64xbf16, #tpu.memory_space<vmem>>, vector<1x16x64xbf16>,
    return
  }
  func.func @transform_0(%arg0: i32) -> (i32, i32, i32) {
    %c0_i32 = arith.constant 0 : i32
    %c0_i32_0 = arith.constant 0 : i32
    %c0_i32_1 = arith.constant 0 : i32
    return %arg0, %c0_i32, %c0_i32_0 : i32, i32, i32
  }
  func.func @transform_1(%arg0: i32) -> (i32, i32) {
    %c0_i32 = arith.constant 0 : i32
    %c0_i32_0 = arith.constant 0 : i32
    %c0_i32_1 = arith.constant 0 : i32
    return %c0_i32, %c0_i32_0 : i32, i32
  }
  func.func @transform_2(%arg0: i32) -> (i32, i32) {
    %c0_i32 = arith.constant 0 : i32
    %c0_i32_0 = arith.constant 0 : i32
    %c0_i32_1 = arith.constant 0 : i32
    return %c0_i32, %c0_i32_0 : i32, i32
  }
  func.func @transform_3(%arg0: i32) -> (i32, i32) {
    %c0_i32 = arith.constant 0 : i32
    %c0_i32_0 = arith.constant 0 : i32
    %c0_i32_1 = arith.constant 0 : i32
    return %c0_i32, %c0_i32_0 : i32, i32
  }
  func.func @transform_4(%arg0: i32) -> (i32, i32, i32) {
    %c0_i32 = arith.constant 0 : i32
    %c0_i32_0 = arith.constant 0 : i32
    %c0_i32_1 = arith.constant 0 : i32
    return %arg0, %c0_i32, %c0_i32_0 : i32, i32, i32
  }
}

module attributes {stable_mosaic.version = 11 : i64} {
  func.func @_stem_maxpool_kernel(%arg0: i32, %arg1: memref<1x16x4xf32, #tpu.memory_space<vmem>>, %arg2: memref<7x64xf32, #tpu.memory_space<vmem>>, %arg3: memref<1x64xf32, #tpu.memory_space<vmem>>, %arg4: memref<1x64xf32, #tpu.memory_space<vmem>>, %arg5: memref<1x16x64xbf16, #tpu.memory_space<vmem>>) attributes {dimension_semantics = [#tpu.dimension_semantics<parallel>], iteration_bounds = array<i64: 2>, scalar_prefetch = 0 : i64, scratch_operands = 0 : i64, tpu.core_type = #tpu.core_type<tc>, window_params = [{transform_indices = @transform_0, window_bounds = array<i64: 1, 16, 4>}, {pipeline_mode = #tpu.pipeline_mode<synchronous>, transform_indices = @transform_1, window_bounds = array<i64: 7, 64>}, {pipeline_mode = #tpu.pipeline_mode<synchronous>, transform_indices = @transform_2, window_bounds = array<i64: 1, 64>}, {pipeline_mode = #tpu.pipeline_mode<synchronous>, transform_indices = @transform_3, window_bounds = array<i64: 1, 64>}, {transform_indices = @transform_4, window_bounds = array<i64: 1, 16, 64>}]} {
    %c0 = arith.constant 0 : index
    %c0_0 = arith.constant 0 : index
    %c0_1 = arith.constant 0 : index
    %0 = vector.load %arg1[%c0, %c0_0, %c0_1] : memref<1x16x4xf32, #tpu.memory_space<vmem>>, vector<1x16x4xf32>
    %1 = vector.shape_cast %0 : vector<1x16x4xf32> to vector<16x4xf32>
    %cst = arith.constant 0.000000e+00 : f32
    %2 = vector.broadcast %cst : f32 to vector<1x4xf32>
    %3 = vector.extract_strided_slice %1 {offsets = [0, 0], sizes = [15, 4], strides = [1, 1]} : vector<16x4xf32> to vector<15x4xf32>
    %4 = tpu.concatenate %2, %3 in 0 : vector<1x4xf32>, vector<15x4xf32> -> vector<16x4xf32>
    %5 = vector.extract_strided_slice %1 {offsets = [1, 0], sizes = [15, 4], strides = [1, 1]} : vector<16x4xf32> to vector<15x4xf32>
    %6 = tpu.concatenate %5, %2 in 0 : vector<15x4xf32>, vector<1x4xf32> -> vector<16x4xf32>
    %c0_2 = arith.constant 0 : index
    %c0_3 = arith.constant 0 : index
    %7 = vector.load %arg2[%c0_2, %c0_3] : memref<7x64xf32, #tpu.memory_space<vmem>>, vector<7x64xf32>
    %8 = vector.extract_strided_slice %4 {offsets = [0, 1], sizes = [16, 1], strides = [1, 1]} : vector<16x4xf32> to vector<16x1xf32>
    %9 = vector.extract_strided_slice %4 {offsets = [0, 2], sizes = [16, 1], strides = [1, 1]} : vector<16x4xf32> to vector<16x1xf32>
    %10 = vector.extract_strided_slice %4 {offsets = [0, 3], sizes = [16, 1], strides = [1, 1]} : vector<16x4xf32> to vector<16x1xf32>
    %11 = vector.extract_strided_slice %1 {offsets = [0, 0], sizes = [16, 1], strides = [1, 1]} : vector<16x4xf32> to vector<16x1xf32>
    %12 = vector.extract_strided_slice %1 {offsets = [0, 1], sizes = [16, 1], strides = [1, 1]} : vector<16x4xf32> to vector<16x1xf32>
    %13 = vector.extract_strided_slice %1 {offsets = [0, 2], sizes = [16, 1], strides = [1, 1]} : vector<16x4xf32> to vector<16x1xf32>
    %14 = vector.extract_strided_slice %1 {offsets = [0, 3], sizes = [16, 1], strides = [1, 1]} : vector<16x4xf32> to vector<16x1xf32>
    %15 = vector.extract_strided_slice %4 {offsets = [0, 3], sizes = [16, 1], strides = [1, 1]} : vector<16x4xf32> to vector<16x1xf32>
    %16 = vector.extract_strided_slice %1 {offsets = [0, 0], sizes = [16, 1], strides = [1, 1]} : vector<16x4xf32> to vector<16x1xf32>
    %17 = vector.extract_strided_slice %1 {offsets = [0, 1], sizes = [16, 1], strides = [1, 1]} : vector<16x4xf32> to vector<16x1xf32>
    %18 = vector.extract_strided_slice %1 {offsets = [0, 2], sizes = [16, 1], strides = [1, 1]} : vector<16x4xf32> to vector<16x1xf32>
    %19 = vector.extract_strided_slice %1 {offsets = [0, 3], sizes = [16, 1], strides = [1, 1]} : vector<16x4xf32> to vector<16x1xf32>
    %20 = vector.extract_strided_slice %6 {offsets = [0, 0], sizes = [16, 1], strides = [1, 1]} : vector<16x4xf32> to vector<16x1xf32>
    %21 = vector.extract_strided_slice %6 {offsets = [0, 1], sizes = [16, 1], strides = [1, 1]} : vector<16x4xf32> to vector<16x1xf32>
    %cst_4 = arith.constant 0.000000e+00 : f32
    %22 = vector.broadcast %cst_4 : f32 to vector<16x64xf32>
    %cst_5 = arith.constant 0.000000e+00 : f32
    %23 = vector.broadcast %cst_5 : f32 to vector<16x64xf32>
    %24 = vector.extract_strided_slice %7 {offsets = [0, 0], sizes = [1, 64], strides = [1, 1]} : vector<7x64xf32> to vector<1x64xf32>
    %25 = vector.broadcast %8 : vector<16x1xf32> to vector<16x64xf32>
    %26 = vector.broadcast %24 : vector<1x64xf32> to vector<16x64xf32>
    %27 = arith.mulf %25, %26 : vector<16x64xf32>
    %28 = arith.addf %22, %27 : vector<16x64xf32>
    %29 = vector.broadcast %15 : vector<16x1xf32> to vector<16x64xf32>
    %30 = vector.broadcast %24 : vector<1x64xf32> to vector<16x64xf32>
    %31 = arith.mulf %29, %30 : vector<16x64xf32>
    %32 = arith.addf %23, %31 : vector<16x64xf32>
    %33 = vector.extract_strided_slice %7 {offsets = [1, 0], sizes = [1, 64], strides = [1, 1]} : vector<7x64xf32> to vector<1x64xf32>
    %34 = vector.broadcast %9 : vector<16x1xf32> to vector<16x64xf32>
    %35 = vector.broadcast %33 : vector<1x64xf32> to vector<16x64xf32>
    %36 = arith.mulf %34, %35 : vector<16x64xf32>
    %37 = arith.addf %28, %36 : vector<16x64xf32>
    %38 = vector.broadcast %16 : vector<16x1xf32> to vector<16x64xf32>
    %39 = vector.broadcast %33 : vector<1x64xf32> to vector<16x64xf32>
    %40 = arith.mulf %38, %39 : vector<16x64xf32>
    %41 = arith.addf %32, %40 : vector<16x64xf32>
    %42 = vector.extract_strided_slice %7 {offsets = [2, 0], sizes = [1, 64], strides = [1, 1]} : vector<7x64xf32> to vector<1x64xf32>
    %43 = vector.broadcast %10 : vector<16x1xf32> to vector<16x64xf32>
    %44 = vector.broadcast %42 : vector<1x64xf32> to vector<16x64xf32>
    %45 = arith.mulf %43, %44 : vector<16x64xf32>
    %46 = arith.addf %37, %45 : vector<16x64xf32>
    %47 = vector.broadcast %17 : vector<16x1xf32> to vector<16x64xf32>
    %48 = vector.broadcast %42 : vector<1x64xf32> to vector<16x64xf32>
    %49 = arith.mulf %47, %48 : vector<16x64xf32>
    %50 = arith.addf %41, %49 : vector<16x64xf32>
    %51 = vector.extract_strided_slice %7 {offsets = [3, 0], sizes = [1, 64], strides = [1, 1]} : vector<7x64xf32> to vector<1x64xf32>
    %52 = vector.broadcast %11 : vector<16x1xf32> to vector<16x64xf32>
    %53 = vector.broadcast %51 : vector<1x64xf32> to vector<16x64xf32>
    %54 = arith.mulf %52, %53 : vector<16x64xf32>
    %55 = arith.addf %46, %54 : vector<16x64xf32>
    %56 = vector.broadcast %18 : vector<16x1xf32> to vector<16x64xf32>
    %57 = vector.broadcast %51 : vector<1x64xf32> to vector<16x64xf32>
    %58 = arith.mulf %56, %57 : vector<16x64xf32>
    %59 = arith.addf %50, %58 : vector<16x64xf32>
    %60 = vector.extract_strided_slice %7 {offsets = [4, 0], sizes = [1, 64], strides = [1, 1]} : vector<7x64xf32> to vector<1x64xf32>
    %61 = vector.broadcast %12 : vector<16x1xf32> to vector<16x64xf32>
    %62 = vector.broadcast %60 : vector<1x64xf32> to vector<16x64xf32>
    %63 = arith.mulf %61, %62 : vector<16x64xf32>
    %64 = arith.addf %55, %63 : vector<16x64xf32>
    %65 = vector.broadcast %19 : vector<16x1xf32> to vector<16x64xf32>
    %66 = vector.broadcast %60 : vector<1x64xf32> to vector<16x64xf32>
    %67 = arith.mulf %65, %66 : vector<16x64xf32>
    %68 = arith.addf %59, %67 : vector<16x64xf32>
    %69 = vector.extract_strided_slice %7 {offsets = [5, 0], sizes = [1, 64], strides = [1, 1]} : vector<7x64xf32> to vector<1x64xf32>
    %70 = vector.broadcast %13 : vector<16x1xf32> to vector<16x64xf32>
    %71 = vector.broadcast %69 : vector<1x64xf32> to vector<16x64xf32>
    %72 = arith.mulf %70, %71 : vector<16x64xf32>
    %73 = arith.addf %64, %72 : vector<16x64xf32>
    %74 = vector.broadcast %20 : vector<16x1xf32> to vector<16x64xf32>
    %75 = vector.broadcast %69 : vector<1x64xf32> to vector<16x64xf32>
    %76 = arith.mulf %74, %75 : vector<16x64xf32>
    %77 = arith.addf %68, %76 : vector<16x64xf32>
    %78 = vector.extract_strided_slice %7 {offsets = [6, 0], sizes = [1, 64], strides = [1, 1]} : vector<7x64xf32> to vector<1x64xf32>
    %79 = vector.broadcast %14 : vector<16x1xf32> to vector<16x64xf32>
    %80 = vector.broadcast %78 : vector<1x64xf32> to vector<16x64xf32>
    %81 = arith.mulf %79, %80 : vector<16x64xf32>
    %82 = arith.addf %73, %81 : vector<16x64xf32>
    %83 = vector.broadcast %21 : vector<16x1xf32> to vector<16x64xf32>
    %84 = vector.broadcast %78 : vector<1x64xf32> to vector<16x64xf32>
    %85 = arith.mulf %83, %84 : vector<16x64xf32>
    %86 = arith.addf %77, %85 : vector<16x64xf32>
    %c0_6 = arith.constant 0 : index
    %c0_7 = arith.constant 0 : index
    %87 = vector.load %arg3[%c0_6, %c0_7] : memref<1x64xf32, #tpu.memory_space<vmem>>, vector<1x64xf32>
    %c0_8 = arith.constant 0 : index
    %c0_9 = arith.constant 0 : index
    %88 = vector.load %arg4[%c0_8, %c0_9] : memref<1x64xf32, #tpu.memory_space<vmem>>, vector<1x64xf32>
    %89 = vector.broadcast %87 : vector<1x64xf32> to vector<16x64xf32>
    %90 = arith.mulf %82, %89 : vector<16x64xf32>
    %91 = vector.broadcast %88 : vector<1x64xf32> to vector<16x64xf32>
    %92 = arith.addf %90, %91 : vector<16x64xf32>
    %cst_10 = arith.constant 0.000000e+00 : f32
    %93 = vector.broadcast %cst_10 : f32 to vector<16x64xf32>
    %94 = arith.maximumf %92, %93 : vector<16x64xf32>
    %95 = vector.broadcast %87 : vector<1x64xf32> to vector<16x64xf32>
    %96 = arith.mulf %86, %95 : vector<16x64xf32>
    %97 = vector.broadcast %88 : vector<1x64xf32> to vector<16x64xf32>
    %98 = arith.addf %96, %97 : vector<16x64xf32>
    %cst_11 = arith.constant 0.000000e+00 : f32
    %99 = vector.broadcast %cst_11 : f32 to vector<16x64xf32>
    %100 = arith.maximumf %98, %99 : vector<16x64xf32>
    %cst_12 = arith.constant 0.000000e+00 : f32
    %101 = vector.broadcast %cst_12 : f32 to vector<1x64xf32>
    %102 = vector.extract_strided_slice %100 {offsets = [0, 0], sizes = [15, 64], strides = [1, 1]} : vector<16x64xf32> to vector<15x64xf32>
    %103 = tpu.concatenate %101, %102 in 0 : vector<1x64xf32>, vector<15x64xf32> -> vector<16x64xf32>
    %104 = arith.maximumf %103, %94 : vector<16x64xf32>
    %105 = arith.maximumf %104, %100 : vector<16x64xf32>
    %106 = vector.shape_cast %105 : vector<16x64xf32> to vector<1x16x64xf32>
    %107 = arith.truncf %106 : vector<1x16x64xf32> to vector<1x16x64xbf16>
    %c0_13 = arith.constant 0 : index
    %c0_14 = arith.constant 0 : index
    %c0_15 = arith.constant 0 : index
    %108 = vector.load %arg5[%c0_13, %c0_14, %c0_15] : memref<1x16x64xbf16, #tpu.memory_space<vmem>>, vector<1x16x64xbf16>
    tpu.vector_store %arg5[%c0_13, %c0_14, %c0_15], %107 {strides = array<i32>} : memref<1x16x64xbf16, #tpu.memory_space<vmem>>, vector<1x16x64xbf16>,
    return
  }
  func.func @transform_0(%arg0: i32) -> (i32, i32, i32) {
    %c0_i32 = arith.constant 0 : i32
    %c0_i32_0 = arith.constant 0 : i32
    %c0_i32_1 = arith.constant 0 : i32
    return %arg0, %c0_i32, %c0_i32_0 : i32, i32, i32
  }
  func.func @transform_1(%arg0: i32) -> (i32, i32) {
    %c0_i32 = arith.constant 0 : i32
    %c0_i32_0 = arith.constant 0 : i32
    %c0_i32_1 = arith.constant 0 : i32
    return %c0_i32, %c0_i32_0 : i32, i32
  }
  func.func @transform_2(%arg0: i32) -> (i32, i32) {
    %c0_i32 = arith.constant 0 : i32
    %c0_i32_0 = arith.constant 0 : i32
    %c0_i32_1 = arith.constant 0 : i32
    return %c0_i32, %c0_i32_0 : i32, i32
  }
  func.func @transform_3(%arg0: i32) -> (i32, i32) {
    %c0_i32 = arith.constant 0 : i32
    %c0_i32_0 = arith.constant 0 : i32
    %c0_i32_1 = arith.constant 0 : i32
    return %c0_i32, %c0_i32_0 : i32, i32
  }
  func.func @transform_4(%arg0: i32) -> (i32, i32, i32) {
    %c0_i32 = arith.constant 0 : i32
    %c0_i32_0 = arith.constant 0 : i32
    %c0_i32_1 = arith.constant 0 : i32
    return %arg0, %c0_i32, %c0_i32_0 : i32, i32, i32
  }
}

module attributes {stable_mosaic.version = 11 : i64} {
  func.func @_transition_kernel(%arg0: i32, %arg1: memref<1x8x128xbf16, #tpu.memory_space<vmem>>, %arg2: memref<192x128xbf16, #tpu.memory_space<vmem>>, %arg3: memref<1x128xf32, #tpu.memory_space<vmem>>, %arg4: memref<1x128xf32, #tpu.memory_space<vmem>>, %arg5: memref<64x128xbf16, #tpu.memory_space<vmem>>, %arg6: memref<1x128xf32, #tpu.memory_space<vmem>>, %arg7: memref<1x128xf32, #tpu.memory_space<vmem>>, %arg8: memref<1x8x128xbf16, #tpu.memory_space<vmem>>, %arg9: memref<1x8x128xbf16, #tpu.memory_space<vmem>>) attributes {dimension_semantics = [#tpu.dimension_semantics<parallel>], iteration_bounds = array<i64: 2>, scalar_prefetch = 0 : i64, scratch_operands = 0 : i64, tpu.core_type = #tpu.core_type<tc>, window_params = [{transform_indices = @transform_0, window_bounds = array<i64: 1, 8, 128>}, {pipeline_mode = #tpu.pipeline_mode<synchronous>, transform_indices = @transform_1, window_bounds = array<i64: 192, 128>}, {pipeline_mode = #tpu.pipeline_mode<synchronous>, transform_indices = @transform_2, window_bounds = array<i64: 1, 128>}, {pipeline_mode = #tpu.pipeline_mode<synchronous>, transform_indices = @transform_3, window_bounds = array<i64: 1, 128>}, {pipeline_mode = #tpu.pipeline_mode<synchronous>, transform_indices = @transform_4, window_bounds = array<i64: 64, 128>}, {pipeline_mode = #tpu.pipeline_mode<synchronous>, transform_indices = @transform_5, window_bounds = array<i64: 1, 128>}, {pipeline_mode = #tpu.pipeline_mode<synchronous>, transform_indices = @transform_6, window_bounds = array<i64: 1, 128>}, {transform_indices = @transform_7, window_bounds = array<i64: 1, 8, 128>}, {transform_indices = @transform_8, window_bounds = array<i64: 1, 8, 128>}]} {
    %c0 = arith.constant 0 : index
    %c0_0 = arith.constant 0 : index
    %c0_1 = arith.constant 0 : index
    %0 = vector.load %arg1[%c0, %c0_0, %c0_1] : memref<1x8x128xbf16, #tpu.memory_space<vmem>>, vector<1x8x128xbf16>
    %1 = vector.shape_cast %0 : vector<1x8x128xbf16> to vector<8x128xbf16>
    %2 = vector.extract_strided_slice %1 {offsets = [0, 0], sizes = [8, 64], strides = [1, 1]} : vector<8x128xbf16> to vector<8x64xbf16>
    %3 = vector.extract_strided_slice %1 {offsets = [0, 64], sizes = [8, 64], strides = [1, 1]} : vector<8x128xbf16> to vector<8x64xbf16>
    %cst = arith.constant 0.000000e+00 : bf16
    %4 = vector.broadcast %cst : bf16 to vector<1x64xbf16>
    %5 = vector.extract_strided_slice %3 {offsets = [0, 0], sizes = [7, 64], strides = [1, 1]} : vector<8x64xbf16> to vector<7x64xbf16>
    %6 = tpu.concatenate %4, %5 in 0 : vector<1x64xbf16>, vector<7x64xbf16> -> vector<8x64xbf16>
    %7 = tpu.concatenate %6, %2, %3 in 1 : vector<8x64xbf16>, vector<8x64xbf16>, vector<8x64xbf16> -> vector<8x192xbf16>
    %c0_2 = arith.constant 0 : index
    %c0_3 = arith.constant 0 : index
    %8 = vector.load %arg2[%c0_2, %c0_3] : memref<192x128xbf16, #tpu.memory_space<vmem>>, vector<192x128xbf16>
    %cst_4 = arith.constant dense<0.000000e+00> : vector<8x128xf32>
    %9 = tpu.matmul %7, %8, %cst_4 {dimension_numbers = #tpu.dot_dimension_numbers<[1], [0], [0], [1], [0, 0, 1, 1], [], []>} : vector<8x192xbf16>, vector<192x128xbf16>, vector<8x128xf32> -> vector<8x128xf32>
    %c0_5 = arith.constant 0 : index
    %c0_6 = arith.constant 0 : index
    %10 = vector.load %arg3[%c0_5, %c0_6] : memref<1x128xf32, #tpu.memory_space<vmem>>, vector<1x128xf32>
    %11 = vector.broadcast %10 : vector<1x128xf32> to vector<8x128xf32>
    %12 = arith.mulf %9, %11 : vector<8x128xf32>
    %c0_7 = arith.constant 0 : index
    %c0_8 = arith.constant 0 : index
    %13 = vector.load %arg4[%c0_7, %c0_8] : memref<1x128xf32, #tpu.memory_space<vmem>>, vector<1x128xf32>
    %14 = vector.broadcast %13 : vector<1x128xf32> to vector<8x128xf32>
    %15 = arith.addf %12, %14 : vector<8x128xf32>
    %cst_9 = arith.constant 0.000000e+00 : f32
    %16 = vector.broadcast %cst_9 : f32 to vector<8x128xf32>
    %17 = arith.maximumf %15, %16 : vector<8x128xf32>
    %18 = vector.shape_cast %17 : vector<8x128xf32> to vector<1x8x128xf32>
    %19 = arith.truncf %18 : vector<1x8x128xf32> to vector<1x8x128xbf16>
    %c0_10 = arith.constant 0 : index
    %c0_11 = arith.constant 0 : index
    %c0_12 = arith.constant 0 : index
    %20 = vector.load %arg8[%c0_10, %c0_11, %c0_12] : memref<1x8x128xbf16, #tpu.memory_space<vmem>>, vector<1x8x128xbf16>
    tpu.vector_store %arg8[%c0_10, %c0_11, %c0_12], %19 {strides = array<i32>} : memref<1x8x128xbf16, #tpu.memory_space<vmem>>, vector<1x8x128xbf16>,
    %c0_13 = arith.constant 0 : index
    %c0_14 = arith.constant 0 : index
    %21 = vector.load %arg5[%c0_13, %c0_14] : memref<64x128xbf16, #tpu.memory_space<vmem>>, vector<64x128xbf16>
    %cst_15 = arith.constant dense<0.000000e+00> : vector<8x128xf32>
    %22 = tpu.matmul %2, %21, %cst_15 {dimension_numbers = #tpu.dot_dimension_numbers<[1], [0], [0], [1], [0, 0, 1, 1], [], []>} : vector<8x64xbf16>, vector<64x128xbf16>, vector<8x128xf32> -> vector<8x128xf32>
    %c0_16 = arith.constant 0 : index
    %c0_17 = arith.constant 0 : index
    %23 = vector.load %arg6[%c0_16, %c0_17] : memref<1x128xf32, #tpu.memory_space<vmem>>, vector<1x128xf32>
    %24 = vector.broadcast %23 : vector<1x128xf32> to vector<8x128xf32>
    %25 = arith.mulf %22, %24 : vector<8x128xf32>
    %c0_18 = arith.constant 0 : index
    %c0_19 = arith.constant 0 : index
    %26 = vector.load %arg7[%c0_18, %c0_19] : memref<1x128xf32, #tpu.memory_space<vmem>>, vector<1x128xf32>
    %27 = vector.broadcast %26 : vector<1x128xf32> to vector<8x128xf32>
    %28 = arith.addf %25, %27 : vector<8x128xf32>
    %29 = vector.shape_cast %28 : vector<8x128xf32> to vector<1x8x128xf32>
    %30 = arith.truncf %29 : vector<1x8x128xf32> to vector<1x8x128xbf16>
    %c0_20 = arith.constant 0 : index
    %c0_21 = arith.constant 0 : index
    %c0_22 = arith.constant 0 : index
    %31 = vector.load %arg9[%c0_20, %c0_21, %c0_22] : memref<1x8x128xbf16, #tpu.memory_space<vmem>>, vector<1x8x128xbf16>
    tpu.vector_store %arg9[%c0_20, %c0_21, %c0_22], %30 {strides = array<i32>} : memref<1x8x128xbf16, #tpu.memory_space<vmem>>, vector<1x8x128xbf16>,
    return
  }
  func.func @transform_0(%arg0: i32) -> (i32, i32, i32) {
    %c0_i32 = arith.constant 0 : i32
    %c0_i32_0 = arith.constant 0 : i32
    %c0_i32_1 = arith.constant 0 : i32
    return %arg0, %c0_i32, %c0_i32_0 : i32, i32, i32
  }
  func.func @transform_1(%arg0: i32) -> (i32, i32) {
    %c0_i32 = arith.constant 0 : i32
    %c0_i32_0 = arith.constant 0 : i32
    %c0_i32_1 = arith.constant 0 : i32
    return %c0_i32, %c0_i32_0 : i32, i32
  }
  func.func @transform_2(%arg0: i32) -> (i32, i32) {
    %c0_i32 = arith.constant 0 : i32
    %c0_i32_0 = arith.constant 0 : i32
    %c0_i32_1 = arith.constant 0 : i32
    return %c0_i32, %c0_i32_0 : i32, i32
  }
  func.func @transform_3(%arg0: i32) -> (i32, i32) {
    %c0_i32 = arith.constant 0 : i32
    %c0_i32_0 = arith.constant 0 : i32
    %c0_i32_1 = arith.constant 0 : i32
    return %c0_i32, %c0_i32_0 : i32, i32
  }
  func.func @transform_4(%arg0: i32) -> (i32, i32) {
    %c0_i32 = arith.constant 0 : i32
    %c0_i32_0 = arith.constant 0 : i32
    %c0_i32_1 = arith.constant 0 : i32
    return %c0_i32, %c0_i32_0 : i32, i32
  }
  func.func @transform_5(%arg0: i32) -> (i32, i32) {
    %c0_i32 = arith.constant 0 : i32
    %c0_i32_0 = arith.constant 0 : i32
    %c0_i32_1 = arith.constant 0 : i32
    return %c0_i32, %c0_i32_0 : i32, i32
  }
  func.func @transform_6(%arg0: i32) -> (i32, i32) {
    %c0_i32 = arith.constant 0 : i32
    %c0_i32_0 = arith.constant 0 : i32
    %c0_i32_1 = arith.constant 0 : i32
    return %c0_i32, %c0_i32_0 : i32, i32
  }
  func.func @transform_7(%arg0: i32) -> (i32, i32, i32) {
    %c0_i32 = arith.constant 0 : i32
    %c0_i32_0 = arith.constant 0 : i32
    %c0_i32_1 = arith.constant 0 : i32
    return %arg0, %c0_i32, %c0_i32_0 : i32, i32, i32
  }
  func.func @transform_8(%arg0: i32) -> (i32, i32, i32) {
    %c0_i32 = arith.constant 0 : i32
    %c0_i32_0 = arith.constant 0 : i32
    %c0_i32_1 = arith.constant 0 : i32
    return %arg0, %c0_i32, %c0_i32_0 : i32, i32, i32
  }
}

module attributes {stable_mosaic.version = 11 : i64} {
  func.func @_conv3_s1_kernel(%arg0: i32, %arg1: memref<1x4x256xbf16, #tpu.memory_space<vmem>>, %arg2: memref<768x256xbf16, #tpu.memory_space<vmem>>, %arg3: memref<1x256xf32, #tpu.memory_space<vmem>>, %arg4: memref<1x256xf32, #tpu.memory_space<vmem>>, %arg5: memref<1x4x256xbf16, #tpu.memory_space<vmem>>, %arg6: memref<1x4x256xbf16, #tpu.memory_space<vmem>>) attributes {dimension_semantics = [#tpu.dimension_semantics<parallel>], iteration_bounds = array<i64: 2>, scalar_prefetch = 0 : i64, scratch_operands = 0 : i64, tpu.core_type = #tpu.core_type<tc>, window_params = [{transform_indices = @transform_0, window_bounds = array<i64: 1, 4, 256>}, {pipeline_mode = #tpu.pipeline_mode<synchronous>, transform_indices = @transform_1, window_bounds = array<i64: 768, 256>}, {pipeline_mode = #tpu.pipeline_mode<synchronous>, transform_indices = @transform_2, window_bounds = array<i64: 1, 256>}, {pipeline_mode = #tpu.pipeline_mode<synchronous>, transform_indices = @transform_3, window_bounds = array<i64: 1, 256>}, {transform_indices = @transform_4, window_bounds = array<i64: 1, 4, 256>}, {transform_indices = @transform_5, window_bounds = array<i64: 1, 4, 256>}]} {
    %c0 = arith.constant 0 : index
    %c0_0 = arith.constant 0 : index
    %c0_1 = arith.constant 0 : index
    %0 = vector.load %arg1[%c0, %c0_0, %c0_1] : memref<1x4x256xbf16, #tpu.memory_space<vmem>>, vector<1x4x256xbf16>
    %1 = vector.shape_cast %0 : vector<1x4x256xbf16> to vector<4x256xbf16>
    %cst = arith.constant 0.000000e+00 : bf16
    %2 = vector.broadcast %cst : bf16 to vector<1x256xbf16>
    %3 = vector.extract_strided_slice %1 {offsets = [0, 0], sizes = [3, 256], strides = [1, 1]} : vector<4x256xbf16> to vector<3x256xbf16>
    %4 = tpu.concatenate %2, %3 in 0 : vector<1x256xbf16>, vector<3x256xbf16> -> vector<4x256xbf16>
    %5 = vector.extract_strided_slice %1 {offsets = [1, 0], sizes = [3, 256], strides = [1, 1]} : vector<4x256xbf16> to vector<3x256xbf16>
    %6 = tpu.concatenate %5, %2 in 0 : vector<3x256xbf16>, vector<1x256xbf16> -> vector<4x256xbf16>
    %7 = tpu.concatenate %4, %1, %6 in 1 : vector<4x256xbf16>, vector<4x256xbf16>, vector<4x256xbf16> -> vector<4x768xbf16>
    %c0_2 = arith.constant 0 : index
    %c0_3 = arith.constant 0 : index
    %8 = vector.load %arg2[%c0_2, %c0_3] : memref<768x256xbf16, #tpu.memory_space<vmem>>, vector<768x256xbf16>
    %cst_4 = arith.constant dense<0.000000e+00> : vector<4x256xf32>
    %9 = tpu.matmul %7, %8, %cst_4 {dimension_numbers = #tpu.dot_dimension_numbers<[1], [0], [0], [1], [0, 0, 1, 1], [], []>} : vector<4x768xbf16>, vector<768x256xbf16>, vector<4x256xf32> -> vector<4x256xf32>
    %c0_5 = arith.constant 0 : index
    %c0_6 = arith.constant 0 : index
    %10 = vector.load %arg3[%c0_5, %c0_6] : memref<1x256xf32, #tpu.memory_space<vmem>>, vector<1x256xf32>
    %11 = vector.broadcast %10 : vector<1x256xf32> to vector<4x256xf32>
    %12 = arith.mulf %9, %11 : vector<4x256xf32>
    %c0_7 = arith.constant 0 : index
    %c0_8 = arith.constant 0 : index
    %13 = vector.load %arg4[%c0_7, %c0_8] : memref<1x256xf32, #tpu.memory_space<vmem>>, vector<1x256xf32>
    %14 = vector.broadcast %13 : vector<1x256xf32> to vector<4x256xf32>
    %15 = arith.addf %12, %14 : vector<4x256xf32>
    %c0_9 = arith.constant 0 : index
    %c0_10 = arith.constant 0 : index
    %c0_11 = arith.constant 0 : index
    %16 = vector.load %arg5[%c0_9, %c0_10, %c0_11] : memref<1x4x256xbf16, #tpu.memory_space<vmem>>, vector<1x4x256xbf16>
    %17 = vector.shape_cast %16 : vector<1x4x256xbf16> to vector<4x256xbf16>
    %18 = arith.extf %17 : vector<4x256xbf16> to vector<4x256xf32>
    %19 = arith.addf %15, %18 : vector<4x256xf32>
    %cst_12 = arith.constant 0.000000e+00 : f32
    %20 = vector.broadcast %cst_12 : f32 to vector<4x256xf32>
    %21 = arith.maximumf %19, %20 : vector<4x256xf32>
    %22 = vector.shape_cast %21 : vector<4x256xf32> to vector<1x4x256xf32>
    %23 = arith.truncf %22 : vector<1x4x256xf32> to vector<1x4x256xbf16>
    %c0_13 = arith.constant 0 : index
    %c0_14 = arith.constant 0 : index
    %c0_15 = arith.constant 0 : index
    %24 = vector.load %arg6[%c0_13, %c0_14, %c0_15] : memref<1x4x256xbf16, #tpu.memory_space<vmem>>, vector<1x4x256xbf16>
    tpu.vector_store %arg6[%c0_13, %c0_14, %c0_15], %23 {strides = array<i32>} : memref<1x4x256xbf16, #tpu.memory_space<vmem>>, vector<1x4x256xbf16>,
    return
  }
  func.func @transform_0(%arg0: i32) -> (i32, i32, i32) {
    %c0_i32 = arith.constant 0 : i32
    %c0_i32_0 = arith.constant 0 : i32
    %c0_i32_1 = arith.constant 0 : i32
    return %arg0, %c0_i32, %c0_i32_0 : i32, i32, i32
  }
  func.func @transform_1(%arg0: i32) -> (i32, i32) {
    %c0_i32 = arith.constant 0 : i32
    %c0_i32_0 = arith.constant 0 : i32
    %c0_i32_1 = arith.constant 0 : i32
    return %c0_i32, %c0_i32_0 : i32, i32
  }
  func.func @transform_2(%arg0: i32) -> (i32, i32) {
    %c0_i32 = arith.constant 0 : i32
    %c0_i32_0 = arith.constant 0 : i32
    %c0_i32_1 = arith.constant 0 : i32
    return %c0_i32, %c0_i32_0 : i32, i32
  }
  func.func @transform_3(%arg0: i32) -> (i32, i32) {
    %c0_i32 = arith.constant 0 : i32
    %c0_i32_0 = arith.constant 0 : i32
    %c0_i32_1 = arith.constant 0 : i32
    return %c0_i32, %c0_i32_0 : i32, i32
  }
  func.func @transform_4(%arg0: i32) -> (i32, i32, i32) {
    %c0_i32 = arith.constant 0 : i32
    %c0_i32_0 = arith.constant 0 : i32
    %c0_i32_1 = arith.constant 0 : i32
    return %arg0, %c0_i32, %c0_i32_0 : i32, i32, i32
  }
  func.func @transform_5(%arg0: i32) -> (i32, i32, i32) {
    %c0_i32 = arith.constant 0 : i32
    %c0_i32_0 = arith.constant 0 : i32
    %c0_i32_1 = arith.constant 0 : i32
    return %arg0, %c0_i32, %c0_i32_0 : i32, i32, i32
  }
}

module attributes {stable_mosaic.version = 11 : i64} {
  func.func @_conv3_s1_kernel(%arg0: i32, %arg1: memref<1x8x128xbf16, #tpu.memory_space<vmem>>, %arg2: memref<384x128xbf16, #tpu.memory_space<vmem>>, %arg3: memref<1x128xf32, #tpu.memory_space<vmem>>, %arg4: memref<1x128xf32, #tpu.memory_space<vmem>>, %arg5: memref<1x8x128xbf16, #tpu.memory_space<vmem>>, %arg6: memref<1x8x128xbf16, #tpu.memory_space<vmem>>) attributes {dimension_semantics = [#tpu.dimension_semantics<parallel>], iteration_bounds = array<i64: 2>, scalar_prefetch = 0 : i64, scratch_operands = 0 : i64, tpu.core_type = #tpu.core_type<tc>, window_params = [{transform_indices = @transform_0, window_bounds = array<i64: 1, 8, 128>}, {pipeline_mode = #tpu.pipeline_mode<synchronous>, transform_indices = @transform_1, window_bounds = array<i64: 384, 128>}, {pipeline_mode = #tpu.pipeline_mode<synchronous>, transform_indices = @transform_2, window_bounds = array<i64: 1, 128>}, {pipeline_mode = #tpu.pipeline_mode<synchronous>, transform_indices = @transform_3, window_bounds = array<i64: 1, 128>}, {transform_indices = @transform_4, window_bounds = array<i64: 1, 8, 128>}, {transform_indices = @transform_5, window_bounds = array<i64: 1, 8, 128>}]} {
    %c0 = arith.constant 0 : index
    %c0_0 = arith.constant 0 : index
    %c0_1 = arith.constant 0 : index
    %0 = vector.load %arg1[%c0, %c0_0, %c0_1] : memref<1x8x128xbf16, #tpu.memory_space<vmem>>, vector<1x8x128xbf16>
    %1 = vector.shape_cast %0 : vector<1x8x128xbf16> to vector<8x128xbf16>
    %cst = arith.constant 0.000000e+00 : bf16
    %2 = vector.broadcast %cst : bf16 to vector<1x128xbf16>
    %3 = vector.extract_strided_slice %1 {offsets = [0, 0], sizes = [7, 128], strides = [1, 1]} : vector<8x128xbf16> to vector<7x128xbf16>
    %4 = tpu.concatenate %2, %3 in 0 : vector<1x128xbf16>, vector<7x128xbf16> -> vector<8x128xbf16>
    %5 = vector.extract_strided_slice %1 {offsets = [1, 0], sizes = [7, 128], strides = [1, 1]} : vector<8x128xbf16> to vector<7x128xbf16>
    %6 = tpu.concatenate %5, %2 in 0 : vector<7x128xbf16>, vector<1x128xbf16> -> vector<8x128xbf16>
    %7 = tpu.concatenate %4, %1, %6 in 1 : vector<8x128xbf16>, vector<8x128xbf16>, vector<8x128xbf16> -> vector<8x384xbf16>
    %c0_2 = arith.constant 0 : index
    %c0_3 = arith.constant 0 : index
    %8 = vector.load %arg2[%c0_2, %c0_3] : memref<384x128xbf16, #tpu.memory_space<vmem>>, vector<384x128xbf16>
    %cst_4 = arith.constant dense<0.000000e+00> : vector<8x128xf32>
    %9 = tpu.matmul %7, %8, %cst_4 {dimension_numbers = #tpu.dot_dimension_numbers<[1], [0], [0], [1], [0, 0, 1, 1], [], []>} : vector<8x384xbf16>, vector<384x128xbf16>, vector<8x128xf32> -> vector<8x128xf32>
    %c0_5 = arith.constant 0 : index
    %c0_6 = arith.constant 0 : index
    %10 = vector.load %arg3[%c0_5, %c0_6] : memref<1x128xf32, #tpu.memory_space<vmem>>, vector<1x128xf32>
    %11 = vector.broadcast %10 : vector<1x128xf32> to vector<8x128xf32>
    %12 = arith.mulf %9, %11 : vector<8x128xf32>
    %c0_7 = arith.constant 0 : index
    %c0_8 = arith.constant 0 : index
    %13 = vector.load %arg4[%c0_7, %c0_8] : memref<1x128xf32, #tpu.memory_space<vmem>>, vector<1x128xf32>
    %14 = vector.broadcast %13 : vector<1x128xf32> to vector<8x128xf32>
    %15 = arith.addf %12, %14 : vector<8x128xf32>
    %c0_9 = arith.constant 0 : index
    %c0_10 = arith.constant 0 : index
    %c0_11 = arith.constant 0 : index
    %16 = vector.load %arg5[%c0_9, %c0_10, %c0_11] : memref<1x8x128xbf16, #tpu.memory_space<vmem>>, vector<1x8x128xbf16>
    %17 = vector.shape_cast %16 : vector<1x8x128xbf16> to vector<8x128xbf16>
    %18 = arith.extf %17 : vector<8x128xbf16> to vector<8x128xf32>
    %19 = arith.addf %15, %18 : vector<8x128xf32>
    %cst_12 = arith.constant 0.000000e+00 : f32
    %20 = vector.broadcast %cst_12 : f32 to vector<8x128xf32>
    %21 = arith.maximumf %19, %20 : vector<8x128xf32>
    %22 = vector.shape_cast %21 : vector<8x128xf32> to vector<1x8x128xf32>
    %23 = arith.truncf %22 : vector<1x8x128xf32> to vector<1x8x128xbf16>
    %c0_13 = arith.constant 0 : index
    %c0_14 = arith.constant 0 : index
    %c0_15 = arith.constant 0 : index
    %24 = vector.load %arg6[%c0_13, %c0_14, %c0_15] : memref<1x8x128xbf16, #tpu.memory_space<vmem>>, vector<1x8x128xbf16>
    tpu.vector_store %arg6[%c0_13, %c0_14, %c0_15], %23 {strides = array<i32>} : memref<1x8x128xbf16, #tpu.memory_space<vmem>>, vector<1x8x128xbf16>,
    return
  }
  func.func @transform_0(%arg0: i32) -> (i32, i32, i32) {
    %c0_i32 = arith.constant 0 : i32
    %c0_i32_0 = arith.constant 0 : i32
    %c0_i32_1 = arith.constant 0 : i32
    return %arg0, %c0_i32, %c0_i32_0 : i32, i32, i32
  }
  func.func @transform_1(%arg0: i32) -> (i32, i32) {
    %c0_i32 = arith.constant 0 : i32
    %c0_i32_0 = arith.constant 0 : i32
    %c0_i32_1 = arith.constant 0 : i32
    return %c0_i32, %c0_i32_0 : i32, i32
  }
  func.func @transform_2(%arg0: i32) -> (i32, i32) {
    %c0_i32 = arith.constant 0 : i32
    %c0_i32_0 = arith.constant 0 : i32
    %c0_i32_1 = arith.constant 0 : i32
    return %c0_i32, %c0_i32_0 : i32, i32
  }
  func.func @transform_3(%arg0: i32) -> (i32, i32) {
    %c0_i32 = arith.constant 0 : i32
    %c0_i32_0 = arith.constant 0 : i32
    %c0_i32_1 = arith.constant 0 : i32
    return %c0_i32, %c0_i32_0 : i32, i32
  }
  func.func @transform_4(%arg0: i32) -> (i32, i32, i32) {
    %c0_i32 = arith.constant 0 : i32
    %c0_i32_0 = arith.constant 0 : i32
    %c0_i32_1 = arith.constant 0 : i32
    return %arg0, %c0_i32, %c0_i32_0 : i32, i32, i32
  }
  func.func @transform_5(%arg0: i32) -> (i32, i32, i32) {
    %c0_i32 = arith.constant 0 : i32
    %c0_i32_0 = arith.constant 0 : i32
    %c0_i32_1 = arith.constant 0 : i32
    return %arg0, %c0_i32, %c0_i32_0 : i32, i32, i32
  }
}

module attributes {stable_mosaic.version = 11 : i64} {
  func.func @_transition_kernel(%arg0: i32, %arg1: memref<1x4x256xbf16, #tpu.memory_space<vmem>>, %arg2: memref<384x256xbf16, #tpu.memory_space<vmem>>, %arg3: memref<1x256xf32, #tpu.memory_space<vmem>>, %arg4: memref<1x256xf32, #tpu.memory_space<vmem>>, %arg5: memref<128x256xbf16, #tpu.memory_space<vmem>>, %arg6: memref<1x256xf32, #tpu.memory_space<vmem>>, %arg7: memref<1x256xf32, #tpu.memory_space<vmem>>, %arg8: memref<1x4x256xbf16, #tpu.memory_space<vmem>>, %arg9: memref<1x4x256xbf16, #tpu.memory_space<vmem>>) attributes {dimension_semantics = [#tpu.dimension_semantics<parallel>], iteration_bounds = array<i64: 2>, scalar_prefetch = 0 : i64, scratch_operands = 0 : i64, tpu.core_type = #tpu.core_type<tc>, window_params = [{transform_indices = @transform_0, window_bounds = array<i64: 1, 4, 256>}, {pipeline_mode = #tpu.pipeline_mode<synchronous>, transform_indices = @transform_1, window_bounds = array<i64: 384, 256>}, {pipeline_mode = #tpu.pipeline_mode<synchronous>, transform_indices = @transform_2, window_bounds = array<i64: 1, 256>}, {pipeline_mode = #tpu.pipeline_mode<synchronous>, transform_indices = @transform_3, window_bounds = array<i64: 1, 256>}, {pipeline_mode = #tpu.pipeline_mode<synchronous>, transform_indices = @transform_4, window_bounds = array<i64: 128, 256>}, {pipeline_mode = #tpu.pipeline_mode<synchronous>, transform_indices = @transform_5, window_bounds = array<i64: 1, 256>}, {pipeline_mode = #tpu.pipeline_mode<synchronous>, transform_indices = @transform_6, window_bounds = array<i64: 1, 256>}, {transform_indices = @transform_7, window_bounds = array<i64: 1, 4, 256>}, {transform_indices = @transform_8, window_bounds = array<i64: 1, 4, 256>}]} {
    %c0 = arith.constant 0 : index
    %c0_0 = arith.constant 0 : index
    %c0_1 = arith.constant 0 : index
    %0 = vector.load %arg1[%c0, %c0_0, %c0_1] : memref<1x4x256xbf16, #tpu.memory_space<vmem>>, vector<1x4x256xbf16>
    %1 = vector.shape_cast %0 : vector<1x4x256xbf16> to vector<4x256xbf16>
    %2 = vector.extract_strided_slice %1 {offsets = [0, 0], sizes = [4, 128], strides = [1, 1]} : vector<4x256xbf16> to vector<4x128xbf16>
    %3 = vector.extract_strided_slice %1 {offsets = [0, 128], sizes = [4, 128], strides = [1, 1]} : vector<4x256xbf16> to vector<4x128xbf16>
    %cst = arith.constant 0.000000e+00 : bf16
    %4 = vector.broadcast %cst : bf16 to vector<1x128xbf16>
    %5 = vector.extract_strided_slice %3 {offsets = [0, 0], sizes = [3, 128], strides = [1, 1]} : vector<4x128xbf16> to vector<3x128xbf16>
    %6 = tpu.concatenate %4, %5 in 0 : vector<1x128xbf16>, vector<3x128xbf16> -> vector<4x128xbf16>
    %7 = tpu.concatenate %6, %2, %3 in 1 : vector<4x128xbf16>, vector<4x128xbf16>, vector<4x128xbf16> -> vector<4x384xbf16>
    %c0_2 = arith.constant 0 : index
    %c0_3 = arith.constant 0 : index
    %8 = vector.load %arg2[%c0_2, %c0_3] : memref<384x256xbf16, #tpu.memory_space<vmem>>, vector<384x256xbf16>
    %cst_4 = arith.constant dense<0.000000e+00> : vector<4x256xf32>
    %9 = tpu.matmul %7, %8, %cst_4 {dimension_numbers = #tpu.dot_dimension_numbers<[1], [0], [0], [1], [0, 0, 1, 1], [], []>} : vector<4x384xbf16>, vector<384x256xbf16>, vector<4x256xf32> -> vector<4x256xf32>
    %c0_5 = arith.constant 0 : index
    %c0_6 = arith.constant 0 : index
    %10 = vector.load %arg3[%c0_5, %c0_6] : memref<1x256xf32, #tpu.memory_space<vmem>>, vector<1x256xf32>
    %11 = vector.broadcast %10 : vector<1x256xf32> to vector<4x256xf32>
    %12 = arith.mulf %9, %11 : vector<4x256xf32>
    %c0_7 = arith.constant 0 : index
    %c0_8 = arith.constant 0 : index
    %13 = vector.load %arg4[%c0_7, %c0_8] : memref<1x256xf32, #tpu.memory_space<vmem>>, vector<1x256xf32>
    %14 = vector.broadcast %13 : vector<1x256xf32> to vector<4x256xf32>
    %15 = arith.addf %12, %14 : vector<4x256xf32>
    %cst_9 = arith.constant 0.000000e+00 : f32
    %16 = vector.broadcast %cst_9 : f32 to vector<4x256xf32>
    %17 = arith.maximumf %15, %16 : vector<4x256xf32>
    %18 = vector.shape_cast %17 : vector<4x256xf32> to vector<1x4x256xf32>
    %19 = arith.truncf %18 : vector<1x4x256xf32> to vector<1x4x256xbf16>
    %c0_10 = arith.constant 0 : index
    %c0_11 = arith.constant 0 : index
    %c0_12 = arith.constant 0 : index
    %20 = vector.load %arg8[%c0_10, %c0_11, %c0_12] : memref<1x4x256xbf16, #tpu.memory_space<vmem>>, vector<1x4x256xbf16>
    tpu.vector_store %arg8[%c0_10, %c0_11, %c0_12], %19 {strides = array<i32>} : memref<1x4x256xbf16, #tpu.memory_space<vmem>>, vector<1x4x256xbf16>,
    %c0_13 = arith.constant 0 : index
    %c0_14 = arith.constant 0 : index
    %21 = vector.load %arg5[%c0_13, %c0_14] : memref<128x256xbf16, #tpu.memory_space<vmem>>, vector<128x256xbf16>
    %cst_15 = arith.constant dense<0.000000e+00> : vector<4x256xf32>
    %22 = tpu.matmul %2, %21, %cst_15 {dimension_numbers = #tpu.dot_dimension_numbers<[1], [0], [0], [1], [0, 0, 1, 1], [], []>} : vector<4x128xbf16>, vector<128x256xbf16>, vector<4x256xf32> -> vector<4x256xf32>
    %c0_16 = arith.constant 0 : index
    %c0_17 = arith.constant 0 : index
    %23 = vector.load %arg6[%c0_16, %c0_17] : memref<1x256xf32, #tpu.memory_space<vmem>>, vector<1x256xf32>
    %24 = vector.broadcast %23 : vector<1x256xf32> to vector<4x256xf32>
    %25 = arith.mulf %22, %24 : vector<4x256xf32>
    %c0_18 = arith.constant 0 : index
    %c0_19 = arith.constant 0 : index
    %26 = vector.load %arg7[%c0_18, %c0_19] : memref<1x256xf32, #tpu.memory_space<vmem>>, vector<1x256xf32>
    %27 = vector.broadcast %26 : vector<1x256xf32> to vector<4x256xf32>
    %28 = arith.addf %25, %27 : vector<4x256xf32>
    %29 = vector.shape_cast %28 : vector<4x256xf32> to vector<1x4x256xf32>
    %30 = arith.truncf %29 : vector<1x4x256xf32> to vector<1x4x256xbf16>
    %c0_20 = arith.constant 0 : index
    %c0_21 = arith.constant 0 : index
    %c0_22 = arith.constant 0 : index
    %31 = vector.load %arg9[%c0_20, %c0_21, %c0_22] : memref<1x4x256xbf16, #tpu.memory_space<vmem>>, vector<1x4x256xbf16>
    tpu.vector_store %arg9[%c0_20, %c0_21, %c0_22], %30 {strides = array<i32>} : memref<1x4x256xbf16, #tpu.memory_space<vmem>>, vector<1x4x256xbf16>,
    return
  }
  func.func @transform_0(%arg0: i32) -> (i32, i32, i32) {
    %c0_i32 = arith.constant 0 : i32
    %c0_i32_0 = arith.constant 0 : i32
    %c0_i32_1 = arith.constant 0 : i32
    return %arg0, %c0_i32, %c0_i32_0 : i32, i32, i32
  }
  func.func @transform_1(%arg0: i32) -> (i32, i32) {
    %c0_i32 = arith.constant 0 : i32
    %c0_i32_0 = arith.constant 0 : i32
    %c0_i32_1 = arith.constant 0 : i32
    return %c0_i32, %c0_i32_0 : i32, i32
  }
  func.func @transform_2(%arg0: i32) -> (i32, i32) {
    %c0_i32 = arith.constant 0 : i32
    %c0_i32_0 = arith.constant 0 : i32
    %c0_i32_1 = arith.constant 0 : i32
    return %c0_i32, %c0_i32_0 : i32, i32
  }
  func.func @transform_3(%arg0: i32) -> (i32, i32) {
    %c0_i32 = arith.constant 0 : i32
    %c0_i32_0 = arith.constant 0 : i32
    %c0_i32_1 = arith.constant 0 : i32
    return %c0_i32, %c0_i32_0 : i32, i32
  }
  func.func @transform_4(%arg0: i32) -> (i32, i32) {
    %c0_i32 = arith.constant 0 : i32
    %c0_i32_0 = arith.constant 0 : i32
    %c0_i32_1 = arith.constant 0 : i32
    return %c0_i32, %c0_i32_0 : i32, i32
  }
  func.func @transform_5(%arg0: i32) -> (i32, i32) {
    %c0_i32 = arith.constant 0 : i32
    %c0_i32_0 = arith.constant 0 : i32
    %c0_i32_1 = arith.constant 0 : i32
    return %c0_i32, %c0_i32_0 : i32, i32
  }
  func.func @transform_6(%arg0: i32) -> (i32, i32) {
    %c0_i32 = arith.constant 0 : i32
    %c0_i32_0 = arith.constant 0 : i32
    %c0_i32_1 = arith.constant 0 : i32
    return %c0_i32, %c0_i32_0 : i32, i32
  }
  func.func @transform_7(%arg0: i32) -> (i32, i32, i32) {
    %c0_i32 = arith.constant 0 : i32
    %c0_i32_0 = arith.constant 0 : i32
    %c0_i32_1 = arith.constant 0 : i32
    return %arg0, %c0_i32, %c0_i32_0 : i32, i32, i32
  }
  func.func @transform_8(%arg0: i32) -> (i32, i32, i32) {
    %c0_i32 = arith.constant 0 : i32
    %c0_i32_0 = arith.constant 0 : i32
    %c0_i32_1 = arith.constant 0 : i32
    return %arg0, %c0_i32, %c0_i32_0 : i32, i32, i32
  }
}

module attributes {stable_mosaic.version = 11 : i64} {
  func.func @_transition_kernel(%arg0: i32, %arg1: memref<1x2x512xbf16, #tpu.memory_space<vmem>>, %arg2: memref<768x512xbf16, #tpu.memory_space<vmem>>, %arg3: memref<1x512xf32, #tpu.memory_space<vmem>>, %arg4: memref<1x512xf32, #tpu.memory_space<vmem>>, %arg5: memref<256x512xbf16, #tpu.memory_space<vmem>>, %arg6: memref<1x512xf32, #tpu.memory_space<vmem>>, %arg7: memref<1x512xf32, #tpu.memory_space<vmem>>, %arg8: memref<1x2x512xbf16, #tpu.memory_space<vmem>>, %arg9: memref<1x2x512xbf16, #tpu.memory_space<vmem>>) attributes {dimension_semantics = [#tpu.dimension_semantics<parallel>], iteration_bounds = array<i64: 2>, scalar_prefetch = 0 : i64, scratch_operands = 0 : i64, tpu.core_type = #tpu.core_type<tc>, window_params = [{transform_indices = @transform_0, window_bounds = array<i64: 1, 2, 512>}, {pipeline_mode = #tpu.pipeline_mode<synchronous>, transform_indices = @transform_1, window_bounds = array<i64: 768, 512>}, {pipeline_mode = #tpu.pipeline_mode<synchronous>, transform_indices = @transform_2, window_bounds = array<i64: 1, 512>}, {pipeline_mode = #tpu.pipeline_mode<synchronous>, transform_indices = @transform_3, window_bounds = array<i64: 1, 512>}, {pipeline_mode = #tpu.pipeline_mode<synchronous>, transform_indices = @transform_4, window_bounds = array<i64: 256, 512>}, {pipeline_mode = #tpu.pipeline_mode<synchronous>, transform_indices = @transform_5, window_bounds = array<i64: 1, 512>}, {pipeline_mode = #tpu.pipeline_mode<synchronous>, transform_indices = @transform_6, window_bounds = array<i64: 1, 512>}, {transform_indices = @transform_7, window_bounds = array<i64: 1, 2, 512>}, {transform_indices = @transform_8, window_bounds = array<i64: 1, 2, 512>}]} {
    %c0 = arith.constant 0 : index
    %c0_0 = arith.constant 0 : index
    %c0_1 = arith.constant 0 : index
    %0 = vector.load %arg1[%c0, %c0_0, %c0_1] : memref<1x2x512xbf16, #tpu.memory_space<vmem>>, vector<1x2x512xbf16>
    %1 = vector.shape_cast %0 : vector<1x2x512xbf16> to vector<2x512xbf16>
    %2 = vector.extract_strided_slice %1 {offsets = [0, 0], sizes = [2, 256], strides = [1, 1]} : vector<2x512xbf16> to vector<2x256xbf16>
    %3 = vector.extract_strided_slice %1 {offsets = [0, 256], sizes = [2, 256], strides = [1, 1]} : vector<2x512xbf16> to vector<2x256xbf16>
    %cst = arith.constant 0.000000e+00 : bf16
    %4 = vector.broadcast %cst : bf16 to vector<1x256xbf16>
    %5 = vector.extract_strided_slice %3 {offsets = [0, 0], sizes = [1, 256], strides = [1, 1]} : vector<2x256xbf16> to vector<1x256xbf16>
    %6 = tpu.concatenate %4, %5 in 0 : vector<1x256xbf16>, vector<1x256xbf16> -> vector<2x256xbf16>
    %7 = tpu.concatenate %6, %2, %3 in 1 : vector<2x256xbf16>, vector<2x256xbf16>, vector<2x256xbf16> -> vector<2x768xbf16>
    %c0_2 = arith.constant 0 : index
    %c0_3 = arith.constant 0 : index
    %8 = vector.load %arg2[%c0_2, %c0_3] : memref<768x512xbf16, #tpu.memory_space<vmem>>, vector<768x512xbf16>
    %cst_4 = arith.constant dense<0.000000e+00> : vector<2x512xf32>
    %9 = tpu.matmul %7, %8, %cst_4 {dimension_numbers = #tpu.dot_dimension_numbers<[1], [0], [0], [1], [0, 0, 1, 1], [], []>} : vector<2x768xbf16>, vector<768x512xbf16>, vector<2x512xf32> -> vector<2x512xf32>
    %c0_5 = arith.constant 0 : index
    %c0_6 = arith.constant 0 : index
    %10 = vector.load %arg3[%c0_5, %c0_6] : memref<1x512xf32, #tpu.memory_space<vmem>>, vector<1x512xf32>
    %11 = vector.broadcast %10 : vector<1x512xf32> to vector<2x512xf32>
    %12 = arith.mulf %9, %11 : vector<2x512xf32>
    %c0_7 = arith.constant 0 : index
    %c0_8 = arith.constant 0 : index
    %13 = vector.load %arg4[%c0_7, %c0_8] : memref<1x512xf32, #tpu.memory_space<vmem>>, vector<1x512xf32>
    %14 = vector.broadcast %13 : vector<1x512xf32> to vector<2x512xf32>
    %15 = arith.addf %12, %14 : vector<2x512xf32>
    %cst_9 = arith.constant 0.000000e+00 : f32
    %16 = vector.broadcast %cst_9 : f32 to vector<2x512xf32>
    %17 = arith.maximumf %15, %16 : vector<2x512xf32>
    %18 = vector.shape_cast %17 : vector<2x512xf32> to vector<1x2x512xf32>
    %19 = arith.truncf %18 : vector<1x2x512xf32> to vector<1x2x512xbf16>
    %c0_10 = arith.constant 0 : index
    %c0_11 = arith.constant 0 : index
    %c0_12 = arith.constant 0 : index
    %20 = vector.load %arg8[%c0_10, %c0_11, %c0_12] : memref<1x2x512xbf16, #tpu.memory_space<vmem>>, vector<1x2x512xbf16>
    tpu.vector_store %arg8[%c0_10, %c0_11, %c0_12], %19 {strides = array<i32>} : memref<1x2x512xbf16, #tpu.memory_space<vmem>>, vector<1x2x512xbf16>,
    %c0_13 = arith.constant 0 : index
    %c0_14 = arith.constant 0 : index
    %21 = vector.load %arg5[%c0_13, %c0_14] : memref<256x512xbf16, #tpu.memory_space<vmem>>, vector<256x512xbf16>
    %cst_15 = arith.constant dense<0.000000e+00> : vector<2x512xf32>
    %22 = tpu.matmul %2, %21, %cst_15 {dimension_numbers = #tpu.dot_dimension_numbers<[1], [0], [0], [1], [0, 0, 1, 1], [], []>} : vector<2x256xbf16>, vector<256x512xbf16>, vector<2x512xf32> -> vector<2x512xf32>
    %c0_16 = arith.constant 0 : index
    %c0_17 = arith.constant 0 : index
    %23 = vector.load %arg6[%c0_16, %c0_17] : memref<1x512xf32, #tpu.memory_space<vmem>>, vector<1x512xf32>
    %24 = vector.broadcast %23 : vector<1x512xf32> to vector<2x512xf32>
    %25 = arith.mulf %22, %24 : vector<2x512xf32>
    %c0_18 = arith.constant 0 : index
    %c0_19 = arith.constant 0 : index
    %26 = vector.load %arg7[%c0_18, %c0_19] : memref<1x512xf32, #tpu.memory_space<vmem>>, vector<1x512xf32>
    %27 = vector.broadcast %26 : vector<1x512xf32> to vector<2x512xf32>
    %28 = arith.addf %25, %27 : vector<2x512xf32>
    %29 = vector.shape_cast %28 : vector<2x512xf32> to vector<1x2x512xf32>
    %30 = arith.truncf %29 : vector<1x2x512xf32> to vector<1x2x512xbf16>
    %c0_20 = arith.constant 0 : index
    %c0_21 = arith.constant 0 : index
    %c0_22 = arith.constant 0 : index
    %31 = vector.load %arg9[%c0_20, %c0_21, %c0_22] : memref<1x2x512xbf16, #tpu.memory_space<vmem>>, vector<1x2x512xbf16>
    tpu.vector_store %arg9[%c0_20, %c0_21, %c0_22], %30 {strides = array<i32>} : memref<1x2x512xbf16, #tpu.memory_space<vmem>>, vector<1x2x512xbf16>,
    return
  }
  func.func @transform_0(%arg0: i32) -> (i32, i32, i32) {
    %c0_i32 = arith.constant 0 : i32
    %c0_i32_0 = arith.constant 0 : i32
    %c0_i32_1 = arith.constant 0 : i32
    return %arg0, %c0_i32, %c0_i32_0 : i32, i32, i32
  }
  func.func @transform_1(%arg0: i32) -> (i32, i32) {
    %c0_i32 = arith.constant 0 : i32
    %c0_i32_0 = arith.constant 0 : i32
    %c0_i32_1 = arith.constant 0 : i32
    return %c0_i32, %c0_i32_0 : i32, i32
  }
  func.func @transform_2(%arg0: i32) -> (i32, i32) {
    %c0_i32 = arith.constant 0 : i32
    %c0_i32_0 = arith.constant 0 : i32
    %c0_i32_1 = arith.constant 0 : i32
    return %c0_i32, %c0_i32_0 : i32, i32
  }
  func.func @transform_3(%arg0: i32) -> (i32, i32) {
    %c0_i32 = arith.constant 0 : i32
    %c0_i32_0 = arith.constant 0 : i32
    %c0_i32_1 = arith.constant 0 : i32
    return %c0_i32, %c0_i32_0 : i32, i32
  }
  func.func @transform_4(%arg0: i32) -> (i32, i32) {
    %c0_i32 = arith.constant 0 : i32
    %c0_i32_0 = arith.constant 0 : i32
    %c0_i32_1 = arith.constant 0 : i32
    return %c0_i32, %c0_i32_0 : i32, i32
  }
  func.func @transform_5(%arg0: i32) -> (i32, i32) {
    %c0_i32 = arith.constant 0 : i32
    %c0_i32_0 = arith.constant 0 : i32
    %c0_i32_1 = arith.constant 0 : i32
    return %c0_i32, %c0_i32_0 : i32, i32
  }
  func.func @transform_6(%arg0: i32) -> (i32, i32) {
    %c0_i32 = arith.constant 0 : i32
    %c0_i32_0 = arith.constant 0 : i32
    %c0_i32_1 = arith.constant 0 : i32
    return %c0_i32, %c0_i32_0 : i32, i32
  }
  func.func @transform_7(%arg0: i32) -> (i32, i32, i32) {
    %c0_i32 = arith.constant 0 : i32
    %c0_i32_0 = arith.constant 0 : i32
    %c0_i32_1 = arith.constant 0 : i32
    return %arg0, %c0_i32, %c0_i32_0 : i32, i32, i32
  }
  func.func @transform_8(%arg0: i32) -> (i32, i32, i32) {
    %c0_i32 = arith.constant 0 : i32
    %c0_i32_0 = arith.constant 0 : i32
    %c0_i32_1 = arith.constant 0 : i32
    return %arg0, %c0_i32, %c0_i32_0 : i32, i32, i32
  }
}

module attributes {stable_mosaic.version = 11 : i64} {
  func.func @_conv3_s1_kernel(%arg0: i32, %arg1: memref<1x2x512xbf16, #tpu.memory_space<vmem>>, %arg2: memref<1536x512xbf16, #tpu.memory_space<vmem>>, %arg3: memref<1x512xf32, #tpu.memory_space<vmem>>, %arg4: memref<1x512xf32, #tpu.memory_space<vmem>>, %arg5: memref<1x2x512xbf16, #tpu.memory_space<vmem>>, %arg6: memref<1x1x512xf32, #tpu.memory_space<vmem>>) attributes {dimension_semantics = [#tpu.dimension_semantics<parallel>], iteration_bounds = array<i64: 2>, scalar_prefetch = 0 : i64, scratch_operands = 0 : i64, tpu.core_type = #tpu.core_type<tc>, window_params = [{transform_indices = @transform_0, window_bounds = array<i64: 1, 2, 512>}, {pipeline_mode = #tpu.pipeline_mode<synchronous>, transform_indices = @transform_1, window_bounds = array<i64: 1536, 512>}, {pipeline_mode = #tpu.pipeline_mode<synchronous>, transform_indices = @transform_2, window_bounds = array<i64: 1, 512>}, {pipeline_mode = #tpu.pipeline_mode<synchronous>, transform_indices = @transform_3, window_bounds = array<i64: 1, 512>}, {transform_indices = @transform_4, window_bounds = array<i64: 1, 2, 512>}, {transform_indices = @transform_5, window_bounds = array<i64: 1, 1, 512>}]} {
    %c0 = arith.constant 0 : index
    %c0_0 = arith.constant 0 : index
    %c0_1 = arith.constant 0 : index
    %0 = vector.load %arg1[%c0, %c0_0, %c0_1] : memref<1x2x512xbf16, #tpu.memory_space<vmem>>, vector<1x2x512xbf16>
    %1 = vector.shape_cast %0 : vector<1x2x512xbf16> to vector<2x512xbf16>
    %cst = arith.constant 0.000000e+00 : bf16
    %2 = vector.broadcast %cst : bf16 to vector<1x512xbf16>
    %3 = vector.extract_strided_slice %1 {offsets = [0, 0], sizes = [1, 512], strides = [1, 1]} : vector<2x512xbf16> to vector<1x512xbf16>
    %4 = tpu.concatenate %2, %3 in 0 : vector<1x512xbf16>, vector<1x512xbf16> -> vector<2x512xbf16>
    %5 = vector.extract_strided_slice %1 {offsets = [1, 0], sizes = [1, 512], strides = [1, 1]} : vector<2x512xbf16> to vector<1x512xbf16>
    %6 = tpu.concatenate %5, %2 in 0 : vector<1x512xbf16>, vector<1x512xbf16> -> vector<2x512xbf16>
    %7 = tpu.concatenate %4, %1, %6 in 1 : vector<2x512xbf16>, vector<2x512xbf16>, vector<2x512xbf16> -> vector<2x1536xbf16>
    %c0_2 = arith.constant 0 : index
    %c0_3 = arith.constant 0 : index
    %8 = vector.load %arg2[%c0_2, %c0_3] : memref<1536x512xbf16, #tpu.memory_space<vmem>>, vector<1536x512xbf16>
    %cst_4 = arith.constant dense<0.000000e+00> : vector<2x512xf32>
    %9 = tpu.matmul %7, %8, %cst_4 {dimension_numbers = #tpu.dot_dimension_numbers<[1], [0], [0], [1], [0, 0, 1, 1], [], []>} : vector<2x1536xbf16>, vector<1536x512xbf16>, vector<2x512xf32> -> vector<2x512xf32>
    %c0_5 = arith.constant 0 : index
    %c0_6 = arith.constant 0 : index
    %10 = vector.load %arg3[%c0_5, %c0_6] : memref<1x512xf32, #tpu.memory_space<vmem>>, vector<1x512xf32>
    %11 = vector.broadcast %10 : vector<1x512xf32> to vector<2x512xf32>
    %12 = arith.mulf %9, %11 : vector<2x512xf32>
    %c0_7 = arith.constant 0 : index
    %c0_8 = arith.constant 0 : index
    %13 = vector.load %arg4[%c0_7, %c0_8] : memref<1x512xf32, #tpu.memory_space<vmem>>, vector<1x512xf32>
    %14 = vector.broadcast %13 : vector<1x512xf32> to vector<2x512xf32>
    %15 = arith.addf %12, %14 : vector<2x512xf32>
    %c0_9 = arith.constant 0 : index
    %c0_10 = arith.constant 0 : index
    %c0_11 = arith.constant 0 : index
    %16 = vector.load %arg5[%c0_9, %c0_10, %c0_11] : memref<1x2x512xbf16, #tpu.memory_space<vmem>>, vector<1x2x512xbf16>
    %17 = vector.shape_cast %16 : vector<1x2x512xbf16> to vector<2x512xbf16>
    %18 = arith.extf %17 : vector<2x512xbf16> to vector<2x512xf32>
    %19 = arith.addf %15, %18 : vector<2x512xf32>
    %cst_12 = arith.constant 0.000000e+00 : f32
    %20 = vector.broadcast %cst_12 : f32 to vector<2x512xf32>
    %21 = arith.maximumf %19, %20 : vector<2x512xf32>
    %cst_13 = arith.constant dense<0.000000e+00> : vector<512xf32>
    %22 = vector.multi_reduction <add>, %21, %cst_13 [0] : vector<2x512xf32> to vector<512xf32>
    %23 = vector.shape_cast %22 : vector<512xf32> to vector<1x512xf32>
    %cst_14 = arith.constant 2.000000e+00 : f32
    %24 = vector.broadcast %cst_14 : f32 to vector<1x512xf32>
    %25 = arith.divf %23, %24 : vector<1x512xf32>
    %26 = vector.shape_cast %25 : vector<1x512xf32> to vector<1x1x512xf32>
    %c0_15 = arith.constant 0 : index
    %c0_16 = arith.constant 0 : index
    %c0_17 = arith.constant 0 : index
    %27 = vector.load %arg6[%c0_15, %c0_16, %c0_17] : memref<1x1x512xf32, #tpu.memory_space<vmem>>, vector<1x1x512xf32>
    tpu.vector_store %arg6[%c0_15, %c0_16, %c0_17], %26 {strides = array<i32>} : memref<1x1x512xf32, #tpu.memory_space<vmem>>, vector<1x1x512xf32>,
    return
  }
  func.func @transform_0(%arg0: i32) -> (i32, i32, i32) {
    %c0_i32 = arith.constant 0 : i32
    %c0_i32_0 = arith.constant 0 : i32
    %c0_i32_1 = arith.constant 0 : i32
    return %arg0, %c0_i32, %c0_i32_0 : i32, i32, i32
  }
  func.func @transform_1(%arg0: i32) -> (i32, i32) {
    %c0_i32 = arith.constant 0 : i32
    %c0_i32_0 = arith.constant 0 : i32
    %c0_i32_1 = arith.constant 0 : i32
    return %c0_i32, %c0_i32_0 : i32, i32
  }
  func.func @transform_2(%arg0: i32) -> (i32, i32) {
    %c0_i32 = arith.constant 0 : i32
    %c0_i32_0 = arith.constant 0 : i32
    %c0_i32_1 = arith.constant 0 : i32
    return %c0_i32, %c0_i32_0 : i32, i32
  }
  func.func @transform_3(%arg0: i32) -> (i32, i32) {
    %c0_i32 = arith.constant 0 : i32
    %c0_i32_0 = arith.constant 0 : i32
    %c0_i32_1 = arith.constant 0 : i32
    return %c0_i32, %c0_i32_0 : i32, i32
  }
  func.func @transform_4(%arg0: i32) -> (i32, i32, i32) {
    %c0_i32 = arith.constant 0 : i32
    %c0_i32_0 = arith.constant 0 : i32
    %c0_i32_1 = arith.constant 0 : i32
    return %arg0, %c0_i32, %c0_i32_0 : i32, i32, i32
  }
  func.func @transform_5(%arg0: i32) -> (i32, i32, i32) {
    %c0_i32 = arith.constant 0 : i32
    %c0_i32_0 = arith.constant 0 : i32
    %c0_i32_1 = arith.constant 0 : i32
    return %arg0, %c0_i32, %c0_i32_0 : i32, i32, i32
  }
}

</mosaic_0001>

<bundles_post_ra>
// kernel: _lambda_.9
= control target key start
LH: loop header
LB: loop body
LE: loop exit
PB: predicated region body
PF: predicated region fallthrough
CT: control target
= control target key end

     0   :  { %9 = vsyncpa [#allocation3], 0  ;;  %s837_s0 = inlined_call_operand.vmem [shape: f32[2,16,4], index: 0, kind: input, shape index: {}]   ;;  %s838_s1 = inlined_call_operand.hbm [shape: f32[7,64], index: 1, kind: input, shape index: {}]   ;;  %s839_s2 = inlined_call_operand.hbm [shape: f32[1,64], index: 2, kind: input, shape index: {}]   ;;  %s840_s3 = inlined_call_operand.hbm [shape: f32[1,64], index: 3, kind: input, shape index: {}]   ;;  %s841_s4 = inlined_call_operand.vmem [shape: bf16[2,16,64], index: 4, kind: output, shape index: {}]  }
   0x1   :  { %10 = vsyncpa [#allocation5], 0  ;;  %s751_s15 = smov 0  }
   0x2 LB: > { %s757_s16 = sadd.s32 4294967295, %s717_s15   ;;  %p548_p0 = scmp.ge.s32.totalorder %s717_s15, 1  ;;  %s717_s15 = sphi %s751_s15, %s16_s15  }
   0x3   : > { %p136_p1 = scmp.lt.s32.totalorder %s717_s15, 3  ;;  %p842_p2 = scmp.eq.s32.totalorder %s757_s16, 0 }
   0x4   : > { %s719_s18 = smov [#allocation4]   ;;  %s720_s20 = smov [#allocation2]  }
   0x5   : > { %p762_p3 = pnand %p548_p0, %p136_p1  ;;  %s160_s19 = sshll.u32 %s719_s18, 4  ;;  %s161_s19 = int_to_ptr.vmem [resolvable:$true] %s160_s19 }
   0x6   : > { %s149_s21 = sshll.u32 %s720_s20, 4  ;;  %s721_s22 = smov [#allocation6]   ;;  %s150_s21 = int_to_ptr.vmem [resolvable:$true] %s149_s21 }
   0x7   : > { %s844_s17 = scalar_select %p762_p3, 1, 0 }
   0x8   : > { %p583_p4 = pneg %p762_p3  ;;  %s171_s23 = sshll.u32 %s721_s22, 4  ;;  %s774_s23 = int_to_ptr.vmem [resolvable:$true] %s171_s23 }
   0x9   : > { %s636_s25 = scalar_lea.vmem %s161_s19, 16  ;;  %s643_s26 = scalar_lea.vmem %s161_s19, 32 }
   0xa   : > { %p770_p5 = pnand %p842_p2, %p583_p4  ;;  %p637_p7 = scmp.ne.s32.totalorder %s161_s19, %s636_s25 }
   0xb   : > { %p644_p10 = scmp.lt.s32.totalorder %s161_s19, %s161_s19  ;;  %p645_p11 = scmp.lt.s32.totalorder %s643_s26, %s636_s25 }
   0xc   : > { %p627_p6 = pneg %p770_p5 }
   0xd   : > { %p646_p12 = por %p645_p11, %p644_p10 }
   0xe   : > { %p639_p8 = pnand %p637_p7, %p627_p6 }
  0x10   : > { %p640_p9 = pneg %p639_p8 }
  0x12   : > { %p647_p13 = pnand %p646_p12, %p640_p9 }
  0x14   : > { %650 = shalt.err (!%p647_p13)
}
  0x15   : > { %589 = dma.hbm_to_vmem [thread:$0]  (!%p770_p5), %s839_s2, 16, %s161_s19, [#allocation5]  }
  0x16   : > { %s662_s29 = scalar_lea.vmem %s150_s21, 128  ;;  %p670_p7 = scmp.lt.s32.totalorder %s150_s21, %s150_s21 }
  0x17   : > { %p663_p0 = scmp.ne.s32.totalorder %s150_s21, %s662_s29  ;;  %p671_p8 = scmp.lt.s32.totalorder %s662_s29, %s662_s29 }
  0x19   : > { %p665_p1 = pnand %p663_p0, %p627_p6  ;;  %p672_p2 = por %p671_p8, %p670_p7 }
  0x1b   : > { %p666_p4 = pneg %p665_p1 }
  0x1d   : > { %p673_p3 = pnand %p672_p2, %p666_p4 }
  0x1f   : > { %676 = shalt.err (!%p673_p3)
}
  0x20   : > { %586 = dma.hbm_to_vmem [thread:$0]  (!%p770_p5), %s838_s1, 128, %s150_s21, [#allocation3]  }
  0x21   : > { %s688_s6 = scalar_lea.vmem %s774_s23, 16  ;;  %s695_s7 = scalar_lea.vmem %s774_s23, 32 }
  0x22   : > { %p689_p9 = scmp.ne.s32.totalorder %s774_s23, %s688_s6  ;;  %p696_p2 = scmp.lt.s32.totalorder %s774_s23, %s774_s23 }
  0x23   : > { %p697_p3 = scmp.lt.s32.totalorder %s695_s7, %s688_s6 }
  0x24   : > { %p691_p10 = pnand %p689_p9, %p627_p6 }
  0x25   : > { %p698_p12 = por %p697_p3, %p696_p2 }
  0x26   : > { %p692_p11 = pneg %p691_p10 }
  0x28   : > { %p699_p13 = pnand %p698_p12, %p692_p11 }
  0x2a   : > { %702 = shalt.err (!%p699_p13)
}
  0x2b   : > { %592 = dma.hbm_to_vmem [thread:$0]  (!%p770_p5), %s840_s3, 16, %s774_s23, [#allocation5]  }
  0x2c   : > { %p846_p0 = scmp.ne.s32.totalorder %s844_s17, 0 }
  0x2d   : > { %p847_p6 = scmp.eq.s32.totalorder (!%p846_p0), %s757_s16, 0 }
  0x2e   : > { %192 = sbr.rel (%p846_p0) target bundleno = 251 (0xfb), region = 36 }
  0x33   : > { %708 = dma.done.wait (%p847_p6), [#allocation3], 128   ;;  %p848_p1 = pmov %p847_p6 }
  0x35   : > { %710 = vsyncadd (%p848_p1), [#allocation3], 4294967168  ;;  %p849_p4 = pmov %p848_p1 }
  0x36   : > { %p850_p7 = pmov %p848_p1 }
  0x37   : > { %712 = dma.done.wait (%p849_p4), [#allocation5], 32  }
  0x38   : > { %714 = vsyncadd (%p850_p7), [#allocation5], 4294967264  ;;  %p226_p8 = scmp.lt.s32.totalorder %s757_s16, 1  ;;  %v722_v0 = vmov 0   ;;  %v723_v1 = vmov 1   ;;  %vm240_vm0 = vcmask 1040384   ;;  %v262_v17 = vlaneseq }
  0x39   : > { %614 = vset.pattern.permute.xlu1 %v722_v0  ;;  %615 = vset.pattern.permute.xlu0 %v723_v1  ;;  %v724_v7 = vmov 2   ;;  %v725_v9 = vmov 3   ;;  %vm246_vm1 = vcmask 1046528   ;;  %v252_v24 = vld [vmem:[#allocation2] sm:$0x7f]  ;;  %vm457_vm2 = vcmask 519168  }
  0x3a   : > { %s852_s16 = smov (!%p226_p8, %s757_s16), 1  ;;  %v263_v19 = vshrl.u32 %v262_v17, 7 }
  0x3b   : > { %s567_s10 = sshll.u32 %s852_s16, 4  ;;  %s568_s14 = sshll.u32 %s852_s16, 3 }
  0x3c   : > { %s230_s13 = scalar_lea.vmem %s837_s0, %s567_s10  ;;  %v264_v21 = vsub.s32 0, %v263_v19  ;;  %v292_v22 = vsub.s32 1, %v263_v19  ;;  %v312_v26 = vsub.s32 2, %v263_v19  ;;  %v332_v30 = vsub.s32 3, %v263_v19  ;;  %s235_s19 = scalar_lea.vmem %s841_s4, %s568_s14 }
  0x3d   : > { %v236_v2 = vld [vmem:[%s230_s13] sm:$0xff]  ;;  %v237_v3 = vld [vmem:[%s230_s13 + $0x8] sm:$0xff]  ;;  %v352_v39 = vsub.s32 4, %v263_v19  ;;  %v372_v47 = vsub.s32 5, %v263_v19  ;;  %v393_v53 = vsub.s32 6, %v263_v19 }
  0x3e   : > { %319 = vperm.xlu0 %615, %v236_v2   ;;  %299 = vperm.xlu1 %614, %v236_v2   ;;  %v241_v4 = vrot.slane %v236_v2, 7  ;;  %v242_v5 = vrot.slane %v237_v3, 7  ;;  %v248_v10 = vrot.slane %v237_v3, 1  ;;  %v247_v12 = vrot.slane %v236_v2, 1 }
  0x3f   : > { %v265_v27 = vrot.slane %v252_v24, %v264_v21  ;;  %v293_v28 = vrot.slane %v252_v24, %v292_v22  ;;  %v313_v31 = vrot.slane %v252_v24, %v312_v26  ;;  %v333_v38 = vrot.slane %v252_v24, %v332_v30 }
  0x40   : > { %v243_v6 = vsel %vm240_vm0, %v241_v4, %v242_v5  ;;  %v245_v8 = vsel %vm240_vm0, 0.0, %v241_v4  ;;  %v251_v11 = vsel %vm246_vm1, %v248_v10, 0.0  ;;  %v249_v13 = vsel %vm246_vm1, %v247_v12, %v248_v10 }
  0x41   : > { %v353_v49 = vrot.slane %v252_v24, %v352_v39  ;;  %v373_v58 = vrot.slane %v252_v24, %v372_v47 }
  0x42   : > { %303 = vperm.xlu1 %614, %v237_v3   ;;  %259 = vperm.xlu0 %615, %v243_v6  }
  0x46   : > { %616 = vset.pattern.permute.xlu1 %v723_v1  ;;  %618 = vset.pattern.permute.xlu0 %v724_v7 }
  0x47   : > { %323 = vperm.xlu1 %616, %v237_v3   ;;  %287 = vperm.xlu0 %618, %v243_v6  }
  0x4b   : > { %255 = vperm.xlu1 %616, %v245_v8   ;;  %619 = vset.pattern.permute.xlu0 %v725_v9 }
  0x4c   : > { %271 = vperm.xlu0 %619, %v245_v8  }
  0x4f   : > { %617 = vset.pattern.permute.xlu1 %v724_v7 }
  0x50   : > { %283 = vperm.xlu1 %617, %v245_v8   ;;  %275 = vperm.xlu0 %619, %v243_v6  }
  0x54   : > { %339 = vperm.xlu1 %617, %v236_v2   ;;  %359 = vperm.xlu0 %619, %v236_v2  }
  0x58   : > { %343 = vperm.xlu1 %617, %v237_v3   ;;  %622 = vset.pattern.permute.xlu0 %v722_v0 }
  0x59   : > { %384 = vperm.xlu0 %622, %v251_v11  }
  0x5c   : > { %620 = vset.pattern.permute.xlu1 %v725_v9 }
  0x5d   : > { %363 = vperm.xlu1 %620, %v237_v3   ;;  %624 = vset.pattern.permute.xlu0 %v723_v1 }
  0x61   : > { %621 = vset.pattern.permute.xlu1 %v722_v0  ;;  %v394_v0 = vrot.slane %v252_v24, %v393_v53 }
  0x62   : > { %379 = vperm.xlu1 %621, %v249_v13  }
  0x66   : > { %623 = vset.pattern.permute.xlu1 %v723_v1 }
  0x67   : > { %400 = vperm.xlu1 %623, %v249_v13  }
  0x6b   : > { %404 = vperm.xlu1 %623, %v251_v11  }
  0xb9   : > { %v300_v14 = vpop.permute.xlu1 %299  ;;  %v320_v15 = vpop.permute.xlu0 %319 }
  0xba   : > { %v334_v46 = vmul.f32 %v333_v38, %v300_v14  ;;  %v306_v48 = vmul.f32 %v300_v14, %v293_v28  ;;  %v326_v54 = vmul.f32 %v320_v15, %v313_v31  ;;  %v354_v57 = vmul.f32 %v353_v49, %v320_v15 }
  0xbd   : > { %v304_v16 = vpop.permute.xlu1 %303  ;;  %v260_v18 = vpop.permute.xlu0 %259 }
  0xbe   : > { %v267_v40 = vmul.f32 %v265_v27, %v260_v18  ;;  %v307_v60 = vmul.f32 %v304_v16, %v293_v28  ;;  %v335_v4 = vmul.f32 %v333_v38, %v304_v16 }
  0xc2   : > { %v324_v20 = vpop.permute.xlu1 %323  ;;  %v288_v25 = vpop.permute.xlu0 %287 }
  0xc3   : > { %v295_v41 = vmul.f32 %v293_v28, %v288_v25  ;;  %v327_v6 = vmul.f32 %v324_v20, %v313_v31  ;;  %v355_v18 = vmul.f32 %v353_v49, %v324_v20 }
  0xc5   : > { %v297_v50 = vadd.f32 %v295_v41, %v267_v40 }
  0xc6   : > { %v256_v23 = vpop.permute.xlu1 %255 }
  0xc7   : > { %v266_v32 = vmul.f32 %v265_v27, %v256_v23  ;;  %v272_v34 = vpop.permute.xlu0 %271 }
  0xc8   : > { %v314_v35 = vmul.f32 %v313_v31, %v272_v34  ;;  %v278_v43 = vmul.f32 %v272_v34, %v265_v27 }
  0xca   : > { %v308_v55 = vadd.f32 %v306_v48, %v278_v43 }
  0xcb   : > { %v284_v29 = vpop.permute.xlu1 %283  ;;  %v276_v44 = vpop.permute.xlu0 %275 }
  0xcc   : > { %v294_v33 = vmul.f32 %v293_v28, %v284_v29  ;;  %v315_v52 = vmul.f32 %v313_v31, %v276_v44  ;;  %v279_v56 = vmul.f32 %v276_v44, %v265_v27  ;;  %v328_v3 = vadd.f32 %v326_v54, %v308_v55  ;;  %v561_v27 = vld [vmem:[#allocation4] ss:$0 sm:$0xff] }
  0xce   : > { %v296_v36 = vadd.f32 %v294_v33, %v266_v32  ;;  %v317_v62 = vadd.f32 %v315_v52, %v297_v50  ;;  %v309_v2 = vadd.f32 %v307_v60, %v279_v56 }
  0xcf   : > { %v340_v37 = vpop.permute.xlu1 %339  ;;  %v360_v1 = vpop.permute.xlu0 %359 }
  0xd0   : > { %v316_v42 = vadd.f32 %v314_v35, %v296_v36  ;;  %v346_v61 = vmul.f32 %v340_v37, %v333_v38  ;;  %v374_v5 = vmul.f32 %v373_v58, %v340_v37  ;;  %v366_v8 = vmul.f32 %v360_v1, %v353_v49  ;;  %v562_v37 = vld [vmem:[#allocation6] ss:$0 sm:$0xff] }
  0xd1   : > { %v337_v11 = vadd.f32 %v335_v4, %v317_v62  ;;  %v395_v13 = vmul.f32 %v394_v0, %v360_v1  ;;  %v329_v14 = vadd.f32 %v327_v6, %v309_v2 }
  0xd2   : > { %v336_v51 = vadd.f32 %v334_v46, %v316_v42  ;;  %v348_v7 = vadd.f32 %v346_v61, %v328_v3 }
  0xd3   : > { %v344_v45 = vpop.permute.xlu1 %343  ;;  %v357_v25 = vadd.f32 %v355_v18, %v337_v11 }
  0xd4   : > { %v356_v63 = vadd.f32 %v354_v57, %v336_v51  ;;  %v347_v9 = vmul.f32 %v344_v45, %v333_v38  ;;  %v375_v19 = vmul.f32 %v373_v58, %v344_v45  ;;  %v385_v21 = vpop.permute.xlu0 %384  ;;  %v368_v22 = vadd.f32 %v366_v8, %v348_v7 }
  0xd5   : > { %v388_v29 = vmul.f32 %v385_v21, %v373_v58 }
  0xd6   : > { %v376_v12 = vadd.f32 %v374_v5, %v356_v63  ;;  %v349_v23 = vadd.f32 %v347_v9, %v329_v14  ;;  %v377_v32 = vadd.f32 %v375_v19, %v357_v25 }
  0xd8   : > { %v364_v59 = vpop.permute.xlu1 %363  ;;  %v397_v24 = vadd.f32 %v395_v13, %v376_v12 }
  0xd9   : > { %v367_v15 = vmul.f32 %v364_v59, %v353_v49  ;;  %v396_v16 = vmul.f32 %v394_v0, %v364_v59 }
  0xda   : > { %v419_v34 = vmul.f32 %v561_v27, %v397_v24 }
  0xdb   : > { %v369_v28 = vadd.f32 %v367_v15, %v349_v23  ;;  %v398_v35 = vadd.f32 %v396_v16, %v377_v32 }
  0xdc   : > { %v427_v42 = vadd.f32 %v562_v37, %v419_v34 }
  0xdd   : > { %v380_v10 = vpop.permute.xlu1 %379  ;;  %v390_v20 = vadd.f32 %v388_v29, %v369_v28  ;;  %v420_v43 = vmul.f32 %v561_v27, %v398_v35 }
  0xde   : > { %v387_v17 = vmul.f32 %v380_v10, %v373_v58  ;;  %v429_v48 = vmax.f32 %v427_v42, 0.0 }
  0xdf   : > { %v428_v49 = vadd.f32 %v562_v37, %v420_v43 }
  0xe0   : > { %v389_v30 = vadd.f32 %v387_v17, %v368_v22 }
  0xe1   : > { %v430_v54 = vmax.f32 %v428_v49, 0.0 }
  0xe2   : > { %v401_v26 = vpop.permute.xlu1 %400 }
  0xe3   : > { %v407_v31 = vmul.f32 %v401_v26, %v394_v0 }
  0xe5   : > { %v409_v33 = vadd.f32 %v407_v31, %v389_v30 }
  0xe6   : > { %v405_v36 = vpop.permute.xlu1 %404 }
  0xe7   : > { %v431_v38 = vmul.f32 %v561_v27, %v409_v33  ;;  %v408_v39 = vmul.f32 %v405_v36, %v394_v0 }
  0xe9   : > { %v433_v40 = vadd.f32 %v562_v37, %v431_v38  ;;  %v410_v41 = vadd.f32 %v408_v39, %v390_v20 }
  0xeb   : > { %v435_v44 = vmax.f32 %v433_v40, 0.0  ;;  %v432_v45 = vmul.f32 %v561_v27, %v410_v41 }
  0xed   : > { %v439_v46 = vrot.slane %v435_v44, 7  ;;  %v434_v47 = vadd.f32 %v562_v37, %v432_v45 }
  0xef   : > { %v444_v50 = vsel %vm240_vm0, 0.0, %v439_v46  ;;  %v436_v51 = vmax.f32 %v434_v47, 0.0 }
  0xf0   : > { %v445_v52 = vmax.f32 %v444_v50, %v429_v48 }
  0xf1   : > { %v440_v53 = vrot.slane %v436_v51, 7 }
  0xf2   : > { %v447_v55 = vmax.f32 %v445_v52, %v435_v44 }
  0xf3   : > { %v441_v56 = vsel %vm240_vm0, %v439_v46, %v440_v53 }
  0xf4   : > { %v569_v57 = vpack.c.bf16 %v447_v55, %v447_v55  ;;  %v446_v58 = vmax.f32 %v441_v56, %v430_v54 }
  0xf6   : > { %458 = vst.msk [vmem:[%s235_s19] sm:$0xf] %vm457_vm2, %v569_v57  ;;  %v448_v59 = vmax.f32 %v446_v58, %v436_v51 }
  0xf8   : > { %v570_v60 = vpack.c.bf16 %v448_v59, %v448_v59 }
  0xfa   : > { %459 = vst.msk [vmem:[%s235_s19 + $0x4] sm:$0xf] %vm457_vm2, %v570_v60 }
  0xfb PF: > { %s16_s15 = sadd.s32 1, %s717_s15  }
  0xfc   : > { %p13_p5 = scmp.ge.s32.totalorder %s16_s15, 4  }
  0xfe   :  { %15 = sbr.rel (!%p13_p5) target bundleno = 2 (0x2), region = 79 }
 0x103   :  { %481 = vsyncpa [#allocation3], 1 }
 0x104   :  { %483 = vsyncpa [#allocation3 + $0x1], 1 }
 0x105   :  { %484 = vsyncpa [#allocation5], 1 }

// kernel: _lambda_.11
= control target key start
LH: loop header
LB: loop body
LE: loop exit
PB: predicated region body
PF: predicated region fallthrough
CT: control target
= control target key end

     0   :  { %10 = vsyncpa [#allocation3], 0  ;;  %s915_s0 = inlined_call_operand.vmem [shape: bf16[2,16,64], index: 0, kind: input, shape index: {}]   ;;  %s916_s1 = inlined_call_operand.hbm [shape: bf16[192,64], index: 1, kind: input, shape index: {}]   ;;  %s917_s2 = inlined_call_operand.hbm [shape: f32[1,64], index: 2, kind: input, shape index: {}]   ;;  %s918_s3 = inlined_call_operand.hbm [shape: f32[1,64], index: 3, kind: input, shape index: {}]   ;;  %s919_s4 = inlined_call_operand.vmem [shape: bf16[2,16,64], index: 4, kind: input, shape index: {}]   ;;  %s920_s5 = inlined_call_operand.vmem [shape: bf16[2,16,64], index: 5, kind: output, shape index: {}]  }
   0x1   :  { %11 = vsyncpa [#allocation5], 0  ;;  %s827_s18 = smov 0  }
   0x2 LB: > { %s790_s19 = smov [#allocation4]   ;;  %s833_s21 = sadd.s32 4294967295, %s788_s18   ;;  %s788_s18 = sphi %s827_s18, %s17_s18  }
   0x3   : > { %s189_s20 = sshll.u32 %s790_s19, 4  ;;  %p596_p0 = scmp.ge.s32.totalorder %s788_s18, 1  ;;  %s190_s20 = int_to_ptr.vmem [resolvable:$true] %s189_s20 }
   0x4   : > { %p163_p1 = scmp.lt.s32.totalorder %s788_s18, 3  ;;  %p921_p2 = scmp.eq.s32.totalorder %s833_s21, 0 }
   0x5   : > { %s791_s23 = smov [#allocation2]   ;;  %s792_s26 = smov [#allocation6]  }
   0x6   : > { %p838_p3 = pnand %p596_p0, %p163_p1  ;;  %s175_s24 = sshll.u32 %s791_s23, 4  ;;  %s176_s24 = int_to_ptr.vmem [resolvable:$true] %s175_s24 }
   0x7   : > { %s200_s27 = sshll.u32 %s792_s26, 4  ;;  %s707_s28 = scalar_lea.vmem %s190_s20, 16  ;;  %s850_s27 = int_to_ptr.vmem [resolvable:$true] %s200_s27 }
   0x8   : > { %s923_s22 = scalar_select %p838_p3, 1, 0 }
   0x9   : > { %p652_p4 = pneg %p838_p3  ;;  %p708_p7 = scmp.ne.s32.totalorder %s190_s20, %s707_s28 }
   0xa   : > { %s714_s29 = scalar_lea.vmem %s190_s20, 32  ;;  %p715_p10 = scmp.lt.s32.totalorder %s190_s20, %s190_s20 }
   0xb   : > { %p846_p5 = pnand %p921_p2, %p652_p4  ;;  %p716_p11 = scmp.lt.s32.totalorder %s714_s29, %s707_s28 }
   0xd   : > { %p698_p6 = pneg %p846_p5  ;;  %p717_p12 = por %p716_p11, %p715_p10 }
   0xf   : > { %p710_p8 = pnand %p708_p7, %p698_p6 }
  0x11   : > { %p711_p9 = pneg %p710_p8 }
  0x13   : > { %p718_p13 = pnand %p717_p12, %p711_p9 }
  0x15   : > { %721 = shalt.err (!%p718_p13)
}
  0x16   : > { %658 = dma.hbm_to_vmem [thread:$0]  (!%p846_p5), %s917_s2, 16, %s190_s20, [#allocation5]  }
  0x17   : > { %s733_s7 = scalar_lea.vmem %s176_s24, 1536  ;;  %p741_p7 = scmp.lt.s32.totalorder %s176_s24, %s176_s24 }
  0x18   : > { %p734_p0 = scmp.ne.s32.totalorder %s176_s24, %s733_s7  ;;  %p742_p8 = scmp.lt.s32.totalorder %s733_s7, %s733_s7 }
  0x1a   : > { %p736_p1 = pnand %p734_p0, %p698_p6  ;;  %p743_p2 = por %p742_p8, %p741_p7 }
  0x1c   : > { %p737_p4 = pneg %p736_p1 }
  0x1e   : > { %p744_p3 = pnand %p743_p2, %p737_p4 }
  0x20   : > { %747 = shalt.err (!%p744_p3)
}
  0x21   : > { %s793_s8 = smov 64   ;;  %s794_s9 = smov 4  }
  0x22   : > { %655 = dma.hbm_to_vmem [thread:$0]  (!%p846_p5), %s916_s1, 1536, %s176_s24, [#allocation3], %s793_s8, %s793_s8, %s794_s9  }
  0x23   : > { %s759_s12 = scalar_lea.vmem %s850_s27, 16  ;;  %s766_s13 = scalar_lea.vmem %s850_s27, 32 }
  0x24   : > { %p760_p9 = scmp.ne.s32.totalorder %s850_s27, %s759_s12  ;;  %p767_p3 = scmp.lt.s32.totalorder %s850_s27, %s850_s27 }
  0x25   : > { %p768_p11 = scmp.lt.s32.totalorder %s766_s13, %s759_s12 }
  0x26   : > { %p762_p10 = pnand %p760_p9, %p698_p6 }
  0x27   : > { %p769_p12 = por %p768_p11, %p767_p3 }
  0x28   : > { %p763_p2 = pneg %p762_p10 }
  0x2a   : > { %p770_p13 = pnand %p769_p12, %p763_p2 }
  0x2c   : > { %773 = shalt.err (!%p770_p13)
}
  0x2d   : > { %661 = dma.hbm_to_vmem [thread:$0]  (!%p846_p5), %s918_s3, 16, %s850_s27, [#allocation5]  }
  0x2e   : > { %p925_p0 = scmp.ne.s32.totalorder %s923_s22, 0 }
  0x2f   : > { %p926_p6 = scmp.eq.s32.totalorder (!%p925_p0), %s833_s21, 0 }
  0x30   : > { %229 = sbr.rel (%p925_p0) target bundleno = 388 (0x184), region = 40 }
  0x35   : > { %779 = dma.done.wait (%p926_p6), [#allocation3], 1536   ;;  %p927_p1 = pmov %p926_p6 }
  0x37   : > { %781 = vsyncadd (%p927_p1), [#allocation3], 4294965760  ;;  %p928_p4 = pmov %p927_p1 }
  0x38   : > { %p929_p7 = pmov %p927_p1 }
  0x39   : > { %783 = dma.done.wait (%p928_p4), [#allocation5], 32  }
  0x3a   : > { %785 = vsyncadd (%p929_p7), [#allocation5], 4294967264  ;;  %p270_p8 = scmp.lt.s32.totalorder %s833_s21, 1  ;;  %v795_v0 = vmov 0   ;;  %vm309_vm0 = vsmask.f32 7424 }
  0x3b   : > { %418 = vmatprep.subr.bf16.mxu0 %v795_v0  ;;  %v684_v2 = vld [vmem:[#allocation2 + $0x38] sm:$0xff]   ;;  %s796_s22 = smov 64   ;;  %vm308_vm1 = vcmask 1047552   ;;  %v685_v4 = vld [vmem:[#allocation2 + $0x30] sm:$0xff]   ;;  %v686_v9 = vld [vmem:[#allocation2 + $0x28] sm:$0xff]   ;;  %vm314_vm3 = vcmask 523264  }
  0x3c   : > { %s931_s21 = smov (!%p270_p8, %s833_s21), 1  ;;  %419 = vmatpush1.bf16.msra.mxu0 %v684_v2  ;;  %vm310_vm2 = vmand %vm308_vm1, %vm309_vm0  ;;  %v687_v12 = vld [vmem:[#allocation2 + $0x20] sm:$0xff]   ;;  %v688_v13 = vld [vmem:[#allocation2 + $0x18] sm:$0xff]   ;;  %vm301_vm4 = vcmask 1040384   ;;  %vm302_vm5 = vsmask.f32 256 }
  0x3d   : > { %s896_s16 = sshll.u32 %s931_s21, 3  ;;  %420 = vmatprep.subr.bf16.mxu0 %v795_v0  ;;  %v689_v14 = vld [vmem:[#allocation2 + $0x10] sm:$0xff]   ;;  %v690_v15 = vld [vmem:[#allocation2 + $0x8] sm:$0xff]   ;;  %v691_v16 = vld [vmem:[#allocation2] sm:$0xff]   ;;  %vm493_vm7 = vcmask 519168  }
  0x3e   : > { %s274_s20 = scalar_lea.vmem %s915_s0, %s896_s16  ;;  %v692_v17 = vld [vmem:[#allocation2 + $0x58] sm:$0xff]   ;;  %v693_v18 = vld [vmem:[#allocation2 + $0x50] sm:$0xff]   ;;  %v694_v19 = vld [vmem:[#allocation2 + $0x48] sm:$0xff]   ;;  %s279_s24 = scalar_lea.vmem %s919_s4, %s896_s16 }
  0x3f   : > { %v683_v1 = vld [vmem:[%s274_s20] sm:$0xff]   ;;  %vm303_vm6 = vmand %vm301_vm4, %vm302_vm5  ;;  %s284_s27 = scalar_lea.vmem %s920_s5, %s896_s16 }
  0x40   : > { %312 = vrot.lane.b32.xlu0 %v683_v1, %s796_s22  ;;  %v294_v3 = vshrl.u32 %v683_v1, 16  ;;  %v297_v5 = vshll.u32 %v683_v1, 16  ;;  %421 = vmatpush1.bf16.msra.mxu0 %v685_v4  ;;  %v695_v20 = vld [vmem:[#allocation2 + $0x40] sm:$0xff]  }
  0x41   : > { %422 = vmatprep.subr.bf16.mxu0 %v795_v0  ;;  %v625_v24 = vld [vmem:[#allocation4] ss:$0 sm:$0xff]  ;;  %v626_v27 = vld [vmem:[#allocation6] ss:$0 sm:$0xff] }
  0x42   : > { %v296_v6 = vrot.slane %v294_v3, 7  ;;  %v305_v7 = vrot.slane %v297_v5, 1  ;;  %v637_v25 = vld [vmem:[%s279_s24] sm:$0xff]  }
  0x43   : > { %v638_v29 = vunpack.c.l.bf16 %v637_v25  ;;  %v639_v35 = vunpack.c.h.bf16 %v637_v25 }
  0x44   : > { %v299_v8 = vor.u32 %v297_v5, %v296_v6  ;;  %v306_v10 = vor.u32 %v305_v7, %v294_v3  ;;  %423 = vmatpush1.bf16.msra.mxu0 %v686_v9 }
  0x45   : > { %424 = vmatprep.subr.bf16.mxu0 %v795_v0 }
  0x46   : > { %v311_v11 = vsel %vm310_vm2, %v306_v10, 0  ;;  %v304_v21 = vsel %vm303_vm6, 0, %v299_v8 }
  0x47   : > { %624 = vmatprep.mubr.msk.bf16.mxu0 %vm314_vm3, %v311_v11 }
  0x48   : > { %425 = vmatpush1.bf16.msra.mxu0 %v687_v12 }
  0x49   : > { %426 = vmatprep.subr.bf16.mxu0 %v795_v0 }
  0x4c   : > { %427 = vmatpush1.bf16.msra.mxu0 %v688_v13 }
  0x4d   : > { %428 = vmatprep.subr.bf16.mxu0 %v795_v0 }
  0x50   : > { %429 = vmatpush1.bf16.msra.mxu0 %v689_v14 }
  0x51   : > { %430 = vmatprep.subr.bf16.mxu0 %v795_v0 }
  0x54   : > { %431 = vmatpush1.bf16.msra.mxu0 %v690_v15 }
  0x55   : > { %432 = vmatprep.subr.bf16.mxu0 %v795_v0 }
  0x58   : > { %433 = vmatpush1.bf16.msra.mxu0 %v691_v16 }
  0x59   : > { %442 = vmatprep.subr.bf16.mxu0 %v795_v0 }
  0x5c   : > { %443 = vmatpush2.bf16.msra.mxu0 %v692_v17 }
  0x5d   : > { %444 = vmatprep.subr.bf16.mxu0 %v795_v0 }
  0x60   : > { %445 = vmatpush2.bf16.msra.mxu0 %v693_v18 }
  0x61   : > { %446 = vmatprep.subr.bf16.mxu0 %v795_v0 }
  0x64   : > { %447 = vmatpush2.bf16.msra.mxu0 %v694_v19 }
  0x65   : > { %448 = vmatprep.subr.bf16.mxu0 %v795_v0 }
  0x68   : > { %449 = vmatpush2.bf16.msra.mxu0 %v695_v20 }
  0xb2   : > { %v313_v22 = vpop.permute.xlu0 %312 }
  0xb3   : > { %v317_v23 = vsel %vm314_vm3, %v304_v21, %v313_v22 }
  0xb4   : > { %451 = vmatmul.mubr.bf16.vlgmr.msra.gmra.mxu0 %v317_v23 }
 0x174   : > { %v452_v26 = vpop.f32.mrf.mxu0 }
 0x175   : > { %v466_v28 = vmul.f32 %v625_v24, %v452_v26 }
 0x176   : > { %v454_v30 = vpop.f32.mrf.mxu0 }
 0x177   : > { %v475_v31 = vadd.f32 %v626_v27, %v466_v28 }
 0x178   : > { %v455_v32 = vpop.f32.mrf.mxu0 }
 0x179   : > { %v481_v33 = vadd.f32 %v638_v29, %v475_v31  ;;  %v467_v34 = vmul.f32 %v625_v24, %v455_v32 }
 0x17a   : > { %v457_v36 = vpop.f32.mrf.mxu0 }
 0x17b   : > { %v483_v37 = vmax.f32 %v481_v33, 0.0  ;;  %v476_v38 = vadd.f32 %v626_v27, %v467_v34 }
 0x17d   : > { %v634_v39 = vpack.c.bf16 %v483_v37, %v483_v37  ;;  %v482_v40 = vadd.f32 %v639_v35, %v476_v38 }
 0x17f   : > { %494 = vst.msk [vmem:[%s284_s27] sm:$0xf] %vm493_vm7, %v634_v39  ;;  %v484_v41 = vmax.f32 %v482_v40, 0.0 }
 0x181   : > { %v635_v42 = vpack.c.bf16 %v484_v41, %v484_v41 }
 0x183   : > { %495 = vst.msk [vmem:[%s284_s27 + $0x4] sm:$0xf] %vm493_vm7, %v635_v42 }
 0x184 PF: > { %s17_s18 = sadd.s32 1, %s788_s18  }
 0x185   : > { %p14_p5 = scmp.ge.s32.totalorder %s17_s18, 4  }
 0x187   :  { %16 = sbr.rel (!%p14_p5) target bundleno = 2 (0x2), region = 86 }
 0x18c   :  { %517 = vsyncpa [#allocation3], 1 }
 0x18d   :  { %519 = vsyncpa [#allocation3 + $0x1], 1 }
 0x18e   :  { %520 = vsyncpa [#allocation5], 1 }

// kernel: _lambda_.10
= control target key start
LH: loop header
LB: loop body
LE: loop exit
PB: predicated region body
PF: predicated region fallthrough
CT: control target
= control target key end

     0   :  { %9 = vsyncpa [#allocation3], 0  ;;  %s837_s0 = inlined_call_operand.vmem [shape: bf16[2,16,64], index: 0, kind: input, shape index: {}]   ;;  %s838_s1 = inlined_call_operand.hbm [shape: bf16[192,64], index: 1, kind: input, shape index: {}]   ;;  %s839_s2 = inlined_call_operand.hbm [shape: f32[1,64], index: 2, kind: input, shape index: {}]   ;;  %s840_s3 = inlined_call_operand.hbm [shape: f32[1,64], index: 3, kind: input, shape index: {}]   ;;  %s841_s4 = inlined_call_operand.vmem [shape: bf16[2,16,64], index: 4, kind: output, shape index: {}]  }
   0x1   :  { %10 = vsyncpa [#allocation5], 0  ;;  %s750_s15 = smov 0  }
   0x2 LB: > { %s718_s16 = smov [#allocation4]   ;;  %s756_s18 = sadd.s32 4294967295, %s716_s15   ;;  %s716_s15 = sphi %s750_s15, %s16_s15  }
   0x3   : > { %s162_s17 = sshll.u32 %s718_s16, 4  ;;  %p531_p0 = scmp.ge.s32.totalorder %s716_s15, 1  ;;  %s163_s17 = int_to_ptr.vmem [resolvable:$true] %s162_s17 }
   0x4   : > { %p136_p1 = scmp.lt.s32.totalorder %s716_s15, 3  ;;  %p842_p2 = scmp.eq.s32.totalorder %s756_s18, 0 }
   0x5   : > { %s719_s20 = smov [#allocation2]   ;;  %s720_s23 = smov [#allocation6]  }
   0x6   : > { %p761_p3 = pnand %p531_p0, %p136_p1  ;;  %s148_s21 = sshll.u32 %s719_s20, 4  ;;  %s149_s21 = int_to_ptr.vmem [resolvable:$true] %s148_s21 }
   0x7   : > { %s173_s24 = sshll.u32 %s720_s23, 4  ;;  %s635_s25 = scalar_lea.vmem %s163_s17, 16  ;;  %s773_s24 = int_to_ptr.vmem [resolvable:$true] %s173_s24 }
   0x8   : > { %s844_s19 = scalar_select %p761_p3, 1, 0 }
   0x9   : > { %p580_p4 = pneg %p761_p3  ;;  %p636_p7 = scmp.ne.s32.totalorder %s163_s17, %s635_s25 }
   0xa   : > { %s642_s26 = scalar_lea.vmem %s163_s17, 32  ;;  %p643_p10 = scmp.lt.s32.totalorder %s163_s17, %s163_s17 }
   0xb   : > { %p769_p5 = pnand %p842_p2, %p580_p4  ;;  %p644_p11 = scmp.lt.s32.totalorder %s642_s26, %s635_s25 }
   0xd   : > { %p626_p6 = pneg %p769_p5  ;;  %p645_p12 = por %p644_p11, %p643_p10 }
   0xf   : > { %p638_p8 = pnand %p636_p7, %p626_p6 }
  0x11   : > { %p639_p9 = pneg %p638_p8 }
  0x13   : > { %p646_p13 = pnand %p645_p12, %p639_p9 }
  0x15   : > { %649 = shalt.err (!%p646_p13)
}
  0x16   : > { %586 = dma.hbm_to_vmem [thread:$0]  (!%p769_p5), %s839_s2, 16, %s163_s17, [#allocation5]  }
  0x17   : > { %s661_s29 = scalar_lea.vmem %s149_s21, 1536  ;;  %p669_p7 = scmp.lt.s32.totalorder %s149_s21, %s149_s21 }
  0x18   : > { %p662_p0 = scmp.ne.s32.totalorder %s149_s21, %s661_s29  ;;  %p670_p8 = scmp.lt.s32.totalorder %s661_s29, %s661_s29 }
  0x1a   : > { %p664_p1 = pnand %p662_p0, %p626_p6  ;;  %p671_p2 = por %p670_p8, %p669_p7 }
  0x1c   : > { %p665_p4 = pneg %p664_p1 }
  0x1e   : > { %p672_p3 = pnand %p671_p2, %p665_p4 }
  0x20   : > { %675 = shalt.err (!%p672_p3)
}
  0x21   : > { %s721_s30 = smov 64   ;;  %s722_s5 = smov 4  }
  0x22   : > { %583 = dma.hbm_to_vmem [thread:$0]  (!%p769_p5), %s838_s1, 1536, %s149_s21, [#allocation3], %s721_s30, %s721_s30, %s722_s5  }
  0x23   : > { %s687_s8 = scalar_lea.vmem %s773_s24, 16  ;;  %s694_s9 = scalar_lea.vmem %s773_s24, 32 }
  0x24   : > { %p688_p9 = scmp.ne.s32.totalorder %s773_s24, %s687_s8  ;;  %p695_p3 = scmp.lt.s32.totalorder %s773_s24, %s773_s24 }
  0x25   : > { %p696_p11 = scmp.lt.s32.totalorder %s694_s9, %s687_s8 }
  0x26   : > { %p690_p10 = pnand %p688_p9, %p626_p6 }
  0x27   : > { %p697_p12 = por %p696_p11, %p695_p3 }
  0x28   : > { %p691_p2 = pneg %p690_p10 }
  0x2a   : > { %p698_p13 = pnand %p697_p12, %p691_p2 }
  0x2c   : > { %701 = shalt.err (!%p698_p13)
}
  0x2d   : > { %589 = dma.hbm_to_vmem [thread:$0]  (!%p769_p5), %s840_s3, 16, %s773_s24, [#allocation5]  }
  0x2e   : > { %p846_p0 = scmp.ne.s32.totalorder %s844_s19, 0 }
  0x2f   : > { %p847_p6 = scmp.eq.s32.totalorder (!%p846_p0), %s756_s18, 0 }
  0x30   : > { %194 = sbr.rel (%p846_p0) target bundleno = 386 (0x182), region = 36 }
  0x35   : > { %707 = dma.done.wait (%p847_p6), [#allocation3], 1536   ;;  %p848_p1 = pmov %p847_p6 }
  0x37   : > { %709 = vsyncadd (%p848_p1), [#allocation3], 4294965760  ;;  %p849_p4 = pmov %p848_p1 }
  0x38   : > { %p850_p7 = pmov %p848_p1 }
  0x39   : > { %711 = dma.done.wait (%p849_p4), [#allocation5], 32  }
  0x3a   : > { %713 = vsyncadd (%p850_p7), [#allocation5], 4294967264  ;;  %p228_p8 = scmp.lt.s32.totalorder %s756_s18, 1  ;;  %v723_v0 = vmov 0   ;;  %vm262_vm0 = vsmask.f32 7424 }
  0x3b   : > { %371 = vmatprep.subr.bf16.mxu0 %v723_v0  ;;  %v612_v2 = vld [vmem:[#allocation2 + $0x38] sm:$0xff]   ;;  %s724_s17 = smov 64   ;;  %vm261_vm1 = vcmask 1047552   ;;  %v613_v4 = vld [vmem:[#allocation2 + $0x30] sm:$0xff]   ;;  %v614_v9 = vld [vmem:[#allocation2 + $0x28] sm:$0xff]   ;;  %vm267_vm3 = vcmask 523264  }
  0x3c   : > { %s852_s18 = smov (!%p228_p8, %s756_s18), 1  ;;  %372 = vmatpush1.bf16.msra.mxu0 %v612_v2  ;;  %vm263_vm2 = vmand %vm261_vm1, %vm262_vm0  ;;  %v615_v12 = vld [vmem:[#allocation2 + $0x20] sm:$0xff]   ;;  %v616_v13 = vld [vmem:[#allocation2 + $0x18] sm:$0xff]   ;;  %vm254_vm4 = vcmask 1040384   ;;  %vm255_vm5 = vsmask.f32 256 }
  0x3d   : > { %s564_s12 = sshll.u32 %s852_s18, 3  ;;  %373 = vmatprep.subr.bf16.mxu0 %v723_v0  ;;  %v617_v14 = vld [vmem:[#allocation2 + $0x10] sm:$0xff]   ;;  %v618_v15 = vld [vmem:[#allocation2 + $0x8] sm:$0xff]   ;;  %v619_v16 = vld [vmem:[#allocation2] sm:$0xff]   ;;  %vm440_vm7 = vcmask 519168  }
  0x3e   : > { %s232_s16 = scalar_lea.vmem %s837_s0, %s564_s12  ;;  %v620_v17 = vld [vmem:[#allocation2 + $0x58] sm:$0xff]   ;;  %v621_v18 = vld [vmem:[#allocation2 + $0x50] sm:$0xff]   ;;  %v622_v19 = vld [vmem:[#allocation2 + $0x48] sm:$0xff]   ;;  %s237_s21 = scalar_lea.vmem %s841_s4, %s564_s12 }
  0x3f   : > { %v611_v1 = vld [vmem:[%s232_s16] sm:$0xff]   ;;  %vm256_vm6 = vmand %vm254_vm4, %vm255_vm5 }
  0x40   : > { %265 = vrot.lane.b32.xlu0 %v611_v1, %s724_s17  ;;  %v247_v3 = vshrl.u32 %v611_v1, 16  ;;  %v250_v5 = vshll.u32 %v611_v1, 16  ;;  %374 = vmatpush1.bf16.msra.mxu0 %v613_v4  ;;  %v623_v20 = vld [vmem:[#allocation2 + $0x40] sm:$0xff]  }
  0x41   : > { %375 = vmatprep.subr.bf16.mxu0 %v723_v0  ;;  %v558_v24 = vld [vmem:[#allocation4] ss:$0 sm:$0xff]  ;;  %v559_v26 = vld [vmem:[#allocation6] ss:$0 sm:$0xff] }
  0x42   : > { %v249_v6 = vrot.slane %v247_v3, 7  ;;  %v258_v7 = vrot.slane %v250_v5, 1 }
  0x44   : > { %v252_v8 = vor.u32 %v250_v5, %v249_v6  ;;  %v259_v10 = vor.u32 %v258_v7, %v247_v3  ;;  %376 = vmatpush1.bf16.msra.mxu0 %v614_v9 }
  0x45   : > { %377 = vmatprep.subr.bf16.mxu0 %v723_v0 }
  0x46   : > { %v264_v11 = vsel %vm263_vm2, %v259_v10, 0  ;;  %v257_v21 = vsel %vm256_vm6, 0, %v252_v8 }
  0x47   : > { %557 = vmatprep.mubr.msk.bf16.mxu0 %vm267_vm3, %v264_v11 }
  0x48   : > { %378 = vmatpush1.bf16.msra.mxu0 %v615_v12 }
  0x49   : > { %379 = vmatprep.subr.bf16.mxu0 %v723_v0 }
  0x4c   : > { %380 = vmatpush1.bf16.msra.mxu0 %v616_v13 }
  0x4d   : > { %381 = vmatprep.subr.bf16.mxu0 %v723_v0 }
  0x50   : > { %382 = vmatpush1.bf16.msra.mxu0 %v617_v14 }
  0x51   : > { %383 = vmatprep.subr.bf16.mxu0 %v723_v0 }
  0x54   : > { %384 = vmatpush1.bf16.msra.mxu0 %v618_v15 }
  0x55   : > { %385 = vmatprep.subr.bf16.mxu0 %v723_v0 }
  0x58   : > { %386 = vmatpush1.bf16.msra.mxu0 %v619_v16 }
  0x59   : > { %395 = vmatprep.subr.bf16.mxu0 %v723_v0 }
  0x5c   : > { %396 = vmatpush2.bf16.msra.mxu0 %v620_v17 }
  0x5d   : > { %397 = vmatprep.subr.bf16.mxu0 %v723_v0 }
  0x60   : > { %398 = vmatpush2.bf16.msra.mxu0 %v621_v18 }
  0x61   : > { %399 = vmatprep.subr.bf16.mxu0 %v723_v0 }
  0x64   : > { %400 = vmatpush2.bf16.msra.mxu0 %v622_v19 }
  0x65   : > { %401 = vmatprep.subr.bf16.mxu0 %v723_v0 }
  0x68   : > { %402 = vmatpush2.bf16.msra.mxu0 %v623_v20 }
  0xb2   : > { %v266_v22 = vpop.permute.xlu0 %265 }
  0xb3   : > { %v270_v23 = vsel %vm267_vm3, %v257_v21, %v266_v22 }
  0xb4   : > { %404 = vmatmul.mubr.bf16.vlgmr.msra.gmra.mxu0 %v270_v23 }
 0x174   : > { %v405_v25 = vpop.f32.mrf.mxu0 }
 0x175   : > { %v419_v27 = vmul.f32 %v558_v24, %v405_v25 }
 0x176   : > { %v407_v28 = vpop.f32.mrf.mxu0 }
 0x177   : > { %v428_v29 = vadd.f32 %v559_v26, %v419_v27 }
 0x178   : > { %v408_v30 = vpop.f32.mrf.mxu0 }
 0x179   : > { %v430_v31 = vmax.f32 %v428_v29, 0.0  ;;  %v420_v32 = vmul.f32 %v558_v24, %v408_v30 }
 0x17a   : > { %v410_v33 = vpop.f32.mrf.mxu0 }
 0x17b   : > { %v566_v34 = vpack.c.bf16 %v430_v31, %v430_v31  ;;  %v429_v35 = vadd.f32 %v559_v26, %v420_v32 }
 0x17d   : > { %441 = vst.msk [vmem:[%s237_s21] sm:$0xf] %vm440_vm7, %v566_v34  ;;  %v431_v36 = vmax.f32 %v429_v35, 0.0 }
 0x17f   : > { %v567_v37 = vpack.c.bf16 %v431_v36, %v431_v36 }
 0x181   : > { %442 = vst.msk [vmem:[%s237_s21 + $0x4] sm:$0xf] %vm440_vm7, %v567_v37 }
 0x182 PF: > { %s16_s15 = sadd.s32 1, %s716_s15  }
 0x183   : > { %p13_p5 = scmp.ge.s32.totalorder %s16_s15, 4  }
 0x185   :  { %15 = sbr.rel (!%p13_p5) target bundleno = 2 (0x2), region = 79 }
 0x18a   :  { %464 = vsyncpa [#allocation3], 1 }
 0x18b   :  { %466 = vsyncpa [#allocation3 + $0x1], 1 }
 0x18c   :  { %467 = vsyncpa [#allocation5], 1 }

// kernel: _lambda_.12
= control target key start
LH: loop header
LB: loop body
LE: loop exit
PB: predicated region body
PF: predicated region fallthrough
CT: control target
= control target key end

     0   :  { %14 = vsyncpa [#allocation3], 0  ;;  %s1343_s0 = inlined_call_operand.vmem [shape: bf16[2,8,128], index: 0, kind: input, shape index: {}]   ;;  %s1344_s1 = inlined_call_operand.hbm [shape: bf16[192,128], index: 1, kind: input, shape index: {}]   ;;  %s1345_s2 = inlined_call_operand.hbm [shape: f32[1,128], index: 2, kind: input, shape index: {}]   ;;  %s1346_s3 = inlined_call_operand.hbm [shape: f32[1,128], index: 3, kind: input, shape index: {}]   ;;  %s1347_s4 = inlined_call_operand.hbm [shape: bf16[64,128], index: 4, kind: input, shape index: {}]   ;;  %s1348_s5 = inlined_call_operand.hbm [shape: f32[1,128], index: 5, kind: input, shape index: {}]   ;;  %s1349_s6 = inlined_call_operand.hbm [shape: f32[1,128], index: 6, kind: input, shape index: {}]   ;;  %s1350_s7 = inlined_call_operand.vmem [shape: bf16[2,8,128], index: 7, kind: output, shape index: {0}]   ;;  %s1351_s8 = inlined_call_operand.vmem [shape: bf16[2,8,128], index: 8, kind: output, shape index: {1}]  }
   0x1   :  { %15 = vsyncpa [#allocation5], 0 }
   0x2   :  { %16 = vsyncpa [#allocation8], 0 }
   0x3   :  { %17 = vsyncpa [#allocation11], 0  ;;  %s1203_s27 = smov 0  }
   0x4 LB: > { %s1146_s28 = smov [#allocation4]   ;;  %s1209_s30 = sadd.s32 4294967295, %s1144_s27   ;;  %s1144_s27 = sphi %s1203_s27, %s23_s27  }
   0x5   : > { %s258_s29 = sshll.u32 %s1146_s28, 4  ;;  %p814_p0 = scmp.ge.s32.totalorder %s1144_s27, 1  ;;  %s259_s29 = int_to_ptr.vmem [resolvable:$true] %s258_s29 }
   0x6   : > { %p232_p1 = scmp.lt.s32.totalorder %s1144_s27, 3  ;;  %p1352_p2 = scmp.eq.s32.totalorder %s1209_s30, 0 }
   0x7   : > { %s1147_s10 = smov [#allocation7]   ;;  %s1148_s13 = smov [#allocation2]  }
   0x8   : > { %p1214_p3 = pnand %p814_p0, %p232_p1  ;;  %s279_s11 = sshll.u32 %s1147_s10, 4  ;;  %s1220_s11 = int_to_ptr.vmem [resolvable:$true] %s279_s11 }
   0x9   : > { %s244_s14 = sshll.u32 %s1148_s13, 4  ;;  %s1149_s15 = smov [#allocation6]   ;;  %s1228_s14 = int_to_ptr.vmem [resolvable:$true] %s244_s14 }
   0xa   : > { %p898_p4 = pneg %p1214_p3  ;;  %s1230_s16 = sshll.u32 %s1149_s15, 4  ;;  %s270_s16 = int_to_ptr.vmem [resolvable:$true] %s1230_s16 }
   0xb   : > { %s977_s18 = scalar_lea.vmem %s259_s29, 16  ;;  %s984_s19 = scalar_lea.vmem %s259_s29, 32 }
   0xc   : > { %p1224_p5 = pnand %p1352_p2, %p898_p4  ;;  %p978_p7 = scmp.ne.s32.totalorder %s259_s29, %s977_s18 }
   0xd   : > { %p985_p10 = scmp.lt.s32.totalorder %s259_s29, %s259_s29  ;;  %p986_p11 = scmp.lt.s32.totalorder %s984_s19, %s977_s18 }
   0xe   : > { %p1234_p6 = pneg %p1224_p5 }
   0xf   : > { %p987_p12 = por %p986_p11, %p985_p10 }
  0x10   : > { %p980_p8 = pnand %p978_p7, %p1234_p6 }
  0x12   : > { %p981_p9 = pneg %p980_p8 }
  0x14   : > { %p988_p13 = pnand %p987_p12, %p981_p9 }
  0x16   : > { %991 = shalt.err (!%p988_p13)
}
  0x17   : > { %904 = dma.hbm_to_vmem [thread:$0]  (!%p1224_p5), %s1345_s2, 16, %s259_s29, [#allocation5]  }
  0x18   : > { %s1003_s22 = scalar_lea.vmem %s1220_s11, 512  ;;  %p1011_p7 = scmp.lt.s32.totalorder %s1220_s11, %s1220_s11 }
  0x19   : > { %p1004_p0 = scmp.ne.s32.totalorder %s1220_s11, %s1003_s22  ;;  %p1012_p8 = scmp.lt.s32.totalorder %s1003_s22, %s1003_s22 }
  0x1b   : > { %p1006_p1 = pnand %p1004_p0, %p1234_p6  ;;  %p1013_p9 = por %p1012_p8, %p1011_p7 }
  0x1d   : > { %p1007_p4 = pneg %p1006_p1 }
  0x1f   : > { %p1014_p10 = pnand %p1013_p9, %p1007_p4 }
  0x21   : > { %1017 = shalt.err (!%p1014_p10)
}
  0x22   : > { %s1150_s23 = smov 64   ;;  %s1151_s24 = smov 4  }
  0x23   : > { %910 = dma.hbm_to_vmem [thread:$0]  (!%p1224_p5), %s1347_s4, 512, %s1220_s11, [#allocation8], %s1150_s23, %s1150_s23, %s1151_s24  }
  0x24   : > { %s1029_s28 = scalar_lea.vmem %s1228_s14, 1536  ;;  %p1037_p0 = scmp.lt.s32.totalorder %s1228_s14, %s1228_s14 }
  0x25   : > { %p1030_p11 = scmp.ne.s32.totalorder %s1228_s14, %s1029_s28  ;;  %p1038_p1 = scmp.lt.s32.totalorder %s1029_s28, %s1029_s28 }
  0x27   : > { %p1032_p12 = pnand %p1030_p11, %p1234_p6  ;;  %p1039_p4 = por %p1038_p1, %p1037_p0 }
  0x29   : > { %p1033_p13 = pneg %p1032_p12 }
  0x2b   : > { %p1040_p7 = pnand %p1039_p4, %p1033_p13 }
  0x2d   : > { %1043 = shalt.err (!%p1040_p7)
}
  0x2e   : > { %901 = dma.hbm_to_vmem [thread:$0]  (!%p1224_p5), %s1344_s1, 1536, %s1228_s14, [#allocation3], %s1150_s23, %s1150_s23, %s1151_s24  }
  0x2f   : > { %s1055_s11 = scalar_lea.vmem %s270_s16, 16  ;;  %s1062_s13 = scalar_lea.vmem %s270_s16, 32 }
  0x30   : > { %p1056_p8 = scmp.ne.s32.totalorder %s270_s16, %s1055_s11  ;;  %p1063_p11 = scmp.lt.s32.totalorder %s270_s16, %s270_s16 }
  0x31   : > { %p1064_p12 = scmp.lt.s32.totalorder %s1062_s13, %s1055_s11 }
  0x32   : > { %p1058_p9 = pnand %p1056_p8, %p1234_p6 }
  0x33   : > { %p1065_p13 = por %p1064_p12, %p1063_p11 }
  0x34   : > { %p1059_p10 = pneg %p1058_p9 }
  0x36   : > { %p1066_p0 = pnand %p1065_p13, %p1059_p10 }
  0x38   : > { %1069 = shalt.err (!%p1066_p0)
}
  0x39   : > { %907 = dma.hbm_to_vmem [thread:$0]  (!%p1224_p5), %s1346_s3, 16, %s270_s16, [#allocation5]  }
  0x3a   : > { %s1152_s14 = smov [#allocation9]   ;;  %s1153_s20 = smov [#allocation10]  }
  0x3b   : > { %s293_s19 = sshll.u32 %s1152_s14, 4  ;;  %s304_s21 = sshll.u32 %s1153_s20, 4  ;;  %s294_s19 = int_to_ptr.vmem [resolvable:$true] %s293_s19  ;;  %s305_s21 = int_to_ptr.vmem [resolvable:$true] %s304_s21 }
  0x3c   : > { %s1081_s22 = scalar_lea.vmem %s294_s19, 16  ;;  %s1088_s23 = scalar_lea.vmem %s294_s19, 32 }
  0x3d   : > { %p1082_p1 = scmp.ne.s32.totalorder %s294_s19, %s1081_s22  ;;  %p1089_p8 = scmp.lt.s32.totalorder %s294_s19, %s294_s19 }
  0x3e   : > { %p1090_p9 = scmp.lt.s32.totalorder %s1088_s23, %s1081_s22 }
  0x3f   : > { %p1084_p4 = pnand %p1082_p1, %p1234_p6 }
  0x40   : > { %p1091_p10 = por %p1090_p9, %p1089_p8 }
  0x41   : > { %p1085_p7 = pneg %p1084_p4 }
  0x43   : > { %p1092_p11 = pnand %p1091_p10, %p1085_p7 }
  0x45   : > { %1095 = shalt.err (!%p1092_p11)
}
  0x46   : > { %913 = dma.hbm_to_vmem [thread:$0]  (!%p1224_p5), %s1348_s5, 16, %s294_s19, [#allocation8]  }
  0x47   : > { %s1107_s25 = scalar_lea.vmem %s305_s21, 16  ;;  %s1114_s26 = scalar_lea.vmem %s305_s21, 32 }
  0x48   : > { %p1108_p12 = scmp.ne.s32.totalorder %s305_s21, %s1107_s25  ;;  %p1115_p1 = scmp.lt.s32.totalorder %s305_s21, %s305_s21 }
  0x49   : > { %p1116_p4 = scmp.lt.s32.totalorder %s1114_s26, %s1107_s25 }
  0x4a   : > { %p1110_p13 = pnand %p1108_p12, %p1234_p6 }
  0x4b   : > { %p1117_p2 = por %p1116_p4, %p1115_p1 }
  0x4c   : > { %p1111_p0 = pneg %p1110_p13 }
  0x4e   : > { %p1118_p8 = pnand %p1117_p2, %p1111_p0 }
  0x50   : > { %1121 = shalt.err (!%p1118_p8)
}
  0x51   : > { %916 = dma.hbm_to_vmem [thread:$0]  (!%p1224_p5), %s1349_s6, 16, %s305_s21, [#allocation11]  }
  0x52   : > { %324 = sbr.rel (%p1214_p3) target bundleno = 434 (0x1b2), region = 48  ;;  %p1356_p7 = scmp.eq.s32.totalorder (!%p1214_p3), %s1209_s30, 0 }
  0x57   : > { %1127 = dma.done.wait (%p1356_p7), [#allocation3], 1536   ;;  %p1357_p6 = pmov %p1356_p7 }
  0x59   : > { %1129 = vsyncadd (%p1357_p6), [#allocation3], 4294965760  ;;  %p1358_p9 = pmov %p1357_p6 }
  0x5a   : > { %p1359_p2 = pmov %p1357_p6 }
  0x5b   : > { %1131 = dma.done.wait (%p1358_p9), [#allocation5], 32  }
  0x5c   : > { %1133 = vsyncadd (%p1359_p2), [#allocation5], 4294967264  ;;  %p1360_p10 = pmov %p1359_p2 }
  0x5d   : > { %p1361_p5 = pmov %p1359_p2 }
  0x5e   : > { %1135 = dma.done.wait (%p1360_p10), [#allocation8], 528  }
  0x5f   : > { %1137 = vsyncadd (%p1361_p5), [#allocation8], 4294966768  ;;  %p1362_p3 = pmov %p1359_p2 }
  0x60   : > { %p1363_p11 = pmov %p1359_p2 }
  0x61   : > { %1139 = dma.done.wait (%p1362_p3), [#allocation11], 16  }
  0x62   : > { %1141 = vsyncadd (%p1363_p11), [#allocation11], 4294967280  ;;  %p380_p12 = scmp.lt.s32.totalorder %s1209_s30, 1  ;;  %v1154_v0 = vmov 0   ;;  %v1155_v1 = vmov 0.0   ;;  %vm1156_vm0 = vmmov 0  }
  0x63   : > { %516 = vmatprep.subr.bf16.mxu0 %v1154_v0  ;;  %862 = vmatprep.subr.bf16.mxu1 %v1155_v1  ;;  %v950_v4 = vld [vmem:[#allocation2 + $0x38] sm:$0xff]   ;;  %v951_v7 = vld [vmem:[#allocation2 + $0x30] sm:$0xff]   ;;  %v952_v10 = vld [vmem:[#allocation2 + $0x28] sm:$0xff]   ;;  %vm413_vm1 = vcmask 523264   ;;  %vm407_vm2 = vcmask 1040384  }
  0x64   : > { %s1365_s30 = smov (!%p380_p12, %s1209_s30), 1  ;;  %870 = vmatprep.mubr.msk.bf16.mxu1 %vm1156_vm0, %v1155_v1  ;;  %517 = vmatpush1.bf16.msra.mxu0 %v950_v4  ;;  %v958_v11 = vld [vmem:[#allocation7 + $0x18] sm:$0xff]   ;;  %v960_v13 = vld [vmem:[#allocation7 + $0x10] sm:$0xff]   ;;  %v962_v15 = vld [vmem:[#allocation7 + $0x8] sm:$0xff]   ;;  %vm408_vm3 = vsmask.f32 256 }
  0x65   : > { %s1312_s9 = sshll.u32 %s1365_s30, 2  ;;  %518 = vmatprep.subr.bf16.mxu0 %v1154_v0  ;;  %s1157_s30 = smov 64   ;;  %v953_v12 = vld [vmem:[#allocation2 + $0x20] sm:$0xff]   ;;  %863 = vmatpush3.bf16.msra.mxu1 %v958_v11  ;;  %v954_v14 = vld [vmem:[#allocation2 + $0x18] sm:$0xff]   ;;  %v955_v16 = vld [vmem:[#allocation2 + $0x10] sm:$0xff]  }
  0x66   : > { %s383_s10 = scalar_lea.vmem %s1343_s0, %s1312_s9  ;;  %864 = vmatprep.subr.bf16.mxu1 %v1155_v1  ;;  %v964_v17 = vld [vmem:[#allocation7] sm:$0xff]   ;;  %v959_v20 = vld [vmem:[#allocation2 + $0x58] sm:$0xff]   ;;  %v961_v21 = vld [vmem:[#allocation2 + $0x50] sm:$0xff]   ;;  %s391_s15 = scalar_lea.vmem %s1351_s8, %s1312_s9 }
  0x67   : > { %v393_v2 = vld [vmem:[%s383_s10] sm:$0xf]  ;;  %v956_v18 = vld [vmem:[#allocation2 + $0x8] sm:$0xff]   ;;  %vm409_vm4 = vmand %vm407_vm2, %vm408_vm3  ;;  %s387_s19 = scalar_lea.vmem %s1350_s7, %s1312_s9 }
  0x68   : > { %v832_v3 = vcombine.low %v393_v2, %v393_v2  ;;  %519 = vmatpush1.bf16.msra.mxu0 %v951_v7  ;;  %v957_v19 = vld [vmem:[#allocation2] sm:$0xff]   ;;  %v963_v22 = vld [vmem:[#allocation2 + $0x48] sm:$0xff]  }
  0x69   : > { %520 = vmatprep.subr.bf16.mxu0 %v1154_v0  ;;  %865 = vmatpush3.bf16.msra.mxu1 %v960_v13  ;;  %v965_v23 = vld [vmem:[#allocation2 + $0x40] sm:$0xff]  }
  0x6a   : > { %v398_v5 = vshrl.u32 %v832_v3, 16  ;;  %v401_v6 = vshll.u32 %v832_v3, 16  ;;  %866 = vmatprep.subr.bf16.mxu1 %v1155_v1  ;;  %v853_v28 = vld [vmem:[#allocation9] ss:$0 sm:$0xff]  ;;  %v854_v30 = vld [vmem:[#allocation10] ss:$0 sm:$0xff] }
  0x6b   : > { %v846_v37 = vld [vmem:[#allocation4] ss:$0 sm:$0xff]  ;;  %v847_v39 = vld [vmem:[#allocation6] ss:$0 sm:$0xff] }
  0x6c   : > { %v400_v8 = vrot.slane %v398_v5, 7  ;;  %521 = vmatpush1.bf16.msra.mxu0 %v952_v10 }
  0x6d   : > { %522 = vmatprep.subr.bf16.mxu0 %v1154_v0  ;;  %867 = vmatpush3.bf16.msra.mxu1 %v962_v15 }
  0x6e   : > { %v403_v9 = vor.u32 %v401_v6, %v400_v8  ;;  %868 = vmatprep.subr.bf16.mxu1 %v1155_v1 }
  0x70   : > { %404 = vrot.lane.b32.xlu0 %v403_v9, %s1157_s30  ;;  %523 = vmatpush1.bf16.msra.mxu0 %v953_v12 }
  0x71   : > { %524 = vmatprep.subr.bf16.mxu0 %v1154_v0  ;;  %869 = vmatpush3.bf16.msra.mxu1 %v964_v17 }
  0x74   : > { %411 = vrot.lane.b32.xlu0 %v832_v3, %s1157_s30  ;;  %525 = vmatpush1.bf16.msra.mxu0 %v954_v14 }
  0x75   : > { %526 = vmatprep.subr.bf16.mxu0 %v1154_v0  ;;  %871 = vmatmul.mubr.msk.bf16.vlgmr.msra.gmra.mxu1 %vm413_vm1, %v393_v2 }
  0x78   : > { %527 = vmatpush1.bf16.msra.mxu0 %v955_v16 }
  0x79   : > { %528 = vmatprep.subr.bf16.mxu0 %v1154_v0 }
  0x7c   : > { %529 = vmatpush1.bf16.msra.mxu0 %v956_v18 }
  0x7d   : > { %530 = vmatprep.subr.bf16.mxu0 %v1154_v0 }
  0x80   : > { %531 = vmatpush1.bf16.msra.mxu0 %v957_v19 }
  0x81   : > { %540 = vmatprep.subr.bf16.mxu0 %v1154_v0 }
  0x84   : > { %541 = vmatpush2.bf16.msra.mxu0 %v959_v20 }
  0x85   : > { %542 = vmatprep.subr.bf16.mxu0 %v1154_v0 }
  0x88   : > { %543 = vmatpush2.bf16.msra.mxu0 %v961_v21 }
  0x89   : > { %544 = vmatprep.subr.bf16.mxu0 %v1154_v0 }
  0x8c   : > { %545 = vmatpush2.bf16.msra.mxu0 %v963_v22 }
  0x8d   : > { %546 = vmatprep.subr.bf16.mxu0 %v1154_v0 }
  0x90   : > { %547 = vmatpush2.bf16.msra.mxu0 %v965_v23 }
  0xe2   : > { %v405_v24 = vpop.permute.xlu0 %404 }
  0xe3   : > { %v410_v25 = vsel %vm409_vm4, 0, %v405_v24 }
  0xe6   : > { %v412_v26 = vpop.permute.xlu0 %411 }
  0xe7   : > { %845 = vmatprep.mubr.msk.bf16.mxu0 %vm413_vm1, %v412_v26  ;;  %v416_v27 = vsel %vm413_vm1, %v410_v25, %v412_v26 }
  0xe8   : > { %549 = vmatmul.mubr.bf16.vlgmr.msra.gmra.mxu0 %v416_v27 }
 0x135   : > { %v644_v29 = vpop.f32.mrf.mxu1 }
 0x136   : > { %v657_v31 = vmul.f32 %v853_v28, %v644_v29 }
 0x137   : > { %v872_v32 = vpop.f32.mrf.mxu1 }
 0x138   : > { %v665_v33 = vadd.f32 %v854_v30, %v657_v31 }
 0x139   : > { %v647_v34 = vpop.f32.mrf.mxu1 }
 0x13a   : > { %v666_v35 = vpack.c.bf16 %v665_v33, %v665_v33 }
 0x13b   : > { %v873_v36 = vpop.f32.mrf.mxu1 }
 0x13c   : > { %667 = vst [vmem:[%s391_s15] sm:$0xf] %v666_v35 }
 0x1a8   : > { %v550_v38 = vpop.f32.mrf.mxu0 }
 0x1a9   : > { %v563_v40 = vmul.f32 %v846_v37, %v550_v38 }
 0x1aa   : > { %v552_v41 = vpop.f32.mrf.mxu0 }
 0x1ab   : > { %v571_v42 = vadd.f32 %v847_v39, %v563_v40 }
 0x1ac   : > { %v553_v43 = vpop.f32.mrf.mxu0 }
 0x1ad   : > { %v572_v44 = vmax.f32 %v571_v42, 0.0 }
 0x1ae   : > { %v554_v45 = vpop.f32.mrf.mxu0 }
 0x1af   : > { %v573_v46 = vpack.c.bf16 %v572_v44, %v572_v44 }
 0x1b1   : > { %574 = vst [vmem:[%s387_s19] sm:$0xf] %v573_v46 }
 0x1b2 PF: > { %s23_s27 = sadd.s32 1, %s1144_s27  }
 0x1b3   : > { %p20_p13 = scmp.ge.s32.totalorder %s23_s27, 4  }
 0x1b5   :  { %22 = sbr.rel (!%p20_p13) target bundleno = 4 (0x4), region = 115 }
 0x1ba   :  { %701 = vsyncpa [#allocation3], 1 }
 0x1bb   :  { %703 = vsyncpa [#allocation3 + $0x1], 1 }
 0x1bc   :  { %704 = vsyncpa [#allocation5], 1 }
 0x1bd   :  { %705 = vsyncpa [#allocation8], 1 }
 0x1be   :  { %706 = vsyncpa [#allocation11], 1 }

// kernel: _lambda_.13
= control target key start
LH: loop header
LB: loop body
LE: loop exit
PB: predicated region body
PF: predicated region fallthrough
CT: control target
= control target key end

     0   :  { %10 = vsyncpa [#allocation3], 0  ;;  %s1079_s0 = inlined_call_operand.vmem [shape: bf16[2,8,128], index: 0, kind: input, shape index: {}]   ;;  %s1080_s1 = inlined_call_operand.hbm [shape: bf16[384,128], index: 1, kind: input, shape index: {}]   ;;  %s1081_s2 = inlined_call_operand.hbm [shape: f32[1,128], index: 2, kind: input, shape index: {}]   ;;  %s1082_s3 = inlined_call_operand.hbm [shape: f32[1,128], index: 3, kind: input, shape index: {}]   ;;  %s1083_s4 = inlined_call_operand.vmem [shape: bf16[2,8,128], index: 4, kind: input, shape index: {}]   ;;  %s1084_s5 = inlined_call_operand.vmem [shape: bf16[2,8,128], index: 5, kind: output, shape index: {}]  }
   0x1   :  { %11 = vsyncpa [#allocation5], 0  ;;  %s984_s18 = smov 0  }
   0x2 LB: > { %s947_s19 = smov [#allocation4]   ;;  %s990_s21 = sadd.s32 4294967295, %s945_s18   ;;  %s945_s18 = sphi %s984_s18, %s17_s18  }
   0x3   : > { %s189_s20 = sshll.u32 %s947_s19, 4  ;;  %p693_p0 = scmp.ge.s32.totalorder %s945_s18, 1  ;;  %s190_s20 = int_to_ptr.vmem [resolvable:$true] %s189_s20 }
   0x4   : > { %p163_p1 = scmp.lt.s32.totalorder %s945_s18, 3  ;;  %p1085_p2 = scmp.eq.s32.totalorder %s990_s21, 0 }
   0x5   : > { %s948_s23 = smov [#allocation2]   ;;  %s949_s26 = smov [#allocation6]  }
   0x6   : > { %p995_p3 = pnand %p693_p0, %p163_p1  ;;  %s175_s24 = sshll.u32 %s948_s23, 4  ;;  %s176_s24 = int_to_ptr.vmem [resolvable:$true] %s175_s24 }
   0x7   : > { %s200_s27 = sshll.u32 %s949_s26, 4  ;;  %s864_s28 = scalar_lea.vmem %s190_s20, 16  ;;  %s1007_s27 = int_to_ptr.vmem [resolvable:$true] %s200_s27 }
   0x8   : > { %s1087_s22 = scalar_select %p995_p3, 1, 0 }
   0x9   : > { %p797_p4 = pneg %p995_p3  ;;  %p865_p7 = scmp.ne.s32.totalorder %s190_s20, %s864_s28 }
   0xa   : > { %s871_s29 = scalar_lea.vmem %s190_s20, 32  ;;  %p872_p10 = scmp.lt.s32.totalorder %s190_s20, %s190_s20 }
   0xb   : > { %p1003_p5 = pnand %p1085_p2, %p797_p4  ;;  %p873_p11 = scmp.lt.s32.totalorder %s871_s29, %s864_s28 }
   0xd   : > { %p855_p6 = pneg %p1003_p5  ;;  %p874_p12 = por %p873_p11, %p872_p10 }
   0xf   : > { %p867_p8 = pnand %p865_p7, %p855_p6 }
  0x11   : > { %p868_p9 = pneg %p867_p8 }
  0x13   : > { %p875_p13 = pnand %p874_p12, %p868_p9 }
  0x15   : > { %878 = shalt.err (!%p875_p13)
}
  0x16   : > { %803 = dma.hbm_to_vmem [thread:$0]  (!%p1003_p5), %s1081_s2, 16, %s190_s20, [#allocation5]  }
  0x17   : > { %s890_s7 = scalar_lea.vmem %s176_s24, 3072  ;;  %p898_p7 = scmp.lt.s32.totalorder %s176_s24, %s176_s24 }
  0x18   : > { %p891_p0 = scmp.ne.s32.totalorder %s176_s24, %s890_s7  ;;  %p899_p8 = scmp.lt.s32.totalorder %s890_s7, %s890_s7 }
  0x1a   : > { %p893_p1 = pnand %p891_p0, %p855_p6  ;;  %p900_p2 = por %p899_p8, %p898_p7 }
  0x1c   : > { %p894_p4 = pneg %p893_p1 }
  0x1e   : > { %p901_p3 = pnand %p900_p2, %p894_p4 }
  0x20   : > { %904 = shalt.err (!%p901_p3)
}
  0x21   : > { %s950_s8 = smov 64   ;;  %s951_s9 = smov 4  }
  0x22   : > { %800 = dma.hbm_to_vmem [thread:$0]  (!%p1003_p5), %s1080_s1, 3072, %s176_s24, [#allocation3], %s950_s8, %s950_s8, %s951_s9  }
  0x23   : > { %s916_s12 = scalar_lea.vmem %s1007_s27, 16  ;;  %s923_s13 = scalar_lea.vmem %s1007_s27, 32 }
  0x24   : > { %p917_p9 = scmp.ne.s32.totalorder %s1007_s27, %s916_s12  ;;  %p924_p3 = scmp.lt.s32.totalorder %s1007_s27, %s1007_s27 }
  0x25   : > { %p925_p11 = scmp.lt.s32.totalorder %s923_s13, %s916_s12 }
  0x26   : > { %p919_p10 = pnand %p917_p9, %p855_p6 }
  0x27   : > { %p926_p12 = por %p925_p11, %p924_p3 }
  0x28   : > { %p920_p2 = pneg %p919_p10 }
  0x2a   : > { %p927_p13 = pnand %p926_p12, %p920_p2 }
  0x2c   : > { %930 = shalt.err (!%p927_p13)
}
  0x2d   : > { %806 = dma.hbm_to_vmem [thread:$0]  (!%p1003_p5), %s1082_s3, 16, %s1007_s27, [#allocation5]  }
  0x2e   : > { %p1089_p0 = scmp.ne.s32.totalorder %s1087_s22, 0 }
  0x2f   : > { %p1090_p6 = scmp.eq.s32.totalorder (!%p1089_p0), %s990_s21, 0 }
  0x30   : > { %227 = sbr.rel (%p1089_p0) target bundleno = 302 (0x12e), region = 40 }
  0x35   : > { %936 = dma.done.wait (%p1090_p6), [#allocation3], 3072   ;;  %p1091_p1 = pmov %p1090_p6 }
  0x37   : > { %938 = vsyncadd (%p1091_p1), [#allocation3], 4294964224  ;;  %p1092_p4 = pmov %p1091_p1 }
  0x38   : > { %p1093_p7 = pmov %p1091_p1 }
  0x39   : > { %940 = dma.done.wait (%p1092_p4), [#allocation5], 32  }
  0x3a   : > { %942 = vsyncadd (%p1093_p7), [#allocation5], 4294967264  ;;  %v952_v0 = vmov 0.0   ;;  %vm953_vm0 = vmmov 0   ;;  %v828_v1 = vld [vmem:[#allocation2 + $0x78] sm:$0xff]   ;;  %v831_v4 = vld [vmem:[#allocation2 + $0x70] sm:$0xff]  }
  0x3b   : > { %765 = vmatprep.subr.bf16.mxu1 %v952_v0  ;;  %781 = vmatprep.mubr.msk.bf16.mxu1 %vm953_vm0, %v952_v0  ;;  %v829_v2 = vld [vmem:[#allocation2 + $0xb8] sm:$0xff]   ;;  %v832_v5 = vld [vmem:[#allocation2 + $0xb0] sm:$0xff]   ;;  %v834_v7 = vld [vmem:[#allocation2 + $0x68] sm:$0xff]   ;;  %p265_p5 = scmp.lt.s32.totalorder %s990_s21, 1  ;;  %vm297_vm1 = vcmask 1043456   ;;  %vm290_vm3 = vcmask 1040384  }
  0x3c   : > { %734 = vmatprep.subr.bf16.mxu0 %v828_v1  ;;  %v830_v3 = vld [vmem:[#allocation2 + $0x38] sm:$0xff]   ;;  %766 = vmatpush3.bf16.msra.mxu1 %v829_v2  ;;  %v833_v6 = vld [vmem:[#allocation2 + $0x30] sm:$0xff]   ;;  %v835_v8 = vld [vmem:[#allocation2 + $0xa8] sm:$0xff]   ;;  %vm298_vm2 = vsmask.f32 3328 }
  0x3d   : > { %735 = vmatpush3.bf16.msra.mxu0 %v830_v3  ;;  %767 = vmatprep.subr.bf16.mxu1 %v952_v0  ;;  %v836_v9 = vld [vmem:[#allocation2 + $0x28] sm:$0xff]   ;;  %v837_v10 = vld [vmem:[#allocation2 + $0x60] sm:$0xff]   ;;  %v840_v13 = vld [vmem:[#allocation2 + $0x58] sm:$0xff]   ;;  %s1095_s21 = smov (!%p265_p5, %s990_s21), 1  ;;  %vm291_vm4 = vsmask.f32 256 }
  0x3e   : > { %736 = vmatprep.subr.bf16.mxu0 %v831_v4  ;;  %v838_v11 = vld [vmem:[#allocation2 + $0xa0] sm:$0xff]   ;;  %v841_v14 = vld [vmem:[#allocation2 + $0x98] sm:$0xff]   ;;  %v843_v16 = vld [vmem:[#allocation2 + $0x50] sm:$0xff]   ;;  %s1059_s16 = sshll.u32 %s1095_s21, 2 }
  0x3f   : > { %v839_v12 = vld [vmem:[#allocation2 + $0x20] sm:$0xff]   ;;  %v842_v15 = vld [vmem:[#allocation2 + $0x18] sm:$0xff]   ;;  %v844_v17 = vld [vmem:[#allocation2 + $0x90] sm:$0xff]   ;;  %s268_s20 = scalar_lea.vmem %s1079_s0, %s1059_s16  ;;  %s272_s23 = scalar_lea.vmem %s1083_s4, %s1059_s16 }
  0x40   : > { %768 = vmatpush3.bf16.msra.mxu1 %v832_v5  ;;  %v845_v18 = vld [vmem:[#allocation2 + $0x10] sm:$0xff]   ;;  %v846_v19 = vld [vmem:[#allocation2 + $0x48] sm:$0xff]   ;;  %v278_v22 = vld [vmem:[%s268_s20] sm:$0xf]  ;;  %s276_s26 = scalar_lea.vmem %s1084_s5, %s1059_s16 }
  0x41   : > { %737 = vmatpush3.bf16.msra.mxu0 %v833_v6  ;;  %769 = vmatprep.subr.bf16.mxu1 %v952_v0  ;;  %v847_v20 = vld [vmem:[#allocation2 + $0x88] sm:$0xff]   ;;  %v849_v23 = vld [vmem:[#allocation2 + $0x40] sm:$0xff]   ;;  %v705_v24 = vcombine.low %v278_v22, %v278_v22  ;;  %vm299_vm5 = vmand %vm297_vm1, %vm298_vm2 }
  0x42   : > { %738 = vmatprep.subr.bf16.mxu0 %v834_v7  ;;  %v848_v21 = vld [vmem:[#allocation2 + $0x8] sm:$0xff]   ;;  %525 = vmatprep.mubr.bf16.mxu0 %v278_v22  ;;  %v850_v25 = vld [vmem:[#allocation2 + $0x80] sm:$0xff]   ;;  %vm292_vm6 = vmand %vm290_vm3, %vm291_vm4 }
  0x43   : > { %v283_v26 = vshrl.u32 %v705_v24, 16  ;;  %v286_v27 = vshll.u32 %v705_v24, 16  ;;  %v851_v28 = vld [vmem:[#allocation2] sm:$0xff]  }
  0x44   : > { %770 = vmatpush3.bf16.msra.mxu1 %v835_v8  ;;  %v589_v41 = vld [vmem:[%s272_s23] sm:$0xf] }
  0x45   : > { %739 = vmatpush3.bf16.msra.mxu0 %v836_v9  ;;  %771 = vmatprep.subr.bf16.mxu1 %v952_v0  ;;  %v285_v29 = vrot.slane %v283_v26, 7  ;;  %v294_v30 = vrot.slane %v286_v27, 1  ;;  %v730_v42 = vld [vmem:[#allocation4] ss:$0 sm:$0xff]  ;;  %v731_v46 = vld [vmem:[#allocation6] ss:$0 sm:$0xff]  ;;  %v590_v48 = vunpack.c.l.bf16 %v589_v41 }
  0x46   : > { %740 = vmatprep.subr.bf16.mxu0 %v837_v10 }
  0x47   : > { %v295_v31 = vor.u32 %v294_v30, %v283_v26  ;;  %v288_v32 = vor.u32 %v286_v27, %v285_v29 }
  0x48   : > { %772 = vmatpush3.bf16.msra.mxu1 %v838_v11 }
  0x49   : > { %741 = vmatpush3.bf16.msra.mxu0 %v839_v12  ;;  %773 = vmatprep.subr.bf16.mxu1 %v952_v0  ;;  %v300_v33 = vsel %vm299_vm5, %v295_v31, 0  ;;  %v293_v34 = vsel %vm292_vm6, 0, %v288_v32 }
  0x4a   : > { %742 = vmatprep.subr.bf16.mxu0 %v840_v13 }
  0x4c   : > { %774 = vmatpush3.bf16.msra.mxu1 %v841_v14 }
  0x4d   : > { %743 = vmatpush3.bf16.msra.mxu0 %v842_v15  ;;  %775 = vmatprep.subr.bf16.mxu1 %v952_v0 }
  0x4e   : > { %744 = vmatprep.subr.bf16.mxu0 %v843_v16 }
  0x50   : > { %776 = vmatpush3.bf16.msra.mxu1 %v844_v17 }
  0x51   : > { %745 = vmatpush3.bf16.msra.mxu0 %v845_v18  ;;  %777 = vmatprep.subr.bf16.mxu1 %v952_v0 }
  0x52   : > { %746 = vmatprep.subr.bf16.mxu0 %v846_v19 }
  0x54   : > { %778 = vmatpush3.bf16.msra.mxu1 %v847_v20 }
  0x55   : > { %747 = vmatpush3.bf16.msra.mxu0 %v848_v21  ;;  %779 = vmatprep.subr.bf16.mxu1 %v952_v0 }
  0x56   : > { %748 = vmatprep.subr.bf16.mxu0 %v849_v23 }
  0x58   : > { %780 = vmatpush3.bf16.msra.mxu1 %v850_v25 }
  0x59   : > { %749 = vmatpush3.bf16.msra.mxu0 %v851_v28 }
  0x5b   : > { %782 = vmatmul.mubr.bf16.vlgmr.msra.gmra.mxu1 %v300_v33 }
  0x5c   : > { %526 = vmatmul.mubr.bf16.vlgmr.msra.gmra.mxu0 %v293_v34 }
 0x11b   : > { %v567_v35 = vpop.f32.mrf.mxu1 }
 0x11c   : > { %v750_v36 = vpop.f32.mrf.mxu0 }
 0x11d   : > { %v783_v37 = vpop.f32.mrf.mxu1 }
 0x11e   : > { %v751_v38 = vpop.f32.mrf.mxu0 }
 0x11f   : > { %v752_v39 = vadd.f32 %v751_v38, %v750_v36  ;;  %v570_v40 = vpop.f32.mrf.mxu1 }
 0x120   : > { %v753_v43 = vpop.f32.mrf.mxu0 }
 0x121   : > { %v568_v44 = vadd.f32 %v752_v39, %v567_v35  ;;  %v784_v45 = vpop.f32.mrf.mxu1 }
 0x122   : > { %v754_v47 = vpop.f32.mrf.mxu0 }
 0x123   : > { %v580_v49 = vmul.f32 %v730_v42, %v568_v44 }
 0x125   : > { %v588_v50 = vadd.f32 %v731_v46, %v580_v49 }
 0x127   : > { %v591_v51 = vadd.f32 %v590_v48, %v588_v50 }
 0x129   : > { %v592_v52 = vmax.f32 %v591_v51, 0.0 }
 0x12b   : > { %v593_v53 = vpack.c.bf16 %v592_v52, %v592_v52 }
 0x12d   : > { %594 = vst [vmem:[%s276_s26] sm:$0xf] %v593_v53 }
 0x12e PF: > { %s17_s18 = sadd.s32 1, %s945_s18  }
 0x12f   : > { %p14_p8 = scmp.ge.s32.totalorder %s17_s18, 4  }
 0x131   :  { %16 = sbr.rel (!%p14_p8) target bundleno = 2 (0x2), region = 86 }
 0x136   :  { %614 = vsyncpa [#allocation3], 1 }
 0x137   :  { %616 = vsyncpa [#allocation3 + $0x1], 1 }
 0x138   :  { %617 = vsyncpa [#allocation5], 1 }

// kernel: _lambda_.15
= control target key start
LH: loop header
LB: loop body
LE: loop exit
PB: predicated region body
PF: predicated region fallthrough
CT: control target
= control target key end

     0   :  { %10 = vsyncpa [#allocation3], 0  ;;  %s1730_s0 = inlined_call_operand.vmem [shape: bf16[2,4,256], index: 0, kind: input, shape index: {}]   ;;  %s1731_s1 = inlined_call_operand.hbm [shape: bf16[768,256], index: 1, kind: input, shape index: {}]   ;;  %s1732_s2 = inlined_call_operand.hbm [shape: f32[1,256], index: 2, kind: input, shape index: {}]   ;;  %s1733_s3 = inlined_call_operand.hbm [shape: f32[1,256], index: 3, kind: input, shape index: {}]   ;;  %s1734_s4 = inlined_call_operand.vmem [shape: bf16[2,4,256], index: 4, kind: input, shape index: {}]   ;;  %s1735_s5 = inlined_call_operand.vmem [shape: bf16[2,4,256], index: 5, kind: output, shape index: {}]  }
   0x1   :  { %11 = vsyncpa [#allocation5], 0  ;;  %s1613_s18 = smov 0  }
   0x2 LB: > { %s1578_s19 = smov [#allocation4]   ;;  %s1619_s21 = sadd.s32 4294967295, %s1576_s18   ;;  %s1576_s18 = sphi %s1613_s18, %s17_s18  }
   0x3   : > { %s189_s20 = sshll.u32 %s1578_s19, 4  ;;  %p1180_p0 = scmp.ge.s32.totalorder %s1576_s18, 1  ;;  %s190_s20 = int_to_ptr.vmem [resolvable:$true] %s189_s20 }
   0x4   : > { %p163_p1 = scmp.lt.s32.totalorder %s1576_s18, 3  ;;  %p1736_p2 = scmp.eq.s32.totalorder %s1619_s21, 0 }
   0x5   : > { %s1579_s23 = smov [#allocation2]   ;;  %s1580_s26 = smov [#allocation6]  }
   0x6   : > { %p1624_p3 = pnand %p1180_p0, %p163_p1  ;;  %s175_s24 = sshll.u32 %s1579_s23, 4  ;;  %s176_s24 = int_to_ptr.vmem [resolvable:$true] %s175_s24 }
   0x7   : > { %s200_s27 = sshll.u32 %s1580_s26, 4  ;;  %s1495_s28 = scalar_lea.vmem %s190_s20, 32  ;;  %s1636_s27 = int_to_ptr.vmem [resolvable:$true] %s200_s27 }
   0x8   : > { %s1738_s22 = scalar_select %p1624_p3, 1, 0 }
   0x9   : > { %p1311_p4 = pneg %p1624_p3  ;;  %p1496_p7 = scmp.ne.s32.totalorder %s190_s20, %s1495_s28 }
   0xa   : > { %p1503_p10 = scmp.lt.s32.totalorder %s190_s20, %s190_s20  ;;  %p1504_p11 = scmp.lt.s32.totalorder %s1495_s28, %s1495_s28 }
   0xb   : > { %p1632_p5 = pnand %p1736_p2, %p1311_p4 }
   0xc   : > { %p1505_p12 = por %p1504_p11, %p1503_p10 }
   0xd   : > { %p1486_p6 = pneg %p1632_p5 }
   0xf   : > { %p1498_p8 = pnand %p1496_p7, %p1486_p6 }
  0x11   : > { %p1499_p9 = pneg %p1498_p8 }
  0x13   : > { %p1506_p13 = pnand %p1505_p12, %p1499_p9 }
  0x15   : > { %1509 = shalt.err (!%p1506_p13)
}
  0x16   : > { %1317 = dma.hbm_to_vmem [thread:$0]  (!%p1632_p5), %s1732_s2, 32, %s190_s20, [#allocation5]  }
  0x17   : > { %s1521_s6 = scalar_lea.vmem %s176_s24, 12288  ;;  %p1529_p7 = scmp.lt.s32.totalorder %s176_s24, %s176_s24 }
  0x18   : > { %p1522_p0 = scmp.ne.s32.totalorder %s176_s24, %s1521_s6  ;;  %p1530_p8 = scmp.lt.s32.totalorder %s1521_s6, %s1521_s6 }
  0x1a   : > { %p1524_p1 = pnand %p1522_p0, %p1486_p6  ;;  %p1531_p2 = por %p1530_p8, %p1529_p7 }
  0x1c   : > { %p1525_p4 = pneg %p1524_p1 }
  0x1e   : > { %p1532_p3 = pnand %p1531_p2, %p1525_p4 }
  0x20   : > { %1535 = shalt.err (!%p1532_p3)
}
  0x21   : > { %s1581_s7 = smov 128   ;;  %s1582_s8 = smov 8  }
  0x22   : > { %1314 = dma.hbm_to_vmem [thread:$0]  (!%p1632_p5), %s1731_s1, 12288, %s176_s24, [#allocation3], %s1581_s7, %s1581_s7, %s1582_s8  }
  0x23   : > { %s1547_s11 = scalar_lea.vmem %s1636_s27, 32  ;;  %p1555_p2 = scmp.lt.s32.totalorder %s1636_s27, %s1636_s27 }
  0x24   : > { %p1548_p9 = scmp.ne.s32.totalorder %s1636_s27, %s1547_s11  ;;  %p1556_p3 = scmp.lt.s32.totalorder %s1547_s11, %s1547_s11 }
  0x26   : > { %p1550_p10 = pnand %p1548_p9, %p1486_p6  ;;  %p1557_p12 = por %p1556_p3, %p1555_p2 }
  0x28   : > { %p1551_p11 = pneg %p1550_p10 }
  0x2a   : > { %p1558_p13 = pnand %p1557_p12, %p1551_p11 }
  0x2c   : > { %1561 = shalt.err (!%p1558_p13)
}
  0x2d   : > { %1320 = dma.hbm_to_vmem [thread:$0]  (!%p1632_p5), %s1733_s3, 32, %s1636_s27, [#allocation5]  }
  0x2e   : > { %p1740_p0 = scmp.ne.s32.totalorder %s1738_s22, 0 }
  0x2f   : > { %p1741_p1 = scmp.eq.s32.totalorder (!%p1740_p0), %s1619_s21, 0 }
  0x30   : > { %229 = sbr.rel (%p1740_p0) target bundleno = 394 (0x18a), region = 40 }
  0x35   : > { %1567 = dma.done.wait (%p1741_p1), [#allocation3], 12288   ;;  %p1742_p6 = pmov %p1741_p1 }
  0x36   : > { %p1743_p4 = pmov %p1741_p1 }
  0x37   : > { %1569 = vsyncadd (%p1742_p6), [#allocation3], 4294955008 }
  0x38   : > { %1571 = dma.done.wait (%p1743_p4), [#allocation5], 64   ;;  %p1744_p7 = pmov %p1741_p1 }
  0x39   : > { %v1340_v0 = vld [vmem:[#allocation2 + $0x74] ss:$8 sps:$4 sm:$0xff]   ;;  %v1344_v2 = vld [vmem:[#allocation2 + $0x70] ss:$8 sps:$4 sm:$0xff]   ;;  %v1346_v4 = vld [vmem:[#allocation2 + $0x64] ss:$8 sps:$4 sm:$0xff]  }
  0x3a   : > { %1573 = vsyncadd (%p1744_p7), [#allocation5], 4294967232  ;;  %v1342_v1 = vld [vmem:[#allocation2 + $0x174] ss:$8 sps:$4 sm:$0xff]   ;;  %906 = vmatprep.subr.bf16.mxu0 %v1340_v0  ;;  %v1345_v3 = vld [vmem:[#allocation2 + $0x170] ss:$8 sps:$4 sm:$0xff]  }
  0x3b   : > { %947 = vmatprep.subr.bf16.mxu1 %v1342_v1  ;;  %907 = vmatpush1.bf16.msra.mxu0 %v1344_v2  ;;  %v1348_v5 = vld [vmem:[#allocation2 + $0x164] ss:$8 sps:$4 sm:$0xff]   ;;  %v1350_v6 = vld [vmem:[#allocation2 + $0x60] ss:$8 sps:$4 sm:$0xff]   ;;  %v1352_v8 = vld [vmem:[#allocation2 + $0x54] ss:$8 sps:$4 sm:$0xff]  }
  0x3c   : > { %948 = vmatpush1.bf16.msra.mxu1 %v1345_v3  ;;  %908 = vmatprep.subr.bf16.mxu0 %v1346_v4  ;;  %v1351_v7 = vld [vmem:[#allocation2 + $0x160] ss:$8 sps:$4 sm:$0xff]   ;;  %v1354_v9 = vld [vmem:[#allocation2 + $0x154] ss:$8 sps:$4 sm:$0xff]   ;;  %v1356_v10 = vld [vmem:[#allocation2 + $0x50] ss:$8 sps:$4 sm:$0xff]  }
  0x3d   : > { %949 = vmatprep.subr.bf16.mxu1 %v1348_v5  ;;  %v1357_v11 = vld [vmem:[#allocation2 + $0x150] ss:$8 sps:$4 sm:$0xff]   ;;  %v1358_v12 = vld [vmem:[#allocation2 + $0x44] ss:$8 sps:$4 sm:$0xff]   ;;  %v1362_v14 = vld [vmem:[#allocation2 + $0x40] ss:$8 sps:$4 sm:$0xff]  }
  0x3e   : > { %v1360_v13 = vld [vmem:[#allocation2 + $0x144] ss:$8 sps:$4 sm:$0xff]   ;;  %v1363_v15 = vld [vmem:[#allocation2 + $0x140] ss:$8 sps:$4 sm:$0xff]   ;;  %v1364_v16 = vld [vmem:[#allocation2 + $0x34] ss:$8 sps:$4 sm:$0xff]  }
  0x3f   : > { %909 = vmatpush1.bf16.msra.mxu0 %v1350_v6  ;;  %v1366_v17 = vld [vmem:[#allocation2 + $0x134] ss:$8 sps:$4 sm:$0xff]   ;;  %v1368_v18 = vld [vmem:[#allocation2 + $0x30] ss:$8 sps:$4 sm:$0xff]   ;;  %v1370_v20 = vld [vmem:[#allocation2 + $0x24] ss:$8 sps:$4 sm:$0xff]  }
  0x40   : > { %950 = vmatpush1.bf16.msra.mxu1 %v1351_v7  ;;  %910 = vmatprep.subr.bf16.mxu0 %v1352_v8  ;;  %v1369_v19 = vld [vmem:[#allocation2 + $0x130] ss:$8 sps:$4 sm:$0xff]   ;;  %v1372_v21 = vld [vmem:[#allocation2 + $0x124] ss:$8 sps:$4 sm:$0xff]   ;;  %v1374_v22 = vld [vmem:[#allocation2 + $0x20] ss:$8 sps:$4 sm:$0xff]  }
  0x41   : > { %951 = vmatprep.subr.bf16.mxu1 %v1354_v9  ;;  %v1375_v23 = vld [vmem:[#allocation2 + $0x120] ss:$8 sps:$4 sm:$0xff]   ;;  %v1376_v24 = vld [vmem:[#allocation2 + $0x14] ss:$8 sps:$4 sm:$0xff]   ;;  %v1380_v26 = vld [vmem:[#allocation2 + $0x10] ss:$8 sps:$4 sm:$0xff]  }
  0x42   : > { %v1378_v25 = vld [vmem:[#allocation2 + $0x114] ss:$8 sps:$4 sm:$0xff]   ;;  %v1381_v27 = vld [vmem:[#allocation2 + $0x110] ss:$8 sps:$4 sm:$0xff]   ;;  %v1382_v28 = vld [vmem:[#allocation2 + $0x4] ss:$8 sps:$4 sm:$0xff]  }
  0x43   : > { %911 = vmatpush1.bf16.msra.mxu0 %v1356_v10  ;;  %v1384_v29 = vld [vmem:[#allocation2 + $0x104] ss:$8 sps:$4 sm:$0xff]   ;;  %v1386_v30 = vld [vmem:[#allocation2] ss:$8 sps:$4 sm:$0xff]   ;;  %v1388_v32 = vld [vmem:[#allocation2 + $0xf4] ss:$8 sps:$4 sm:$0xff]  }
  0x44   : > { %952 = vmatpush1.bf16.msra.mxu1 %v1357_v11  ;;  %912 = vmatprep.subr.bf16.mxu0 %v1358_v12  ;;  %v1387_v31 = vld [vmem:[#allocation2 + $0x100] ss:$8 sps:$4 sm:$0xff]   ;;  %v1390_v33 = vld [vmem:[#allocation2 + $0x1f4] ss:$8 sps:$4 sm:$0xff]   ;;  %p270_p5 = scmp.lt.s32.totalorder %s1619_s21, 1  ;;  %vm312_vm0 = vcmask 1040384  }
  0x45   : > { %953 = vmatprep.subr.bf16.mxu1 %v1360_v13  ;;  %v1392_v34 = vld [vmem:[#allocation2 + $0xf0] ss:$8 sps:$4 sm:$0xff]   ;;  %v1394_v36 = vld [vmem:[#allocation2 + $0xe4] ss:$8 sps:$4 sm:$0xff]   ;;  %v1398_v38 = vld [vmem:[#allocation2 + $0xe0] ss:$8 sps:$4 sm:$0xff]  }
  0x46   : > { %v1393_v35 = vld [vmem:[#allocation2 + $0x1f0] ss:$8 sps:$4 sm:$0xff]   ;;  %v1396_v37 = vld [vmem:[#allocation2 + $0x1e4] ss:$8 sps:$4 sm:$0xff]   ;;  %s1750_s21 = smov (!%p270_p5, %s1619_s21), 1  ;;  %vm323_vm3 = vcmask 1041408  }
  0x47   : > { %913 = vmatpush1.bf16.msra.mxu0 %v1362_v14  ;;  %v1399_v39 = vld [vmem:[#allocation2 + $0x1e0] ss:$8 sps:$4 sm:$0xff]   ;;  %v1400_v40 = vld [vmem:[#allocation2 + $0xd4] ss:$8 sps:$4 sm:$0xff]   ;;  %s1681_s14 = sshll.u32 %s1750_s21, 2 }
  0x48   : > { %954 = vmatpush1.bf16.msra.mxu1 %v1363_v15  ;;  %914 = vmatprep.subr.bf16.mxu0 %v1364_v16  ;;  %v1402_v41 = vld [vmem:[#allocation2 + $0x1d4] ss:$8 sps:$4 sm:$0xff]   ;;  %v1404_v42 = vld [vmem:[#allocation2 + $0xd0] ss:$8 sps:$4 sm:$0xff]   ;;  %v1406_v44 = vld [vmem:[#allocation2 + $0xc4] ss:$8 sps:$4 sm:$0xff]   ;;  %s274_s17 = scalar_lea.vmem %s1730_s0, %s1681_s14  ;;  %s279_s21 = scalar_lea.vmem %s1734_s4, %s1681_s14 }
  0x49   : > { %955 = vmatprep.subr.bf16.mxu1 %v1366_v17  ;;  %v1405_v43 = vld [vmem:[#allocation2 + $0x1d0] ss:$8 sps:$4 sm:$0xff]   ;;  %v1408_v45 = vld [vmem:[#allocation2 + $0x1c4] ss:$8 sps:$4 sm:$0xff]   ;;  %v1410_v47 = vld [vmem:[#allocation2 + $0xc0] ss:$8 sps:$4 sm:$0xff]   ;;  %s284_s24 = scalar_lea.vmem %s1735_s5, %s1681_s14 }
  0x4a   : > { %v1687_v46 = vld.sshfl [vmem:[%s274_s17] sm:$0x33 pattern:$0x76325410]  ;;  %vm313_vm1 = vsmask.f32 256 }
  0x4b   : > { %915 = vmatpush1.bf16.msra.mxu0 %v1368_v18  ;;  %v1411_v48 = vld [vmem:[#allocation2 + $0x1c0] ss:$8 sps:$4 sm:$0xff]   ;;  %v295_v49 = vcombine.high %v1687_v46, %v1687_v46  ;;  %v1412_v50 = vld [vmem:[#allocation2 + $0xb4] ss:$8 sps:$4 sm:$0xff]   ;;  %vm1692_vm2 = vmand %vm312_vm0, %vm313_vm1  ;;  %v297_v0 = vshrl.u32 %v1687_v46, 16  ;;  %v300_v6 = vshll.u32 %v1687_v46, 16 }
  0x4c   : > { %956 = vmatpush1.bf16.msra.mxu1 %v1369_v19  ;;  %916 = vmatprep.subr.bf16.mxu0 %v1370_v20  ;;  %v1414_v51 = vld [vmem:[#allocation2 + $0x1b4] ss:$8 sps:$4 sm:$0xff]   ;;  %v1416_v55 = vld [vmem:[#allocation2 + $0xb0] ss:$8 sps:$4 sm:$0xff]   ;;  %v1418_v58 = vld [vmem:[#allocation2 + $0xa4] ss:$8 sps:$4 sm:$0xff]  }
  0x4d   : > { %957 = vmatprep.subr.bf16.mxu1 %v1372_v21  ;;  %v304_v52 = vshrl.u32 %v295_v49, 16  ;;  %v307_v53 = vshll.u32 %v295_v49, 16  ;;  %979 = vmatprep.mubr.bf16.mxu1 %v295_v49  ;;  %v1417_v56 = vld [vmem:[#allocation2 + $0x1b0] ss:$8 sps:$4 sm:$0xff]   ;;  %v1420_v59 = vld [vmem:[#allocation2 + $0x1a4] ss:$8 sps:$4 sm:$0xff]  }
  0x4e   : > { %v1422_v61 = vld [vmem:[#allocation2 + $0xa0] ss:$8 sps:$4 sm:$0xff]   ;;  %v1424_v1 = vld [vmem:[#allocation2 + $0x94] ss:$8 sps:$4 sm:$0xff]   ;;  %v1428_v3 = vld [vmem:[#allocation2 + $0x90] ss:$8 sps:$4 sm:$0xff]  }
  0x4f   : > { %917 = vmatpush1.bf16.msra.mxu0 %v1374_v22  ;;  %v306_v57 = vrot.slane %v304_v52, 7  ;;  %v1423_v62 = vld [vmem:[#allocation2 + $0x1a0] ss:$8 sps:$4 sm:$0xff]   ;;  %v1426_v2 = vld [vmem:[#allocation2 + $0x194] ss:$8 sps:$4 sm:$0xff]   ;;  %v299_v5 = vrot.slane %v297_v0, 7 }
  0x50   : > { %958 = vmatpush1.bf16.msra.mxu1 %v1375_v23  ;;  %918 = vmatprep.subr.bf16.mxu0 %v1376_v24  ;;  %v1429_v4 = vld [vmem:[#allocation2 + $0x190] ss:$8 sps:$4 sm:$0xff]   ;;  %v1430_v7 = vld [vmem:[#allocation2 + $0x84] ss:$8 sps:$4 sm:$0xff]   ;;  %v319_v9 = vrot.slane %v307_v53, 1 }
  0x51   : > { %959 = vmatprep.subr.bf16.mxu1 %v1378_v25  ;;  %v309_v60 = vor.u32 %v307_v53, %v306_v57  ;;  %v1432_v8 = vld [vmem:[#allocation2 + $0x184] ss:$8 sps:$4 sm:$0xff]   ;;  %vm324_vm4 = vsmask.f32 1280  ;;  %v1434_v10 = vld [vmem:[#allocation2 + $0x80] ss:$8 sps:$4 sm:$0xff]   ;;  %v302_v12 = vor.u32 %v300_v6, %v299_v5 }
  0x52   : > { %v1435_v11 = vld [vmem:[#allocation2 + $0x180] ss:$8 sps:$4 sm:$0xff]   ;;  %v1438_v13 = vld [vmem:[#allocation2 + $0x274] ss:$8 sps:$4 sm:$0xff]   ;;  %v320_v14 = vor.u32 %v319_v9, %v304_v52  ;;  %vm1704_vm5 = vmand %vm323_vm3, %vm324_vm4 }
  0x53   : > { %919 = vmatpush1.bf16.msra.mxu0 %v1380_v26  ;;  %v316_v63 = vsel %vm1692_vm2, 0, %v309_v60  ;;  %v315_v16 = vsel %vm1692_vm2, 0, %v302_v12  ;;  %v1436_v17 = vld [vmem:[#allocation2 + $0x270] ss:$8 sps:$4 sm:$0xff]   ;;  %v1441_v18 = vld [vmem:[#allocation2 + $0x264] ss:$8 sps:$4 sm:$0xff]  }
  0x54   : > { %960 = vmatpush1.bf16.msra.mxu1 %v1381_v27  ;;  %920 = vmatprep.subr.bf16.mxu0 %v1382_v28  ;;  %v327_v19 = vsel %vm1704_vm5, %v320_v14, 0  ;;  %v1439_v20 = vld [vmem:[#allocation2 + $0x260] ss:$8 sps:$4 sm:$0xff]   ;;  %v1444_v21 = vld [vmem:[#allocation2 + $0x254] ss:$8 sps:$4 sm:$0xff]  }
  0x55   : > { %961 = vmatprep.subr.bf16.mxu1 %v1384_v29  ;;  %938 = vmatprep.mubr.bf16.mxu0 %v316_v63  ;;  %v1442_v22 = vld [vmem:[#allocation2 + $0x250] ss:$8 sps:$4 sm:$0xff]   ;;  %v1447_v23 = vld [vmem:[#allocation2 + $0x244] ss:$8 sps:$4 sm:$0xff]   ;;  %v1445_v24 = vld [vmem:[#allocation2 + $0x240] ss:$8 sps:$4 sm:$0xff]  }
  0x56   : > { %v1450_v25 = vld [vmem:[#allocation2 + $0x234] ss:$8 sps:$4 sm:$0xff]   ;;  %v1448_v26 = vld [vmem:[#allocation2 + $0x230] ss:$8 sps:$4 sm:$0xff]   ;;  %v1453_v27 = vld [vmem:[#allocation2 + $0x224] ss:$8 sps:$4 sm:$0xff]  }
  0x57   : > { %921 = vmatpush1.bf16.msra.mxu0 %v1386_v30  ;;  %v1451_v28 = vld [vmem:[#allocation2 + $0x220] ss:$8 sps:$4 sm:$0xff]   ;;  %v1456_v29 = vld [vmem:[#allocation2 + $0x214] ss:$8 sps:$4 sm:$0xff]   ;;  %v1454_v30 = vld [vmem:[#allocation2 + $0x210] ss:$8 sps:$4 sm:$0xff]  }
  0x58   : > { %962 = vmatpush1.bf16.msra.mxu1 %v1387_v31  ;;  %922 = vmatprep.subr.bf16.mxu0 %v1388_v32  ;;  %v1459_v31 = vld [vmem:[#allocation2 + $0x204] ss:$8 sps:$4 sm:$0xff]   ;;  %v1457_v32 = vld [vmem:[#allocation2 + $0x200] ss:$8 sps:$4 sm:$0xff]  }
  0x59   : > { %963 = vmatprep.subr.bf16.mxu1 %v1390_v33  ;;  %v1462_v33 = vld [vmem:[#allocation2 + $0x2f4] ss:$8 sps:$4 sm:$0xff]   ;;  %v1483_v49 = vld [vmem:[#allocation2 + $0x284] ss:$8 sps:$4 sm:$0xff]  }
  0x5b   : > { %923 = vmatpush2.bf16.msra.mxu0 %v1392_v34  ;;  %v1460_v34 = vld [vmem:[#allocation2 + $0x2f0] ss:$8 sps:$4 sm:$0xff]  }
  0x5c   : > { %964 = vmatpush2.bf16.msra.mxu1 %v1393_v35  ;;  %924 = vmatprep.subr.bf16.mxu0 %v1394_v36  ;;  %v1465_v35 = vld [vmem:[#allocation2 + $0x2e4] ss:$8 sps:$4 sm:$0xff]   ;;  %v1463_v36 = vld [vmem:[#allocation2 + $0x2e0] ss:$8 sps:$4 sm:$0xff]  }
  0x5d   : > { %965 = vmatprep.subr.bf16.mxu1 %v1396_v37  ;;  %v1468_v37 = vld [vmem:[#allocation2 + $0x2d4] ss:$8 sps:$4 sm:$0xff]  }
  0x5f   : > { %925 = vmatpush2.bf16.msra.mxu0 %v1398_v38  ;;  %v1466_v38 = vld [vmem:[#allocation2 + $0x2d0] ss:$8 sps:$4 sm:$0xff]  }
  0x60   : > { %966 = vmatpush2.bf16.msra.mxu1 %v1399_v39  ;;  %926 = vmatprep.subr.bf16.mxu0 %v1400_v40  ;;  %v1471_v39 = vld [vmem:[#allocation2 + $0x2c4] ss:$8 sps:$4 sm:$0xff]   ;;  %v1469_v40 = vld [vmem:[#allocation2 + $0x2c0] ss:$8 sps:$4 sm:$0xff]  }
  0x61   : > { %967 = vmatprep.subr.bf16.mxu1 %v1402_v41  ;;  %v1474_v41 = vld [vmem:[#allocation2 + $0x2b4] ss:$8 sps:$4 sm:$0xff]  }
  0x63   : > { %927 = vmatpush2.bf16.msra.mxu0 %v1404_v42  ;;  %v1472_v42 = vld [vmem:[#allocation2 + $0x2b0] ss:$8 sps:$4 sm:$0xff]  }
  0x64   : > { %968 = vmatpush2.bf16.msra.mxu1 %v1405_v43  ;;  %928 = vmatprep.subr.bf16.mxu0 %v1406_v44  ;;  %v1477_v43 = vld [vmem:[#allocation2 + $0x2a4] ss:$8 sps:$4 sm:$0xff]   ;;  %v1475_v44 = vld [vmem:[#allocation2 + $0x2a0] ss:$8 sps:$4 sm:$0xff]  }
  0x65   : > { %969 = vmatprep.subr.bf16.mxu1 %v1408_v45  ;;  %v1480_v45 = vld [vmem:[#allocation2 + $0x294] ss:$8 sps:$4 sm:$0xff]  }
  0x67   : > { %929 = vmatpush2.bf16.msra.mxu0 %v1410_v47  ;;  %v1478_v47 = vld [vmem:[#allocation2 + $0x290] ss:$8 sps:$4 sm:$0xff]  }
  0x68   : > { %970 = vmatpush2.bf16.msra.mxu1 %v1411_v48  ;;  %930 = vmatprep.subr.bf16.mxu0 %v1412_v50  ;;  %v317_v48 = vrot.slane %v300_v6, 1  ;;  %v1481_v50 = vld [vmem:[#allocation2 + $0x280] ss:$8 sps:$4 sm:$0xff]  }
  0x69   : > { %971 = vmatprep.subr.bf16.mxu1 %v1414_v51 }
  0x6a   : > { %v318_v51 = vor.u32 %v317_v48, %v297_v0  ;;  %v1029_v0 = vld [vmem:[#allocation4] sm:$0x3] }
  0x6b   : > { %931 = vmatpush2.bf16.msra.mxu0 %v1416_v55 }
  0x6c   : > { %972 = vmatpush2.bf16.msra.mxu1 %v1417_v56  ;;  %932 = vmatprep.subr.bf16.mxu0 %v1418_v58  ;;  %v326_v52 = vsel %vm1704_vm5, %v318_v51, 0 }
  0x6d   : > { %973 = vmatprep.subr.bf16.mxu1 %v1420_v59 }
  0x6f   : > { %933 = vmatpush2.bf16.msra.mxu0 %v1422_v61 }
  0x70   : > { %974 = vmatpush2.bf16.msra.mxu1 %v1423_v62  ;;  %934 = vmatprep.subr.bf16.mxu0 %v1424_v1  ;;  %v1031_v62 = vlaneseq  ;;  %v1043_v1 = vld [vmem:[#allocation6] sm:$0x3] }
  0x71   : > { %975 = vmatprep.subr.bf16.mxu1 %v1426_v2 }
  0x72   : > { %v1032_v63 = vshrl.u32 %v1031_v62, 7 }
  0x73   : > { %935 = vmatpush2.bf16.msra.mxu0 %v1428_v3  ;;  %v1057_v3 = vld [vmem:[%s279_s21] sm:$0xf] }
  0x74   : > { %976 = vmatpush2.bf16.msra.mxu1 %v1429_v4  ;;  %936 = vmatprep.subr.bf16.mxu0 %v1430_v7  ;;  %v1037_v2 = vsub.s32 1, %v1032_v63  ;;  %v1058_v9 = vunpack.c.l.bf16 %v1057_v3 }
  0x75   : > { %977 = vmatprep.subr.bf16.mxu1 %v1432_v8 }
  0x76   : > { %v1052_v14 = vrot.slane %v1043_v1, %v1037_v2 }
  0x77   : > { %937 = vmatpush2.bf16.msra.mxu0 %v1434_v10  ;;  %v1038_v10 = vrot.slane %v1029_v0, %v1037_v2 }
  0x78   : > { %978 = vmatpush2.bf16.msra.mxu1 %v1435_v11  ;;  %988 = vmatprep.subr.bf16.mxu0 %v1438_v13 }
  0x7a   : > { %939 = vmatmul.mubr.bf16.vlgmr.msra.gmra.mxu0 %v315_v16 }
  0x7b   : > { %980 = vmatmul.mubr.bf16.vlgmr.msra.gmra.mxu1 %v1687_v46  ;;  %989 = vmatpush1.bf16.msra.mxu0 %v1436_v17  ;;  %v1033_v46 = vsub.s32 0, %v1032_v63 }
  0x7c   : > { %1020 = vmatprep.mubr.bf16.mxu0 %v327_v19  ;;  %990 = vmatprep.subr.bf16.mxu0 %v1441_v18  ;;  %v1060_v18 = vcombine.high %v1058_v9, %v1058_v9 }
  0x7d   : > { %v1034_v4 = vrot.slane %v1029_v0, %v1033_v46  ;;  %v1048_v6 = vrot.slane %v1043_v1, %v1033_v46 }
  0x7f   : > { %991 = vmatpush1.bf16.msra.mxu0 %v1439_v20 }
  0x80   : > { %992 = vmatprep.subr.bf16.mxu0 %v1444_v21 }
  0x83   : > { %993 = vmatpush1.bf16.msra.mxu0 %v1442_v22 }
  0x84   : > { %994 = vmatprep.subr.bf16.mxu0 %v1447_v23 }
  0x87   : > { %995 = vmatpush1.bf16.msra.mxu0 %v1445_v24 }
  0x88   : > { %996 = vmatprep.subr.bf16.mxu0 %v1450_v25 }
  0x8b   : > { %997 = vmatpush1.bf16.msra.mxu0 %v1448_v26 }
  0x8c   : > { %998 = vmatprep.subr.bf16.mxu0 %v1453_v27 }
  0x8f   : > { %999 = vmatpush1.bf16.msra.mxu0 %v1451_v28 }
  0x90   : > { %1000 = vmatprep.subr.bf16.mxu0 %v1456_v29 }
  0x93   : > { %1001 = vmatpush1.bf16.msra.mxu0 %v1454_v30 }
  0x94   : > { %1002 = vmatprep.subr.bf16.mxu0 %v1459_v31 }
  0x97   : > { %1003 = vmatpush1.bf16.msra.mxu0 %v1457_v32 }
  0x98   : > { %1004 = vmatprep.subr.bf16.mxu0 %v1462_v33 }
  0x9b   : > { %1005 = vmatpush2.bf16.msra.mxu0 %v1460_v34 }
  0x9c   : > { %1006 = vmatprep.subr.bf16.mxu0 %v1465_v35 }
  0x9f   : > { %1007 = vmatpush2.bf16.msra.mxu0 %v1463_v36 }
  0xa0   : > { %1008 = vmatprep.subr.bf16.mxu0 %v1468_v37 }
  0xa3   : > { %1009 = vmatpush2.bf16.msra.mxu0 %v1466_v38 }
  0xa4   : > { %1010 = vmatprep.subr.bf16.mxu0 %v1471_v39 }
  0xa7   : > { %1011 = vmatpush2.bf16.msra.mxu0 %v1469_v40 }
  0xa8   : > { %1012 = vmatprep.subr.bf16.mxu0 %v1474_v41 }
  0xab   : > { %1013 = vmatpush2.bf16.msra.mxu0 %v1472_v42 }
  0xac   : > { %1014 = vmatprep.subr.bf16.mxu0 %v1477_v43 }
  0xaf   : > { %1015 = vmatpush2.bf16.msra.mxu0 %v1475_v44 }
  0xb0   : > { %1016 = vmatprep.subr.bf16.mxu0 %v1480_v45 }
  0xb3   : > { %1017 = vmatpush2.bf16.msra.mxu0 %v1478_v47 }
  0xb4   : > { %1018 = vmatprep.subr.bf16.mxu0 %v1483_v49 }
  0xb7   : > { %1019 = vmatpush2.bf16.msra.mxu0 %v1481_v50 }
  0xba   : > { %1021 = vmatmul.mubr.bf16.vlgmr.msra.gmra.mxu0 %v326_v52 }
 0x13a   : > { %v940_v53 = vpop.f32.mrf.mxu0 }
 0x13b   : > { %v981_v54 = vpop.f32.mrf.mxu1 }
 0x13c   : > { %v982_v55 = vadd.f32 %v981_v54, %v940_v53  ;;  %v942_v56 = vpop.f32.mrf.mxu0 }
 0x13d   : > { %v983_v57 = vpop.f32.mrf.mxu1 }
 0x13e   : > { %v944_v58 = vpop.f32.mrf.mxu0  ;;  %v984_v7 = vadd.f32 %v983_v57, %v942_v56 }
 0x13f   : > { %v985_v59 = vpop.f32.mrf.mxu1 }
 0x140   : > { %v945_v60 = vpop.f32.mrf.mxu0 }
 0x141   : > { %v986_v61 = vpop.f32.mrf.mxu1 }
 0x17a   : > { %v1022_v5 = vpop.f32.mrf.mxu0 }
 0x17b   : > { %v1023_v8 = vadd.f32 %v1022_v5, %v982_v55 }
 0x17c   : > { %v1024_v11 = vpop.f32.mrf.mxu0 }
 0x17d   : > { %v1041_v12 = vmul.f32 %v1034_v4, %v1023_v8  ;;  %v1025_v13 = vadd.f32 %v1024_v11, %v984_v7 }
 0x17e   : > { %v1026_v15 = vpop.f32.mrf.mxu0 }
 0x17f   : > { %v1055_v16 = vadd.f32 %v1048_v6, %v1041_v12  ;;  %v1042_v17 = vmul.f32 %v1038_v10, %v1025_v13 }
 0x180   : > { %v1027_v19 = vpop.f32.mrf.mxu0 }
 0x181   : > { %v1062_v20 = vadd.f32 %v1058_v9, %v1055_v16  ;;  %v1056_v21 = vadd.f32 %v1052_v14, %v1042_v17 }
 0x183   : > { %v1063_v22 = vadd.f32 %v1060_v18, %v1056_v21  ;;  %v1064_v23 = vmax.f32 %v1062_v20, 0.0 }
 0x185   : > { %v1065_v24 = vmax.f32 %v1063_v22, 0.0 }
 0x187   : > { %v1292_v25 = vpack.c.bf16 %v1065_v24, %v1064_v23 }
 0x189   : > { %1293 = vst.sshfl [vmem:[%s284_s24] sm:$0x33 pattern:$0x76325410] %v1292_v25 }
 0x18a PF: > { %s17_s18 = sadd.s32 1, %s1576_s18  }
 0x18b   : > { %p14_p8 = scmp.ge.s32.totalorder %s17_s18, 4  }
 0x18d   :  { %16 = sbr.rel (!%p14_p8) target bundleno = 2 (0x2), region = 86 }
 0x192   :  { %1101 = vsyncpa [#allocation3], 1 }
 0x193   :  { %1103 = vsyncpa [#allocation3 + $0x1], 1 }
 0x194   :  { %1104 = vsyncpa [#allocation5], 1 }

// kernel: _lambda_.14
= control target key start
LH: loop header
LB: loop body
LE: loop exit
PB: predicated region body
PF: predicated region fallthrough
CT: control target
= control target key end

     0   :  { %14 = vsyncpa [#allocation3], 0  ;;  %s1806_s0 = inlined_call_operand.vmem [shape: bf16[2,4,256], index: 0, kind: input, shape index: {}]   ;;  %s1807_s1 = inlined_call_operand.hbm [shape: bf16[384,256], index: 1, kind: input, shape index: {}]   ;;  %s1808_s2 = inlined_call_operand.hbm [shape: f32[1,256], index: 2, kind: input, shape index: {}]   ;;  %s1809_s3 = inlined_call_operand.hbm [shape: f32[1,256], index: 3, kind: input, shape index: {}]   ;;  %s1810_s4 = inlined_call_operand.hbm [shape: bf16[128,256], index: 4, kind: input, shape index: {}]   ;;  %s1811_s5 = inlined_call_operand.hbm [shape: f32[1,256], index: 5, kind: input, shape index: {}]   ;;  %s1812_s6 = inlined_call_operand.hbm [shape: f32[1,256], index: 6, kind: input, shape index: {}]   ;;  %s1813_s7 = inlined_call_operand.vmem [shape: bf16[2,4,256], index: 7, kind: output, shape index: {0}]   ;;  %s1814_s8 = inlined_call_operand.vmem [shape: bf16[2,4,256], index: 8, kind: output, shape index: {1}]  }
   0x1   :  { %15 = vsyncpa [#allocation5], 0 }
   0x2   :  { %16 = vsyncpa [#allocation8], 0 }
   0x3   :  { %17 = vsyncpa [#allocation11], 0  ;;  %s1664_s27 = smov 0  }
   0x4 LB: > { %s1609_s28 = smov [#allocation4]   ;;  %s1670_s30 = sadd.s32 4294967295, %s1607_s27   ;;  %s1607_s27 = sphi %s1664_s27, %s23_s27  }
   0x5   : > { %s258_s29 = sshll.u32 %s1609_s28, 4  ;;  %p1166_p0 = scmp.ge.s32.totalorder %s1607_s27, 1  ;;  %s259_s29 = int_to_ptr.vmem [resolvable:$true] %s258_s29 }
   0x6   : > { %p232_p1 = scmp.lt.s32.totalorder %s1607_s27, 3  ;;  %p1815_p2 = scmp.eq.s32.totalorder %s1670_s30, 0 }
   0x7   : > { %s1610_s10 = smov [#allocation7]   ;;  %s1611_s13 = smov [#allocation2]  }
   0x8   : > { %p1675_p3 = pnand %p1166_p0, %p232_p1  ;;  %s279_s11 = sshll.u32 %s1610_s10, 4  ;;  %s1681_s11 = int_to_ptr.vmem [resolvable:$true] %s279_s11 }
   0x9   : > { %s244_s14 = sshll.u32 %s1611_s13, 4  ;;  %s1612_s15 = smov [#allocation6]   ;;  %s1689_s14 = int_to_ptr.vmem [resolvable:$true] %s244_s14 }
   0xa   : > { %s1817_s9 = scalar_select %p1675_p3, 1, 0 }
   0xb   : > { %p1284_p4 = pneg %p1675_p3  ;;  %s1691_s16 = sshll.u32 %s1612_s15, 4  ;;  %s270_s16 = int_to_ptr.vmem [resolvable:$true] %s1691_s16 }
   0xc   : > { %s1440_s18 = scalar_lea.vmem %s259_s29, 32  ;;  %p1448_p10 = scmp.lt.s32.totalorder %s259_s29, %s259_s29 }
   0xd   : > { %p1685_p5 = pnand %p1815_p2, %p1284_p4  ;;  %p1441_p7 = scmp.ne.s32.totalorder %s259_s29, %s1440_s18 }
   0xe   : > { %p1449_p11 = scmp.lt.s32.totalorder %s1440_s18, %s1440_s18 }
   0xf   : > { %p1695_p6 = pneg %p1685_p5 }
  0x10   : > { %p1450_p12 = por %p1449_p11, %p1448_p10 }
  0x11   : > { %p1443_p8 = pnand %p1441_p7, %p1695_p6 }
  0x13   : > { %p1444_p9 = pneg %p1443_p8 }
  0x15   : > { %p1451_p13 = pnand %p1450_p12, %p1444_p9 }
  0x17   : > { %1454 = shalt.err (!%p1451_p13)
}
  0x18   : > { %1290 = dma.hbm_to_vmem [thread:$0]  (!%p1685_p5), %s1808_s2, 32, %s259_s29, [#allocation5]  }
  0x19   : > { %s1466_s21 = scalar_lea.vmem %s1681_s11, 2048  ;;  %p1474_p7 = scmp.lt.s32.totalorder %s1681_s11, %s1681_s11 }
  0x1a   : > { %p1467_p0 = scmp.ne.s32.totalorder %s1681_s11, %s1466_s21  ;;  %p1475_p8 = scmp.lt.s32.totalorder %s1466_s21, %s1466_s21 }
  0x1c   : > { %p1469_p1 = pnand %p1467_p0, %p1695_p6  ;;  %p1476_p9 = por %p1475_p8, %p1474_p7 }
  0x1e   : > { %p1470_p4 = pneg %p1469_p1 }
  0x20   : > { %p1477_p10 = pnand %p1476_p9, %p1470_p4 }
  0x22   : > { %1480 = shalt.err (!%p1477_p10)
}
  0x23   : > { %s1613_s22 = smov 128   ;;  %s1614_s23 = smov 8  }
  0x24   : > { %1296 = dma.hbm_to_vmem [thread:$0]  (!%p1685_p5), %s1810_s4, 2048, %s1681_s11, [#allocation8], %s1613_s22, %s1613_s22, %s1614_s23  }
  0x25   : > { %s1492_s26 = scalar_lea.vmem %s1689_s14, 6144  ;;  %p1500_p0 = scmp.lt.s32.totalorder %s1689_s14, %s1689_s14 }
  0x26   : > { %p1493_p11 = scmp.ne.s32.totalorder %s1689_s14, %s1492_s26  ;;  %p1501_p1 = scmp.lt.s32.totalorder %s1492_s26, %s1492_s26 }
  0x28   : > { %p1495_p12 = pnand %p1493_p11, %p1695_p6  ;;  %p1502_p4 = por %p1501_p1, %p1500_p0 }
  0x2a   : > { %p1496_p13 = pneg %p1495_p12 }
  0x2c   : > { %p1503_p7 = pnand %p1502_p4, %p1496_p13 }
  0x2e   : > { %1506 = shalt.err (!%p1503_p7)
}
  0x2f   : > { %1287 = dma.hbm_to_vmem [thread:$0]  (!%p1685_p5), %s1807_s1, 6144, %s1689_s14, [#allocation3], %s1613_s22, %s1613_s22, %s1614_s23  }
  0x30   : > { %s1518_s10 = scalar_lea.vmem %s270_s16, 32  ;;  %p1526_p11 = scmp.lt.s32.totalorder %s270_s16, %s270_s16 }
  0x31   : > { %p1519_p8 = scmp.ne.s32.totalorder %s270_s16, %s1518_s10  ;;  %p1527_p12 = scmp.lt.s32.totalorder %s1518_s10, %s1518_s10 }
  0x33   : > { %p1521_p9 = pnand %p1519_p8, %p1695_p6  ;;  %p1528_p0 = por %p1527_p12, %p1526_p11 }
  0x35   : > { %p1522_p10 = pneg %p1521_p9 }
  0x37   : > { %p1529_p13 = pnand %p1528_p0, %p1522_p10 }
  0x39   : > { %1532 = shalt.err (!%p1529_p13)
}
  0x3a   : > { %1293 = dma.hbm_to_vmem [thread:$0]  (!%p1685_p5), %s1809_s3, 32, %s270_s16, [#allocation5]  }
  0x3b   : > { %s1615_s15 = smov [#allocation9]   ;;  %s1616_s18 = smov [#allocation10]  }
  0x3c   : > { %s293_s14 = sshll.u32 %s1615_s15, 4  ;;  %s304_s19 = sshll.u32 %s1616_s18, 4  ;;  %s294_s14 = int_to_ptr.vmem [resolvable:$true] %s293_s14  ;;  %s305_s19 = int_to_ptr.vmem [resolvable:$true] %s304_s19 }
  0x3d   : > { %s1544_s20 = scalar_lea.vmem %s294_s14, 32  ;;  %p1552_p8 = scmp.lt.s32.totalorder %s294_s14, %s294_s14 }
  0x3e   : > { %p1545_p1 = scmp.ne.s32.totalorder %s294_s14, %s1544_s20  ;;  %p1553_p9 = scmp.lt.s32.totalorder %s1544_s20, %s1544_s20 }
  0x40   : > { %p1547_p4 = pnand %p1545_p1, %p1695_p6  ;;  %p1554_p10 = por %p1553_p9, %p1552_p8 }
  0x42   : > { %p1548_p7 = pneg %p1547_p4 }
  0x44   : > { %p1555_p11 = pnand %p1554_p10, %p1548_p7 }
  0x46   : > { %1558 = shalt.err (!%p1555_p11)
}
  0x47   : > { %1299 = dma.hbm_to_vmem [thread:$0]  (!%p1685_p5), %s1811_s5, 32, %s294_s14, [#allocation8]  }
  0x48   : > { %s1570_s16 = scalar_lea.vmem %s305_s19, 32  ;;  %p1578_p1 = scmp.lt.s32.totalorder %s305_s19, %s305_s19 }
  0x49   : > { %p1571_p12 = scmp.ne.s32.totalorder %s305_s19, %s1570_s16  ;;  %p1579_p4 = scmp.lt.s32.totalorder %s1570_s16, %s1570_s16 }
  0x4b   : > { %p1573_p0 = pnand %p1571_p12, %p1695_p6  ;;  %p1580_p2 = por %p1579_p4, %p1578_p1 }
  0x4d   : > { %p1574_p13 = pneg %p1573_p0 }
  0x4f   : > { %p1581_p3 = pnand %p1580_p2, %p1574_p13 }
  0x51   : > { %1584 = shalt.err (!%p1581_p3)
}
  0x52   : > { %1302 = dma.hbm_to_vmem [thread:$0]  (!%p1685_p5), %s1812_s6, 32, %s305_s19, [#allocation11]  }
  0x53   : > { %p1820_p7 = scmp.ne.s32.totalorder %s1817_s9, 0 }
  0x54   : > { %p1821_p8 = scmp.eq.s32.totalorder (!%p1820_p7), %s1670_s30, 0 }
  0x55   : > { %325 = sbr.rel (%p1820_p7) target bundleno = 372 (0x174), region = 48 }
  0x5a   : > { %1590 = dma.done.wait (%p1821_p8), [#allocation3], 6144   ;;  %p1822_p6 = pmov %p1821_p8 }
  0x5c   : > { %1592 = vsyncadd (%p1822_p6), [#allocation3], 4294961152  ;;  %p1823_p9 = pmov %p1822_p6 }
  0x5d   : > { %p1824_p2 = pmov %p1822_p6 }
  0x5e   : > { %1594 = dma.done.wait (%p1823_p9), [#allocation5], 64  }
  0x5f   : > { %1596 = vsyncadd (%p1824_p2), [#allocation5], 4294967232  ;;  %p1825_p3 = pmov %p1824_p2 }
  0x60   : > { %p1826_p5 = pmov %p1824_p2 }
  0x61   : > { %1598 = dma.done.wait (%p1825_p3), [#allocation8], 2080  }
  0x62   : > { %1600 = vsyncadd (%p1826_p5), [#allocation8], 4294965216  ;;  %p1827_p10 = pmov %p1824_p2 }
  0x63   : > { %p1828_p11 = pmov %p1824_p2 }
  0x64   : > { %1602 = dma.done.wait (%p1827_p10), [#allocation11], 32  }
  0x65   : > { %1604 = vsyncadd (%p1828_p11), [#allocation11], 4294967264  ;;  %v1617_v0 = vmov 0   ;;  %v1333_v1 = vld [vmem:[#allocation2 + $0x74] ss:$8 sps:$4 sm:$0xff]   ;;  %p384_p12 = scmp.lt.s32.totalorder %s1670_s30, 1  ;;  %v405_v23 = vlaneseq }
  0x66   : > { %784 = vmatprep.mubr.bf16.mxu1 %v1617_v0  ;;  %v1335_v2 = vld [vmem:[#allocation2 + $0x174] ss:$8 sps:$4 sm:$0xff]   ;;  %711 = vmatprep.subr.bf16.mxu0 %v1333_v1  ;;  %v1337_v3 = vld [vmem:[#allocation2 + $0x70] ss:$8 sps:$4 sm:$0xff]   ;;  %v1339_v5 = vld [vmem:[#allocation2 + $0x64] ss:$8 sps:$4 sm:$0xff]  }
  0x67   : > { %v1338_v4 = vld [vmem:[#allocation2 + $0x170] ss:$8 sps:$4 sm:$0xff]   ;;  %752 = vmatprep.subr.bf16.mxu1 %v1335_v2  ;;  %712 = vmatpush1.bf16.msra.mxu0 %v1337_v3  ;;  %v1341_v6 = vld [vmem:[#allocation2 + $0x164] ss:$8 sps:$4 sm:$0xff]   ;;  %v1343_v7 = vld [vmem:[#allocation2 + $0x60] ss:$8 sps:$4 sm:$0xff]  }
  0x68   : > { %753 = vmatpush1.bf16.msra.mxu1 %v1338_v4  ;;  %713 = vmatprep.subr.bf16.mxu0 %v1339_v5  ;;  %v1344_v8 = vld [vmem:[#allocation2 + $0x160] ss:$8 sps:$4 sm:$0xff]   ;;  %v1345_v9 = vld [vmem:[#allocation2 + $0x54] ss:$8 sps:$4 sm:$0xff]   ;;  %v1349_v11 = vld [vmem:[#allocation2 + $0x50] ss:$8 sps:$4 sm:$0xff]  }
  0x69   : > { %754 = vmatprep.subr.bf16.mxu1 %v1341_v6  ;;  %v1347_v10 = vld [vmem:[#allocation2 + $0x154] ss:$8 sps:$4 sm:$0xff]   ;;  %v1350_v12 = vld [vmem:[#allocation2 + $0x150] ss:$8 sps:$4 sm:$0xff]   ;;  %v1351_v13 = vld [vmem:[#allocation2 + $0x44] ss:$8 sps:$4 sm:$0xff]  }
  0x6a   : > { %v1353_v14 = vld [vmem:[#allocation2 + $0x144] ss:$8 sps:$4 sm:$0xff]   ;;  %v1355_v15 = vld [vmem:[#allocation2 + $0x40] ss:$8 sps:$4 sm:$0xff]   ;;  %v1357_v17 = vld [vmem:[#allocation2 + $0x34] ss:$8 sps:$4 sm:$0xff]  }
  0x6b   : > { %714 = vmatpush1.bf16.msra.mxu0 %v1343_v7  ;;  %v1356_v16 = vld [vmem:[#allocation2 + $0x140] ss:$8 sps:$4 sm:$0xff]   ;;  %s1830_s30 = smov (!%p384_p12, %s1670_s30), 1  ;;  %v1359_v18 = vld [vmem:[#allocation2 + $0x134] ss:$8 sps:$4 sm:$0xff]   ;;  %v1779_v28 = vshrl.u32 %v405_v23, 7 }
  0x6c   : > { %755 = vmatpush1.bf16.msra.mxu1 %v1344_v8  ;;  %715 = vmatprep.subr.bf16.mxu0 %v1345_v9  ;;  %v1361_v19 = vld [vmem:[#allocation2 + $0x30] ss:$8 sps:$4 sm:$0xff]   ;;  %v1618_v21 = vmov 1983009808   ;;  %v1363_v24 = vld [vmem:[#allocation2 + $0x24] ss:$8 sps:$4 sm:$0xff]  }
  0x6d   : > { %756 = vmatprep.subr.bf16.mxu1 %v1347_v10  ;;  %v1362_v20 = vld [vmem:[#allocation2 + $0x130] ss:$8 sps:$4 sm:$0xff]   ;;  %v403_v22 = vunpack.c.l.s4 %v1618_v21  ;;  %s1773_s9 = sshll.u32 %s1830_s30, 2  ;;  %v1365_v25 = vld [vmem:[#allocation2 + $0x124] ss:$8 sps:$4 sm:$0xff]   ;;  %vm418_vm0 = vcmask 1040384  }
  0x6e   : > { %v1367_v26 = vld [vmem:[#allocation2 + $0x20] ss:$8 sps:$4 sm:$0xff]   ;;  %s388_s25 = scalar_lea.vmem %s1806_s0, %s1773_s9  ;;  %v1369_v30 = vld [vmem:[#allocation2 + $0x14] ss:$8 sps:$4 sm:$0xff]   ;;  %v1373_v33 = vld [vmem:[#allocation2 + $0x10] ss:$8 sps:$4 sm:$0xff]   ;;  %s398_s28 = scalar_lea.vmem %s1814_s8, %s1773_s9 }
  0x6f   : > { %716 = vmatpush1.bf16.msra.mxu0 %v1349_v11  ;;  %v404_v27 = vunpack.c.0.s8 %v403_v22  ;;  %v1368_v29 = vld [vmem:[#allocation2 + $0x120] ss:$8 sps:$4 sm:$0xff]   ;;  %v1371_v31 = vld [vmem:[#allocation2 + $0x114] ss:$8 sps:$4 sm:$0xff]   ;;  %v1374_v34 = vld [vmem:[#allocation2 + $0x110] ss:$8 sps:$4 sm:$0xff]   ;;  %s393_s11 = scalar_lea.vmem %s1813_s7, %s1773_s9 }
  0x70   : > { %757 = vmatpush1.bf16.msra.mxu1 %v1350_v12  ;;  %717 = vmatprep.subr.bf16.mxu0 %v1351_v13  ;;  %v1781_v32 = vld [vmem:[%s388_s25] sm:$0xf]  ;;  %v1375_v36 = vld [vmem:[#allocation2 + $0x4] ss:$8 sps:$4 sm:$0xff]   ;;  %v1381_v41 = vld [vmem:[#allocation2 + $0xf4] ss:$8 sps:$4 sm:$0xff]  }
  0x71   : > { %758 = vmatprep.subr.bf16.mxu1 %v1353_v14  ;;  %v407_v35 = vsub.s32 %v404_v27, %v1779_v28  ;;  %743 = vmatprep.mubr.bf16.mxu0 %v1781_v32  ;;  %v1377_v37 = vld [vmem:[#allocation2 + $0x104] ss:$8 sps:$4 sm:$0xff]   ;;  %v1379_v38 = vld [vmem:[#allocation2] ss:$8 sps:$4 sm:$0xff]   ;;  %v1383_v44 = vld [vmem:[#allocation7 + $0x70] ss:$8 sps:$4 sm:$0xff]  }
  0x72   : > { %v1380_v40 = vld [vmem:[#allocation2 + $0x100] ss:$8 sps:$4 sm:$0xff]   ;;  %v1386_v45 = vld [vmem:[#allocation2 + $0xf0] ss:$8 sps:$4 sm:$0xff]   ;;  %v1387_v46 = vld [vmem:[#allocation2 + $0xe4] ss:$8 sps:$4 sm:$0xff]  }
  0x73   : > { %718 = vmatpush1.bf16.msra.mxu0 %v1355_v15  ;;  %v408_v39 = vrot.slane %v1781_v32, %v407_v35  ;;  %v1385_v42 = vld [vmem:[#allocation7 + $0x74] ss:$8 sps:$4 sm:$0xff]   ;;  %v1391_v47 = vld [vmem:[#allocation7 + $0x64] ss:$8 sps:$4 sm:$0xff]   ;;  %v1389_v48 = vld [vmem:[#allocation7 + $0x60] ss:$8 sps:$4 sm:$0xff]  }
  0x74   : > { %759 = vmatpush1.bf16.msra.mxu1 %v1356_v16  ;;  %719 = vmatprep.subr.bf16.mxu0 %v1357_v17  ;;  %v1392_v49 = vld [vmem:[#allocation2 + $0xe0] ss:$8 sps:$4 sm:$0xff]   ;;  %v1393_v50 = vld [vmem:[#allocation2 + $0xd4] ss:$8 sps:$4 sm:$0xff]   ;;  %v1398_v53 = vld [vmem:[#allocation2 + $0xd0] ss:$8 sps:$4 sm:$0xff]  }
  0x75   : > { %760 = vmatprep.subr.bf16.mxu1 %v1359_v18  ;;  %v1786_v43 = vcombine.high %v408_v39, %v408_v39  ;;  %v1397_v51 = vld [vmem:[#allocation7 + $0x54] ss:$8 sps:$4 sm:$0xff]   ;;  %v1395_v52 = vld [vmem:[#allocation7 + $0x50] ss:$8 sps:$4 sm:$0xff]   ;;  %v1399_v54 = vld [vmem:[#allocation2 + $0xc4] ss:$8 sps:$4 sm:$0xff]  }
  0x76   : > { %v1403_v55 = vld [vmem:[#allocation7 + $0x44] ss:$8 sps:$4 sm:$0xff]   ;;  %v1401_v56 = vld [vmem:[#allocation7 + $0x40] ss:$8 sps:$4 sm:$0xff]   ;;  %v1405_v58 = vld [vmem:[#allocation2 + $0xb4] ss:$8 sps:$4 sm:$0xff]  }
  0x77   : > { %720 = vmatpush1.bf16.msra.mxu0 %v1361_v19  ;;  %v1404_v57 = vld [vmem:[#allocation2 + $0xc0] ss:$8 sps:$4 sm:$0xff]   ;;  %v1407_v60 = vld [vmem:[#allocation7 + $0x30] ss:$8 sps:$4 sm:$0xff]   ;;  %v1410_v61 = vld [vmem:[#allocation2 + $0xb0] ss:$8 sps:$4 sm:$0xff]  }
  0x78   : > { %761 = vmatpush1.bf16.msra.mxu1 %v1362_v20  ;;  %721 = vmatprep.subr.bf16.mxu0 %v1363_v24  ;;  %v1409_v59 = vld [vmem:[#allocation7 + $0x34] ss:$8 sps:$4 sm:$0xff]   ;;  %v1411_v62 = vld [vmem:[#allocation2 + $0xa4] ss:$8 sps:$4 sm:$0xff]   ;;  %v1415_v63 = vld [vmem:[#allocation7 + $0x24] ss:$8 sps:$4 sm:$0xff]  }
  0x79   : > { %762 = vmatprep.subr.bf16.mxu1 %v1365_v25  ;;  %v1416_v1 = vld [vmem:[#allocation2 + $0xa0] ss:$8 sps:$4 sm:$0xff]   ;;  %v411_v2 = vshrl.u32 %v1786_v43, 16  ;;  %v1417_v3 = vld [vmem:[#allocation2 + $0x94] ss:$8 sps:$4 sm:$0xff]   ;;  %v414_v8 = vshll.u32 %v1786_v43, 16 }
  0x7a   : > { %v1421_v4 = vld [vmem:[#allocation7 + $0x14] ss:$8 sps:$4 sm:$0xff]   ;;  %v1419_v5 = vld [vmem:[#allocation7 + $0x10] ss:$8 sps:$4 sm:$0xff]   ;;  %v1423_v9 = vld [vmem:[#allocation2 + $0x84] ss:$8 sps:$4 sm:$0xff]  }
  0x7b   : > { %722 = vmatpush1.bf16.msra.mxu0 %v1367_v26  ;;  %v1422_v6 = vld [vmem:[#allocation2 + $0x90] ss:$8 sps:$4 sm:$0xff]   ;;  %v413_v7 = vrot.slane %v411_v2, 7  ;;  %vm419_vm1 = vsmask.f32 256  ;;  %v797_v20 = vsub.s32 0, %v1779_v28 }
  0x7c   : > { %763 = vmatpush1.bf16.msra.mxu1 %v1368_v29  ;;  %723 = vmatprep.subr.bf16.mxu0 %v1369_v30  ;;  %v1427_v10 = vld [vmem:[#allocation7 + $0x4] ss:$8 sps:$4 sm:$0xff]   ;;  %v1425_v11 = vld [vmem:[#allocation7] ss:$8 sps:$4 sm:$0xff]   ;;  %vm420_vm2 = vmand %vm418_vm0, %vm419_vm1  ;;  %v801_v21 = vsub.s32 1, %v1779_v28 }
  0x7d   : > { %764 = vmatprep.subr.bf16.mxu1 %v1371_v31  ;;  %v1428_v12 = vld [vmem:[#allocation2 + $0x80] ss:$8 sps:$4 sm:$0xff]   ;;  %v416_v13 = vor.u32 %v414_v8, %v413_v7  ;;  %v974_v19 = vld [vmem:[#allocation9] sm:$0x3]  ;;  %v988_v23 = vld [vmem:[#allocation10] sm:$0x3] }
  0x7e   : > { %v793_v22 = vld [vmem:[#allocation4] sm:$0x3]  ;;  %v807_v24 = vld [vmem:[#allocation6] sm:$0x3]  ;;  %v979_v25 = vrot.slane %v974_v19, %v797_v20  ;;  %v993_v27 = vrot.slane %v988_v23, %v797_v20  ;;  %v983_v29 = vrot.slane %v974_v19, %v801_v21 }
  0x7f   : > { %724 = vmatpush1.bf16.msra.mxu0 %v1373_v33  ;;  %v421_v14 = vsel %vm420_vm2, 0, %v416_v13  ;;  %v798_v26 = vrot.slane %v793_v22, %v797_v20  ;;  %v812_v31 = vrot.slane %v807_v24, %v797_v20  ;;  %v802_v35 = vrot.slane %v793_v22, %v801_v21 }
  0x80   : > { %765 = vmatpush1.bf16.msra.mxu1 %v1374_v34  ;;  %725 = vmatprep.subr.bf16.mxu0 %v1375_v36  ;;  %v997_v36 = vrot.slane %v988_v23, %v801_v21 }
  0x81   : > { %766 = vmatprep.subr.bf16.mxu1 %v1377_v37 }
  0x83   : > { %726 = vmatpush1.bf16.msra.mxu0 %v1379_v38  ;;  %v816_v38 = vrot.slane %v807_v24, %v801_v21 }
  0x84   : > { %767 = vmatpush1.bf16.msra.mxu1 %v1380_v40  ;;  %727 = vmatprep.subr.bf16.mxu0 %v1381_v41 }
  0x85   : > { %933 = vmatprep.subr.bf16.mxu1 %v1385_v42 }
  0x87   : > { %785 = vmatmul.mubr.bf16.vlgmr.msra.gmra.mxu1 %v1786_v43  ;;  %728 = vmatpush2.bf16.msra.mxu0 %v1386_v45 }
  0x88   : > { %934 = vmatpush1.bf16.msra.mxu1 %v1383_v44  ;;  %729 = vmatprep.subr.bf16.mxu0 %v1387_v46 }
  0x89   : > { %935 = vmatprep.subr.bf16.mxu1 %v1391_v47  ;;  %965 = vmatprep.mubr.bf16.mxu1 %v1617_v0  ;;  %v1413_v0 = vld [vmem:[#allocation7 + $0x20] ss:$8 sps:$4 sm:$0xff]  }
  0x8b   : > { %730 = vmatpush2.bf16.msra.mxu0 %v1392_v49 }
  0x8c   : > { %936 = vmatpush1.bf16.msra.mxu1 %v1389_v48  ;;  %731 = vmatprep.subr.bf16.mxu0 %v1393_v50 }
  0x8d   : > { %937 = vmatprep.subr.bf16.mxu1 %v1397_v51 }
  0x8f   : > { %732 = vmatpush2.bf16.msra.mxu0 %v1398_v53 }
  0x90   : > { %938 = vmatpush1.bf16.msra.mxu1 %v1395_v52  ;;  %733 = vmatprep.subr.bf16.mxu0 %v1399_v54 }
  0x91   : > { %939 = vmatprep.subr.bf16.mxu1 %v1403_v55 }
  0x93   : > { %734 = vmatpush2.bf16.msra.mxu0 %v1404_v57 }
  0x94   : > { %940 = vmatpush1.bf16.msra.mxu1 %v1401_v56  ;;  %735 = vmatprep.subr.bf16.mxu0 %v1405_v58 }
  0x95   : > { %941 = vmatprep.subr.bf16.mxu1 %v1409_v59 }
  0x97   : > { %736 = vmatpush2.bf16.msra.mxu0 %v1410_v61 }
  0x98   : > { %942 = vmatpush1.bf16.msra.mxu1 %v1407_v60  ;;  %737 = vmatprep.subr.bf16.mxu0 %v1411_v62 }
  0x99   : > { %943 = vmatprep.subr.bf16.mxu1 %v1415_v63 }
  0x9b   : > { %738 = vmatpush2.bf16.msra.mxu0 %v1416_v1 }
  0x9c   : > { %944 = vmatpush1.bf16.msra.mxu1 %v1413_v0  ;;  %739 = vmatprep.subr.bf16.mxu0 %v1417_v3 }
  0x9d   : > { %945 = vmatprep.subr.bf16.mxu1 %v1421_v4 }
  0x9f   : > { %740 = vmatpush2.bf16.msra.mxu0 %v1422_v6 }
  0xa0   : > { %946 = vmatpush1.bf16.msra.mxu1 %v1419_v5  ;;  %741 = vmatprep.subr.bf16.mxu0 %v1423_v9 }
  0xa1   : > { %947 = vmatprep.subr.bf16.mxu1 %v1427_v10 }
  0xa3   : > { %742 = vmatpush2.bf16.msra.mxu0 %v1428_v12 }
  0xa4   : > { %948 = vmatpush1.bf16.msra.mxu1 %v1425_v11 }
  0xa6   : > { %744 = vmatmul.mubr.bf16.vlgmr.msra.gmra.mxu0 %v421_v14 }
  0xa7   : > { %966 = vmatmul.mubr.bf16.vlgmr.msra.gmra.mxu1 %v1781_v32 }
 0x147   : > { %v786_v15 = vpop.f32.mrf.mxu1 }
 0x149   : > { %v788_v16 = vpop.f32.mrf.mxu1 }
 0x14b   : > { %v790_v17 = vpop.f32.mrf.mxu1 }
 0x14d   : > { %v791_v18 = vpop.f32.mrf.mxu1 }
 0x166   : > { %v745_v30 = vpop.f32.mrf.mxu0 }
 0x167   : > { %v967_v33 = vpop.f32.mrf.mxu1  ;;  %v787_v32 = vadd.f32 %v786_v15, %v745_v30 }
 0x168   : > { %v986_v34 = vmul.f32 %v979_v25, %v967_v33  ;;  %v747_v37 = vpop.f32.mrf.mxu0 }
 0x169   : > { %v969_v39 = vpop.f32.mrf.mxu1  ;;  %v805_v40 = vmul.f32 %v798_v26, %v787_v32  ;;  %v789_v41 = vadd.f32 %v788_v16, %v747_v37 }
 0x16a   : > { %v1000_v28 = vadd.f32 %v993_v27, %v986_v34  ;;  %v987_v42 = vmul.f32 %v983_v29, %v969_v39  ;;  %v749_v43 = vpop.f32.mrf.mxu0 }
 0x16b   : > { %v971_v44 = vpop.f32.mrf.mxu1  ;;  %v819_v45 = vadd.f32 %v812_v31, %v805_v40  ;;  %v806_v46 = vmul.f32 %v802_v35, %v789_v41 }
 0x16c   : > { %v1001_v47 = vadd.f32 %v997_v36, %v987_v42  ;;  %v750_v48 = vpop.f32.mrf.mxu0 }
 0x16d   : > { %v972_v49 = vpop.f32.mrf.mxu1  ;;  %v820_v50 = vadd.f32 %v816_v38, %v806_v46  ;;  %v821_v52 = vmax.f32 %v819_v45, 0.0 }
 0x16e   : > { %v1253_v51 = vpack.c.bf16 %v1001_v47, %v1000_v28 }
 0x16f   : > { %v822_v53 = vmax.f32 %v820_v50, 0.0 }
 0x170   : > { %1254 = vst.sshfl [vmem:[%s398_s28] sm:$0x33 pattern:$0x76325410] %v1253_v51 }
 0x171   : > { %v1235_v54 = vpack.c.bf16 %v822_v53, %v821_v52 }
 0x173   : > { %1236 = vst.sshfl [vmem:[%s393_s11] sm:$0x33 pattern:$0x76325410] %v1235_v54 }
 0x174 PF: > { %s23_s27 = sadd.s32 1, %s1607_s27  }
 0x175   : > { %p20_p0 = scmp.ge.s32.totalorder %s23_s27, 4  }
 0x177   :  { %22 = sbr.rel (!%p20_p0) target bundleno = 4 (0x4), region = 115 }
 0x17c   :  { %1053 = vsyncpa [#allocation3], 1 }
 0x17d   :  { %1055 = vsyncpa [#allocation3 + $0x1], 1 }
 0x17e   :  { %1056 = vsyncpa [#allocation5], 1 }
 0x17f   :  { %1057 = vsyncpa [#allocation8], 1 }
 0x180   :  { %1058 = vsyncpa [#allocation11], 1 }

// kernel: _lambda_.16
= control target key start
LH: loop header
LB: loop body
LE: loop exit
PB: predicated region body
PF: predicated region fallthrough
CT: control target
= control target key end

     0   :  { %14 = vsyncpa [#allocation3], 0  ;;  %s3785_s0 = inlined_call_operand.vmem [shape: bf16[2,2,512], index: 0, kind: input, shape index: {}]   ;;  %s3786_s1 = inlined_call_operand.hbm [shape: bf16[768,512], index: 1, kind: input, shape index: {}]   ;;  %s3787_s2 = inlined_call_operand.hbm [shape: f32[1,512], index: 2, kind: input, shape index: {}]   ;;  %s3788_s3 = inlined_call_operand.hbm [shape: f32[1,512], index: 3, kind: input, shape index: {}]   ;;  %s3789_s4 = inlined_call_operand.hbm [shape: bf16[256,512], index: 4, kind: input, shape index: {}]   ;;  %s3790_s5 = inlined_call_operand.hbm [shape: f32[1,512], index: 5, kind: input, shape index: {}]   ;;  %s3791_s6 = inlined_call_operand.hbm [shape: f32[1,512], index: 6, kind: input, shape index: {}]   ;;  %s3792_s7 = inlined_call_operand.vmem [shape: bf16[2,2,512], index: 7, kind: output, shape index: {0}]   ;;  %s3793_s8 = inlined_call_operand.vmem [shape: bf16[2,2,512], index: 8, kind: output, shape index: {1}]  }
   0x1   :  { %15 = vsyncpa [#allocation5], 0 }
   0x2   :  { %16 = vsyncpa [#allocation8], 0 }
   0x3   :  { %17 = vsyncpa [#allocation11], 0  ;;  %s3595_s27 = smov 0  }
   0x4 LB: > { %s3541_s28 = smov [#allocation4]   ;;  %s3601_s30 = sadd.s32 4294967295, %s3539_s27   ;;  %s3539_s27 = sphi %s3595_s27, %s23_s27  }
   0x5   : > { %s258_s29 = sshll.u32 %s3541_s28, 4  ;;  %p2622_p0 = scmp.ge.s32.totalorder %s3539_s27, 1  ;;  %s259_s29 = int_to_ptr.vmem [resolvable:$true] %s258_s29 }
   0x6   : > { %p232_p1 = scmp.lt.s32.totalorder %s3539_s27, 3  ;;  %p3794_p2 = scmp.eq.s32.totalorder %s3601_s30, 0 }
   0x7   : > { %s3542_s10 = smov [#allocation7]   ;;  %s3543_s13 = smov [#allocation2]  }
   0x8   : > { %p3606_p3 = pnand %p2622_p0, %p232_p1  ;;  %s279_s11 = sshll.u32 %s3542_s10, 4  ;;  %s3612_s11 = int_to_ptr.vmem [resolvable:$true] %s279_s11 }
   0x9   : > { %s244_s14 = sshll.u32 %s3543_s13, 4  ;;  %s3544_s15 = smov [#allocation6]   ;;  %s3620_s14 = int_to_ptr.vmem [resolvable:$true] %s244_s14 }
   0xa   : > { %s3796_s9 = scalar_select %p3606_p3, 1, 0 }
   0xb   : > { %p2929_p4 = pneg %p3606_p3  ;;  %s3622_s16 = sshll.u32 %s3544_s15, 4  ;;  %s270_s16 = int_to_ptr.vmem [resolvable:$true] %s3622_s16 }
   0xc   : > { %s3372_s18 = scalar_lea.vmem %s259_s29, 64  ;;  %p3380_p10 = scmp.lt.s32.totalorder %s259_s29, %s259_s29 }
   0xd   : > { %p3616_p5 = pnand %p3794_p2, %p2929_p4  ;;  %p3373_p7 = scmp.ne.s32.totalorder %s259_s29, %s3372_s18 }
   0xe   : > { %p3381_p11 = scmp.lt.s32.totalorder %s3372_s18, %s3372_s18 }
   0xf   : > { %p3626_p6 = pneg %p3616_p5 }
  0x10   : > { %p3382_p12 = por %p3381_p11, %p3380_p10 }
  0x11   : > { %p3375_p8 = pnand %p3373_p7, %p3626_p6 }
  0x13   : > { %p3376_p9 = pneg %p3375_p8 }
  0x15   : > { %p3383_p13 = pnand %p3382_p12, %p3376_p9 }
  0x17   : > { %3386 = shalt.err (!%p3383_p13)
}
  0x18   : > { %2935 = dma.hbm_to_vmem [thread:$0]  (!%p3616_p5), %s3787_s2, 64, %s259_s29, [#allocation5]  }
  0x19   : > { %s3398_s21 = scalar_lea.vmem %s3612_s11, 8192  ;;  %p3406_p7 = scmp.lt.s32.totalorder %s3612_s11, %s3612_s11 }
  0x1a   : > { %p3399_p0 = scmp.ne.s32.totalorder %s3612_s11, %s3398_s21  ;;  %p3407_p8 = scmp.lt.s32.totalorder %s3398_s21, %s3398_s21 }
  0x1c   : > { %p3401_p1 = pnand %p3399_p0, %p3626_p6  ;;  %p3408_p9 = por %p3407_p8, %p3406_p7 }
  0x1e   : > { %p3402_p4 = pneg %p3401_p1 }
  0x20   : > { %p3409_p10 = pnand %p3408_p9, %p3402_p4 }
  0x22   : > { %3412 = shalt.err (!%p3409_p10)
}
  0x23   : > { %s3545_s22 = smov 256   ;;  %s3546_s23 = smov 16  }
  0x24   : > { %2941 = dma.hbm_to_vmem [thread:$0]  (!%p3616_p5), %s3789_s4, 8192, %s3612_s11, [#allocation8], %s3545_s22, %s3545_s22, %s3546_s23  }
  0x25   : > { %s3424_s26 = scalar_lea.vmem %s3620_s14, 24576  ;;  %p3432_p0 = scmp.lt.s32.totalorder %s3620_s14, %s3620_s14 }
  0x26   : > { %p3425_p11 = scmp.ne.s32.totalorder %s3620_s14, %s3424_s26  ;;  %p3433_p1 = scmp.lt.s32.totalorder %s3424_s26, %s3424_s26 }
  0x28   : > { %p3427_p12 = pnand %p3425_p11, %p3626_p6  ;;  %p3434_p4 = por %p3433_p1, %p3432_p0 }
  0x2a   : > { %p3428_p13 = pneg %p3427_p12 }
  0x2c   : > { %p3435_p7 = pnand %p3434_p4, %p3428_p13 }
  0x2e   : > { %3438 = shalt.err (!%p3435_p7)
}
  0x2f   : > { %2932 = dma.hbm_to_vmem [thread:$0]  (!%p3616_p5), %s3786_s1, 24576, %s3620_s14, [#allocation3], %s3545_s22, %s3545_s22, %s3546_s23  }
  0x30   : > { %s3450_s10 = scalar_lea.vmem %s270_s16, 64  ;;  %p3458_p11 = scmp.lt.s32.totalorder %s270_s16, %s270_s16 }
  0x31   : > { %p3451_p8 = scmp.ne.s32.totalorder %s270_s16, %s3450_s10  ;;  %p3459_p12 = scmp.lt.s32.totalorder %s3450_s10, %s3450_s10 }
  0x33   : > { %p3453_p9 = pnand %p3451_p8, %p3626_p6  ;;  %p3460_p0 = por %p3459_p12, %p3458_p11 }
  0x35   : > { %p3454_p10 = pneg %p3453_p9 }
  0x37   : > { %p3461_p13 = pnand %p3460_p0, %p3454_p10 }
  0x39   : > { %3464 = shalt.err (!%p3461_p13)
}
  0x3a   : > { %2938 = dma.hbm_to_vmem [thread:$0]  (!%p3616_p5), %s3788_s3, 64, %s270_s16, [#allocation5]  }
  0x3b   : > { %s3547_s15 = smov [#allocation9]   ;;  %s3548_s18 = smov [#allocation10]  }
  0x3c   : > { %s293_s14 = sshll.u32 %s3547_s15, 4  ;;  %s304_s19 = sshll.u32 %s3548_s18, 4  ;;  %s294_s14 = int_to_ptr.vmem [resolvable:$true] %s293_s14  ;;  %s305_s19 = int_to_ptr.vmem [resolvable:$true] %s304_s19 }
  0x3d   : > { %s3476_s20 = scalar_lea.vmem %s294_s14, 64  ;;  %p3484_p8 = scmp.lt.s32.totalorder %s294_s14, %s294_s14 }
  0x3e   : > { %p3477_p1 = scmp.ne.s32.totalorder %s294_s14, %s3476_s20  ;;  %p3485_p9 = scmp.lt.s32.totalorder %s3476_s20, %s3476_s20 }
  0x40   : > { %p3479_p4 = pnand %p3477_p1, %p3626_p6  ;;  %p3486_p10 = por %p3485_p9, %p3484_p8 }
  0x42   : > { %p3480_p7 = pneg %p3479_p4 }
  0x44   : > { %p3487_p11 = pnand %p3486_p10, %p3480_p7 }
  0x46   : > { %3490 = shalt.err (!%p3487_p11)
}
  0x47   : > { %2944 = dma.hbm_to_vmem [thread:$0]  (!%p3616_p5), %s3790_s5, 64, %s294_s14, [#allocation8]  }
  0x48   : > { %s3502_s16 = scalar_lea.vmem %s305_s19, 64  ;;  %p3510_p1 = scmp.lt.s32.totalorder %s305_s19, %s305_s19 }
  0x49   : > { %p3503_p12 = scmp.ne.s32.totalorder %s305_s19, %s3502_s16  ;;  %p3511_p4 = scmp.lt.s32.totalorder %s3502_s16, %s3502_s16 }
  0x4b   : > { %p3505_p0 = pnand %p3503_p12, %p3626_p6  ;;  %p3512_p2 = por %p3511_p4, %p3510_p1 }
  0x4d   : > { %p3506_p13 = pneg %p3505_p0 }
  0x4f   : > { %p3513_p3 = pnand %p3512_p2, %p3506_p13 }
  0x51   : > { %3516 = shalt.err (!%p3513_p3)
}
  0x52   : > { %2947 = dma.hbm_to_vmem [thread:$0]  (!%p3616_p5), %s3791_s6, 64, %s305_s19, [#allocation11]  }
  0x53   : > { %p3799_p7 = scmp.ne.s32.totalorder %s3796_s9, 0 }
  0x54   : > { %p3800_p8 = scmp.eq.s32.totalorder (!%p3799_p7), %s3601_s30, 0 }
  0x55   : > { %324 = sbr.rel (%p3799_p7) target bundleno = 565 (0x235), region = 48 }
  0x5a   : > { %3522 = dma.done.wait (%p3800_p8), [#allocation3], 24576   ;;  %p3801_p6 = pmov %p3800_p8 }
  0x5c   : > { %3524 = vsyncadd (%p3801_p6), [#allocation3], 4294942720  ;;  %p3802_p9 = pmov %p3801_p6 }
  0x5d   : > { %p3803_p2 = pmov %p3801_p6 }
  0x5e   : > { %3526 = dma.done.wait (%p3802_p9), [#allocation5], 128  }
  0x5f   : > { %3528 = vsyncadd (%p3803_p2), [#allocation5], 4294967168  ;;  %p3804_p3 = pmov %p3803_p2 }
  0x60   : > { %p3805_p5 = pmov %p3803_p2 }
  0x61   : > { %3530 = dma.done.wait (%p3804_p3), [#allocation8], 8256  }
  0x62   : > { %3532 = vsyncadd (%p3805_p5), [#allocation8], 4294959040  ;;  %p3806_p10 = pmov %p3803_p2 }
  0x63   : > { %p3807_p11 = pmov %p3803_p2 }
  0x64   : > { %3534 = dma.done.wait (%p3806_p10), [#allocation11], 64  }
  0x65   : > { %3536 = vsyncadd (%p3807_p11), [#allocation11], 4294967232  ;;  %v2977_v0 = vld [vmem:[#allocation2 + $0xe4] ss:$16 sps:$4 sm:$0xff]   ;;  %v2981_v2 = vld [vmem:[#allocation2 + $0xe0] ss:$16 sps:$4 sm:$0xff]   ;;  %v406_v40 = vlaneseq }
  0x66   : > { %v2979_v1 = vld [vmem:[#allocation2 + $0x2e4] ss:$16 sps:$4 sm:$0xff]   ;;  %1588 = vmatprep.subr.bf16.mxu0 %v2977_v0  ;;  %v2982_v3 = vld [vmem:[#allocation2 + $0x2e0] ss:$16 sps:$4 sm:$0xff]   ;;  %p380_p12 = scmp.lt.s32.totalorder %s3601_s30, 1  ;;  %vm427_vm0 = vcmask 1040384  }
  0x67   : > { %1629 = vmatprep.subr.bf16.mxu1 %v2979_v1  ;;  %v2983_v4 = vld [vmem:[#allocation2 + $0xc4] ss:$16 sps:$4 sm:$0xff]   ;;  %1589 = vmatpush1.bf16.msra.mxu0 %v2981_v2  ;;  %v2987_v6 = vld [vmem:[#allocation2 + $0xc0] ss:$16 sps:$4 sm:$0xff]   ;;  %v3549_v38 = vmov 1966171168  }
  0x68   : > { %1630 = vmatpush1.bf16.msra.mxu1 %v2982_v3  ;;  %v2985_v5 = vld [vmem:[#allocation2 + $0x2c4] ss:$16 sps:$4 sm:$0xff]   ;;  %1590 = vmatprep.subr.bf16.mxu0 %v2983_v4  ;;  %v2988_v7 = vld [vmem:[#allocation2 + $0x2c0] ss:$16 sps:$4 sm:$0xff]   ;;  %s3811_s30 = smov (!%p380_p12, %s3601_s30), 1  ;;  %v404_v39 = vunpack.c.l.s4 %v3549_v38  ;;  %v3705_v46 = vshrl.u32 %v406_v40, 7 }
  0x69   : > { %1631 = vmatprep.subr.bf16.mxu1 %v2985_v5  ;;  %v2989_v8 = vld [vmem:[#allocation2 + $0xa4] ss:$16 sps:$4 sm:$0xff]   ;;  %v2993_v10 = vld [vmem:[#allocation2 + $0xa0] ss:$16 sps:$4 sm:$0xff]   ;;  %s3703_s9 = sshll.u32 %s3811_s30, 2 }
  0x6a   : > { %v2991_v9 = vld [vmem:[#allocation2 + $0x2a4] ss:$16 sps:$4 sm:$0xff]   ;;  %v2994_v11 = vld [vmem:[#allocation2 + $0x2a0] ss:$16 sps:$4 sm:$0xff]   ;;  %v405_v45 = vunpack.c.0.s8 %v404_v39  ;;  %s383_s25 = scalar_lea.vmem %s3785_s0, %s3703_s9  ;;  %vm428_vm1 = vsmask.f32 256  ;;  %s387_s28 = scalar_lea.vmem %s3792_s7, %s3703_s9 }
  0x6b   : > { %1591 = vmatpush1.bf16.msra.mxu0 %v2987_v6  ;;  %v2995_v12 = vld [vmem:[#allocation2 + $0x84] ss:$16 sps:$4 sm:$0xff]   ;;  %v2999_v14 = vld [vmem:[#allocation2 + $0x80] ss:$16 sps:$4 sm:$0xff]   ;;  %vm3717_vm2 = vmand %vm427_vm0, %vm428_vm1  ;;  %s391_s11 = scalar_lea.vmem %s3793_s8, %s3703_s9 }
  0x6c   : > { %1632 = vmatpush1.bf16.msra.mxu1 %v2988_v7  ;;  %1592 = vmatprep.subr.bf16.mxu0 %v2989_v8  ;;  %v2997_v13 = vld [vmem:[#allocation2 + $0x284] ss:$16 sps:$4 sm:$0xff]   ;;  %v3000_v15 = vld [vmem:[#allocation2 + $0x280] ss:$16 sps:$4 sm:$0xff]   ;;  %v3712_v51 = vsub.s32 %v405_v45, %v3705_v46  ;;  %v3108_v38 = vld [vmem:[#allocation2 + $0x4c] ss:$16 sps:$4 sm:$0xff]  }
  0x6d   : > { %1633 = vmatprep.subr.bf16.mxu1 %v2991_v9  ;;  %v3001_v16 = vld [vmem:[#allocation2 + $0x64] ss:$16 sps:$4 sm:$0xff]   ;;  %v3005_v18 = vld [vmem:[#allocation2 + $0x60] ss:$16 sps:$4 sm:$0xff]   ;;  %v3106_v40 = vld [vmem:[#allocation2 + $0x48] ss:$16 sps:$4 sm:$0xff]  }
  0x6e   : > { %v3003_v17 = vld [vmem:[#allocation2 + $0x264] ss:$16 sps:$4 sm:$0xff]   ;;  %v3006_v19 = vld [vmem:[#allocation2 + $0x260] ss:$16 sps:$4 sm:$0xff]   ;;  %v3130_v59 = vld [vmem:[#allocation2 + $0x1c8] ss:$16 sps:$4 sm:$0xff]  }
  0x6f   : > { %1593 = vmatpush1.bf16.msra.mxu0 %v2993_v10  ;;  %v3007_v20 = vld [vmem:[#allocation2 + $0x44] ss:$16 sps:$4 sm:$0xff]   ;;  %v3011_v22 = vld [vmem:[#allocation2 + $0x40] ss:$16 sps:$4 sm:$0xff]  }
  0x70   : > { %1634 = vmatpush1.bf16.msra.mxu1 %v2994_v11  ;;  %1594 = vmatprep.subr.bf16.mxu0 %v2995_v12  ;;  %v3009_v21 = vld [vmem:[#allocation2 + $0x244] ss:$16 sps:$4 sm:$0xff]   ;;  %v3012_v23 = vld [vmem:[#allocation2 + $0x240] ss:$16 sps:$4 sm:$0xff]  }
  0x71   : > { %1635 = vmatprep.subr.bf16.mxu1 %v2997_v13  ;;  %v3013_v24 = vld [vmem:[#allocation2 + $0x24] ss:$16 sps:$4 sm:$0xff]   ;;  %v3017_v26 = vld [vmem:[#allocation2 + $0x20] ss:$16 sps:$4 sm:$0xff]  }
  0x72   : > { %v3015_v25 = vld [vmem:[#allocation2 + $0x224] ss:$16 sps:$4 sm:$0xff]   ;;  %v3018_v27 = vld [vmem:[#allocation2 + $0x220] ss:$16 sps:$4 sm:$0xff]  }
  0x73   : > { %1595 = vmatpush1.bf16.msra.mxu0 %v2999_v14  ;;  %v3019_v28 = vld [vmem:[#allocation2 + $0x4] ss:$16 sps:$4 sm:$0xff]   ;;  %v3023_v30 = vld [vmem:[#allocation2] ss:$16 sps:$4 sm:$0xff]  }
  0x74   : > { %1636 = vmatpush1.bf16.msra.mxu1 %v3000_v15  ;;  %1596 = vmatprep.subr.bf16.mxu0 %v3001_v16  ;;  %v3021_v29 = vld [vmem:[#allocation2 + $0x204] ss:$16 sps:$4 sm:$0xff]   ;;  %v3024_v31 = vld [vmem:[#allocation2 + $0x200] ss:$16 sps:$4 sm:$0xff]  }
  0x75   : > { %1637 = vmatprep.subr.bf16.mxu1 %v3003_v17  ;;  %v3025_v32 = vld [vmem:[#allocation2 + $0x1e4] ss:$16 sps:$4 sm:$0xff]   ;;  %v3029_v34 = vld [vmem:[#allocation2 + $0x1e0] ss:$16 sps:$4 sm:$0xff]   ;;  %v3078_v17 = vld [vmem:[#allocation2 + $0xec] ss:$16 sps:$4 sm:$0xff]  }
  0x76   : > { %v3027_v33 = vld [vmem:[#allocation2 + $0x3e4] ss:$16 sps:$4 sm:$0xff]   ;;  %v3030_v35 = vld [vmem:[#allocation2 + $0x3e0] ss:$16 sps:$4 sm:$0xff]  }
  0x77   : > { %1597 = vmatpush1.bf16.msra.mxu0 %v3005_v18  ;;  %v3031_v36 = vld [vmem:[#allocation2 + $0x1c4] ss:$16 sps:$4 sm:$0xff]   ;;  %v3035_v41 = vld [vmem:[#allocation2 + $0x1c0] ss:$16 sps:$4 sm:$0xff]  }
  0x78   : > { %1638 = vmatpush1.bf16.msra.mxu1 %v3006_v19  ;;  %1598 = vmatprep.subr.bf16.mxu0 %v3007_v20  ;;  %v3033_v37 = vld [vmem:[#allocation2 + $0x3c4] ss:$16 sps:$4 sm:$0xff]   ;;  %v3036_v42 = vld [vmem:[#allocation2 + $0x3c0] ss:$16 sps:$4 sm:$0xff]   ;;  %v3076_v20 = vld [vmem:[#allocation2 + $0xe8] ss:$16 sps:$4 sm:$0xff]  }
  0x79   : > { %1639 = vmatprep.subr.bf16.mxu1 %v3009_v21  ;;  %v3037_v43 = vld [vmem:[#allocation2 + $0x1a4] ss:$16 sps:$4 sm:$0xff]   ;;  %v3041_v47 = vld [vmem:[#allocation2 + $0x1a0] ss:$16 sps:$4 sm:$0xff]  }
  0x7a   : > { %v3039_v44 = vld [vmem:[#allocation2 + $0x3a4] ss:$16 sps:$4 sm:$0xff]   ;;  %v3042_v48 = vld [vmem:[#allocation2 + $0x3a0] ss:$16 sps:$4 sm:$0xff]  }
  0x7b   : > { %1599 = vmatpush1.bf16.msra.mxu0 %v3011_v22  ;;  %v3043_v49 = vld [vmem:[#allocation2 + $0x184] ss:$16 sps:$4 sm:$0xff]   ;;  %v2640_v52 = vld.sshfl [vmem:[%s383_s25] sm:$0x33 pattern:$0x75316420] }
  0x7c   : > { %1640 = vmatpush1.bf16.msra.mxu1 %v3012_v23  ;;  %1600 = vmatprep.subr.bf16.mxu0 %v3013_v24  ;;  %v3045_v50 = vld [vmem:[#allocation2 + $0x384] ss:$16 sps:$4 sm:$0xff]   ;;  %v3047_v53 = vld [vmem:[#allocation2 + $0x180] ss:$16 sps:$4 sm:$0xff]   ;;  %v402_v55 = vcombine.high %v2640_v52, %v2640_v52  ;;  %v3730_v5 = vrot.slane %v2640_v52, %v3712_v51  ;;  %v3084_v22 = vld [vmem:[#allocation2 + $0xcc] ss:$16 sps:$4 sm:$0xff]  }
  0x7d   : > { %1641 = vmatprep.subr.bf16.mxu1 %v3015_v25  ;;  %v3048_v54 = vld [vmem:[#allocation2 + $0x380] ss:$16 sps:$4 sm:$0xff]   ;;  %v3049_v56 = vld [vmem:[#allocation2 + $0x164] ss:$16 sps:$4 sm:$0xff]   ;;  %v3082_v24 = vld [vmem:[#allocation2 + $0xc8] ss:$16 sps:$4 sm:$0xff]  }
  0x7e   : > { %v3051_v57 = vld [vmem:[#allocation2 + $0x364] ss:$16 sps:$4 sm:$0xff]   ;;  %v3715_v58 = vrot.slane %v402_v55, %v3712_v51  ;;  %v3053_v60 = vld [vmem:[#allocation2 + $0x160] ss:$16 sps:$4 sm:$0xff]   ;;  %v3734_v10 = vcombine.high %v3730_v5, %v3730_v5  ;;  %v3126_v52 = vld [vmem:[#allocation2 + $0x1ec] ss:$16 sps:$4 sm:$0xff]  }
  0x7f   : > { %1601 = vmatpush1.bf16.msra.mxu0 %v3017_v26  ;;  %v3054_v61 = vld [vmem:[#allocation2 + $0x360] ss:$16 sps:$4 sm:$0xff]   ;;  %v3055_v63 = vld [vmem:[#allocation2 + $0x144] ss:$16 sps:$4 sm:$0xff]   ;;  %v3090_v26 = vld [vmem:[#allocation2 + $0xac] ss:$16 sps:$4 sm:$0xff]  }
  0x80   : > { %1642 = vmatpush1.bf16.msra.mxu1 %v3018_v27  ;;  %1602 = vmatprep.subr.bf16.mxu0 %v3019_v28  ;;  %v3723_v62 = vcombine.high %v3715_v58, %v3715_v58  ;;  %v3057_v0 = vld [vmem:[#allocation2 + $0x344] ss:$16 sps:$4 sm:$0xff]   ;;  %v3059_v2 = vld [vmem:[#allocation2 + $0x140] ss:$16 sps:$4 sm:$0xff]   ;;  %v420_v15 = vshll.u32 %v3734_v10, 16 }
  0x81   : > { %1643 = vmatprep.subr.bf16.mxu1 %v3021_v29  ;;  %1661 = vmatprep.mubr.bf16.mxu1 %v3715_v58  ;;  %v3060_v3 = vld [vmem:[#allocation2 + $0x340] ss:$16 sps:$4 sm:$0xff]   ;;  %v3061_v6 = vld [vmem:[#allocation2 + $0x124] ss:$16 sps:$4 sm:$0xff]   ;;  %v3088_v28 = vld [vmem:[#allocation2 + $0xa8] ss:$16 sps:$4 sm:$0xff]  }
  0x82   : > { %v423_v1 = vshll.u32 %v3723_v62, 16  ;;  %v3063_v7 = vld [vmem:[#allocation2 + $0x324] ss:$16 sps:$4 sm:$0xff]   ;;  %v3065_v8 = vld [vmem:[#allocation2 + $0x120] ss:$16 sps:$4 sm:$0xff]   ;;  %v3739_v19 = vsel %vm3717_vm2, 0, %v420_v15 }
  0x83   : > { %1603 = vmatpush1.bf16.msra.mxu0 %v3023_v30  ;;  %v3066_v9 = vld [vmem:[#allocation2 + $0x320] ss:$16 sps:$4 sm:$0xff]   ;;  %v3067_v11 = vld [vmem:[#allocation2 + $0x104] ss:$16 sps:$4 sm:$0xff]   ;;  %v3096_v30 = vld [vmem:[#allocation2 + $0x8c] ss:$16 sps:$4 sm:$0xff]  }
  0x84   : > { %1644 = vmatpush1.bf16.msra.mxu1 %v3024_v31  ;;  %1604 = vmatprep.subr.bf16.mxu0 %v3025_v32  ;;  %v431_v4 = vsel %vm3717_vm2, 0, %v423_v1  ;;  %v3069_v12 = vld [vmem:[#allocation2 + $0x304] ss:$16 sps:$4 sm:$0xff]   ;;  %v3071_v13 = vld [vmem:[#allocation2 + $0x100] ss:$16 sps:$4 sm:$0xff]  }
  0x85   : > { %1645 = vmatprep.subr.bf16.mxu1 %v3027_v33  ;;  %1620 = vmatprep.mubr.bf16.mxu0 %v431_v4  ;;  %v3072_v14 = vld [vmem:[#allocation2 + $0x300] ss:$16 sps:$4 sm:$0xff]   ;;  %v3075_v16 = vld [vmem:[#allocation2 + $0x4e4] ss:$16 sps:$4 sm:$0xff]   ;;  %v3094_v32 = vld [vmem:[#allocation2 + $0x88] ss:$16 sps:$4 sm:$0xff]  }
  0x86   : > { %v3073_v18 = vld [vmem:[#allocation2 + $0x4e0] ss:$16 sps:$4 sm:$0xff]   ;;  %v3081_v21 = vld [vmem:[#allocation2 + $0x4c4] ss:$16 sps:$4 sm:$0xff]  }
  0x87   : > { %1605 = vmatpush2.bf16.msra.mxu0 %v3029_v34  ;;  %v3079_v23 = vld [vmem:[#allocation2 + $0x4c0] ss:$16 sps:$4 sm:$0xff]   ;;  %v3087_v25 = vld [vmem:[#allocation2 + $0x4a4] ss:$16 sps:$4 sm:$0xff]   ;;  %v3102_v34 = vld [vmem:[#allocation2 + $0x6c] ss:$16 sps:$4 sm:$0xff]  }
  0x88   : > { %1646 = vmatpush2.bf16.msra.mxu1 %v3030_v35  ;;  %1606 = vmatprep.subr.bf16.mxu0 %v3031_v36  ;;  %v3085_v27 = vld [vmem:[#allocation2 + $0x4a0] ss:$16 sps:$4 sm:$0xff]   ;;  %v3093_v29 = vld [vmem:[#allocation2 + $0x484] ss:$16 sps:$4 sm:$0xff]   ;;  %v3100_v36 = vld [vmem:[#allocation2 + $0x68] ss:$16 sps:$4 sm:$0xff]  }
  0x89   : > { %1647 = vmatprep.subr.bf16.mxu1 %v3033_v37  ;;  %v3091_v31 = vld [vmem:[#allocation2 + $0x480] ss:$16 sps:$4 sm:$0xff]   ;;  %v3099_v33 = vld [vmem:[#allocation2 + $0x464] ss:$16 sps:$4 sm:$0xff]  }
  0x8a   : > { %v3097_v35 = vld [vmem:[#allocation2 + $0x460] ss:$16 sps:$4 sm:$0xff]   ;;  %v3105_v37 = vld [vmem:[#allocation2 + $0x444] ss:$16 sps:$4 sm:$0xff]  }
  0x8b   : > { %1607 = vmatpush2.bf16.msra.mxu0 %v3035_v41  ;;  %v3103_v39 = vld [vmem:[#allocation2 + $0x440] ss:$16 sps:$4 sm:$0xff]   ;;  %v3111_v41 = vld [vmem:[#allocation2 + $0x424] ss:$16 sps:$4 sm:$0xff]  }
  0x8c   : > { %1648 = vmatpush2.bf16.msra.mxu1 %v3036_v42  ;;  %1608 = vmatprep.subr.bf16.mxu0 %v3037_v43  ;;  %v3114_v42 = vld [vmem:[#allocation2 + $0x2c] ss:$16 sps:$4 sm:$0xff]   ;;  %v3109_v43 = vld [vmem:[#allocation2 + $0x420] ss:$16 sps:$4 sm:$0xff]   ;;  %v3117_v45 = vld [vmem:[#allocation2 + $0x404] ss:$16 sps:$4 sm:$0xff]  }
  0x8d   : > { %1649 = vmatprep.subr.bf16.mxu1 %v3039_v44  ;;  %v3112_v44 = vld [vmem:[#allocation2 + $0x28] ss:$16 sps:$4 sm:$0xff]   ;;  %v3129_v55 = vld [vmem:[#allocation2 + $0x5c4] ss:$16 sps:$4 sm:$0xff]  }
  0x8e   : > { %v3141_v1 = vld [vmem:[#allocation2 + $0x584] ss:$16 sps:$4 sm:$0xff]  }
  0x8f   : > { %1609 = vmatpush2.bf16.msra.mxu0 %v3041_v47  ;;  %v3120_v47 = vld [vmem:[#allocation2 + $0xc] ss:$16 sps:$4 sm:$0xff]   ;;  %v3159_v15 = vld [vmem:[#allocation2 + $0x524] ss:$16 sps:$4 sm:$0xff]  }
  0x90   : > { %1650 = vmatpush2.bf16.msra.mxu1 %v3042_v48  ;;  %1610 = vmatprep.subr.bf16.mxu0 %v3043_v49  ;;  %v3115_v48 = vld [vmem:[#allocation2 + $0x400] ss:$16 sps:$4 sm:$0xff]   ;;  %v3118_v49 = vld [vmem:[#allocation2 + $0x8] ss:$16 sps:$4 sm:$0xff]  }
  0x91   : > { %1651 = vmatprep.subr.bf16.mxu1 %v3045_v50  ;;  %v3123_v50 = vld [vmem:[#allocation2 + $0x5e4] ss:$16 sps:$4 sm:$0xff]  }
  0x93   : > { %1611 = vmatpush2.bf16.msra.mxu0 %v3047_v53  ;;  %v3121_v53 = vld [vmem:[#allocation2 + $0x5e0] ss:$16 sps:$4 sm:$0xff]  }
  0x94   : > { %1652 = vmatpush2.bf16.msra.mxu1 %v3048_v54  ;;  %1612 = vmatprep.subr.bf16.mxu0 %v3049_v56  ;;  %v3124_v54 = vld [vmem:[#allocation2 + $0x1e8] ss:$16 sps:$4 sm:$0xff]   ;;  %v3132_v56 = vld [vmem:[#allocation2 + $0x1cc] ss:$16 sps:$4 sm:$0xff]  }
  0x95   : > { %1653 = vmatprep.subr.bf16.mxu1 %v3051_v57  ;;  %v3127_v57 = vld [vmem:[#allocation2 + $0x5c0] ss:$16 sps:$4 sm:$0xff]  }
  0x97   : > { %1613 = vmatpush2.bf16.msra.mxu0 %v3053_v60  ;;  %v3135_v60 = vld [vmem:[#allocation2 + $0x5a4] ss:$16 sps:$4 sm:$0xff]  }
  0x98   : > { %1654 = vmatpush2.bf16.msra.mxu1 %v3054_v61  ;;  %1614 = vmatprep.subr.bf16.mxu0 %v3055_v63  ;;  %v3138_v61 = vld [vmem:[#allocation2 + $0x1ac] ss:$16 sps:$4 sm:$0xff]   ;;  %v3133_v63 = vld [vmem:[#allocation2 + $0x5a0] ss:$16 sps:$4 sm:$0xff]  }
  0x99   : > { %1655 = vmatprep.subr.bf16.mxu1 %v3057_v0  ;;  %v3136_v0 = vld [vmem:[#allocation2 + $0x1a8] ss:$16 sps:$4 sm:$0xff]  }
  0x9b   : > { %1615 = vmatpush2.bf16.msra.mxu0 %v3059_v2  ;;  %v3144_v2 = vld [vmem:[#allocation2 + $0x18c] ss:$16 sps:$4 sm:$0xff]  }
  0x9c   : > { %1656 = vmatpush2.bf16.msra.mxu1 %v3060_v3  ;;  %1616 = vmatprep.subr.bf16.mxu0 %v3061_v6  ;;  %v3139_v3 = vld [vmem:[#allocation2 + $0x580] ss:$16 sps:$4 sm:$0xff]   ;;  %v3147_v6 = vld [vmem:[#allocation2 + $0x564] ss:$16 sps:$4 sm:$0xff]  }
  0x9d   : > { %1657 = vmatprep.subr.bf16.mxu1 %v3063_v7  ;;  %v3150_v7 = vld [vmem:[#allocation2 + $0x16c] ss:$16 sps:$4 sm:$0xff]  }
  0x9f   : > { %1617 = vmatpush2.bf16.msra.mxu0 %v3065_v8  ;;  %v3145_v8 = vld [vmem:[#allocation2 + $0x560] ss:$16 sps:$4 sm:$0xff]  }
  0xa0   : > { %1658 = vmatpush2.bf16.msra.mxu1 %v3066_v9  ;;  %1618 = vmatprep.subr.bf16.mxu0 %v3067_v11  ;;  %v3148_v9 = vld [vmem:[#allocation2 + $0x168] ss:$16 sps:$4 sm:$0xff]   ;;  %v3153_v11 = vld [vmem:[#allocation2 + $0x544] ss:$16 sps:$4 sm:$0xff]  }
  0xa1   : > { %1659 = vmatprep.subr.bf16.mxu1 %v3069_v12  ;;  %v3156_v12 = vld [vmem:[#allocation2 + $0x14c] ss:$16 sps:$4 sm:$0xff]  }
  0xa3   : > { %1619 = vmatpush2.bf16.msra.mxu0 %v3071_v13  ;;  %v3151_v13 = vld [vmem:[#allocation2 + $0x540] ss:$16 sps:$4 sm:$0xff]  }
  0xa4   : > { %1660 = vmatpush2.bf16.msra.mxu1 %v3072_v14  ;;  %1670 = vmatprep.subr.bf16.mxu0 %v3075_v16  ;;  %v3154_v14 = vld [vmem:[#allocation2 + $0x148] ss:$16 sps:$4 sm:$0xff]   ;;  %v3162_v16 = vld [vmem:[#allocation2 + $0x12c] ss:$16 sps:$4 sm:$0xff]  }
  0xa5   : > { %1711 = vmatprep.subr.bf16.mxu1 %v3078_v17  ;;  %v3157_v17 = vld [vmem:[#allocation2 + $0x520] ss:$16 sps:$4 sm:$0xff]  }
  0xa6   : > { %1621 = vmatmul.mubr.bf16.vlgmr.msra.gmra.mxu0 %v3739_v19 }
  0xa7   : > { %1662 = vmatmul.mubr.bf16.vlgmr.msra.gmra.mxu1 %v3730_v5  ;;  %1671 = vmatpush1.bf16.msra.mxu0 %v3073_v18  ;;  %v3160_v18 = vld [vmem:[#allocation2 + $0x128] ss:$16 sps:$4 sm:$0xff]  }
  0xa8   : > { %1712 = vmatpush1.bf16.msra.mxu1 %v3076_v20  ;;  %1672 = vmatprep.subr.bf16.mxu0 %v3081_v21  ;;  %v3165_v20 = vld [vmem:[#allocation2 + $0x504] ss:$16 sps:$4 sm:$0xff]   ;;  %v3168_v21 = vld [vmem:[#allocation2 + $0x10c] ss:$16 sps:$4 sm:$0xff]  }
  0xa9   : > { %1713 = vmatprep.subr.bf16.mxu1 %v3084_v22  ;;  %1702 = vmatprep.mubr.bf16.mxu0 %v3723_v62  ;;  %v3163_v22 = vld [vmem:[#allocation2 + $0x500] ss:$16 sps:$4 sm:$0xff]  }
  0xaa   : > { %1743 = vmatprep.mubr.bf16.mxu1 %v431_v4  ;;  %v3142_v4 = vld [vmem:[#allocation2 + $0x188] ss:$16 sps:$4 sm:$0xff]  }
  0xab   : > { %1673 = vmatpush1.bf16.msra.mxu0 %v3079_v23  ;;  %v3166_v23 = vld [vmem:[#allocation2 + $0x108] ss:$16 sps:$4 sm:$0xff]  }
  0xac   : > { %1714 = vmatpush1.bf16.msra.mxu1 %v3082_v24  ;;  %1674 = vmatprep.subr.bf16.mxu0 %v3087_v25  ;;  %v3171_v24 = vld [vmem:[#allocation2 + $0x2ec] ss:$16 sps:$4 sm:$0xff]  }
  0xad   : > { %1715 = vmatprep.subr.bf16.mxu1 %v3090_v26  ;;  %v3174_v25 = vld [vmem:[#allocation2 + $0x4ec] ss:$16 sps:$4 sm:$0xff]   ;;  %v3169_v26 = vld [vmem:[#allocation2 + $0x2e8] ss:$16 sps:$4 sm:$0xff]  }
  0xaf   : > { %1675 = vmatpush1.bf16.msra.mxu0 %v3085_v27  ;;  %v3172_v27 = vld [vmem:[#allocation2 + $0x4e8] ss:$16 sps:$4 sm:$0xff]  }
  0xb0   : > { %1716 = vmatpush1.bf16.msra.mxu1 %v3088_v28  ;;  %1676 = vmatprep.subr.bf16.mxu0 %v3093_v29  ;;  %v3177_v28 = vld [vmem:[#allocation2 + $0x2cc] ss:$16 sps:$4 sm:$0xff]  }
  0xb1   : > { %1717 = vmatprep.subr.bf16.mxu1 %v3096_v30  ;;  %v3180_v29 = vld [vmem:[#allocation2 + $0x4cc] ss:$16 sps:$4 sm:$0xff]   ;;  %v3175_v30 = vld [vmem:[#allocation2 + $0x2c8] ss:$16 sps:$4 sm:$0xff]  }
  0xb3   : > { %1677 = vmatpush1.bf16.msra.mxu0 %v3091_v31  ;;  %v3178_v31 = vld [vmem:[#allocation2 + $0x4c8] ss:$16 sps:$4 sm:$0xff]  }
  0xb4   : > { %1718 = vmatpush1.bf16.msra.mxu1 %v3094_v32  ;;  %1678 = vmatprep.subr.bf16.mxu0 %v3099_v33  ;;  %v3183_v32 = vld [vmem:[#allocation2 + $0x2ac] ss:$16 sps:$4 sm:$0xff]  }
  0xb5   : > { %1719 = vmatprep.subr.bf16.mxu1 %v3102_v34  ;;  %v3186_v33 = vld [vmem:[#allocation2 + $0x4ac] ss:$16 sps:$4 sm:$0xff]   ;;  %v3181_v34 = vld [vmem:[#allocation2 + $0x2a8] ss:$16 sps:$4 sm:$0xff]  }
  0xb7   : > { %1679 = vmatpush1.bf16.msra.mxu0 %v3097_v35  ;;  %v3184_v35 = vld [vmem:[#allocation2 + $0x4a8] ss:$16 sps:$4 sm:$0xff]  }
  0xb8   : > { %1720 = vmatpush1.bf16.msra.mxu1 %v3100_v36  ;;  %1680 = vmatprep.subr.bf16.mxu0 %v3105_v37  ;;  %v3189_v36 = vld [vmem:[#allocation2 + $0x28c] ss:$16 sps:$4 sm:$0xff]   ;;  %v3187_v37 = vld [vmem:[#allocation2 + $0x288] ss:$16 sps:$4 sm:$0xff]  }
  0xb9   : > { %1721 = vmatprep.subr.bf16.mxu1 %v3108_v38  ;;  %v3190_v38 = vld [vmem:[#allocation2 + $0x488] ss:$16 sps:$4 sm:$0xff]  }
  0xbb   : > { %1681 = vmatpush1.bf16.msra.mxu0 %v3103_v39  ;;  %v3195_v39 = vld [vmem:[#allocation2 + $0x26c] ss:$16 sps:$4 sm:$0xff]  }
  0xbc   : > { %1722 = vmatpush1.bf16.msra.mxu1 %v3106_v40  ;;  %1682 = vmatprep.subr.bf16.mxu0 %v3111_v41  ;;  %v3198_v40 = vld [vmem:[#allocation2 + $0x46c] ss:$16 sps:$4 sm:$0xff]   ;;  %v3193_v41 = vld [vmem:[#allocation2 + $0x268] ss:$16 sps:$4 sm:$0xff]  }
  0xbd   : > { %1723 = vmatprep.subr.bf16.mxu1 %v3114_v42  ;;  %v3201_v42 = vld [vmem:[#allocation2 + $0x24c] ss:$16 sps:$4 sm:$0xff]  }
  0xbf   : > { %1683 = vmatpush1.bf16.msra.mxu0 %v3109_v43  ;;  %v3204_v43 = vld [vmem:[#allocation2 + $0x44c] ss:$16 sps:$4 sm:$0xff]  }
  0xc0   : > { %1724 = vmatpush1.bf16.msra.mxu1 %v3112_v44  ;;  %1684 = vmatprep.subr.bf16.mxu0 %v3117_v45  ;;  %v3199_v44 = vld [vmem:[#allocation2 + $0x248] ss:$16 sps:$4 sm:$0xff]  }
  0xc1   : > { %1725 = vmatprep.subr.bf16.mxu1 %v3120_v47  ;;  %v3202_v45 = vld [vmem:[#allocation2 + $0x448] ss:$16 sps:$4 sm:$0xff]   ;;  %v3207_v47 = vld [vmem:[#allocation2 + $0x22c] ss:$16 sps:$4 sm:$0xff]  }
  0xc3   : > { %1685 = vmatpush1.bf16.msra.mxu0 %v3115_v48  ;;  %v3210_v48 = vld [vmem:[#allocation2 + $0x42c] ss:$16 sps:$4 sm:$0xff]  }
  0xc4   : > { %1726 = vmatpush1.bf16.msra.mxu1 %v3118_v49  ;;  %1686 = vmatprep.subr.bf16.mxu0 %v3123_v50  ;;  %v3205_v49 = vld [vmem:[#allocation2 + $0x228] ss:$16 sps:$4 sm:$0xff]  }
  0xc5   : > { %1727 = vmatprep.subr.bf16.mxu1 %v3126_v52  ;;  %v3208_v50 = vld [vmem:[#allocation2 + $0x428] ss:$16 sps:$4 sm:$0xff]   ;;  %v3213_v52 = vld [vmem:[#allocation2 + $0x20c] ss:$16 sps:$4 sm:$0xff]  }
  0xc7   : > { %1687 = vmatpush2.bf16.msra.mxu0 %v3121_v53  ;;  %v3216_v53 = vld [vmem:[#allocation2 + $0x40c] ss:$16 sps:$4 sm:$0xff]  }
  0xc8   : > { %1728 = vmatpush2.bf16.msra.mxu1 %v3124_v54  ;;  %1688 = vmatprep.subr.bf16.mxu0 %v3129_v55  ;;  %v3211_v54 = vld [vmem:[#allocation2 + $0x208] ss:$16 sps:$4 sm:$0xff]  }
  0xc9   : > { %1729 = vmatprep.subr.bf16.mxu1 %v3132_v56  ;;  %v3214_v55 = vld [vmem:[#allocation2 + $0x408] ss:$16 sps:$4 sm:$0xff]   ;;  %v3219_v56 = vld [vmem:[#allocation2 + $0x3ec] ss:$16 sps:$4 sm:$0xff]  }
  0xcb   : > { %1689 = vmatpush2.bf16.msra.mxu0 %v3127_v57  ;;  %v3222_v57 = vld [vmem:[#allocation2 + $0x5ec] ss:$16 sps:$4 sm:$0xff]  }
  0xcc   : > { %1730 = vmatpush2.bf16.msra.mxu1 %v3130_v59  ;;  %1690 = vmatprep.subr.bf16.mxu0 %v3135_v60  ;;  %v3217_v59 = vld [vmem:[#allocation2 + $0x3e8] ss:$16 sps:$4 sm:$0xff]  }
  0xcd   : > { %1731 = vmatprep.subr.bf16.mxu1 %v3138_v61  ;;  %v3220_v60 = vld [vmem:[#allocation2 + $0x5e8] ss:$16 sps:$4 sm:$0xff]   ;;  %v3225_v61 = vld [vmem:[#allocation2 + $0x3cc] ss:$16 sps:$4 sm:$0xff]  }
  0xcf   : > { %1691 = vmatpush2.bf16.msra.mxu0 %v3133_v63  ;;  %v3228_v63 = vld [vmem:[#allocation2 + $0x5cc] ss:$16 sps:$4 sm:$0xff]  }
  0xd0   : > { %1732 = vmatpush2.bf16.msra.mxu1 %v3136_v0  ;;  %1692 = vmatprep.subr.bf16.mxu0 %v3141_v1  ;;  %v3223_v0 = vld [vmem:[#allocation2 + $0x3c8] ss:$16 sps:$4 sm:$0xff]  }
  0xd1   : > { %1733 = vmatprep.subr.bf16.mxu1 %v3144_v2  ;;  %v3226_v1 = vld [vmem:[#allocation2 + $0x5c8] ss:$16 sps:$4 sm:$0xff]   ;;  %v3231_v2 = vld [vmem:[#allocation2 + $0x3ac] ss:$16 sps:$4 sm:$0xff]  }
  0xd3   : > { %1693 = vmatpush2.bf16.msra.mxu0 %v3139_v3  ;;  %v3234_v3 = vld [vmem:[#allocation2 + $0x5ac] ss:$16 sps:$4 sm:$0xff]  }
  0xd4   : > { %1734 = vmatpush2.bf16.msra.mxu1 %v3142_v4  ;;  %1694 = vmatprep.subr.bf16.mxu0 %v3147_v6  ;;  %v3229_v4 = vld [vmem:[#allocation2 + $0x3a8] ss:$16 sps:$4 sm:$0xff]  }
  0xd5   : > { %1735 = vmatprep.subr.bf16.mxu1 %v3150_v7  ;;  %v3232_v6 = vld [vmem:[#allocation2 + $0x5a8] ss:$16 sps:$4 sm:$0xff]   ;;  %v3237_v7 = vld [vmem:[#allocation2 + $0x38c] ss:$16 sps:$4 sm:$0xff]  }
  0xd7   : > { %1695 = vmatpush2.bf16.msra.mxu0 %v3145_v8  ;;  %v3240_v8 = vld [vmem:[#allocation2 + $0x58c] ss:$16 sps:$4 sm:$0xff]  }
  0xd8   : > { %1736 = vmatpush2.bf16.msra.mxu1 %v3148_v9  ;;  %1696 = vmatprep.subr.bf16.mxu0 %v3153_v11  ;;  %v3235_v9 = vld [vmem:[#allocation2 + $0x388] ss:$16 sps:$4 sm:$0xff]  }
  0xd9   : > { %1737 = vmatprep.subr.bf16.mxu1 %v3156_v12  ;;  %v3238_v11 = vld [vmem:[#allocation2 + $0x588] ss:$16 sps:$4 sm:$0xff]   ;;  %v3243_v12 = vld [vmem:[#allocation2 + $0x36c] ss:$16 sps:$4 sm:$0xff]  }
  0xdb   : > { %1697 = vmatpush2.bf16.msra.mxu0 %v3151_v13  ;;  %v3246_v13 = vld [vmem:[#allocation2 + $0x56c] ss:$16 sps:$4 sm:$0xff]  }
  0xdc   : > { %1738 = vmatpush2.bf16.msra.mxu1 %v3154_v14  ;;  %1698 = vmatprep.subr.bf16.mxu0 %v3159_v15  ;;  %v3241_v14 = vld [vmem:[#allocation2 + $0x368] ss:$16 sps:$4 sm:$0xff]  }
  0xdd   : > { %1739 = vmatprep.subr.bf16.mxu1 %v3162_v16  ;;  %v3244_v15 = vld [vmem:[#allocation2 + $0x568] ss:$16 sps:$4 sm:$0xff]   ;;  %v3249_v16 = vld [vmem:[#allocation2 + $0x34c] ss:$16 sps:$4 sm:$0xff]  }
  0xdf   : > { %1699 = vmatpush2.bf16.msra.mxu0 %v3157_v17  ;;  %v3252_v17 = vld [vmem:[#allocation2 + $0x54c] ss:$16 sps:$4 sm:$0xff]  }
  0xe0   : > { %1740 = vmatpush2.bf16.msra.mxu1 %v3160_v18  ;;  %1700 = vmatprep.subr.bf16.mxu0 %v3165_v20  ;;  %v3247_v18 = vld [vmem:[#allocation2 + $0x348] ss:$16 sps:$4 sm:$0xff]  }
  0xe1   : > { %1741 = vmatprep.subr.bf16.mxu1 %v3168_v21  ;;  %v3250_v20 = vld [vmem:[#allocation2 + $0x548] ss:$16 sps:$4 sm:$0xff]   ;;  %v3255_v21 = vld [vmem:[#allocation2 + $0x32c] ss:$16 sps:$4 sm:$0xff]  }
  0xe3   : > { %1701 = vmatpush2.bf16.msra.mxu0 %v3163_v22  ;;  %v3258_v22 = vld [vmem:[#allocation2 + $0x52c] ss:$16 sps:$4 sm:$0xff]  }
  0xe4   : > { %1742 = vmatpush2.bf16.msra.mxu1 %v3166_v23  ;;  %1752 = vmatprep.subr.bf16.mxu0 %v3171_v24  ;;  %v3253_v23 = vld [vmem:[#allocation2 + $0x328] ss:$16 sps:$4 sm:$0xff]  }
  0xe5   : > { %1793 = vmatprep.subr.bf16.mxu1 %v3174_v25  ;;  %v3256_v24 = vld [vmem:[#allocation2 + $0x528] ss:$16 sps:$4 sm:$0xff]   ;;  %v3261_v25 = vld [vmem:[#allocation2 + $0x30c] ss:$16 sps:$4 sm:$0xff]  }
  0xe6   : > { %1703 = vmatmul.mubr.bf16.vlgmr.msra.gmra.mxu0 %v3734_v10 }
  0xe7   : > { %1744 = vmatmul.mubr.bf16.vlgmr.msra.gmra.mxu1 %v3739_v19  ;;  %1753 = vmatpush1.bf16.msra.mxu0 %v3169_v26  ;;  %v3192_v19 = vld [vmem:[#allocation2 + $0x48c] ss:$16 sps:$4 sm:$0xff]  }
  0xe8   : > { %1794 = vmatpush1.bf16.msra.mxu1 %v3172_v27  ;;  %1754 = vmatprep.subr.bf16.mxu0 %v3177_v28  ;;  %v3264_v26 = vld [vmem:[#allocation2 + $0x50c] ss:$16 sps:$4 sm:$0xff]   ;;  %v3259_v27 = vld [vmem:[#allocation2 + $0x308] ss:$16 sps:$4 sm:$0xff]  }
  0xe9   : > { %1795 = vmatprep.subr.bf16.mxu1 %v3180_v29  ;;  %1784 = vmatprep.mubr.bf16.mxu0 %v3715_v58  ;;  %v3262_v28 = vld [vmem:[#allocation2 + $0x508] ss:$16 sps:$4 sm:$0xff]   ;;  %v3267_v29 = vld [vmem:[#allocation7 + $0xe4] ss:$16 sps:$4 sm:$0xff]  }
  0xea   : > { %1825 = vmatprep.mubr.bf16.mxu1 %v3723_v62  ;;  %v3196_v62 = vld [vmem:[#allocation2 + $0x468] ss:$16 sps:$4 sm:$0xff]  }
  0xeb   : > { %1755 = vmatpush1.bf16.msra.mxu0 %v3175_v30  ;;  %v3270_v30 = vld [vmem:[#allocation7 + $0xec] ss:$16 sps:$4 sm:$0xff]  }
  0xec   : > { %1796 = vmatpush1.bf16.msra.mxu1 %v3178_v31  ;;  %1756 = vmatprep.subr.bf16.mxu0 %v3183_v32  ;;  %v3265_v31 = vld [vmem:[#allocation7 + $0xe0] ss:$16 sps:$4 sm:$0xff]   ;;  %v3268_v32 = vld [vmem:[#allocation7 + $0xe8] ss:$16 sps:$4 sm:$0xff]  }
  0xed   : > { %1797 = vmatprep.subr.bf16.mxu1 %v3186_v33  ;;  %v3273_v33 = vld [vmem:[#allocation7 + $0xc4] ss:$16 sps:$4 sm:$0xff]  }
  0xef   : > { %1757 = vmatpush1.bf16.msra.mxu0 %v3181_v34  ;;  %v3276_v34 = vld [vmem:[#allocation7 + $0xcc] ss:$16 sps:$4 sm:$0xff]  }
  0xf0   : > { %1798 = vmatpush1.bf16.msra.mxu1 %v3184_v35  ;;  %1758 = vmatprep.subr.bf16.mxu0 %v3189_v36  ;;  %v3271_v35 = vld [vmem:[#allocation7 + $0xc0] ss:$16 sps:$4 sm:$0xff]   ;;  %v3274_v36 = vld [vmem:[#allocation7 + $0xc8] ss:$16 sps:$4 sm:$0xff]  }
  0xf1   : > { %1799 = vmatprep.subr.bf16.mxu1 %v3192_v19  ;;  %v3279_v19 = vld [vmem:[#allocation7 + $0xa4] ss:$16 sps:$4 sm:$0xff]  }
  0xf3   : > { %1759 = vmatpush1.bf16.msra.mxu0 %v3187_v37  ;;  %v3282_v37 = vld [vmem:[#allocation7 + $0xac] ss:$16 sps:$4 sm:$0xff]  }
  0xf4   : > { %1800 = vmatpush1.bf16.msra.mxu1 %v3190_v38  ;;  %1760 = vmatprep.subr.bf16.mxu0 %v3195_v39  ;;  %v3277_v38 = vld [vmem:[#allocation7 + $0xa0] ss:$16 sps:$4 sm:$0xff]   ;;  %v3280_v39 = vld [vmem:[#allocation7 + $0xa8] ss:$16 sps:$4 sm:$0xff]  }
  0xf5   : > { %1801 = vmatprep.subr.bf16.mxu1 %v3198_v40  ;;  %v3285_v40 = vld [vmem:[#allocation7 + $0x84] ss:$16 sps:$4 sm:$0xff]  }
  0xf7   : > { %1761 = vmatpush1.bf16.msra.mxu0 %v3193_v41  ;;  %v3283_v41 = vld [vmem:[#allocation7 + $0x80] ss:$16 sps:$4 sm:$0xff]  }
  0xf8   : > { %1802 = vmatpush1.bf16.msra.mxu1 %v3196_v62  ;;  %1762 = vmatprep.subr.bf16.mxu0 %v3201_v42  ;;  %v3286_v62 = vld [vmem:[#allocation7 + $0x88] ss:$16 sps:$4 sm:$0xff]   ;;  %v3291_v42 = vld [vmem:[#allocation7 + $0x64] ss:$16 sps:$4 sm:$0xff]  }
  0xf9   : > { %1803 = vmatprep.subr.bf16.mxu1 %v3204_v43  ;;  %v3294_v43 = vld [vmem:[#allocation7 + $0x6c] ss:$16 sps:$4 sm:$0xff]  }
  0xfb   : > { %1763 = vmatpush1.bf16.msra.mxu0 %v3199_v44  ;;  %v3289_v44 = vld [vmem:[#allocation7 + $0x60] ss:$16 sps:$4 sm:$0xff]  }
  0xfc   : > { %1804 = vmatpush1.bf16.msra.mxu1 %v3202_v45  ;;  %1764 = vmatprep.subr.bf16.mxu0 %v3207_v47  ;;  %v3297_v45 = vld [vmem:[#allocation7 + $0x44] ss:$16 sps:$4 sm:$0xff]   ;;  %v3300_v47 = vld [vmem:[#allocation7 + $0x4c] ss:$16 sps:$4 sm:$0xff]  }
  0xfd   : > { %1805 = vmatprep.subr.bf16.mxu1 %v3210_v48  ;;  %v3295_v48 = vld [vmem:[#allocation7 + $0x40] ss:$16 sps:$4 sm:$0xff]  }
  0xff   : > { %1765 = vmatpush1.bf16.msra.mxu0 %v3205_v49  ;;  %v3298_v49 = vld [vmem:[#allocation7 + $0x48] ss:$16 sps:$4 sm:$0xff]  }
 0x100   : > { %1806 = vmatpush1.bf16.msra.mxu1 %v3208_v50  ;;  %1766 = vmatprep.subr.bf16.mxu0 %v3213_v52  ;;  %v3303_v50 = vld [vmem:[#allocation7 + $0x24] ss:$16 sps:$4 sm:$0xff]   ;;  %v3306_v52 = vld [vmem:[#allocation7 + $0x2c] ss:$16 sps:$4 sm:$0xff]  }
 0x101   : > { %1807 = vmatprep.subr.bf16.mxu1 %v3216_v53  ;;  %v3301_v53 = vld [vmem:[#allocation7 + $0x20] ss:$16 sps:$4 sm:$0xff]  }
 0x103   : > { %1767 = vmatpush1.bf16.msra.mxu0 %v3211_v54  ;;  %v3304_v54 = vld [vmem:[#allocation7 + $0x28] ss:$16 sps:$4 sm:$0xff]  }
 0x104   : > { %1808 = vmatpush1.bf16.msra.mxu1 %v3214_v55  ;;  %1768 = vmatprep.subr.bf16.mxu0 %v3219_v56  ;;  %v3309_v55 = vld [vmem:[#allocation7 + $0x4] ss:$16 sps:$4 sm:$0xff]   ;;  %v3312_v56 = vld [vmem:[#allocation7 + $0xc] ss:$16 sps:$4 sm:$0xff]  }
 0x105   : > { %1809 = vmatprep.subr.bf16.mxu1 %v3222_v57  ;;  %v3307_v57 = vld [vmem:[#allocation7] ss:$16 sps:$4 sm:$0xff]  }
 0x107   : > { %1769 = vmatpush2.bf16.msra.mxu0 %v3217_v59  ;;  %v3310_v59 = vld [vmem:[#allocation7 + $0x8] ss:$16 sps:$4 sm:$0xff]  }
 0x108   : > { %1810 = vmatpush2.bf16.msra.mxu1 %v3220_v60  ;;  %1770 = vmatprep.subr.bf16.mxu0 %v3225_v61  ;;  %v3315_v60 = vld [vmem:[#allocation7 + $0x1e4] ss:$16 sps:$4 sm:$0xff]   ;;  %v3318_v61 = vld [vmem:[#allocation7 + $0x1ec] ss:$16 sps:$4 sm:$0xff]  }
 0x109   : > { %1811 = vmatprep.subr.bf16.mxu1 %v3228_v63  ;;  %v3313_v63 = vld [vmem:[#allocation7 + $0x1e0] ss:$16 sps:$4 sm:$0xff]  }
 0x10b   : > { %1771 = vmatpush2.bf16.msra.mxu0 %v3223_v0  ;;  %v3316_v0 = vld [vmem:[#allocation7 + $0x1e8] ss:$16 sps:$4 sm:$0xff]  }
 0x10c   : > { %1812 = vmatpush2.bf16.msra.mxu1 %v3226_v1  ;;  %1772 = vmatprep.subr.bf16.mxu0 %v3231_v2  ;;  %v3321_v1 = vld [vmem:[#allocation7 + $0x1c4] ss:$16 sps:$4 sm:$0xff]   ;;  %v3324_v2 = vld [vmem:[#allocation7 + $0x1cc] ss:$16 sps:$4 sm:$0xff]  }
 0x10d   : > { %1813 = vmatprep.subr.bf16.mxu1 %v3234_v3  ;;  %v3319_v3 = vld [vmem:[#allocation7 + $0x1c0] ss:$16 sps:$4 sm:$0xff]  }
 0x10f   : > { %1773 = vmatpush2.bf16.msra.mxu0 %v3229_v4  ;;  %v3322_v4 = vld [vmem:[#allocation7 + $0x1c8] ss:$16 sps:$4 sm:$0xff]  }
 0x110   : > { %1814 = vmatpush2.bf16.msra.mxu1 %v3232_v6  ;;  %1774 = vmatprep.subr.bf16.mxu0 %v3237_v7  ;;  %v3327_v6 = vld [vmem:[#allocation7 + $0x1a4] ss:$16 sps:$4 sm:$0xff]   ;;  %v3330_v7 = vld [vmem:[#allocation7 + $0x1ac] ss:$16 sps:$4 sm:$0xff]  }
 0x111   : > { %1815 = vmatprep.subr.bf16.mxu1 %v3240_v8  ;;  %v3325_v8 = vld [vmem:[#allocation7 + $0x1a0] ss:$16 sps:$4 sm:$0xff]  }
 0x113   : > { %1775 = vmatpush2.bf16.msra.mxu0 %v3235_v9  ;;  %v3328_v9 = vld [vmem:[#allocation7 + $0x1a8] ss:$16 sps:$4 sm:$0xff]  }
 0x114   : > { %1816 = vmatpush2.bf16.msra.mxu1 %v3238_v11  ;;  %1776 = vmatprep.subr.bf16.mxu0 %v3243_v12  ;;  %v3333_v11 = vld [vmem:[#allocation7 + $0x184] ss:$16 sps:$4 sm:$0xff]   ;;  %v3336_v12 = vld [vmem:[#allocation7 + $0x18c] ss:$16 sps:$4 sm:$0xff]  }
 0x115   : > { %1817 = vmatprep.subr.bf16.mxu1 %v3246_v13  ;;  %v3331_v13 = vld [vmem:[#allocation7 + $0x180] ss:$16 sps:$4 sm:$0xff]  }
 0x117   : > { %1777 = vmatpush2.bf16.msra.mxu0 %v3241_v14  ;;  %v3334_v14 = vld [vmem:[#allocation7 + $0x188] ss:$16 sps:$4 sm:$0xff]  }
 0x118   : > { %1818 = vmatpush2.bf16.msra.mxu1 %v3244_v15  ;;  %1778 = vmatprep.subr.bf16.mxu0 %v3249_v16  ;;  %v3339_v15 = vld [vmem:[#allocation7 + $0x164] ss:$16 sps:$4 sm:$0xff]   ;;  %v3342_v16 = vld [vmem:[#allocation7 + $0x16c] ss:$16 sps:$4 sm:$0xff]  }
 0x119   : > { %1819 = vmatprep.subr.bf16.mxu1 %v3252_v17  ;;  %v3337_v17 = vld [vmem:[#allocation7 + $0x160] ss:$16 sps:$4 sm:$0xff]  }
 0x11b   : > { %1779 = vmatpush2.bf16.msra.mxu0 %v3247_v18  ;;  %v3340_v18 = vld [vmem:[#allocation7 + $0x168] ss:$16 sps:$4 sm:$0xff]  }
 0x11c   : > { %1820 = vmatpush2.bf16.msra.mxu1 %v3250_v20  ;;  %1780 = vmatprep.subr.bf16.mxu0 %v3255_v21  ;;  %v3345_v20 = vld [vmem:[#allocation7 + $0x144] ss:$16 sps:$4 sm:$0xff]   ;;  %v3348_v21 = vld [vmem:[#allocation7 + $0x14c] ss:$16 sps:$4 sm:$0xff]  }
 0x11d   : > { %1821 = vmatprep.subr.bf16.mxu1 %v3258_v22  ;;  %v3343_v22 = vld [vmem:[#allocation7 + $0x140] ss:$16 sps:$4 sm:$0xff]  }
 0x11f   : > { %1781 = vmatpush2.bf16.msra.mxu0 %v3253_v23  ;;  %v3346_v23 = vld [vmem:[#allocation7 + $0x148] ss:$16 sps:$4 sm:$0xff]  }
 0x120   : > { %1822 = vmatpush2.bf16.msra.mxu1 %v3256_v24  ;;  %1782 = vmatprep.subr.bf16.mxu0 %v3261_v25  ;;  %v3351_v24 = vld [vmem:[#allocation7 + $0x124] ss:$16 sps:$4 sm:$0xff]   ;;  %v3354_v25 = vld [vmem:[#allocation7 + $0x12c] ss:$16 sps:$4 sm:$0xff]  }
 0x121   : > { %1823 = vmatprep.subr.bf16.mxu1 %v3264_v26  ;;  %v3349_v26 = vld [vmem:[#allocation7 + $0x120] ss:$16 sps:$4 sm:$0xff]  }
 0x123   : > { %1783 = vmatpush2.bf16.msra.mxu0 %v3259_v27  ;;  %v3352_v27 = vld [vmem:[#allocation7 + $0x128] ss:$16 sps:$4 sm:$0xff]  }
 0x124   : > { %1824 = vmatpush2.bf16.msra.mxu1 %v3262_v28  ;;  %2308 = vmatprep.subr.bf16.mxu0 %v3267_v29  ;;  %v3357_v28 = vld [vmem:[#allocation7 + $0x104] ss:$16 sps:$4 sm:$0xff]   ;;  %v3360_v29 = vld [vmem:[#allocation7 + $0x10c] ss:$16 sps:$4 sm:$0xff]  }
 0x125   : > { %2349 = vmatprep.subr.bf16.mxu1 %v3270_v30  ;;  %v3355_v30 = vld [vmem:[#allocation7 + $0x100] ss:$16 sps:$4 sm:$0xff]  }
 0x126   : > { %1785 = vmatmul.mubr.bf16.vlgmr.msra.gmra.mxu0 %v3730_v5 }
 0x127   : > { %1826 = vmatmul.mubr.bf16.vlgmr.msra.gmra.mxu1 %v3734_v10  ;;  %2309 = vmatpush1.bf16.msra.mxu0 %v3265_v31  ;;  %v3288_v10 = vld [vmem:[#allocation7 + $0x8c] ss:$16 sps:$4 sm:$0xff]   ;;  %v3358_v31 = vld [vmem:[#allocation7 + $0x108] ss:$16 sps:$4 sm:$0xff]  }
 0x128   : > { %2350 = vmatpush1.bf16.msra.mxu1 %v3268_v32  ;;  %2310 = vmatprep.subr.bf16.mxu0 %v3273_v33 }
 0x129   : > { %2351 = vmatprep.subr.bf16.mxu1 %v3276_v34  ;;  %2340 = vmatprep.mubr.bf16.mxu0 %v3715_v58 }
 0x12a   : > { %2381 = vmatprep.mubr.bf16.mxu1 %v3715_v58  ;;  %v3292_v58 = vld [vmem:[#allocation7 + $0x68] ss:$16 sps:$4 sm:$0xff]  }
 0x12b   : > { %2311 = vmatpush1.bf16.msra.mxu0 %v3271_v35 }
 0x12c   : > { %2352 = vmatpush1.bf16.msra.mxu1 %v3274_v36  ;;  %2312 = vmatprep.subr.bf16.mxu0 %v3279_v19 }
 0x12d   : > { %2353 = vmatprep.subr.bf16.mxu1 %v3282_v37 }
 0x12f   : > { %2313 = vmatpush1.bf16.msra.mxu0 %v3277_v38 }
 0x130   : > { %2354 = vmatpush1.bf16.msra.mxu1 %v3280_v39  ;;  %2314 = vmatprep.subr.bf16.mxu0 %v3285_v40 }
 0x131   : > { %2355 = vmatprep.subr.bf16.mxu1 %v3288_v10  ;;  %v3755_v10 = vsub.s32 0, %v3705_v46 }
 0x133   : > { %2315 = vmatpush1.bf16.msra.mxu0 %v3283_v41  ;;  %v1834_v41 = vld [vmem:[#allocation4] sm:$0xf] }
 0x134   : > { %2356 = vmatpush1.bf16.msra.mxu1 %v3286_v62  ;;  %2316 = vmatprep.subr.bf16.mxu0 %v3291_v42  ;;  %v3758_v62 = vsub.s32 1, %v3705_v46  ;;  %v1860_v42 = vld [vmem:[#allocation6] sm:$0xf] }
 0x135   : > { %2357 = vmatprep.subr.bf16.mxu1 %v3294_v43  ;;  %v1839_v43 = vrot.slane %v1834_v41, %v3755_v10 }
 0x137   : > { %2317 = vmatpush1.bf16.msra.mxu0 %v3289_v44 }
 0x138   : > { %2358 = vmatpush1.bf16.msra.mxu1 %v3292_v58  ;;  %2318 = vmatprep.subr.bf16.mxu0 %v3297_v45  ;;  %v1865_v45 = vrot.slane %v1860_v42, %v3755_v10 }
 0x139   : > { %2359 = vmatprep.subr.bf16.mxu1 %v3300_v47  ;;  %v1843_v47 = vrot.slane %v1834_v41, %v3758_v62 }
 0x13b   : > { %2319 = vmatpush1.bf16.msra.mxu0 %v3295_v48 }
 0x13c   : > { %2360 = vmatpush1.bf16.msra.mxu1 %v3298_v49  ;;  %2320 = vmatprep.subr.bf16.mxu0 %v3303_v50 }
 0x13d   : > { %2361 = vmatprep.subr.bf16.mxu1 %v3306_v52 }
 0x13f   : > { %2321 = vmatpush1.bf16.msra.mxu0 %v3301_v53  ;;  %v1869_v53 = vrot.slane %v1860_v42, %v3758_v62 }
 0x140   : > { %2362 = vmatpush1.bf16.msra.mxu1 %v3304_v54  ;;  %2322 = vmatprep.subr.bf16.mxu0 %v3309_v55 }
 0x141   : > { %2363 = vmatprep.subr.bf16.mxu1 %v3312_v56 }
 0x143   : > { %2323 = vmatpush1.bf16.msra.mxu0 %v3307_v57 }
 0x144   : > { %2364 = vmatpush1.bf16.msra.mxu1 %v3310_v59  ;;  %2324 = vmatprep.subr.bf16.mxu0 %v3315_v60 }
 0x145   : > { %2365 = vmatprep.subr.bf16.mxu1 %v3318_v61 }
 0x147   : > { %2325 = vmatpush2.bf16.msra.mxu0 %v3313_v63 }
 0x148   : > { %2366 = vmatpush2.bf16.msra.mxu1 %v3316_v0  ;;  %2326 = vmatprep.subr.bf16.mxu0 %v3321_v1 }
 0x149   : > { %2367 = vmatprep.subr.bf16.mxu1 %v3324_v2  ;;  %v1846_v2 = vsub.s32 2, %v3705_v46 }
 0x14b   : > { %2327 = vmatpush2.bf16.msra.mxu0 %v3319_v3  ;;  %v1850_v3 = vsub.s32 3, %v3705_v46 }
 0x14c   : > { %2368 = vmatpush2.bf16.msra.mxu1 %v3322_v4  ;;  %2328 = vmatprep.subr.bf16.mxu0 %v3327_v6 }
 0x14d   : > { %2369 = vmatprep.subr.bf16.mxu1 %v3330_v7 }
 0x14f   : > { %2329 = vmatpush2.bf16.msra.mxu0 %v3325_v8  ;;  %v1847_v8 = vrot.slane %v1834_v41, %v1846_v2 }
 0x150   : > { %2370 = vmatpush2.bf16.msra.mxu1 %v3328_v9  ;;  %2330 = vmatprep.subr.bf16.mxu0 %v3333_v11 }
 0x151   : > { %2371 = vmatprep.subr.bf16.mxu1 %v3336_v12 }
 0x153   : > { %2331 = vmatpush2.bf16.msra.mxu0 %v3331_v13  ;;  %v1873_v13 = vrot.slane %v1860_v42, %v1846_v2 }
 0x154   : > { %2372 = vmatpush2.bf16.msra.mxu1 %v3334_v14  ;;  %2332 = vmatprep.subr.bf16.mxu0 %v3339_v15  ;;  %v1851_v15 = vrot.slane %v1834_v41, %v1850_v3 }
 0x155   : > { %2373 = vmatprep.subr.bf16.mxu1 %v3342_v16 }
 0x157   : > { %2333 = vmatpush2.bf16.msra.mxu0 %v3337_v17 }
 0x158   : > { %2374 = vmatpush2.bf16.msra.mxu1 %v3340_v18  ;;  %2334 = vmatprep.subr.bf16.mxu0 %v3345_v20 }
 0x159   : > { %2375 = vmatprep.subr.bf16.mxu1 %v3348_v21  ;;  %v1877_v21 = vrot.slane %v1860_v42, %v1850_v3 }
 0x15b   : > { %2335 = vmatpush2.bf16.msra.mxu0 %v3343_v22 }
 0x15c   : > { %2376 = vmatpush2.bf16.msra.mxu1 %v3346_v23  ;;  %2336 = vmatprep.subr.bf16.mxu0 %v3351_v24 }
 0x15d   : > { %2377 = vmatprep.subr.bf16.mxu1 %v3354_v25 }
 0x15f   : > { %2337 = vmatpush2.bf16.msra.mxu0 %v3349_v26 }
 0x160   : > { %2378 = vmatpush2.bf16.msra.mxu1 %v3352_v27  ;;  %2338 = vmatprep.subr.bf16.mxu0 %v3357_v28 }
 0x161   : > { %2379 = vmatprep.subr.bf16.mxu1 %v3360_v29 }
 0x163   : > { %2339 = vmatpush2.bf16.msra.mxu0 %v3355_v30 }
 0x164   : > { %2380 = vmatpush2.bf16.msra.mxu1 %v3358_v31 }
 0x166   : > { %v1622_v32 = vpop.f32.mrf.mxu0  ;;  %2341 = vmatmul.mubr.bf16.vlgmr.msra.gmra.mxu0 %v3730_v5 }
 0x167   : > { %v1663_v33 = vpop.f32.mrf.mxu1  ;;  %2382 = vmatmul.mubr.bf16.vlgmr.msra.gmra.mxu1 %v3730_v5 }
 0x168   : > { %v1664_v34 = vadd.f32 %v1663_v33, %v1622_v32  ;;  %v1624_v35 = vpop.f32.mrf.mxu0  ;;  %v2390_v32 = vld [vmem:[#allocation9] sm:$0xf] }
 0x169   : > { %v1665_v36 = vpop.f32.mrf.mxu1  ;;  %v2395_v33 = vrot.slane %v2390_v32, %v3755_v10 }
 0x16a   : > { %v1666_v19 = vadd.f32 %v1665_v36, %v1624_v35  ;;  %v1626_v37 = vpop.f32.mrf.mxu0  ;;  %v2403_v35 = vrot.slane %v2390_v32, %v1846_v2  ;;  %v2399_v36 = vrot.slane %v2390_v32, %v3758_v62 }
 0x16b   : > { %v1667_v38 = vpop.f32.mrf.mxu1 }
 0x16c   : > { %v1627_v39 = vpop.f32.mrf.mxu0 }
 0x16d   : > { %v1668_v40 = vpop.f32.mrf.mxu1 }
 0x1a6   : > { %v1704_v44 = vpop.f32.mrf.mxu0 }
 0x1a7   : > { %v1745_v5 = vpop.f32.mrf.mxu1  ;;  %v1705_v58 = vadd.f32 %v1704_v44, %v1664_v34  ;;  %v2416_v34 = vld [vmem:[#allocation10] sm:$0xf] }
 0x1a8   : > { %v1706_v48 = vpop.f32.mrf.mxu0  ;;  %v2421_v38 = vrot.slane %v2416_v34, %v3755_v10  ;;  %v2429_v40 = vrot.slane %v2416_v34, %v1846_v2  ;;  %v2433_v44 = vrot.slane %v2416_v34, %v1850_v3 }
 0x1a9   : > { %v1747_v49 = vpop.f32.mrf.mxu1  ;;  %v1856_v50 = vmul.f32 %v1839_v43, %v1705_v58  ;;  %v1707_v52 = vadd.f32 %v1706_v48, %v1666_v19  ;;  %v2407_v19 = vrot.slane %v2390_v32, %v1850_v3  ;;  %v2425_v43 = vrot.slane %v2416_v34, %v3758_v62 }
 0x1aa   : > { %v1708_v54 = vpop.f32.mrf.mxu0 }
 0x1ab   : > { %v1749_v55 = vpop.f32.mrf.mxu1  ;;  %v1882_v56 = vadd.f32 %v1865_v45, %v1856_v50  ;;  %v1857_v57 = vmul.f32 %v1843_v47, %v1707_v52 }
 0x1ac   : > { %v1709_v59 = vpop.f32.mrf.mxu0 }
 0x1ad   : > { %v1750_v60 = vpop.f32.mrf.mxu1  ;;  %v1883_v61 = vadd.f32 %v1869_v53, %v1857_v57  ;;  %v1886_v63 = vmax.f32 %v1882_v56, 0.0 }
 0x1af   : > { %v1887_v0 = vmax.f32 %v1883_v61, 0.0 }
 0x1b1   : > { %v2833_v1 = vpack.c.bf16 %v1887_v0, %v1886_v63 }
 0x1b3   : > { %v1906_v29 = vrot.slane %v2833_v1, %v3712_v51 }
 0x1e6   : > { %v1786_v4 = vpop.f32.mrf.mxu0 }
 0x1e7   : > { %v1827_v6 = vpop.f32.mrf.mxu1  ;;  %v1787_v7 = vadd.f32 %v1786_v4, %v1745_v5 }
 0x1e8   : > { %v1788_v9 = vpop.f32.mrf.mxu0 }
 0x1e9   : > { %v1829_v11 = vpop.f32.mrf.mxu1  ;;  %v1828_v12 = vadd.f32 %v1827_v6, %v1787_v7  ;;  %v1789_v14 = vadd.f32 %v1788_v9, %v1747_v49 }
 0x1ea   : > { %v1790_v16 = vpop.f32.mrf.mxu0 }
 0x1eb   : > { %v1831_v17 = vpop.f32.mrf.mxu1  ;;  %v1858_v18 = vmul.f32 %v1847_v8, %v1828_v12  ;;  %v1830_v20 = vadd.f32 %v1829_v11, %v1789_v14 }
 0x1ec   : > { %v1791_v22 = vpop.f32.mrf.mxu0 }
 0x1ed   : > { %v1832_v23 = vpop.f32.mrf.mxu1  ;;  %v1884_v24 = vadd.f32 %v1873_v13, %v1858_v18  ;;  %v1859_v46 = vmul.f32 %v1851_v15, %v1830_v20 }
 0x1ef   : > { %v1885_v25 = vadd.f32 %v1877_v21, %v1859_v46  ;;  %v1888_v26 = vmax.f32 %v1884_v24, 0.0 }
 0x1f1   : > { %v1889_v27 = vmax.f32 %v1885_v25, 0.0 }
 0x1f3   : > { %v2834_v28 = vpack.c.bf16 %v1889_v27, %v1888_v26 }
 0x1f5   : > { %v1913_v30 = vrot.slane %v2834_v28, %v3712_v51 }
 0x1f7   : > { %v1914_v31 = vcombine.low %v1906_v29, %v1913_v30 }
 0x1f9   : > { %2835 = vst.sshfl [vmem:[%s387_s28] sm:$0x55 pattern:$0x73625140] %v1914_v31 }
 0x226   : > { %v2342_v37 = vpop.f32.mrf.mxu0 }
 0x227   : > { %v2383_v39 = vpop.f32.mrf.mxu1  ;;  %v2412_v41 = vmul.f32 %v2395_v33, %v2342_v37 }
 0x228   : > { %v2414_v42 = vmul.f32 %v2403_v35, %v2383_v39  ;;  %v2344_v5 = vpop.f32.mrf.mxu0 }
 0x229   : > { %v2385_v58 = vpop.f32.mrf.mxu1  ;;  %v2413_v45 = vmul.f32 %v2399_v36, %v2344_v5  ;;  %v2438_v50 = vadd.f32 %v2421_v38, %v2412_v41 }
 0x22a   : > { %v2415_v47 = vmul.f32 %v2407_v19, %v2385_v58  ;;  %v2346_v48 = vpop.f32.mrf.mxu0  ;;  %v2440_v52 = vadd.f32 %v2429_v40, %v2414_v42 }
 0x22b   : > { %v2387_v49 = vpop.f32.mrf.mxu1  ;;  %v2439_v53 = vadd.f32 %v2425_v43, %v2413_v45 }
 0x22c   : > { %v2441_v54 = vadd.f32 %v2433_v44, %v2415_v47  ;;  %v2347_v55 = vpop.f32.mrf.mxu0 }
 0x22d   : > { %v2388_v10 = vpop.f32.mrf.mxu1  ;;  %v2900_v56 = vpack.c.bf16 %v2439_v53, %v2438_v50 }
 0x22e   : > { %v2901_v57 = vpack.c.bf16 %v2441_v54, %v2440_v52 }
 0x22f   : > { %v2458_v59 = vrot.slane %v2900_v56, %v3712_v51 }
 0x230   : > { %v2465_v62 = vrot.slane %v2901_v57, %v3712_v51 }
 0x232   : > { %v2466_v60 = vcombine.low %v2458_v59, %v2465_v62 }
 0x234   : > { %2902 = vst.sshfl [vmem:[%s391_s11] sm:$0x55 pattern:$0x73625140] %v2466_v60 }
 0x235 PF: > { %s23_s27 = sadd.s32 1, %s3539_s27  }
 0x236   : > { %p20_p0 = scmp.ge.s32.totalorder %s23_s27, 4  }
 0x238   :  { %22 = sbr.rel (!%p20_p0) target bundleno = 4 (0x4), region = 115 }
 0x23d   :  { %2509 = vsyncpa [#allocation3], 1 }
 0x23e   :  { %2511 = vsyncpa [#allocation3 + $0x1], 1 }
 0x23f   :  { %2512 = vsyncpa [#allocation5], 1 }
 0x240   :  { %2513 = vsyncpa [#allocation8], 1 }
 0x241   :  { %2514 = vsyncpa [#allocation11], 1 }

// kernel: _lambda_.17
= control target key start
LH: loop header
LB: loop body
LE: loop exit
PB: predicated region body
PF: predicated region fallthrough
CT: control target
= control target key end

     0   :  { %s4341_s18 = smov 0   ;;  %s5671_s0 = inlined_call_operand.vmem [shape: bf16[2,2,512], index: 0, kind: input, shape index: {}]   ;;  %s5672_s1 = inlined_call_operand.vmem [shape: bf16[1536,512], index: 1, kind: input, shape index: {}]   ;;  %s5673_s2 = inlined_call_operand.vmem [shape: f32[1,512], index: 2, kind: input, shape index: {}]   ;;  %s5674_s3 = inlined_call_operand.vmem [shape: f32[1,512], index: 3, kind: input, shape index: {}]   ;;  %s5675_s4 = inlined_call_operand.vmem [shape: bf16[2,2,512], index: 4, kind: input, shape index: {}]   ;;  %s5676_s5 = inlined_call_operand.vmem [shape: f32[2,1,512], index: 5, kind: output, shape index: {}]  }
   0x1 LB: > { %s3320_s19 = sadd.s32 4294967295, %s4307_s18   ;;  %p3324_p0 = scmp.ge.s32.totalorder %s4307_s18, 1  ;;  %s4307_s18 = sphi %s4341_s18, %s15_s18  }
   0x2   : > { %p195_p1 = scmp.lt.s32.totalorder %s4307_s18, 3 }
   0x4   : > { %p196_p2 = pnand %p3324_p0, %p195_p1 }
   0x5   : > { %p225_p3 = scmp.lt.s32.totalorder (!%p196_p2), %s3320_s19, 1 }
   0x6   : > { %199 = sbr.rel (%p196_p2) target bundleno = 627 (0x273), region = 40 }
   0xb   : > { %v3725_v0 = vld [vmem:[%s5672_s1 + $0xe4] ss:$16 sps:$4 sm:$0xff]   ;;  %v3729_v2 = vld [vmem:[%s5672_s1 + $0xe0] ss:$16 sps:$4 sm:$0xff]   ;;  %s5680_s19 = smov (!%p225_p3, %s3320_s19), 1  ;;  %v251_v40 = vlaneseq  ;;  %vm280_vm1 = vcmask 1040384  }
   0xc   : > { %v3727_v1 = vld [vmem:[%s5672_s1 + $0x2e4] ss:$16 sps:$4 sm:$0xff]   ;;  %2611 = vmatprep.subr.bf16.mxu0 %v3725_v0  ;;  %v3730_v3 = vld [vmem:[%s5672_s1 + $0x2e0] ss:$16 sps:$4 sm:$0xff]   ;;  %v4309_v38 = vmov 1966171168  }
   0xd   : > { %2652 = vmatprep.subr.bf16.mxu1 %v3727_v1  ;;  %v3731_v4 = vld [vmem:[%s5672_s1 + $0xc4] ss:$16 sps:$4 sm:$0xff]   ;;  %2612 = vmatpush1.bf16.msra.mxu0 %v3729_v2  ;;  %v3735_v6 = vld [vmem:[%s5672_s1 + $0xc0] ss:$16 sps:$4 sm:$0xff]   ;;  %v249_v39 = vunpack.c.l.s4 %v4309_v38  ;;  %s4479_s10 = sshll.u32 %s5680_s19, 2  ;;  %v4482_v46 = vshrl.u32 %v251_v40, 7 }
   0xe   : > { %2653 = vmatpush1.bf16.msra.mxu1 %v3730_v3  ;;  %v3733_v5 = vld [vmem:[%s5672_s1 + $0x2c4] ss:$16 sps:$4 sm:$0xff]   ;;  %2613 = vmatprep.subr.bf16.mxu0 %v3731_v4  ;;  %v3736_v7 = vld [vmem:[%s5672_s1 + $0x2c0] ss:$16 sps:$4 sm:$0xff]   ;;  %s228_s20 = scalar_lea.vmem %s5671_s0, %s4479_s10  ;;  %vm281_vm0 = vsmask.f32 256  ;;  %s232_s9 = scalar_lea.vmem %s5675_s4, %s4479_s10 }
   0xf   : > { %2654 = vmatprep.subr.bf16.mxu1 %v3733_v5  ;;  %v3737_v8 = vld [vmem:[%s5672_s1 + $0xa4] ss:$16 sps:$4 sm:$0xff]   ;;  %v3741_v10 = vld [vmem:[%s5672_s1 + $0xa0] ss:$16 sps:$4 sm:$0xff]   ;;  %v250_v45 = vunpack.c.0.s8 %v249_v39  ;;  %vm4518_vm2 = vmand %vm280_vm1, %vm281_vm0  ;;  %vm3187_vm3 = vcmask 1041408   ;;  %s236_s19 = scalar_lea.vmem %s5676_s5, %s4479_s10  ;;  %vm3252_vm4 = vcmp.lt.s32.totalorder %v251_v40, 512 }
  0x10   : > { %v3739_v9 = vld [vmem:[%s5672_s1 + $0x2a4] ss:$16 sps:$4 sm:$0xff]   ;;  %v3742_v11 = vld [vmem:[%s5672_s1 + $0x2a0] ss:$16 sps:$4 sm:$0xff]   ;;  %v4019_v59 = vld [vmem:[%s5672_s1 + $0xc8] ss:$16 sps:$4 sm:$0xff]  }
  0x11   : > { %2614 = vmatpush1.bf16.msra.mxu0 %v3735_v6  ;;  %v3743_v12 = vld [vmem:[%s5672_s1 + $0x84] ss:$16 sps:$4 sm:$0xff]   ;;  %v3747_v14 = vld [vmem:[%s5672_s1 + $0x80] ss:$16 sps:$4 sm:$0xff]   ;;  %v4501_v51 = vsub.s32 %v250_v45, %v4482_v46 }
  0x12   : > { %2655 = vmatpush1.bf16.msra.mxu1 %v3736_v7  ;;  %2615 = vmatprep.subr.bf16.mxu0 %v3737_v8  ;;  %v3745_v13 = vld [vmem:[%s5672_s1 + $0x284] ss:$16 sps:$4 sm:$0xff]   ;;  %v3748_v15 = vld [vmem:[%s5672_s1 + $0x280] ss:$16 sps:$4 sm:$0xff]  }
  0x13   : > { %2656 = vmatprep.subr.bf16.mxu1 %v3739_v9  ;;  %v3749_v16 = vld [vmem:[%s5672_s1 + $0x64] ss:$16 sps:$4 sm:$0xff]   ;;  %v3753_v18 = vld [vmem:[%s5672_s1 + $0x60] ss:$16 sps:$4 sm:$0xff]  }
  0x14   : > { %v3751_v17 = vld [vmem:[%s5672_s1 + $0x264] ss:$16 sps:$4 sm:$0xff]   ;;  %v3754_v19 = vld [vmem:[%s5672_s1 + $0x260] ss:$16 sps:$4 sm:$0xff]  }
  0x15   : > { %2616 = vmatpush1.bf16.msra.mxu0 %v3741_v10  ;;  %v3755_v20 = vld [vmem:[%s5672_s1 + $0x44] ss:$16 sps:$4 sm:$0xff]   ;;  %v3759_v22 = vld [vmem:[%s5672_s1 + $0x40] ss:$16 sps:$4 sm:$0xff]  }
  0x16   : > { %2657 = vmatpush1.bf16.msra.mxu1 %v3742_v11  ;;  %2617 = vmatprep.subr.bf16.mxu0 %v3743_v12  ;;  %v3757_v21 = vld [vmem:[%s5672_s1 + $0x244] ss:$16 sps:$4 sm:$0xff]   ;;  %v3760_v23 = vld [vmem:[%s5672_s1 + $0x240] ss:$16 sps:$4 sm:$0xff]  }
  0x17   : > { %2658 = vmatprep.subr.bf16.mxu1 %v3745_v13  ;;  %v3761_v24 = vld [vmem:[%s5672_s1 + $0x24] ss:$16 sps:$4 sm:$0xff]   ;;  %v3765_v26 = vld [vmem:[%s5672_s1 + $0x20] ss:$16 sps:$4 sm:$0xff]  }
  0x18   : > { %v3763_v25 = vld [vmem:[%s5672_s1 + $0x224] ss:$16 sps:$4 sm:$0xff]   ;;  %v3766_v27 = vld [vmem:[%s5672_s1 + $0x220] ss:$16 sps:$4 sm:$0xff]  }
  0x19   : > { %2618 = vmatpush1.bf16.msra.mxu0 %v3747_v14  ;;  %v3767_v28 = vld [vmem:[%s5672_s1 + $0x4] ss:$16 sps:$4 sm:$0xff]   ;;  %v3771_v30 = vld [vmem:[%s5672_s1] ss:$16 sps:$4 sm:$0xff]  }
  0x1a   : > { %2659 = vmatpush1.bf16.msra.mxu1 %v3748_v15  ;;  %2619 = vmatprep.subr.bf16.mxu0 %v3749_v16  ;;  %v3769_v29 = vld [vmem:[%s5672_s1 + $0x204] ss:$16 sps:$4 sm:$0xff]   ;;  %v3772_v31 = vld [vmem:[%s5672_s1 + $0x200] ss:$16 sps:$4 sm:$0xff]  }
  0x1b   : > { %2660 = vmatprep.subr.bf16.mxu1 %v3751_v17  ;;  %v3773_v32 = vld [vmem:[%s5672_s1 + $0x1e4] ss:$16 sps:$4 sm:$0xff]   ;;  %v3777_v34 = vld [vmem:[%s5672_s1 + $0x1e0] ss:$16 sps:$4 sm:$0xff]  }
  0x1c   : > { %v3775_v33 = vld [vmem:[%s5672_s1 + $0x3e4] ss:$16 sps:$4 sm:$0xff]   ;;  %v3778_v35 = vld [vmem:[%s5672_s1 + $0x3e0] ss:$16 sps:$4 sm:$0xff]  }
  0x1d   : > { %2620 = vmatpush1.bf16.msra.mxu0 %v3753_v18  ;;  %v3779_v36 = vld [vmem:[%s5672_s1 + $0x1c4] ss:$16 sps:$4 sm:$0xff]   ;;  %v3783_v41 = vld [vmem:[%s5672_s1 + $0x1c0] ss:$16 sps:$4 sm:$0xff]  }
  0x1e   : > { %2661 = vmatpush1.bf16.msra.mxu1 %v3754_v19  ;;  %2621 = vmatprep.subr.bf16.mxu0 %v3755_v20  ;;  %v3781_v37 = vld [vmem:[%s5672_s1 + $0x3c4] ss:$16 sps:$4 sm:$0xff]   ;;  %v3784_v42 = vld [vmem:[%s5672_s1 + $0x3c0] ss:$16 sps:$4 sm:$0xff]  }
  0x1f   : > { %2662 = vmatprep.subr.bf16.mxu1 %v3757_v21  ;;  %v3785_v43 = vld [vmem:[%s5672_s1 + $0x1a4] ss:$16 sps:$4 sm:$0xff]   ;;  %v3789_v47 = vld [vmem:[%s5672_s1 + $0x1a0] ss:$16 sps:$4 sm:$0xff]  }
  0x20   : > { %v3787_v44 = vld [vmem:[%s5672_s1 + $0x3a4] ss:$16 sps:$4 sm:$0xff]   ;;  %v3790_v48 = vld [vmem:[%s5672_s1 + $0x3a0] ss:$16 sps:$4 sm:$0xff]  }
  0x21   : > { %2622 = vmatpush1.bf16.msra.mxu0 %v3759_v22  ;;  %v3791_v49 = vld [vmem:[%s5672_s1 + $0x184] ss:$16 sps:$4 sm:$0xff]   ;;  %v3328_v52 = vld.sshfl [vmem:[%s228_s20] sm:$0x33 pattern:$0x75316420] }
  0x22   : > { %2663 = vmatpush1.bf16.msra.mxu1 %v3760_v23  ;;  %2623 = vmatprep.subr.bf16.mxu0 %v3761_v24  ;;  %v3793_v50 = vld [vmem:[%s5672_s1 + $0x384] ss:$16 sps:$4 sm:$0xff]   ;;  %v3795_v53 = vld [vmem:[%s5672_s1 + $0x180] ss:$16 sps:$4 sm:$0xff]   ;;  %v247_v55 = vcombine.high %v3328_v52, %v3328_v52  ;;  %v4559_v8 = vrot.slane %v3328_v52, %v4501_v51 }
  0x23   : > { %2664 = vmatprep.subr.bf16.mxu1 %v3763_v25  ;;  %v3796_v54 = vld [vmem:[%s5672_s1 + $0x380] ss:$16 sps:$4 sm:$0xff]   ;;  %v3797_v56 = vld [vmem:[%s5672_s1 + $0x164] ss:$16 sps:$4 sm:$0xff]  }
  0x24   : > { %v3799_v57 = vld [vmem:[%s5672_s1 + $0x364] ss:$16 sps:$4 sm:$0xff]   ;;  %v4516_v58 = vrot.slane %v247_v55, %v4501_v51  ;;  %v3801_v60 = vld [vmem:[%s5672_s1 + $0x160] ss:$16 sps:$4 sm:$0xff]   ;;  %v4576_v13 = vcombine.high %v4559_v8, %v4559_v8  ;;  %v265_v17 = vshll.u32 %v4559_v8, 16 }
  0x25   : > { %2624 = vmatpush1.bf16.msra.mxu0 %v3765_v26  ;;  %v3802_v61 = vld [vmem:[%s5672_s1 + $0x360] ss:$16 sps:$4 sm:$0xff]   ;;  %v3803_v0 = vld [vmem:[%s5672_s1 + $0x144] ss:$16 sps:$4 sm:$0xff]  }
  0x26   : > { %2665 = vmatpush1.bf16.msra.mxu1 %v3766_v27  ;;  %2625 = vmatprep.subr.bf16.mxu0 %v3767_v28  ;;  %v268_v62 = vshll.u32 %v4516_v58, 16  ;;  %v4531_v63 = vcombine.high %v4516_v58, %v4516_v58  ;;  %v3805_v1 = vld [vmem:[%s5672_s1 + $0x344] ss:$16 sps:$4 sm:$0xff]   ;;  %v3807_v4 = vld [vmem:[%s5672_s1 + $0x140] ss:$16 sps:$4 sm:$0xff]   ;;  %v271_v18 = vshll.u32 %v4576_v13, 16 }
  0x27   : > { %2666 = vmatprep.subr.bf16.mxu1 %v3769_v29  ;;  %v3808_v5 = vld [vmem:[%s5672_s1 + $0x340] ss:$16 sps:$4 sm:$0xff]   ;;  %v3809_v6 = vld [vmem:[%s5672_s1 + $0x124] ss:$16 sps:$4 sm:$0xff]   ;;  %v4603_v23 = vsel %vm4518_vm2, 0, %v265_v17 }
  0x28   : > { %v4541_v2 = vsel %vm4518_vm2, 0, %v268_v62  ;;  %v274_v3 = vshll.u32 %v4531_v63, 16  ;;  %v3811_v9 = vld [vmem:[%s5672_s1 + $0x324] ss:$16 sps:$4 sm:$0xff]   ;;  %v3813_v10 = vld [vmem:[%s5672_s1 + $0x120] ss:$16 sps:$4 sm:$0xff]  }
  0x29   : > { %2626 = vmatpush1.bf16.msra.mxu0 %v3771_v30  ;;  %2643 = vmatprep.mubr.bf16.mxu0 %v4541_v2  ;;  %v3814_v11 = vld [vmem:[%s5672_s1 + $0x320] ss:$16 sps:$4 sm:$0xff]   ;;  %v3815_v12 = vld [vmem:[%s5672_s1 + $0x104] ss:$16 sps:$4 sm:$0xff]   ;;  %v4607_v24 = vsel %vm4518_vm2, 0, %v271_v18 }
  0x2a   : > { %2667 = vmatpush1.bf16.msra.mxu1 %v3772_v31  ;;  %2627 = vmatprep.subr.bf16.mxu0 %v3773_v32  ;;  %v4556_v7 = vsel %vm4518_vm2, 0, %v274_v3  ;;  %v3817_v14 = vld [vmem:[%s5672_s1 + $0x304] ss:$16 sps:$4 sm:$0xff]   ;;  %v3819_v15 = vld [vmem:[%s5672_s1 + $0x100] ss:$16 sps:$4 sm:$0xff]  }
  0x2b   : > { %2668 = vmatprep.subr.bf16.mxu1 %v3775_v33  ;;  %2684 = vmatprep.mubr.bf16.mxu1 %v4556_v7  ;;  %v3820_v16 = vld [vmem:[%s5672_s1 + $0x300] ss:$16 sps:$4 sm:$0xff]   ;;  %v3823_v19 = vld [vmem:[%s5672_s1 + $0x4e4] ss:$16 sps:$4 sm:$0xff]  }
  0x2c   : > { %v3826_v20 = vld [vmem:[%s5672_s1 + $0x6e4] ss:$16 sps:$4 sm:$0xff]   ;;  %v3821_v21 = vld [vmem:[%s5672_s1 + $0x4e0] ss:$16 sps:$4 sm:$0xff]  }
  0x2d   : > { %2628 = vmatpush2.bf16.msra.mxu0 %v3777_v34  ;;  %v3824_v22 = vld [vmem:[%s5672_s1 + $0x6e0] ss:$16 sps:$4 sm:$0xff]   ;;  %v3829_v25 = vld [vmem:[%s5672_s1 + $0x4c4] ss:$16 sps:$4 sm:$0xff]  }
  0x2e   : > { %2669 = vmatpush2.bf16.msra.mxu1 %v3778_v35  ;;  %2629 = vmatprep.subr.bf16.mxu0 %v3779_v36  ;;  %v3832_v26 = vld [vmem:[%s5672_s1 + $0x6c4] ss:$16 sps:$4 sm:$0xff]   ;;  %v3827_v27 = vld [vmem:[%s5672_s1 + $0x4c0] ss:$16 sps:$4 sm:$0xff]  }
  0x2f   : > { %2670 = vmatprep.subr.bf16.mxu1 %v3781_v37  ;;  %v3830_v28 = vld [vmem:[%s5672_s1 + $0x6c0] ss:$16 sps:$4 sm:$0xff]   ;;  %v3835_v29 = vld [vmem:[%s5672_s1 + $0x4a4] ss:$16 sps:$4 sm:$0xff]  }
  0x30   : > { %v3838_v30 = vld [vmem:[%s5672_s1 + $0x6a4] ss:$16 sps:$4 sm:$0xff]   ;;  %v3833_v31 = vld [vmem:[%s5672_s1 + $0x4a0] ss:$16 sps:$4 sm:$0xff]  }
  0x31   : > { %2630 = vmatpush2.bf16.msra.mxu0 %v3783_v41  ;;  %v3836_v32 = vld [vmem:[%s5672_s1 + $0x6a0] ss:$16 sps:$4 sm:$0xff]   ;;  %v3841_v33 = vld [vmem:[%s5672_s1 + $0x484] ss:$16 sps:$4 sm:$0xff]  }
  0x32   : > { %2671 = vmatpush2.bf16.msra.mxu1 %v3784_v42  ;;  %2631 = vmatprep.subr.bf16.mxu0 %v3785_v43  ;;  %v3844_v34 = vld [vmem:[%s5672_s1 + $0x684] ss:$16 sps:$4 sm:$0xff]   ;;  %v3839_v35 = vld [vmem:[%s5672_s1 + $0x480] ss:$16 sps:$4 sm:$0xff]  }
  0x33   : > { %2672 = vmatprep.subr.bf16.mxu1 %v3787_v44  ;;  %v3842_v36 = vld [vmem:[%s5672_s1 + $0x680] ss:$16 sps:$4 sm:$0xff]   ;;  %v3847_v37 = vld [vmem:[%s5672_s1 + $0x464] ss:$16 sps:$4 sm:$0xff]  }
  0x34   : > { %v3850_v38 = vld [vmem:[%s5672_s1 + $0x664] ss:$16 sps:$4 sm:$0xff]   ;;  %v3845_v39 = vld [vmem:[%s5672_s1 + $0x460] ss:$16 sps:$4 sm:$0xff]  }
  0x35   : > { %2632 = vmatpush2.bf16.msra.mxu0 %v3789_v47  ;;  %v3848_v41 = vld [vmem:[%s5672_s1 + $0x660] ss:$16 sps:$4 sm:$0xff]   ;;  %v3853_v42 = vld [vmem:[%s5672_s1 + $0x444] ss:$16 sps:$4 sm:$0xff]  }
  0x36   : > { %2673 = vmatpush2.bf16.msra.mxu1 %v3790_v48  ;;  %2633 = vmatprep.subr.bf16.mxu0 %v3791_v49  ;;  %v3856_v43 = vld [vmem:[%s5672_s1 + $0x644] ss:$16 sps:$4 sm:$0xff]   ;;  %v3851_v44 = vld [vmem:[%s5672_s1 + $0x440] ss:$16 sps:$4 sm:$0xff]  }
  0x37   : > { %2674 = vmatprep.subr.bf16.mxu1 %v3793_v50  ;;  %v3854_v45 = vld [vmem:[%s5672_s1 + $0x640] ss:$16 sps:$4 sm:$0xff]   ;;  %v3859_v47 = vld [vmem:[%s5672_s1 + $0x424] ss:$16 sps:$4 sm:$0xff]  }
  0x38   : > { %v3862_v48 = vld [vmem:[%s5672_s1 + $0x624] ss:$16 sps:$4 sm:$0xff]   ;;  %v3857_v49 = vld [vmem:[%s5672_s1 + $0x420] ss:$16 sps:$4 sm:$0xff]  }
  0x39   : > { %2634 = vmatpush2.bf16.msra.mxu0 %v3795_v53  ;;  %v3860_v50 = vld [vmem:[%s5672_s1 + $0x620] ss:$16 sps:$4 sm:$0xff]   ;;  %v3865_v52 = vld [vmem:[%s5672_s1 + $0x404] ss:$16 sps:$4 sm:$0xff]  }
  0x3a   : > { %2675 = vmatpush2.bf16.msra.mxu1 %v3796_v54  ;;  %2635 = vmatprep.subr.bf16.mxu0 %v3797_v56  ;;  %v3868_v53 = vld [vmem:[%s5672_s1 + $0x604] ss:$16 sps:$4 sm:$0xff]   ;;  %v3863_v54 = vld [vmem:[%s5672_s1 + $0x400] ss:$16 sps:$4 sm:$0xff]  }
  0x3b   : > { %2676 = vmatprep.subr.bf16.mxu1 %v3799_v57  ;;  %v3866_v55 = vld [vmem:[%s5672_s1 + $0x600] ss:$16 sps:$4 sm:$0xff]   ;;  %v3871_v56 = vld [vmem:[%s5672_s1 + $0x5e4] ss:$16 sps:$4 sm:$0xff]  }
  0x3c   : > { %v3874_v57 = vld [vmem:[%s5672_s1 + $0x7e4] ss:$16 sps:$4 sm:$0xff]   ;;  %v3878_v3 = vld [vmem:[%s5672_s1 + $0x7c0] ss:$16 sps:$4 sm:$0xff]  }
  0x3d   : > { %2636 = vmatpush2.bf16.msra.mxu0 %v3801_v60  ;;  %v3869_v60 = vld [vmem:[%s5672_s1 + $0x5e0] ss:$16 sps:$4 sm:$0xff]   ;;  %v3877_v62 = vld [vmem:[%s5672_s1 + $0x5c4] ss:$16 sps:$4 sm:$0xff]  }
  0x3e   : > { %2677 = vmatpush2.bf16.msra.mxu1 %v3802_v61  ;;  %2637 = vmatprep.subr.bf16.mxu0 %v3803_v0  ;;  %v3872_v61 = vld [vmem:[%s5672_s1 + $0x7e0] ss:$16 sps:$4 sm:$0xff]   ;;  %v3880_v0 = vld [vmem:[%s5672_s1 + $0x7c4] ss:$16 sps:$4 sm:$0xff]  }
  0x3f   : > { %2678 = vmatprep.subr.bf16.mxu1 %v3805_v1  ;;  %v3875_v1 = vld [vmem:[%s5672_s1 + $0x5c0] ss:$16 sps:$4 sm:$0xff]  }
  0x40   : > { %v3893_v17 = vld [vmem:[%s5672_s1 + $0x560] ss:$16 sps:$4 sm:$0xff]  }
  0x41   : > { %2638 = vmatpush2.bf16.msra.mxu0 %v3807_v4  ;;  %v3883_v4 = vld [vmem:[%s5672_s1 + $0x5a4] ss:$16 sps:$4 sm:$0xff]   ;;  %v3896_v18 = vld [vmem:[%s5672_s1 + $0x760] ss:$16 sps:$4 sm:$0xff]  }
  0x42   : > { %2679 = vmatpush2.bf16.msra.mxu1 %v3808_v5  ;;  %2639 = vmatprep.subr.bf16.mxu0 %v3809_v6  ;;  %v3886_v5 = vld [vmem:[%s5672_s1 + $0x7a4] ss:$16 sps:$4 sm:$0xff]   ;;  %v3881_v6 = vld [vmem:[%s5672_s1 + $0x5a0] ss:$16 sps:$4 sm:$0xff]  }
  0x43   : > { %2680 = vmatprep.subr.bf16.mxu1 %v3811_v9  ;;  %v3884_v9 = vld [vmem:[%s5672_s1 + $0x7a0] ss:$16 sps:$4 sm:$0xff]  }
  0x45   : > { %2640 = vmatpush2.bf16.msra.mxu0 %v3813_v10  ;;  %v3889_v10 = vld [vmem:[%s5672_s1 + $0x584] ss:$16 sps:$4 sm:$0xff]  }
  0x46   : > { %2681 = vmatpush2.bf16.msra.mxu1 %v3814_v11  ;;  %2641 = vmatprep.subr.bf16.mxu0 %v3815_v12  ;;  %v3892_v11 = vld [vmem:[%s5672_s1 + $0x784] ss:$16 sps:$4 sm:$0xff]   ;;  %v3887_v12 = vld [vmem:[%s5672_s1 + $0x580] ss:$16 sps:$4 sm:$0xff]  }
  0x47   : > { %2682 = vmatprep.subr.bf16.mxu1 %v3817_v14  ;;  %v3890_v14 = vld [vmem:[%s5672_s1 + $0x780] ss:$16 sps:$4 sm:$0xff]  }
  0x49   : > { %2642 = vmatpush2.bf16.msra.mxu0 %v3819_v15  ;;  %v3895_v15 = vld [vmem:[%s5672_s1 + $0x564] ss:$16 sps:$4 sm:$0xff]  }
  0x4a   : > { %2683 = vmatpush2.bf16.msra.mxu1 %v3820_v16  ;;  %2693 = vmatprep.subr.bf16.mxu0 %v3823_v19  ;;  %v3898_v16 = vld [vmem:[%s5672_s1 + $0x764] ss:$16 sps:$4 sm:$0xff]  }
  0x4b   : > { %2734 = vmatprep.subr.bf16.mxu1 %v3826_v20  ;;  %v3901_v19 = vld [vmem:[%s5672_s1 + $0x544] ss:$16 sps:$4 sm:$0xff]  }
  0x4c   : > { %2644 = vmatmul.mubr.bf16.vlgmr.msra.gmra.mxu0 %v4603_v23  ;;  %v3904_v20 = vld [vmem:[%s5672_s1 + $0x744] ss:$16 sps:$4 sm:$0xff]  }
  0x4d   : > { %2685 = vmatmul.mubr.bf16.vlgmr.msra.gmra.mxu1 %v4607_v24  ;;  %2694 = vmatpush1.bf16.msra.mxu0 %v3821_v21  ;;  %v3899_v21 = vld [vmem:[%s5672_s1 + $0x540] ss:$16 sps:$4 sm:$0xff]  }
  0x4e   : > { %2735 = vmatpush1.bf16.msra.mxu1 %v3824_v22  ;;  %2695 = vmatprep.subr.bf16.mxu0 %v3829_v25  ;;  %v3902_v22 = vld [vmem:[%s5672_s1 + $0x740] ss:$16 sps:$4 sm:$0xff]   ;;  %v3907_v25 = vld [vmem:[%s5672_s1 + $0x524] ss:$16 sps:$4 sm:$0xff]  }
  0x4f   : > { %2736 = vmatprep.subr.bf16.mxu1 %v3832_v26  ;;  %2725 = vmatprep.mubr.bf16.mxu0 %v4516_v58  ;;  %v3910_v26 = vld [vmem:[%s5672_s1 + $0x724] ss:$16 sps:$4 sm:$0xff]  }
  0x50   : > { %2766 = vmatprep.mubr.bf16.mxu1 %v4531_v63 }
  0x51   : > { %2696 = vmatpush1.bf16.msra.mxu0 %v3827_v27  ;;  %v3905_v27 = vld [vmem:[%s5672_s1 + $0x520] ss:$16 sps:$4 sm:$0xff]  }
  0x52   : > { %2737 = vmatpush1.bf16.msra.mxu1 %v3830_v28  ;;  %2697 = vmatprep.subr.bf16.mxu0 %v3835_v29  ;;  %v3908_v28 = vld [vmem:[%s5672_s1 + $0x720] ss:$16 sps:$4 sm:$0xff]   ;;  %v3913_v29 = vld [vmem:[%s5672_s1 + $0x504] ss:$16 sps:$4 sm:$0xff]  }
  0x53   : > { %2738 = vmatprep.subr.bf16.mxu1 %v3838_v30  ;;  %v3916_v30 = vld [vmem:[%s5672_s1 + $0x704] ss:$16 sps:$4 sm:$0xff]  }
  0x55   : > { %2698 = vmatpush1.bf16.msra.mxu0 %v3833_v31  ;;  %v3911_v31 = vld [vmem:[%s5672_s1 + $0x500] ss:$16 sps:$4 sm:$0xff]  }
  0x56   : > { %2739 = vmatpush1.bf16.msra.mxu1 %v3836_v32  ;;  %2699 = vmatprep.subr.bf16.mxu0 %v3841_v33  ;;  %v3914_v32 = vld [vmem:[%s5672_s1 + $0x700] ss:$16 sps:$4 sm:$0xff]   ;;  %v3919_v33 = vld [vmem:[%s5672_s1 + $0x8e4] ss:$16 sps:$4 sm:$0xff]  }
  0x57   : > { %2740 = vmatprep.subr.bf16.mxu1 %v3844_v34  ;;  %v3922_v34 = vld [vmem:[%s5672_s1 + $0xae4] ss:$16 sps:$4 sm:$0xff]  }
  0x59   : > { %2700 = vmatpush1.bf16.msra.mxu0 %v3839_v35  ;;  %v289_v35 = vshrl.u32 %v4516_v58, 16 }
  0x5a   : > { %2741 = vmatpush1.bf16.msra.mxu1 %v3842_v36  ;;  %2701 = vmatprep.subr.bf16.mxu0 %v3847_v37  ;;  %v3917_v36 = vld [vmem:[%s5672_s1 + $0x8e0] ss:$16 sps:$4 sm:$0xff]  }
  0x5b   : > { %2742 = vmatprep.subr.bf16.mxu1 %v3850_v38  ;;  %v3920_v37 = vld [vmem:[%s5672_s1 + $0xae0] ss:$16 sps:$4 sm:$0xff]   ;;  %v293_v38 = vshrl.u32 %v4531_v63, 16 }
  0x5d   : > { %2702 = vmatpush1.bf16.msra.mxu0 %v3845_v39  ;;  %v3925_v39 = vld [vmem:[%s5672_s1 + $0x8c4] ss:$16 sps:$4 sm:$0xff]  }
  0x5e   : > { %2743 = vmatpush1.bf16.msra.mxu1 %v3848_v41  ;;  %2703 = vmatprep.subr.bf16.mxu0 %v3853_v42  ;;  %v3928_v41 = vld [vmem:[%s5672_s1 + $0xac4] ss:$16 sps:$4 sm:$0xff]   ;;  %v4815_v42 = vsel %vm4518_vm2, %v289_v35, 0  ;;  %v3989_v35 = vld [vmem:[%s5672_s1 + $0x960] ss:$16 sps:$4 sm:$0xff]  }
  0x5f   : > { %2744 = vmatprep.subr.bf16.mxu1 %v3856_v43  ;;  %v3923_v43 = vld [vmem:[%s5672_s1 + $0x8c0] ss:$16 sps:$4 sm:$0xff]  }
  0x61   : > { %2704 = vmatpush1.bf16.msra.mxu0 %v3851_v44  ;;  %v3926_v44 = vld [vmem:[%s5672_s1 + $0xac0] ss:$16 sps:$4 sm:$0xff]  }
  0x62   : > { %2745 = vmatpush1.bf16.msra.mxu1 %v3854_v45  ;;  %2705 = vmatprep.subr.bf16.mxu0 %v3859_v47  ;;  %v4827_v45 = vsel %vm4518_vm2, %v293_v38, 0  ;;  %v3931_v47 = vld [vmem:[%s5672_s1 + $0x8a4] ss:$16 sps:$4 sm:$0xff]  }
  0x63   : > { %2746 = vmatprep.subr.bf16.mxu1 %v3862_v48  ;;  %v3934_v48 = vld [vmem:[%s5672_s1 + $0xaa4] ss:$16 sps:$4 sm:$0xff]  }
  0x64   : > { %v4000_v38 = vld [vmem:[%s5672_s1 + $0xb44] ss:$16 sps:$4 sm:$0xff]  }
  0x65   : > { %2706 = vmatpush1.bf16.msra.mxu0 %v3857_v49  ;;  %v3929_v49 = vld [vmem:[%s5672_s1 + $0x8a0] ss:$16 sps:$4 sm:$0xff]  }
  0x66   : > { %2747 = vmatpush1.bf16.msra.mxu1 %v3860_v50  ;;  %2707 = vmatprep.subr.bf16.mxu0 %v3865_v52  ;;  %v3932_v50 = vld [vmem:[%s5672_s1 + $0xaa0] ss:$16 sps:$4 sm:$0xff]   ;;  %v3937_v52 = vld [vmem:[%s5672_s1 + $0x884] ss:$16 sps:$4 sm:$0xff]  }
  0x67   : > { %2748 = vmatprep.subr.bf16.mxu1 %v3868_v53  ;;  %v3940_v53 = vld [vmem:[%s5672_s1 + $0xa84] ss:$16 sps:$4 sm:$0xff]  }
  0x69   : > { %2708 = vmatpush1.bf16.msra.mxu0 %v3863_v54  ;;  %v3935_v54 = vld [vmem:[%s5672_s1 + $0x880] ss:$16 sps:$4 sm:$0xff]  }
  0x6a   : > { %2749 = vmatpush1.bf16.msra.mxu1 %v3866_v55  ;;  %2709 = vmatprep.subr.bf16.mxu0 %v3871_v56  ;;  %v3938_v55 = vld [vmem:[%s5672_s1 + $0xa80] ss:$16 sps:$4 sm:$0xff]   ;;  %v3943_v56 = vld [vmem:[%s5672_s1 + $0x864] ss:$16 sps:$4 sm:$0xff]  }
  0x6b   : > { %2750 = vmatprep.subr.bf16.mxu1 %v3874_v57  ;;  %v3946_v57 = vld [vmem:[%s5672_s1 + $0xa64] ss:$16 sps:$4 sm:$0xff]  }
  0x6d   : > { %2710 = vmatpush2.bf16.msra.mxu0 %v3869_v60  ;;  %v3941_v60 = vld [vmem:[%s5672_s1 + $0x860] ss:$16 sps:$4 sm:$0xff]  }
  0x6e   : > { %2751 = vmatpush2.bf16.msra.mxu1 %v3872_v61  ;;  %2711 = vmatprep.subr.bf16.mxu0 %v3877_v62  ;;  %v3944_v61 = vld [vmem:[%s5672_s1 + $0xa60] ss:$16 sps:$4 sm:$0xff]   ;;  %v3949_v62 = vld [vmem:[%s5672_s1 + $0x844] ss:$16 sps:$4 sm:$0xff]  }
  0x6f   : > { %2752 = vmatprep.subr.bf16.mxu1 %v3880_v0  ;;  %v3952_v0 = vld [vmem:[%s5672_s1 + $0xa44] ss:$16 sps:$4 sm:$0xff]  }
  0x71   : > { %2712 = vmatpush2.bf16.msra.mxu0 %v3875_v1  ;;  %v3947_v1 = vld [vmem:[%s5672_s1 + $0x840] ss:$16 sps:$4 sm:$0xff]  }
  0x72   : > { %2753 = vmatpush2.bf16.msra.mxu1 %v3878_v3  ;;  %2713 = vmatprep.subr.bf16.mxu0 %v3883_v4  ;;  %v3950_v3 = vld [vmem:[%s5672_s1 + $0xa40] ss:$16 sps:$4 sm:$0xff]   ;;  %v3955_v4 = vld [vmem:[%s5672_s1 + $0x824] ss:$16 sps:$4 sm:$0xff]  }
  0x73   : > { %2754 = vmatprep.subr.bf16.mxu1 %v3886_v5  ;;  %v3958_v5 = vld [vmem:[%s5672_s1 + $0xa24] ss:$16 sps:$4 sm:$0xff]  }
  0x75   : > { %2714 = vmatpush2.bf16.msra.mxu0 %v3881_v6  ;;  %v3953_v6 = vld [vmem:[%s5672_s1 + $0x820] ss:$16 sps:$4 sm:$0xff]  }
  0x76   : > { %2755 = vmatpush2.bf16.msra.mxu1 %v3884_v9  ;;  %2715 = vmatprep.subr.bf16.mxu0 %v3889_v10  ;;  %v3956_v9 = vld [vmem:[%s5672_s1 + $0xa20] ss:$16 sps:$4 sm:$0xff]   ;;  %v3961_v10 = vld [vmem:[%s5672_s1 + $0x804] ss:$16 sps:$4 sm:$0xff]  }
  0x77   : > { %2756 = vmatprep.subr.bf16.mxu1 %v3892_v11  ;;  %v3964_v11 = vld [vmem:[%s5672_s1 + $0xa04] ss:$16 sps:$4 sm:$0xff]  }
  0x79   : > { %2716 = vmatpush2.bf16.msra.mxu0 %v3887_v12  ;;  %v3959_v12 = vld [vmem:[%s5672_s1 + $0x800] ss:$16 sps:$4 sm:$0xff]  }
  0x7a   : > { %2757 = vmatpush2.bf16.msra.mxu1 %v3890_v14  ;;  %2717 = vmatprep.subr.bf16.mxu0 %v3895_v15  ;;  %v3962_v14 = vld [vmem:[%s5672_s1 + $0xa00] ss:$16 sps:$4 sm:$0xff]   ;;  %v3967_v15 = vld [vmem:[%s5672_s1 + $0x9e4] ss:$16 sps:$4 sm:$0xff]  }
  0x7b   : > { %2758 = vmatprep.subr.bf16.mxu1 %v3898_v16  ;;  %v3970_v16 = vld [vmem:[%s5672_s1 + $0xbe4] ss:$16 sps:$4 sm:$0xff]  }
  0x7d   : > { %2718 = vmatpush2.bf16.msra.mxu0 %v3893_v17  ;;  %v3965_v17 = vld [vmem:[%s5672_s1 + $0x9e0] ss:$16 sps:$4 sm:$0xff]  }
  0x7e   : > { %2759 = vmatpush2.bf16.msra.mxu1 %v3896_v18  ;;  %2719 = vmatprep.subr.bf16.mxu0 %v3901_v19  ;;  %v3968_v18 = vld [vmem:[%s5672_s1 + $0xbe0] ss:$16 sps:$4 sm:$0xff]   ;;  %v3973_v19 = vld [vmem:[%s5672_s1 + $0x9c4] ss:$16 sps:$4 sm:$0xff]  }
  0x7f   : > { %2760 = vmatprep.subr.bf16.mxu1 %v3904_v20  ;;  %v3976_v20 = vld [vmem:[%s5672_s1 + $0xbc4] ss:$16 sps:$4 sm:$0xff]  }
  0x81   : > { %2720 = vmatpush2.bf16.msra.mxu0 %v3899_v21  ;;  %v3971_v21 = vld [vmem:[%s5672_s1 + $0x9c0] ss:$16 sps:$4 sm:$0xff]  }
  0x82   : > { %2761 = vmatpush2.bf16.msra.mxu1 %v3902_v22  ;;  %2721 = vmatprep.subr.bf16.mxu0 %v3907_v25  ;;  %v3974_v22 = vld [vmem:[%s5672_s1 + $0xbc0] ss:$16 sps:$4 sm:$0xff]   ;;  %v3979_v25 = vld [vmem:[%s5672_s1 + $0x9a4] ss:$16 sps:$4 sm:$0xff]  }
  0x83   : > { %2762 = vmatprep.subr.bf16.mxu1 %v3910_v26  ;;  %v3982_v26 = vld [vmem:[%s5672_s1 + $0xba4] ss:$16 sps:$4 sm:$0xff]  }
  0x85   : > { %2722 = vmatpush2.bf16.msra.mxu0 %v3905_v27  ;;  %v3977_v27 = vld [vmem:[%s5672_s1 + $0x9a0] ss:$16 sps:$4 sm:$0xff]  }
  0x86   : > { %2763 = vmatpush2.bf16.msra.mxu1 %v3908_v28  ;;  %2723 = vmatprep.subr.bf16.mxu0 %v3913_v29  ;;  %v3980_v28 = vld [vmem:[%s5672_s1 + $0xba0] ss:$16 sps:$4 sm:$0xff]   ;;  %v3985_v29 = vld [vmem:[%s5672_s1 + $0x984] ss:$16 sps:$4 sm:$0xff]  }
  0x87   : > { %2764 = vmatprep.subr.bf16.mxu1 %v3916_v30  ;;  %v3988_v30 = vld [vmem:[%s5672_s1 + $0xb84] ss:$16 sps:$4 sm:$0xff]  }
  0x89   : > { %2724 = vmatpush2.bf16.msra.mxu0 %v3911_v31  ;;  %v3983_v31 = vld [vmem:[%s5672_s1 + $0x980] ss:$16 sps:$4 sm:$0xff]  }
  0x8a   : > { %2765 = vmatpush2.bf16.msra.mxu1 %v3914_v32  ;;  %2775 = vmatprep.subr.bf16.mxu0 %v3919_v33  ;;  %v3986_v32 = vld [vmem:[%s5672_s1 + $0xb80] ss:$16 sps:$4 sm:$0xff]   ;;  %v3991_v33 = vld [vmem:[%s5672_s1 + $0x964] ss:$16 sps:$4 sm:$0xff]  }
  0x8b   : > { %2816 = vmatprep.subr.bf16.mxu1 %v3922_v34  ;;  %v3994_v34 = vld [vmem:[%s5672_s1 + $0xb64] ss:$16 sps:$4 sm:$0xff]  }
  0x8c   : > { %2726 = vmatmul.mubr.bf16.vlgmr.msra.gmra.mxu0 %v4559_v8 }
  0x8d   : > { %2767 = vmatmul.mubr.bf16.vlgmr.msra.gmra.mxu1 %v4576_v13  ;;  %2776 = vmatpush1.bf16.msra.mxu0 %v3917_v36  ;;  %v3992_v36 = vld [vmem:[%s5672_s1 + $0xb60] ss:$16 sps:$4 sm:$0xff]  }
  0x8e   : > { %2817 = vmatpush1.bf16.msra.mxu1 %v3920_v37  ;;  %2777 = vmatprep.subr.bf16.mxu0 %v3925_v39  ;;  %v3997_v37 = vld [vmem:[%s5672_s1 + $0x944] ss:$16 sps:$4 sm:$0xff]   ;;  %v3995_v39 = vld [vmem:[%s5672_s1 + $0x940] ss:$16 sps:$4 sm:$0xff]  }
  0x8f   : > { %2818 = vmatprep.subr.bf16.mxu1 %v3928_v41  ;;  %2807 = vmatprep.mubr.bf16.mxu0 %v4815_v42  ;;  %v3998_v41 = vld [vmem:[%s5672_s1 + $0xb40] ss:$16 sps:$4 sm:$0xff]  }
  0x90   : > { %2848 = vmatprep.mubr.bf16.mxu1 %v4827_v45 }
  0x91   : > { %2778 = vmatpush1.bf16.msra.mxu0 %v3923_v43  ;;  %v4003_v43 = vld [vmem:[%s5672_s1 + $0x924] ss:$16 sps:$4 sm:$0xff]  }
  0x92   : > { %2819 = vmatpush1.bf16.msra.mxu1 %v3926_v44  ;;  %2779 = vmatprep.subr.bf16.mxu0 %v3931_v47  ;;  %v4006_v44 = vld [vmem:[%s5672_s1 + $0xb24] ss:$16 sps:$4 sm:$0xff]   ;;  %v4001_v47 = vld [vmem:[%s5672_s1 + $0x920] ss:$16 sps:$4 sm:$0xff]  }
  0x93   : > { %2820 = vmatprep.subr.bf16.mxu1 %v3934_v48  ;;  %v4004_v48 = vld [vmem:[%s5672_s1 + $0xb20] ss:$16 sps:$4 sm:$0xff]  }
  0x95   : > { %2780 = vmatpush1.bf16.msra.mxu0 %v3929_v49  ;;  %v4009_v49 = vld [vmem:[%s5672_s1 + $0x904] ss:$16 sps:$4 sm:$0xff]  }
  0x96   : > { %2821 = vmatpush1.bf16.msra.mxu1 %v3932_v50  ;;  %2781 = vmatprep.subr.bf16.mxu0 %v3937_v52  ;;  %v4012_v50 = vld [vmem:[%s5672_s1 + $0xb04] ss:$16 sps:$4 sm:$0xff]   ;;  %v4007_v52 = vld [vmem:[%s5672_s1 + $0x900] ss:$16 sps:$4 sm:$0xff]  }
  0x97   : > { %2822 = vmatprep.subr.bf16.mxu1 %v3940_v53  ;;  %v4010_v53 = vld [vmem:[%s5672_s1 + $0xb00] ss:$16 sps:$4 sm:$0xff]  }
  0x99   : > { %2782 = vmatpush1.bf16.msra.mxu0 %v3935_v54  ;;  %v287_v54 = vshrl.u32 %v4559_v8, 16 }
  0x9a   : > { %2823 = vmatpush1.bf16.msra.mxu1 %v3938_v55  ;;  %2783 = vmatprep.subr.bf16.mxu0 %v3943_v56  ;;  %v291_v55 = vshrl.u32 %v4576_v13, 16  ;;  %v4015_v56 = vld [vmem:[%s5672_s1 + $0xec] ss:$16 sps:$4 sm:$0xff]  }
  0x9b   : > { %2824 = vmatprep.subr.bf16.mxu1 %v3946_v57  ;;  %v4018_v57 = vld [vmem:[%s5672_s1 + $0x2ec] ss:$16 sps:$4 sm:$0xff]  }
  0x9d   : > { %2784 = vmatpush1.bf16.msra.mxu0 %v3941_v60  ;;  %v4013_v60 = vld [vmem:[%s5672_s1 + $0xe8] ss:$16 sps:$4 sm:$0xff]  }
  0x9e   : > { %2825 = vmatpush1.bf16.msra.mxu1 %v3944_v61  ;;  %2785 = vmatprep.subr.bf16.mxu0 %v3949_v62  ;;  %v4016_v61 = vld [vmem:[%s5672_s1 + $0x2e8] ss:$16 sps:$4 sm:$0xff]   ;;  %v5015_v62 = vsel %vm4518_vm2, %v287_v54, 0  ;;  %v4090_v54 = vld [vmem:[%s5672_s1 + $0x36c] ss:$16 sps:$4 sm:$0xff]  }
  0x9f   : > { %2826 = vmatprep.subr.bf16.mxu1 %v3952_v0  ;;  %v5019_v0 = vsel %vm4518_vm2, %v291_v55, 0  ;;  %v4085_v55 = vld [vmem:[%s5672_s1 + $0x168] ss:$16 sps:$4 sm:$0xff]  }
  0xa1   : > { %2786 = vmatpush1.bf16.msra.mxu0 %v3947_v1  ;;  %v4021_v1 = vld [vmem:[%s5672_s1 + $0xcc] ss:$16 sps:$4 sm:$0xff]  }
  0xa2   : > { %2827 = vmatpush1.bf16.msra.mxu1 %v3950_v3  ;;  %2787 = vmatprep.subr.bf16.mxu0 %v3955_v4  ;;  %v4024_v3 = vld [vmem:[%s5672_s1 + $0x2cc] ss:$16 sps:$4 sm:$0xff]   ;;  %v4022_v4 = vld [vmem:[%s5672_s1 + $0x2c8] ss:$16 sps:$4 sm:$0xff]  }
  0xa3   : > { %2828 = vmatprep.subr.bf16.mxu1 %v3958_v5  ;;  %v4027_v5 = vld [vmem:[%s5672_s1 + $0xac] ss:$16 sps:$4 sm:$0xff]  }
  0xa5   : > { %2788 = vmatpush1.bf16.msra.mxu0 %v3953_v6  ;;  %v4030_v6 = vld [vmem:[%s5672_s1 + $0x2ac] ss:$16 sps:$4 sm:$0xff]  }
  0xa6   : > { %2829 = vmatpush1.bf16.msra.mxu1 %v3956_v9  ;;  %2789 = vmatprep.subr.bf16.mxu0 %v3961_v10  ;;  %v4025_v9 = vld [vmem:[%s5672_s1 + $0xa8] ss:$16 sps:$4 sm:$0xff]  }
  0xa7   : > { %2830 = vmatprep.subr.bf16.mxu1 %v3964_v11  ;;  %v4028_v10 = vld [vmem:[%s5672_s1 + $0x2a8] ss:$16 sps:$4 sm:$0xff]   ;;  %v4033_v11 = vld [vmem:[%s5672_s1 + $0x8c] ss:$16 sps:$4 sm:$0xff]  }
  0xa9   : > { %2790 = vmatpush1.bf16.msra.mxu0 %v3959_v12  ;;  %v4034_v12 = vld [vmem:[%s5672_s1 + $0x288] ss:$16 sps:$4 sm:$0xff]  }
  0xaa   : > { %2831 = vmatpush1.bf16.msra.mxu1 %v3962_v14  ;;  %2791 = vmatprep.subr.bf16.mxu0 %v3967_v15  ;;  %v4039_v14 = vld [vmem:[%s5672_s1 + $0x6c] ss:$16 sps:$4 sm:$0xff]  }
  0xab   : > { %2832 = vmatprep.subr.bf16.mxu1 %v3970_v16  ;;  %v4042_v15 = vld [vmem:[%s5672_s1 + $0x26c] ss:$16 sps:$4 sm:$0xff]   ;;  %v4037_v16 = vld [vmem:[%s5672_s1 + $0x68] ss:$16 sps:$4 sm:$0xff]  }
  0xad   : > { %2792 = vmatpush2.bf16.msra.mxu0 %v3965_v17  ;;  %v4040_v17 = vld [vmem:[%s5672_s1 + $0x268] ss:$16 sps:$4 sm:$0xff]  }
  0xae   : > { %2833 = vmatpush2.bf16.msra.mxu1 %v3968_v18  ;;  %2793 = vmatprep.subr.bf16.mxu0 %v3973_v19  ;;  %v4045_v18 = vld [vmem:[%s5672_s1 + $0x4c] ss:$16 sps:$4 sm:$0xff]  }
  0xaf   : > { %2834 = vmatprep.subr.bf16.mxu1 %v3976_v20  ;;  %v4048_v19 = vld [vmem:[%s5672_s1 + $0x24c] ss:$16 sps:$4 sm:$0xff]   ;;  %v4043_v20 = vld [vmem:[%s5672_s1 + $0x48] ss:$16 sps:$4 sm:$0xff]  }
  0xb1   : > { %2794 = vmatpush2.bf16.msra.mxu0 %v3971_v21  ;;  %v4046_v21 = vld [vmem:[%s5672_s1 + $0x248] ss:$16 sps:$4 sm:$0xff]  }
  0xb2   : > { %2835 = vmatpush2.bf16.msra.mxu1 %v3974_v22  ;;  %2795 = vmatprep.subr.bf16.mxu0 %v3979_v25  ;;  %v4051_v22 = vld [vmem:[%s5672_s1 + $0x2c] ss:$16 sps:$4 sm:$0xff]  }
  0xb3   : > { %2836 = vmatprep.subr.bf16.mxu1 %v3982_v26  ;;  %v4054_v25 = vld [vmem:[%s5672_s1 + $0x22c] ss:$16 sps:$4 sm:$0xff]   ;;  %v4049_v26 = vld [vmem:[%s5672_s1 + $0x28] ss:$16 sps:$4 sm:$0xff]  }
  0xb5   : > { %2796 = vmatpush2.bf16.msra.mxu0 %v3977_v27  ;;  %v4052_v27 = vld [vmem:[%s5672_s1 + $0x228] ss:$16 sps:$4 sm:$0xff]  }
  0xb6   : > { %2837 = vmatpush2.bf16.msra.mxu1 %v3980_v28  ;;  %2797 = vmatprep.subr.bf16.mxu0 %v3985_v29  ;;  %v4057_v28 = vld [vmem:[%s5672_s1 + $0xc] ss:$16 sps:$4 sm:$0xff]  }
  0xb7   : > { %2838 = vmatprep.subr.bf16.mxu1 %v3988_v30  ;;  %v4060_v29 = vld [vmem:[%s5672_s1 + $0x20c] ss:$16 sps:$4 sm:$0xff]   ;;  %v4055_v30 = vld [vmem:[%s5672_s1 + $0x8] ss:$16 sps:$4 sm:$0xff]  }
  0xb9   : > { %2798 = vmatpush2.bf16.msra.mxu0 %v3983_v31  ;;  %v4058_v31 = vld [vmem:[%s5672_s1 + $0x208] ss:$16 sps:$4 sm:$0xff]  }
  0xba   : > { %2839 = vmatpush2.bf16.msra.mxu1 %v3986_v32  ;;  %2799 = vmatprep.subr.bf16.mxu0 %v3991_v33  ;;  %v4063_v32 = vld [vmem:[%s5672_s1 + $0x1ec] ss:$16 sps:$4 sm:$0xff]  }
  0xbb   : > { %2840 = vmatprep.subr.bf16.mxu1 %v3994_v34  ;;  %v4066_v33 = vld [vmem:[%s5672_s1 + $0x3ec] ss:$16 sps:$4 sm:$0xff]   ;;  %v4061_v34 = vld [vmem:[%s5672_s1 + $0x1e8] ss:$16 sps:$4 sm:$0xff]  }
  0xbd   : > { %2800 = vmatpush2.bf16.msra.mxu0 %v3989_v35  ;;  %v4064_v35 = vld [vmem:[%s5672_s1 + $0x3e8] ss:$16 sps:$4 sm:$0xff]  }
  0xbe   : > { %2841 = vmatpush2.bf16.msra.mxu1 %v3992_v36  ;;  %2801 = vmatprep.subr.bf16.mxu0 %v3997_v37  ;;  %v4069_v36 = vld [vmem:[%s5672_s1 + $0x1cc] ss:$16 sps:$4 sm:$0xff]  }
  0xbf   : > { %2842 = vmatprep.subr.bf16.mxu1 %v4000_v38  ;;  %v4072_v37 = vld [vmem:[%s5672_s1 + $0x3cc] ss:$16 sps:$4 sm:$0xff]   ;;  %v4067_v38 = vld [vmem:[%s5672_s1 + $0x1c8] ss:$16 sps:$4 sm:$0xff]  }
  0xc1   : > { %2802 = vmatpush2.bf16.msra.mxu0 %v3995_v39  ;;  %v4070_v39 = vld [vmem:[%s5672_s1 + $0x3c8] ss:$16 sps:$4 sm:$0xff]  }
  0xc2   : > { %2843 = vmatpush2.bf16.msra.mxu1 %v3998_v41  ;;  %2803 = vmatprep.subr.bf16.mxu0 %v4003_v43  ;;  %v4075_v41 = vld [vmem:[%s5672_s1 + $0x1ac] ss:$16 sps:$4 sm:$0xff]  }
  0xc3   : > { %2844 = vmatprep.subr.bf16.mxu1 %v4006_v44  ;;  %v4078_v43 = vld [vmem:[%s5672_s1 + $0x3ac] ss:$16 sps:$4 sm:$0xff]   ;;  %v4073_v44 = vld [vmem:[%s5672_s1 + $0x1a8] ss:$16 sps:$4 sm:$0xff]  }
  0xc5   : > { %2804 = vmatpush2.bf16.msra.mxu0 %v4001_v47  ;;  %v4076_v47 = vld [vmem:[%s5672_s1 + $0x3a8] ss:$16 sps:$4 sm:$0xff]  }
  0xc6   : > { %2845 = vmatpush2.bf16.msra.mxu1 %v4004_v48  ;;  %2805 = vmatprep.subr.bf16.mxu0 %v4009_v49  ;;  %v4081_v48 = vld [vmem:[%s5672_s1 + $0x18c] ss:$16 sps:$4 sm:$0xff]  }
  0xc7   : > { %2846 = vmatprep.subr.bf16.mxu1 %v4012_v50  ;;  %v4084_v49 = vld [vmem:[%s5672_s1 + $0x38c] ss:$16 sps:$4 sm:$0xff]   ;;  %v4079_v50 = vld [vmem:[%s5672_s1 + $0x188] ss:$16 sps:$4 sm:$0xff]  }
  0xc9   : > { %2806 = vmatpush2.bf16.msra.mxu0 %v4007_v52  ;;  %v4082_v52 = vld [vmem:[%s5672_s1 + $0x388] ss:$16 sps:$4 sm:$0xff]  }
  0xca   : > { %2847 = vmatpush2.bf16.msra.mxu1 %v4010_v53  ;;  %2857 = vmatprep.subr.bf16.mxu0 %v4015_v56  ;;  %v4087_v53 = vld [vmem:[%s5672_s1 + $0x16c] ss:$16 sps:$4 sm:$0xff]   ;;  %v4088_v56 = vld [vmem:[%s5672_s1 + $0x368] ss:$16 sps:$4 sm:$0xff]  }
  0xcb   : > { %2898 = vmatprep.subr.bf16.mxu1 %v4018_v57  ;;  %v4093_v57 = vld [vmem:[%s5672_s1 + $0x14c] ss:$16 sps:$4 sm:$0xff]  }
  0xcc   : > { %2808 = vmatmul.mubr.bf16.vlgmr.msra.gmra.mxu0 %v5015_v62 }
  0xcd   : > { %2849 = vmatmul.mubr.bf16.vlgmr.msra.gmra.mxu1 %v5019_v0  ;;  %2858 = vmatpush1.bf16.msra.mxu0 %v4013_v60  ;;  %v4096_v60 = vld [vmem:[%s5672_s1 + $0x34c] ss:$16 sps:$4 sm:$0xff]  }
  0xce   : > { %2899 = vmatpush1.bf16.msra.mxu1 %v4016_v61  ;;  %2859 = vmatprep.subr.bf16.mxu0 %v4021_v1  ;;  %v4091_v61 = vld [vmem:[%s5672_s1 + $0x148] ss:$16 sps:$4 sm:$0xff]  }
  0xcf   : > { %2900 = vmatprep.subr.bf16.mxu1 %v4024_v3  ;;  %2889 = vmatprep.mubr.bf16.mxu0 %v4541_v2  ;;  %v4036_v2 = vld [vmem:[%s5672_s1 + $0x28c] ss:$16 sps:$4 sm:$0xff]   ;;  %v4094_v1 = vld [vmem:[%s5672_s1 + $0x348] ss:$16 sps:$4 sm:$0xff]  }
  0xd0   : > { %2930 = vmatprep.mubr.bf16.mxu1 %v4556_v7  ;;  %v4031_v7 = vld [vmem:[%s5672_s1 + $0x88] ss:$16 sps:$4 sm:$0xff]   ;;  %v4099_v3 = vld [vmem:[%s5672_s1 + $0x12c] ss:$16 sps:$4 sm:$0xff]  }
  0xd1   : > { %2860 = vmatpush1.bf16.msra.mxu0 %v4019_v59  ;;  %v4102_v59 = vld [vmem:[%s5672_s1 + $0x32c] ss:$16 sps:$4 sm:$0xff]  }
  0xd2   : > { %2901 = vmatpush1.bf16.msra.mxu1 %v4022_v4  ;;  %2861 = vmatprep.subr.bf16.mxu0 %v4027_v5  ;;  %v4097_v4 = vld [vmem:[%s5672_s1 + $0x128] ss:$16 sps:$4 sm:$0xff]  }
  0xd3   : > { %2902 = vmatprep.subr.bf16.mxu1 %v4030_v6  ;;  %v4100_v5 = vld [vmem:[%s5672_s1 + $0x328] ss:$16 sps:$4 sm:$0xff]   ;;  %v4105_v6 = vld [vmem:[%s5672_s1 + $0x10c] ss:$16 sps:$4 sm:$0xff]  }
  0xd5   : > { %2862 = vmatpush1.bf16.msra.mxu0 %v4025_v9  ;;  %v4108_v9 = vld [vmem:[%s5672_s1 + $0x30c] ss:$16 sps:$4 sm:$0xff]  }
  0xd6   : > { %2903 = vmatpush1.bf16.msra.mxu1 %v4028_v10  ;;  %2863 = vmatprep.subr.bf16.mxu0 %v4033_v11  ;;  %v4103_v10 = vld [vmem:[%s5672_s1 + $0x108] ss:$16 sps:$4 sm:$0xff]  }
  0xd7   : > { %2904 = vmatprep.subr.bf16.mxu1 %v4036_v2  ;;  %v4106_v11 = vld [vmem:[%s5672_s1 + $0x308] ss:$16 sps:$4 sm:$0xff]   ;;  %v4111_v2 = vld [vmem:[%s5672_s1 + $0x4ec] ss:$16 sps:$4 sm:$0xff]  }
  0xd9   : > { %2864 = vmatpush1.bf16.msra.mxu0 %v4031_v7  ;;  %v4114_v7 = vld [vmem:[%s5672_s1 + $0x6ec] ss:$16 sps:$4 sm:$0xff]  }
  0xda   : > { %2905 = vmatpush1.bf16.msra.mxu1 %v4034_v12  ;;  %2865 = vmatprep.subr.bf16.mxu0 %v4039_v14  ;;  %v4109_v12 = vld [vmem:[%s5672_s1 + $0x4e8] ss:$16 sps:$4 sm:$0xff]  }
  0xdb   : > { %2906 = vmatprep.subr.bf16.mxu1 %v4042_v15  ;;  %v4112_v14 = vld [vmem:[%s5672_s1 + $0x6e8] ss:$16 sps:$4 sm:$0xff]   ;;  %v4117_v15 = vld [vmem:[%s5672_s1 + $0x4cc] ss:$16 sps:$4 sm:$0xff]  }
  0xdd   : > { %2866 = vmatpush1.bf16.msra.mxu0 %v4037_v16  ;;  %v4120_v16 = vld [vmem:[%s5672_s1 + $0x6cc] ss:$16 sps:$4 sm:$0xff]  }
  0xde   : > { %2907 = vmatpush1.bf16.msra.mxu1 %v4040_v17  ;;  %2867 = vmatprep.subr.bf16.mxu0 %v4045_v18 }
  0xdf   : > { %2908 = vmatprep.subr.bf16.mxu1 %v4048_v19 }
  0xe1   : > { %2868 = vmatpush1.bf16.msra.mxu0 %v4043_v20  ;;  %v4115_v20 = vld [vmem:[%s5672_s1 + $0x4c8] ss:$16 sps:$4 sm:$0xff]  }
  0xe2   : > { %2909 = vmatpush1.bf16.msra.mxu1 %v4046_v21  ;;  %2869 = vmatprep.subr.bf16.mxu0 %v4051_v22  ;;  %v4118_v21 = vld [vmem:[%s5672_s1 + $0x6c8] ss:$16 sps:$4 sm:$0xff]  }
  0xe3   : > { %2910 = vmatprep.subr.bf16.mxu1 %v4054_v25 }
  0xe5   : > { %2870 = vmatpush1.bf16.msra.mxu0 %v4049_v26 }
  0xe6   : > { %2911 = vmatpush1.bf16.msra.mxu1 %v4052_v27  ;;  %2871 = vmatprep.subr.bf16.mxu0 %v4057_v28 }
  0xe7   : > { %2912 = vmatprep.subr.bf16.mxu1 %v4060_v29  ;;  %v4121_v29 = vld [vmem:[%s5672_s1 + $0x4a8] ss:$16 sps:$4 sm:$0xff]  }
  0xe9   : > { %2872 = vmatpush1.bf16.msra.mxu0 %v4055_v30  ;;  %v4124_v30 = vld [vmem:[%s5672_s1 + $0x6a8] ss:$16 sps:$4 sm:$0xff]  }
  0xea   : > { %2913 = vmatpush1.bf16.msra.mxu1 %v4058_v31  ;;  %2873 = vmatprep.subr.bf16.mxu0 %v4063_v32 }
  0xeb   : > { %2914 = vmatprep.subr.bf16.mxu1 %v4066_v33  ;;  %v4127_v33 = vld [vmem:[%s5672_s1 + $0x488] ss:$16 sps:$4 sm:$0xff]  }
  0xed   : > { %2874 = vmatpush2.bf16.msra.mxu0 %v4061_v34  ;;  %v4130_v34 = vld [vmem:[%s5672_s1 + $0x688] ss:$16 sps:$4 sm:$0xff]  }
  0xee   : > { %2915 = vmatpush2.bf16.msra.mxu1 %v4064_v35  ;;  %2875 = vmatprep.subr.bf16.mxu0 %v4069_v36  ;;  %v4135_v35 = vld [vmem:[%s5672_s1 + $0x46c] ss:$16 sps:$4 sm:$0xff]  }
  0xef   : > { %2916 = vmatprep.subr.bf16.mxu1 %v4072_v37  ;;  %v4138_v36 = vld [vmem:[%s5672_s1 + $0x66c] ss:$16 sps:$4 sm:$0xff]   ;;  %v4133_v37 = vld [vmem:[%s5672_s1 + $0x468] ss:$16 sps:$4 sm:$0xff]  }
  0xf1   : > { %2876 = vmatpush2.bf16.msra.mxu0 %v4067_v38  ;;  %v4136_v38 = vld [vmem:[%s5672_s1 + $0x668] ss:$16 sps:$4 sm:$0xff]  }
  0xf2   : > { %2917 = vmatpush2.bf16.msra.mxu1 %v4070_v39  ;;  %2877 = vmatprep.subr.bf16.mxu0 %v4075_v41  ;;  %v4141_v39 = vld [vmem:[%s5672_s1 + $0x44c] ss:$16 sps:$4 sm:$0xff]  }
  0xf3   : > { %2918 = vmatprep.subr.bf16.mxu1 %v4078_v43  ;;  %v4144_v41 = vld [vmem:[%s5672_s1 + $0x64c] ss:$16 sps:$4 sm:$0xff]   ;;  %v4139_v43 = vld [vmem:[%s5672_s1 + $0x448] ss:$16 sps:$4 sm:$0xff]  }
  0xf5   : > { %2878 = vmatpush2.bf16.msra.mxu0 %v4073_v44  ;;  %v4142_v44 = vld [vmem:[%s5672_s1 + $0x648] ss:$16 sps:$4 sm:$0xff]  }
  0xf6   : > { %2919 = vmatpush2.bf16.msra.mxu1 %v4076_v47  ;;  %2879 = vmatprep.subr.bf16.mxu0 %v4081_v48  ;;  %v4147_v47 = vld [vmem:[%s5672_s1 + $0x42c] ss:$16 sps:$4 sm:$0xff]  }
  0xf7   : > { %2920 = vmatprep.subr.bf16.mxu1 %v4084_v49  ;;  %v4150_v48 = vld [vmem:[%s5672_s1 + $0x62c] ss:$16 sps:$4 sm:$0xff]   ;;  %v4145_v49 = vld [vmem:[%s5672_s1 + $0x428] ss:$16 sps:$4 sm:$0xff]  }
  0xf9   : > { %2880 = vmatpush2.bf16.msra.mxu0 %v4079_v50  ;;  %v4148_v50 = vld [vmem:[%s5672_s1 + $0x628] ss:$16 sps:$4 sm:$0xff]  }
  0xfa   : > { %2921 = vmatpush2.bf16.msra.mxu1 %v4082_v52  ;;  %2881 = vmatprep.subr.bf16.mxu0 %v4087_v53  ;;  %v4153_v52 = vld [vmem:[%s5672_s1 + $0x40c] ss:$16 sps:$4 sm:$0xff]  }
  0xfb   : > { %2922 = vmatprep.subr.bf16.mxu1 %v4090_v54  ;;  %v4156_v53 = vld [vmem:[%s5672_s1 + $0x60c] ss:$16 sps:$4 sm:$0xff]   ;;  %v4151_v54 = vld [vmem:[%s5672_s1 + $0x408] ss:$16 sps:$4 sm:$0xff]  }
  0xfd   : > { %2882 = vmatpush2.bf16.msra.mxu0 %v4085_v55  ;;  %v4154_v55 = vld [vmem:[%s5672_s1 + $0x608] ss:$16 sps:$4 sm:$0xff]  }
  0xfe   : > { %2923 = vmatpush2.bf16.msra.mxu1 %v4088_v56  ;;  %2883 = vmatprep.subr.bf16.mxu0 %v4093_v57  ;;  %v4159_v56 = vld [vmem:[%s5672_s1 + $0x5ec] ss:$16 sps:$4 sm:$0xff]  }
  0xff   : > { %2924 = vmatprep.subr.bf16.mxu1 %v4096_v60  ;;  %v4162_v57 = vld [vmem:[%s5672_s1 + $0x7ec] ss:$16 sps:$4 sm:$0xff]   ;;  %v4157_v60 = vld [vmem:[%s5672_s1 + $0x5e8] ss:$16 sps:$4 sm:$0xff]  }
 0x101   : > { %2884 = vmatpush2.bf16.msra.mxu0 %v4091_v61  ;;  %v4160_v61 = vld [vmem:[%s5672_s1 + $0x7e8] ss:$16 sps:$4 sm:$0xff]  }
 0x102   : > { %2925 = vmatpush2.bf16.msra.mxu1 %v4094_v1  ;;  %2885 = vmatprep.subr.bf16.mxu0 %v4099_v3  ;;  %v4165_v1 = vld [vmem:[%s5672_s1 + $0x5cc] ss:$16 sps:$4 sm:$0xff]  }
 0x103   : > { %2926 = vmatprep.subr.bf16.mxu1 %v4102_v59  ;;  %v4168_v3 = vld [vmem:[%s5672_s1 + $0x7cc] ss:$16 sps:$4 sm:$0xff]   ;;  %v4163_v59 = vld [vmem:[%s5672_s1 + $0x5c8] ss:$16 sps:$4 sm:$0xff]  }
 0x105   : > { %2886 = vmatpush2.bf16.msra.mxu0 %v4097_v4  ;;  %v4166_v4 = vld [vmem:[%s5672_s1 + $0x7c8] ss:$16 sps:$4 sm:$0xff]  }
 0x106   : > { %2927 = vmatpush2.bf16.msra.mxu1 %v4100_v5  ;;  %2887 = vmatprep.subr.bf16.mxu0 %v4105_v6  ;;  %v4171_v5 = vld [vmem:[%s5672_s1 + $0x5ac] ss:$16 sps:$4 sm:$0xff]  }
 0x107   : > { %2928 = vmatprep.subr.bf16.mxu1 %v4108_v9  ;;  %v4174_v6 = vld [vmem:[%s5672_s1 + $0x7ac] ss:$16 sps:$4 sm:$0xff]   ;;  %v4169_v9 = vld [vmem:[%s5672_s1 + $0x5a8] ss:$16 sps:$4 sm:$0xff]  }
 0x109   : > { %2888 = vmatpush2.bf16.msra.mxu0 %v4103_v10  ;;  %v4172_v10 = vld [vmem:[%s5672_s1 + $0x7a8] ss:$16 sps:$4 sm:$0xff]  }
 0x10a   : > { %2929 = vmatpush2.bf16.msra.mxu1 %v4106_v11  ;;  %2939 = vmatprep.subr.bf16.mxu0 %v4111_v2  ;;  %v4177_v11 = vld [vmem:[%s5672_s1 + $0x58c] ss:$16 sps:$4 sm:$0xff]  }
 0x10b   : > { %2980 = vmatprep.subr.bf16.mxu1 %v4114_v7  ;;  %v4180_v2 = vld [vmem:[%s5672_s1 + $0x78c] ss:$16 sps:$4 sm:$0xff]   ;;  %v4175_v7 = vld [vmem:[%s5672_s1 + $0x588] ss:$16 sps:$4 sm:$0xff]  }
 0x10c   : > { %v2645_v17 = vpop.f32.mrf.mxu0  ;;  %2890 = vmatmul.mubr.bf16.vlgmr.msra.gmra.mxu0 %v4603_v23  ;;  %v4123_v23 = vld [vmem:[%s5672_s1 + $0x4ac] ss:$16 sps:$4 sm:$0xff]  }
 0x10d   : > { %v2686_v18 = vpop.f32.mrf.mxu1  ;;  %2931 = vmatmul.mubr.bf16.vlgmr.msra.gmra.mxu1 %v4607_v24  ;;  %2940 = vmatpush1.bf16.msra.mxu0 %v4109_v12  ;;  %v4126_v24 = vld [vmem:[%s5672_s1 + $0x6ac] ss:$16 sps:$4 sm:$0xff]   ;;  %v4178_v12 = vld [vmem:[%s5672_s1 + $0x788] ss:$16 sps:$4 sm:$0xff]  }
 0x10e   : > { %v5225_v19 = vadd.f32 %v2686_v18, %v2645_v17  ;;  %2981 = vmatpush1.bf16.msra.mxu1 %v4112_v14  ;;  %v2647_v22 = vpop.f32.mrf.mxu0  ;;  %2941 = vmatprep.subr.bf16.mxu0 %v4117_v15  ;;  %v4183_v14 = vld [vmem:[%s5672_s1 + $0x56c] ss:$16 sps:$4 sm:$0xff]   ;;  %v4184_v17 = vld [vmem:[%s5672_s1 + $0x768] ss:$16 sps:$4 sm:$0xff]  }
 0x10f   : > { %v2688_v25 = vpop.f32.mrf.mxu1  ;;  %2982 = vmatprep.subr.bf16.mxu1 %v4120_v16  ;;  %2971 = vmatprep.mubr.bf16.mxu0 %v4516_v58  ;;  %v4129_v58 = vld [vmem:[%s5672_s1 + $0x48c] ss:$16 sps:$4 sm:$0xff]   ;;  %v4181_v16 = vld [vmem:[%s5672_s1 + $0x568] ss:$16 sps:$4 sm:$0xff]  }
 0x110   : > { %v5239_v26 = vadd.f32 %v2688_v25, %v2647_v22  ;;  %3012 = vmatprep.mubr.bf16.mxu1 %v4531_v63  ;;  %v2649_v27 = vpop.f32.mrf.mxu0  ;;  %v4132_v63 = vld [vmem:[%s5672_s1 + $0x68c] ss:$16 sps:$4 sm:$0xff]   ;;  %v4190_v22 = vld [vmem:[%s5672_s1 + $0x748] ss:$16 sps:$4 sm:$0xff]  }
 0x111   : > { %v2690_v28 = vpop.f32.mrf.mxu1  ;;  %2942 = vmatpush1.bf16.msra.mxu0 %v4115_v20  ;;  %v4186_v15 = vld [vmem:[%s5672_s1 + $0x76c] ss:$16 sps:$4 sm:$0xff]   ;;  %v4196_v27 = vld [vmem:[%s5672_s1 + $0x728] ss:$16 sps:$4 sm:$0xff]  }
 0x112   : > { %2983 = vmatpush1.bf16.msra.mxu1 %v4118_v21  ;;  %v2650_v31 = vpop.f32.mrf.mxu0  ;;  %2943 = vmatprep.subr.bf16.mxu0 %v4123_v23  ;;  %v4189_v18 = vld [vmem:[%s5672_s1 + $0x54c] ss:$16 sps:$4 sm:$0xff]   ;;  %v4187_v21 = vld [vmem:[%s5672_s1 + $0x548] ss:$16 sps:$4 sm:$0xff]  }
 0x113   : > { %v2691_v32 = vpop.f32.mrf.mxu1  ;;  %2984 = vmatprep.subr.bf16.mxu1 %v4126_v24  ;;  %v4192_v20 = vld [vmem:[%s5672_s1 + $0x74c] ss:$16 sps:$4 sm:$0xff]   ;;  %v4193_v24 = vld [vmem:[%s5672_s1 + $0x528] ss:$16 sps:$4 sm:$0xff]  }
 0x114   : > { %v4195_v25 = vld [vmem:[%s5672_s1 + $0x52c] ss:$16 sps:$4 sm:$0xff]   ;;  %v4202_v31 = vld [vmem:[%s5672_s1 + $0x708] ss:$16 sps:$4 sm:$0xff]  }
 0x115   : > { %2944 = vmatpush1.bf16.msra.mxu0 %v4121_v29  ;;  %v4198_v23 = vld [vmem:[%s5672_s1 + $0x72c] ss:$16 sps:$4 sm:$0xff]  }
 0x116   : > { %2985 = vmatpush1.bf16.msra.mxu1 %v4124_v30  ;;  %2945 = vmatprep.subr.bf16.mxu0 %v4129_v58  ;;  %v4201_v28 = vld [vmem:[%s5672_s1 + $0x50c] ss:$16 sps:$4 sm:$0xff]   ;;  %v4199_v30 = vld [vmem:[%s5672_s1 + $0x508] ss:$16 sps:$4 sm:$0xff]  }
 0x117   : > { %2986 = vmatprep.subr.bf16.mxu1 %v4132_v63  ;;  %v4204_v29 = vld [vmem:[%s5672_s1 + $0x70c] ss:$16 sps:$4 sm:$0xff]   ;;  %v4205_v63 = vld [vmem:[%s5672_s1 + $0x8e8] ss:$16 sps:$4 sm:$0xff]  }
 0x118   : > { %v4207_v32 = vld [vmem:[%s5672_s1 + $0x8ec] ss:$16 sps:$4 sm:$0xff]  }
 0x119   : > { %2946 = vmatpush1.bf16.msra.mxu0 %v4127_v33  ;;  %v4210_v58 = vld [vmem:[%s5672_s1 + $0xaec] ss:$16 sps:$4 sm:$0xff]   ;;  %v4208_v33 = vld [vmem:[%s5672_s1 + $0xae8] ss:$16 sps:$4 sm:$0xff]  }
 0x11a   : > { %2987 = vmatpush1.bf16.msra.mxu1 %v4130_v34  ;;  %2947 = vmatprep.subr.bf16.mxu0 %v4135_v35  ;;  %v4213_v34 = vld [vmem:[%s5672_s1 + $0x8cc] ss:$16 sps:$4 sm:$0xff]  }
 0x11b   : > { %2988 = vmatprep.subr.bf16.mxu1 %v4138_v36  ;;  %v4216_v35 = vld [vmem:[%s5672_s1 + $0xacc] ss:$16 sps:$4 sm:$0xff]  }
 0x11d   : > { %2948 = vmatpush1.bf16.msra.mxu0 %v4133_v37 }
 0x11e   : > { %2989 = vmatpush1.bf16.msra.mxu1 %v4136_v38  ;;  %2949 = vmatprep.subr.bf16.mxu0 %v4141_v39  ;;  %v4211_v39 = vld [vmem:[%s5672_s1 + $0x8c8] ss:$16 sps:$4 sm:$0xff]  }
 0x11f   : > { %2990 = vmatprep.subr.bf16.mxu1 %v4144_v41  ;;  %v4214_v41 = vld [vmem:[%s5672_s1 + $0xac8] ss:$16 sps:$4 sm:$0xff]  }
 0x121   : > { %2950 = vmatpush1.bf16.msra.mxu0 %v4139_v43 }
 0x122   : > { %2991 = vmatpush1.bf16.msra.mxu1 %v4142_v44  ;;  %2951 = vmatprep.subr.bf16.mxu0 %v4147_v47 }
 0x123   : > { %2992 = vmatprep.subr.bf16.mxu1 %v4150_v48 }
 0x125   : > { %2952 = vmatpush1.bf16.msra.mxu0 %v4145_v49 }
 0x126   : > { %2993 = vmatpush1.bf16.msra.mxu1 %v4148_v50  ;;  %2953 = vmatprep.subr.bf16.mxu0 %v4153_v52  ;;  %v4217_v52 = vld [vmem:[%s5672_s1 + $0x8a8] ss:$16 sps:$4 sm:$0xff]  }
 0x127   : > { %2994 = vmatprep.subr.bf16.mxu1 %v4156_v53  ;;  %v4220_v53 = vld [vmem:[%s5672_s1 + $0xaa8] ss:$16 sps:$4 sm:$0xff]  }
 0x129   : > { %2954 = vmatpush1.bf16.msra.mxu0 %v4151_v54 }
 0x12a   : > { %2995 = vmatpush1.bf16.msra.mxu1 %v4154_v55  ;;  %2955 = vmatprep.subr.bf16.mxu0 %v4159_v56  ;;  %v4223_v55 = vld [vmem:[%s5672_s1 + $0x888] ss:$16 sps:$4 sm:$0xff]  }
 0x12b   : > { %2996 = vmatprep.subr.bf16.mxu1 %v4162_v57  ;;  %v4226_v56 = vld [vmem:[%s5672_s1 + $0xa88] ss:$16 sps:$4 sm:$0xff]   ;;  %v4231_v57 = vld [vmem:[%s5672_s1 + $0x86c] ss:$16 sps:$4 sm:$0xff]  }
 0x12d   : > { %2956 = vmatpush2.bf16.msra.mxu0 %v4157_v60  ;;  %v4234_v60 = vld [vmem:[%s5672_s1 + $0xa6c] ss:$16 sps:$4 sm:$0xff]  }
 0x12e   : > { %2997 = vmatpush2.bf16.msra.mxu1 %v4160_v61  ;;  %2957 = vmatprep.subr.bf16.mxu0 %v4165_v1  ;;  %v4229_v61 = vld [vmem:[%s5672_s1 + $0x868] ss:$16 sps:$4 sm:$0xff]  }
 0x12f   : > { %2998 = vmatprep.subr.bf16.mxu1 %v4168_v3  ;;  %v4232_v1 = vld [vmem:[%s5672_s1 + $0xa68] ss:$16 sps:$4 sm:$0xff]   ;;  %v4237_v3 = vld [vmem:[%s5672_s1 + $0x84c] ss:$16 sps:$4 sm:$0xff]  }
 0x131   : > { %2958 = vmatpush2.bf16.msra.mxu0 %v4163_v59  ;;  %v4240_v59 = vld [vmem:[%s5672_s1 + $0xa4c] ss:$16 sps:$4 sm:$0xff]  }
 0x132   : > { %2999 = vmatpush2.bf16.msra.mxu1 %v4166_v4  ;;  %2959 = vmatprep.subr.bf16.mxu0 %v4171_v5  ;;  %v4235_v4 = vld [vmem:[%s5672_s1 + $0x848] ss:$16 sps:$4 sm:$0xff]  }
 0x133   : > { %3000 = vmatprep.subr.bf16.mxu1 %v4174_v6  ;;  %v4238_v5 = vld [vmem:[%s5672_s1 + $0xa48] ss:$16 sps:$4 sm:$0xff]   ;;  %v4243_v6 = vld [vmem:[%s5672_s1 + $0x82c] ss:$16 sps:$4 sm:$0xff]  }
 0x135   : > { %2960 = vmatpush2.bf16.msra.mxu0 %v4169_v9  ;;  %v4246_v9 = vld [vmem:[%s5672_s1 + $0xa2c] ss:$16 sps:$4 sm:$0xff]  }
 0x136   : > { %3001 = vmatpush2.bf16.msra.mxu1 %v4172_v10  ;;  %2961 = vmatprep.subr.bf16.mxu0 %v4177_v11  ;;  %v4241_v10 = vld [vmem:[%s5672_s1 + $0x828] ss:$16 sps:$4 sm:$0xff]  }
 0x137   : > { %3002 = vmatprep.subr.bf16.mxu1 %v4180_v2  ;;  %v4244_v11 = vld [vmem:[%s5672_s1 + $0xa28] ss:$16 sps:$4 sm:$0xff]   ;;  %v4249_v2 = vld [vmem:[%s5672_s1 + $0x80c] ss:$16 sps:$4 sm:$0xff]  }
 0x139   : > { %2962 = vmatpush2.bf16.msra.mxu0 %v4175_v7  ;;  %v4252_v7 = vld [vmem:[%s5672_s1 + $0xa0c] ss:$16 sps:$4 sm:$0xff]  }
 0x13a   : > { %3003 = vmatpush2.bf16.msra.mxu1 %v4178_v12  ;;  %2963 = vmatprep.subr.bf16.mxu0 %v4183_v14  ;;  %v4247_v12 = vld [vmem:[%s5672_s1 + $0x808] ss:$16 sps:$4 sm:$0xff]  }
 0x13b   : > { %3004 = vmatprep.subr.bf16.mxu1 %v4186_v15  ;;  %v4250_v14 = vld [vmem:[%s5672_s1 + $0xa08] ss:$16 sps:$4 sm:$0xff]   ;;  %v4255_v15 = vld [vmem:[%s5672_s1 + $0x9ec] ss:$16 sps:$4 sm:$0xff]  }
 0x13d   : > { %2964 = vmatpush2.bf16.msra.mxu0 %v4181_v16  ;;  %v4258_v16 = vld [vmem:[%s5672_s1 + $0xbec] ss:$16 sps:$4 sm:$0xff]  }
 0x13e   : > { %3005 = vmatpush2.bf16.msra.mxu1 %v4184_v17  ;;  %2965 = vmatprep.subr.bf16.mxu0 %v4189_v18  ;;  %v4253_v17 = vld [vmem:[%s5672_s1 + $0x9e8] ss:$16 sps:$4 sm:$0xff]  }
 0x13f   : > { %3006 = vmatprep.subr.bf16.mxu1 %v4192_v20  ;;  %v4256_v18 = vld [vmem:[%s5672_s1 + $0xbe8] ss:$16 sps:$4 sm:$0xff]   ;;  %v4261_v20 = vld [vmem:[%s5672_s1 + $0x9cc] ss:$16 sps:$4 sm:$0xff]  }
 0x141   : > { %2966 = vmatpush2.bf16.msra.mxu0 %v4187_v21  ;;  %v4264_v21 = vld [vmem:[%s5672_s1 + $0xbcc] ss:$16 sps:$4 sm:$0xff]  }
 0x142   : > { %3007 = vmatpush2.bf16.msra.mxu1 %v4190_v22  ;;  %2967 = vmatprep.subr.bf16.mxu0 %v4195_v25  ;;  %v4259_v22 = vld [vmem:[%s5672_s1 + $0x9c8] ss:$16 sps:$4 sm:$0xff]  }
 0x143   : > { %3008 = vmatprep.subr.bf16.mxu1 %v4198_v23  ;;  %v4262_v25 = vld [vmem:[%s5672_s1 + $0xbc8] ss:$16 sps:$4 sm:$0xff]   ;;  %v4267_v23 = vld [vmem:[%s5672_s1 + $0x9ac] ss:$16 sps:$4 sm:$0xff]  }
 0x145   : > { %2968 = vmatpush2.bf16.msra.mxu0 %v4193_v24  ;;  %v4270_v24 = vld [vmem:[%s5672_s1 + $0xbac] ss:$16 sps:$4 sm:$0xff]  }
 0x146   : > { %3009 = vmatpush2.bf16.msra.mxu1 %v4196_v27  ;;  %2969 = vmatprep.subr.bf16.mxu0 %v4201_v28  ;;  %v4265_v27 = vld [vmem:[%s5672_s1 + $0x9a8] ss:$16 sps:$4 sm:$0xff]  }
 0x147   : > { %3010 = vmatprep.subr.bf16.mxu1 %v4204_v29  ;;  %v4268_v28 = vld [vmem:[%s5672_s1 + $0xba8] ss:$16 sps:$4 sm:$0xff]   ;;  %v4273_v29 = vld [vmem:[%s5672_s1 + $0x98c] ss:$16 sps:$4 sm:$0xff]  }
 0x149   : > { %2970 = vmatpush2.bf16.msra.mxu0 %v4199_v30  ;;  %v4276_v30 = vld [vmem:[%s5672_s1 + $0xb8c] ss:$16 sps:$4 sm:$0xff]  }
 0x14a   : > { %3011 = vmatpush2.bf16.msra.mxu1 %v4202_v31  ;;  %3021 = vmatprep.subr.bf16.mxu0 %v4207_v32  ;;  %v4271_v31 = vld [vmem:[%s5672_s1 + $0x988] ss:$16 sps:$4 sm:$0xff]  }
 0x14b   : > { %3062 = vmatprep.subr.bf16.mxu1 %v4210_v58  ;;  %v4274_v32 = vld [vmem:[%s5672_s1 + $0xb88] ss:$16 sps:$4 sm:$0xff]   ;;  %v4279_v58 = vld [vmem:[%s5672_s1 + $0x96c] ss:$16 sps:$4 sm:$0xff]  }
 0x14c   : > { %v2727_v36 = vpop.f32.mrf.mxu0  ;;  %2972 = vmatmul.mubr.bf16.vlgmr.msra.gmra.mxu0 %v4559_v8  ;;  %v4219_v8 = vld [vmem:[%s5672_s1 + $0x8ac] ss:$16 sps:$4 sm:$0xff]  }
 0x14d   : > { %v2768_v37 = vpop.f32.mrf.mxu1  ;;  %3013 = vmatmul.mubr.bf16.vlgmr.msra.gmra.mxu1 %v4576_v13  ;;  %v2728_v38 = vadd.f32 %v2727_v36, %v5225_v19  ;;  %3022 = vmatpush1.bf16.msra.mxu0 %v4205_v63  ;;  %v4222_v13 = vld [vmem:[%s5672_s1 + $0xaac] ss:$16 sps:$4 sm:$0xff]  }
 0x14e   : > { %3063 = vmatpush1.bf16.msra.mxu1 %v4208_v33  ;;  %v2729_v43 = vpop.f32.mrf.mxu0  ;;  %3023 = vmatprep.subr.bf16.mxu0 %v4213_v34  ;;  %v4282_v63 = vld [vmem:[%s5672_s1 + $0xb6c] ss:$16 sps:$4 sm:$0xff]   ;;  %v4277_v33 = vld [vmem:[%s5672_s1 + $0x968] ss:$16 sps:$4 sm:$0xff]  }
 0x14f   : > { %v2770_v44 = vpop.f32.mrf.mxu1  ;;  %3064 = vmatprep.subr.bf16.mxu1 %v4216_v35  ;;  %v5438_v19 = vadd.f32 %v2768_v37, %v2728_v38  ;;  %v2730_v47 = vadd.f32 %v2729_v43, %v5239_v26  ;;  %3053 = vmatprep.mubr.bf16.mxu0 %v4815_v42  ;;  %v4225_v42 = vld [vmem:[%s5672_s1 + $0x88c] ss:$16 sps:$4 sm:$0xff]   ;;  %v4280_v34 = vld [vmem:[%s5672_s1 + $0xb68] ss:$16 sps:$4 sm:$0xff]  }
 0x150   : > { %3094 = vmatprep.mubr.bf16.mxu1 %v4827_v45  ;;  %v2731_v48 = vpop.f32.mrf.mxu0  ;;  %v4228_v45 = vld [vmem:[%s5672_s1 + $0xa8c] ss:$16 sps:$4 sm:$0xff]   ;;  %v4283_v37 = vld [vmem:[%s5672_s1 + $0x948] ss:$16 sps:$4 sm:$0xff]  }
 0x151   : > { %v2772_v49 = vpop.f32.mrf.mxu1  ;;  %v5443_v50 = vadd.f32 %v2770_v44, %v2730_v47  ;;  %3024 = vmatpush1.bf16.msra.mxu0 %v4211_v39  ;;  %v4285_v35 = vld [vmem:[%s5672_s1 + $0x94c] ss:$16 sps:$4 sm:$0xff]   ;;  %v4286_v38 = vld [vmem:[%s5672_s1 + $0xb48] ss:$16 sps:$4 sm:$0xff]   ;;  %v4310_v47 = vmov 1983009808  }
 0x152   : > { %3065 = vmatpush1.bf16.msra.mxu1 %v4214_v41  ;;  %v2732_v54 = vpop.f32.mrf.mxu0  ;;  %3025 = vmatprep.subr.bf16.mxu0 %v4219_v8  ;;  %v4288_v36 = vld [vmem:[%s5672_s1 + $0xb4c] ss:$16 sps:$4 sm:$0xff]   ;;  %v4289_v43 = vld [vmem:[%s5672_s1 + $0x928] ss:$16 sps:$4 sm:$0xff]   ;;  %v3160_v48 = vunpack.c.l.s4 %v4310_v47 }
 0x153   : > { %v2773_v26 = vpop.f32.mrf.mxu1  ;;  %3066 = vmatprep.subr.bf16.mxu1 %v4222_v13  ;;  %v4291_v39 = vld [vmem:[%s5672_s1 + $0x92c] ss:$16 sps:$4 sm:$0xff]   ;;  %v4292_v44 = vld [vmem:[%s5672_s1 + $0xb28] ss:$16 sps:$4 sm:$0xff]   ;;  %v3155_v54 = vld [vmem:[%s232_s9] sm:$0xf] }
 0x154   : > { %v4294_v41 = vld [vmem:[%s5672_s1 + $0xb2c] ss:$16 sps:$4 sm:$0xff]   ;;  %v4295_v49 = vld [vmem:[%s5672_s1 + $0x908] ss:$16 sps:$4 sm:$0xff]   ;;  %v3107_v26 = vsub.s32 0, %v4482_v46 }
 0x155   : > { %3026 = vmatpush1.bf16.msra.mxu0 %v4217_v52  ;;  %v4297_v8 = vld [vmem:[%s5672_s1 + $0x90c] ss:$16 sps:$4 sm:$0xff]   ;;  %v4298_v52 = vld [vmem:[%s5672_s1 + $0xb08] ss:$16 sps:$4 sm:$0xff]  }
 0x156   : > { %3067 = vmatpush1.bf16.msra.mxu1 %v4220_v53  ;;  %3027 = vmatprep.subr.bf16.mxu0 %v4225_v42  ;;  %v4300_v13 = vld [vmem:[%s5672_s1 + $0xb0c] ss:$16 sps:$4 sm:$0xff]   ;;  %v3161_v53 = vunpack.c.0.s8 %v3160_v48  ;;  %v5615_v42 = vld [vmem:[%s5673_s2] sm:$0xf] }
 0x157   : > { %3068 = vmatprep.subr.bf16.mxu1 %v4228_v45  ;;  %v5620_v45 = vld [vmem:[%s5674_s3] sm:$0xf] }
 0x159   : > { %3028 = vmatpush1.bf16.msra.mxu0 %v4223_v55  ;;  %v5622_v55 = vunpack.c.l.bf16 %v3155_v54 }
 0x15a   : > { %3069 = vmatpush1.bf16.msra.mxu1 %v4226_v56  ;;  %3029 = vmatprep.subr.bf16.mxu0 %v4231_v57  ;;  %v5625_v56 = vsub.s32 %v3161_v53, %v4482_v46  ;;  %v3111_v57 = vsub.s32 1, %v4482_v46 }
 0x15b   : > { %3070 = vmatprep.subr.bf16.mxu1 %v4234_v60 }
 0x15d   : > { %3030 = vmatpush1.bf16.msra.mxu0 %v4229_v61 }
 0x15e   : > { %3071 = vmatpush1.bf16.msra.mxu1 %v4232_v1  ;;  %3031 = vmatprep.subr.bf16.mxu0 %v4237_v3  ;;  %v3108_v3 = vrot.slane %v5615_v42, %v3107_v26 }
 0x15f   : > { %3072 = vmatprep.subr.bf16.mxu1 %v4240_v59  ;;  %v3134_v59 = vrot.slane %v5620_v45, %v3107_v26 }
 0x161   : > { %3032 = vmatpush1.bf16.msra.mxu0 %v4235_v4 }
 0x162   : > { %3073 = vmatpush1.bf16.msra.mxu1 %v4238_v5  ;;  %3033 = vmatprep.subr.bf16.mxu0 %v4243_v6 }
 0x163   : > { %3074 = vmatprep.subr.bf16.mxu1 %v4246_v9  ;;  %v3165_v9 = vrot.slane %v5622_v55, %v5625_v56 }
 0x165   : > { %3034 = vmatpush1.bf16.msra.mxu0 %v4241_v10 }
 0x166   : > { %3075 = vmatpush1.bf16.msra.mxu1 %v4244_v11  ;;  %3035 = vmatprep.subr.bf16.mxu0 %v4249_v2  ;;  %v3112_v11 = vrot.slane %v5615_v42, %v3111_v57 }
 0x167   : > { %3076 = vmatprep.subr.bf16.mxu1 %v4252_v7 }
 0x169   : > { %3036 = vmatpush1.bf16.msra.mxu0 %v4247_v12 }
 0x16a   : > { %3077 = vmatpush1.bf16.msra.mxu1 %v4250_v14  ;;  %3037 = vmatprep.subr.bf16.mxu0 %v4255_v15 }
 0x16b   : > { %3078 = vmatprep.subr.bf16.mxu1 %v4258_v16 }
 0x16d   : > { %3038 = vmatpush2.bf16.msra.mxu0 %v4253_v17  ;;  %v3173_v17 = vcombine.high %v3165_v9, %v3165_v9 }
 0x16e   : > { %3079 = vmatpush2.bf16.msra.mxu1 %v4256_v18  ;;  %3039 = vmatprep.subr.bf16.mxu0 %v4261_v20 }
 0x16f   : > { %3080 = vmatprep.subr.bf16.mxu1 %v4264_v21 }
 0x171   : > { %3040 = vmatpush2.bf16.msra.mxu0 %v4259_v22 }
 0x172   : > { %3081 = vmatpush2.bf16.msra.mxu1 %v4262_v25  ;;  %3041 = vmatprep.subr.bf16.mxu0 %v4267_v23 }
 0x173   : > { %3082 = vmatprep.subr.bf16.mxu1 %v4270_v24 }
 0x175   : > { %3042 = vmatpush2.bf16.msra.mxu0 %v4265_v27 }
 0x176   : > { %3083 = vmatpush2.bf16.msra.mxu1 %v4268_v28  ;;  %3043 = vmatprep.subr.bf16.mxu0 %v4273_v29 }
 0x177   : > { %3084 = vmatprep.subr.bf16.mxu1 %v4276_v30 }
 0x179   : > { %3044 = vmatpush2.bf16.msra.mxu0 %v4271_v31 }
 0x17a   : > { %3085 = vmatpush2.bf16.msra.mxu1 %v4274_v32  ;;  %3045 = vmatprep.subr.bf16.mxu0 %v4279_v58 }
 0x17b   : > { %3086 = vmatprep.subr.bf16.mxu1 %v4282_v63 }
 0x17d   : > { %3046 = vmatpush2.bf16.msra.mxu0 %v4277_v33 }
 0x17e   : > { %3087 = vmatpush2.bf16.msra.mxu1 %v4280_v34  ;;  %3047 = vmatprep.subr.bf16.mxu0 %v4285_v35 }
 0x17f   : > { %3088 = vmatprep.subr.bf16.mxu1 %v4288_v36 }
 0x181   : > { %3048 = vmatpush2.bf16.msra.mxu0 %v4283_v37 }
 0x182   : > { %3089 = vmatpush2.bf16.msra.mxu1 %v4286_v38  ;;  %3049 = vmatprep.subr.bf16.mxu0 %v4291_v39 }
 0x183   : > { %3090 = vmatprep.subr.bf16.mxu1 %v4294_v41 }
 0x185   : > { %3050 = vmatpush2.bf16.msra.mxu0 %v4289_v43 }
 0x186   : > { %3091 = vmatpush2.bf16.msra.mxu1 %v4292_v44  ;;  %3051 = vmatprep.subr.bf16.mxu0 %v4297_v8 }
 0x187   : > { %3092 = vmatprep.subr.bf16.mxu1 %v4300_v13 }
 0x189   : > { %3052 = vmatpush2.bf16.msra.mxu0 %v4295_v49 }
 0x18a   : > { %3093 = vmatpush2.bf16.msra.mxu1 %v4298_v52 }
 0x18c   : > { %v2809_v60 = vpop.f32.mrf.mxu0  ;;  %3054 = vmatmul.mubr.bf16.vlgmr.msra.gmra.mxu0 %v5015_v62 }
 0x18d   : > { %v2850_v61 = vpop.f32.mrf.mxu1  ;;  %3095 = vmatmul.mubr.bf16.vlgmr.msra.gmra.mxu1 %v5019_v0  ;;  %v2810_v1 = vadd.f32 %v2809_v60, %v5438_v19  ;;  %v3138_v19 = vrot.slane %v5620_v45, %v3111_v57 }
 0x18e   : > { %v2811_v4 = vpop.f32.mrf.mxu0 }
 0x18f   : > { %v2852_v5 = vpop.f32.mrf.mxu1  ;;  %v2851_v6 = vadd.f32 %v2850_v61, %v2810_v1  ;;  %v2812_v10 = vadd.f32 %v2811_v4, %v5443_v50 }
 0x190   : > { %v2813_v2 = vpop.f32.mrf.mxu0 }
 0x191   : > { %v2854_v62 = vpop.f32.mrf.mxu1  ;;  %v3125_v7 = vmul.f32 %v3108_v3, %v2851_v6  ;;  %v2853_v0 = vadd.f32 %v2852_v5, %v2812_v10  ;;  %v3115_v6 = vsub.s32 2, %v4482_v46  ;;  %v3119_v10 = vsub.s32 3, %v4482_v46 }
 0x192   : > { %v2814_v12 = vpop.f32.mrf.mxu0 }
 0x193   : > { %v2855_v14 = vpop.f32.mrf.mxu1  ;;  %v3151_v15 = vadd.f32 %v3134_v59, %v3125_v7  ;;  %v3126_v16 = vmul.f32 %v3112_v11, %v2853_v0  ;;  %v3116_v0 = vrot.slane %v5615_v42, %v3115_v6 }
 0x195   : > { %v3179_v18 = vadd.f32 %v3165_v9, %v3151_v15  ;;  %v3152_v20 = vadd.f32 %v3138_v19, %v3126_v16  ;;  %v3158_v9 = vcombine.high %v5622_v55, %v5622_v55  ;;  %v3142_v19 = vrot.slane %v5620_v45, %v3115_v6 }
 0x197   : > { %v3183_v21 = vmax.f32 %v3179_v18, 0.0  ;;  %v3180_v22 = vadd.f32 %v3173_v17, %v3152_v20  ;;  %v3172_v16 = vrot.slane %v3158_v9, %v5625_v56  ;;  %v3120_v18 = vrot.slane %v5615_v42, %v3119_v10 }
 0x199   : > { %v3188_v50 = vsel %vm3187_vm3, %v3183_v21, 0.0  ;;  %v3184_v25 = vmax.f32 %v3180_v22, 0.0  ;;  %v3146_v22 = vrot.slane %v5620_v45, %v3119_v10 }
 0x19a   : > { %v3189_v23 = vrot.slane %v3188_v50, 4 }
 0x19b   : > { %v3195_v24 = vsel %vm3187_vm3, %v3184_v25, 0.0 }
 0x19c   : > { %v3190_v27 = vadd.f32 %v3189_v23, %v3188_v50  ;;  %v3196_v28 = vrot.slane %v3195_v24, 4 }
 0x19e   : > { %v3191_v29 = vrot.slane %v3190_v27, 2  ;;  %v3197_v30 = vadd.f32 %v3196_v28, %v3195_v24 }
 0x1a0   : > { %v3192_v31 = vadd.f32 %v3191_v29, %v3190_v27  ;;  %v3198_v32 = vrot.slane %v3197_v30, 2  ;;  %v3174_v27 = vcombine.high %v3172_v16, %v3172_v16 }
 0x1a2   : > { %v3193_v58 = vrot.slane %v3192_v31, 1  ;;  %v3199_v63 = vadd.f32 %v3198_v32, %v3197_v30 }
 0x1a4   : > { %v3194_v33 = vadd.f32 %v3193_v58, %v3192_v31  ;;  %v3200_v34 = vrot.slane %v3199_v63, 1 }
 0x1a6   : > { %v3201_v35 = vadd.f32 %v3200_v34, %v3199_v63  ;;  %v5640_v36 = vmul.f32 0.5, %v3194_v33 }
 0x1a8   : > { %v5642_v37 = vmul.f32 0.5, %v3201_v35 }
 0x1aa   : > { %v3225_v38 = vcombine.low %v5640_v36, %v5642_v37 }
 0x1cc   : > { %v2891_v39 = vpop.f32.mrf.mxu0 }
 0x1cd   : > { %v2932_v41 = vpop.f32.mrf.mxu1 }
 0x1ce   : > { %v2933_v43 = vadd.f32 %v2932_v41, %v2891_v39  ;;  %v2893_v44 = vpop.f32.mrf.mxu0 }
 0x1cf   : > { %v2934_v8 = vpop.f32.mrf.mxu1 }
 0x1d0   : > { %v2935_v13 = vadd.f32 %v2934_v8, %v2893_v44  ;;  %v2895_v47 = vpop.f32.mrf.mxu0 }
 0x1d1   : > { %v2936_v48 = vpop.f32.mrf.mxu1 }
 0x1d2   : > { %v2896_v49 = vpop.f32.mrf.mxu0 }
 0x1d3   : > { %v2937_v52 = vpop.f32.mrf.mxu1 }
 0x1d4   : > { %v3233_v52 = vrot.slane %v3225_v38, %v4501_v51 }
 0x20c   : > { %v2973_v53 = vpop.f32.mrf.mxu0 }
 0x20d   : > { %v3014_v54 = vpop.f32.mrf.mxu1  ;;  %v2974_v26 = vadd.f32 %v2973_v53, %v2933_v43 }
 0x20e   : > { %v2975_v57 = vpop.f32.mrf.mxu0 }
 0x20f   : > { %v3016_v60 = vpop.f32.mrf.mxu1  ;;  %v3015_v61 = vadd.f32 %v3014_v54, %v2974_v26  ;;  %v2976_v5 = vadd.f32 %v2975_v57, %v2935_v13 }
 0x210   : > { %v2977_v1 = vpop.f32.mrf.mxu0 }
 0x211   : > { %v3018_v3 = vpop.f32.mrf.mxu1  ;;  %v3017_v62 = vadd.f32 %v3016_v60, %v2976_v5 }
 0x212   : > { %v2978_v59 = vpop.f32.mrf.mxu0 }
 0x213   : > { %v3019_v4 = vpop.f32.mrf.mxu1 }
 0x24c   : > { %v3055_v11 = vpop.f32.mrf.mxu0 }
 0x24d   : > { %v3096_v2 = vpop.f32.mrf.mxu1  ;;  %v3056_v7 = vadd.f32 %v3055_v11, %v3015_v61 }
 0x24e   : > { %v3057_v12 = vpop.f32.mrf.mxu0 }
 0x24f   : > { %v3098_v14 = vpop.f32.mrf.mxu1  ;;  %v3097_v15 = vadd.f32 %v3096_v2, %v3056_v7  ;;  %v3058_v17 = vadd.f32 %v3057_v12, %v3017_v62 }
 0x250   : > { %v3059_v20 = vpop.f32.mrf.mxu0 }
 0x251   : > { %v3100_v55 = vpop.f32.mrf.mxu1  ;;  %v3127_v21 = vmul.f32 %v3116_v0, %v3097_v15  ;;  %v3099_v46 = vadd.f32 %v3098_v14, %v3058_v17 }
 0x252   : > { %v3060_v50 = vpop.f32.mrf.mxu0 }
 0x253   : > { %v3101_v25 = vpop.f32.mrf.mxu1  ;;  %v3153_v23 = vadd.f32 %v3142_v19, %v3127_v21  ;;  %v3128_v24 = vmul.f32 %v3120_v18, %v3099_v46 }
 0x255   : > { %v3181_v28 = vadd.f32 %v3172_v16, %v3153_v23  ;;  %v3154_v29 = vadd.f32 %v3146_v22, %v3128_v24 }
 0x257   : > { %v3185_v30 = vmax.f32 %v3181_v28, 0.0  ;;  %v3182_v31 = vadd.f32 %v3174_v27, %v3154_v29 }
 0x259   : > { %v3202_v56 = vsel %vm3187_vm3, %v3185_v30, 0.0  ;;  %v3186_v32 = vmax.f32 %v3182_v31, 0.0 }
 0x25a   : > { %v3203_v58 = vrot.slane %v3202_v56, 4 }
 0x25b   : > { %v3209_v42 = vsel %vm3187_vm3, %v3186_v32, 0.0 }
 0x25c   : > { %v3204_v63 = vadd.f32 %v3203_v58, %v3202_v56  ;;  %v3210_v33 = vrot.slane %v3209_v42, 4 }
 0x25e   : > { %v3205_v34 = vrot.slane %v3204_v63, 2  ;;  %v3211_v45 = vadd.f32 %v3210_v33, %v3209_v42 }
 0x260   : > { %v3206_v35 = vadd.f32 %v3205_v34, %v3204_v63  ;;  %v3212_v39 = vrot.slane %v3211_v45, 2 }
 0x262   : > { %v3207_v41 = vrot.slane %v3206_v35, 1  ;;  %v3213_v43 = vadd.f32 %v3212_v39, %v3211_v45 }
 0x264   : > { %v3208_v44 = vadd.f32 %v3207_v41, %v3206_v35  ;;  %v3214_v8 = vrot.slane %v3213_v43, 1 }
 0x266   : > { %v3215_v13 = vadd.f32 %v3214_v8, %v3213_v43  ;;  %v3219_v47 = vmul.f32 0.5, %v3208_v44 }
 0x268   : > { %v3220_v48 = vmul.f32 0.5, %v3215_v13 }
 0x26a   : > { %v3226_v49 = vcombine.low %v3219_v47, %v3220_v48 }
 0x26c   : > { %v3240_v53 = vrot.slane %v3226_v49, %v4501_v51 }
 0x26e   : > { %v3241_v54 = vcombine.low %v3233_v52, %v3240_v53 }
 0x270   : > { %v3248_v26 = vrot.slane %v3241_v54, %v4501_v51 }
 0x272   : > { %3254 = vst.msk [vmem:[%s236_s19] sm:$0xf] %vm3252_vm4, %v3248_v26 }
 0x273 PF: > { %s15_s18 = sadd.s32 1, %s4307_s18  }
 0x274   : > { %p12_p4 = scmp.ge.s32.totalorder %s15_s18, 4  }
 0x276   :  { %14 = sbr.rel (!%p12_p4) target bundleno = 1 (0x1), region = 73 }

</bundles_post_ra>
